<compile_context>
chip_gen: v7x
topology: tpu7x:2x2x1
jax: 0.10.0
libtpu: 0.0.40
codegen_flags: <defaults>
</compile_context>

<pallas_src>
import functools

import jax
import jax.numpy as jnp
from jax.experimental import pallas as pl
from jax.experimental.pallas import tpu as pltpu

FEAT_TEXT = 768                    # BERT last_hidden_state[:, 0] width
FEAT_PIC = 4096                    # VGG16Feature output width
FEAT_CAT = FEAT_TEXT + FEAT_PIC    # 4864
HIDDEN = 4096
NUM_CLASSES = 3
OUT_PAD = 128                      # pad class dim to lane width
BATCH_PAD = 16                     # pad batch to a packed-bf16 sublane multiple
TN_FC1 = 1024                      # fc1 output tile; grid=(4,) -> 2 blocks per v7x TC
N_BLOCKS = HIDDEN // TN_FC1        # 4
VMEM_LIMIT = 40 * 1024 * 1024      # int8 block (4.75 MiB) x2 + bf16 dequant temp + w2


# ---------------------------------------------------------------------------
# Fused fusion-head kernel: fc1 (int8-dequant) + bias + ReLU + fc2 partial logits
# ---------------------------------------------------------------------------
def _fused_head_kernel(x_ref, w1q_ref, s1_ref, b1_ref, w2_ref, o_ref):
    # fc1 block: (B_pad, 4864) @ (4864, TN). Weight streamed from HBM as int8 and
    # dequantized in-register; MXU accumulates in f32.
    w1 = w1q_ref[0].astype(jnp.bfloat16)                                 # (4864, TN)
    acc = jnp.dot(x_ref[...], w1, preferred_element_type=jnp.float32)    # (B_pad, TN) f32
    # Per-output-column scale applied BEFORE the bias (bias is un-scaled f32).
    h = jnp.maximum(acc * s1_ref[...] + b1_ref[...], 0.0)                # (B_pad, TN) f32
    # Fused fc2 partial-logits epilogue: (B_pad, TN) @ (TN, OUT_PAD).
    o_ref[0] = jnp.dot(h.astype(jnp.bfloat16), w2_ref[...],
                       preferred_element_type=jnp.float32)


def _fused_head(x_pad, w1q, s1, b1, w2_pad):
    # x_pad : (B_pad, FEAT_CAT)            bf16
    # w1q   : (N_BLOCKS, FEAT_CAT, TN_FC1) int8   (pre-tiled, contiguous per block)
    # s1    : (1, HIDDEN)                  f32    per-output-column dequant scales
    # b1    : (1, HIDDEN)                  f32
    # w2_pad: (HIDDEN, OUT_PAD)            bf16
    # returns (N_BLOCKS, B_pad, OUT_PAD)   f32 partial logits (sum over axis 0 outside)
    b_pad = x_pad.shape[0]
    flops = 2 * b_pad * FEAT_CAT * HIDDEN + 2 * b_pad * HIDDEN * OUT_PAD
    bytes_accessed = (
        w1q.size                                   # int8 weight stream (dominant)
        + x_pad.size * 2                           # bf16 activations
        + w2_pad.size * 2                          # bf16 fc2 weights
        + (s1.size + b1.size) * 4                  # f32 scales + bias
        + N_BLOCKS * b_pad * OUT_PAD * 4           # f32 partial-logits output
    )
    return pl.pallas_call(
        _fused_head_kernel,
        out_shape=jax.ShapeDtypeStruct((N_BLOCKS, b_pad, OUT_PAD), jnp.float32),
        grid_spec=pltpu.PrefetchScalarGridSpec(
            num_scalar_prefetch=0,
            grid=(N_BLOCKS,),                      # parallel over output columns only
            in_specs=[
                pl.BlockSpec((b_pad, FEAT_CAT), lambda j: (0, 0)),
                pl.BlockSpec((1, FEAT_CAT, TN_FC1), lambda j: (j, 0, 0)),
                pl.BlockSpec((1, TN_FC1), lambda j: (0, j)),
                pl.BlockSpec((1, TN_FC1), lambda j: (0, j)),
                pl.BlockSpec((TN_FC1, OUT_PAD), lambda j: (j, 0)),
            ],
            out_specs=pl.BlockSpec((1, b_pad, OUT_PAD), lambda j: (j, 0, 0)),
        ),
        compiler_params=pltpu.CompilerParams(
            dimension_semantics=("parallel",),
            vmem_limit_bytes=VMEM_LIMIT,
        ),
        cost_estimate=pl.CostEstimate(
            flops=flops, transcendentals=0, bytes_accessed=bytes_accessed),
    )(x_pad, w1q, s1, b1, w2_pad)


# ---------------------------------------------------------------------------
# Backbone stand-ins (glue; external pretrained modules are not available)
# ---------------------------------------------------------------------------
def _bert_cls_stub(params, input_ids, token_type_ids, attention_mask):
    # TODO(synk): real pretrained BERT encoder (load_bert) is external; deterministic
    # embedding + masked-mean stand-in producing the (B, 768) CLS vector.
    emb = params["tok_emb"][input_ids] + params["type_emb"][token_type_ids]  # (B,S,768)
    mask = attention_mask[..., None].astype(jnp.float32)
    return (emb * mask).sum(axis=1) / jnp.maximum(mask.sum(axis=1), 1.0)     # (B,768)


def _vgg_feature_stub(params, pic):
    # layout: pic is NCHW (PyTorch convention).
    # TODO(synk): full VGG16 conv/fc stack is external; stand-in = global avg pool
    # over (H, W) followed by a linear projection to 4096 + ReLU.
    pooled = pic.mean(axis=(2, 3))                                           # (B, C)
    return jax.nn.relu(pooled @ params["vgg_w"] + params["vgg_b"])           # (B,4096)


# ---------------------------------------------------------------------------
# Full forward (fusion_level == 'feature')
# ---------------------------------------------------------------------------
@functools.partial(jax.jit, static_argnames=("mode",))
def mutil_model_classifier(params, pic, input_ids, token_type_ids,
                           attention_mask, mode="all"):
    batch = pic.shape[0]
    if mode == "all":
        bert_feat = _bert_cls_stub(params, input_ids, token_type_ids, attention_mask)
        vgg_feat = _vgg_feature_stub(params, pic)
    elif mode == "picture":
        bert_feat = jnp.zeros((batch, FEAT_TEXT), jnp.float32)
        vgg_feat = _vgg_feature_stub(params, pic)
    elif mode == "text":
        bert_feat = _bert_cls_stub(params, input_ids, token_type_ids, attention_mask)
        vgg_feat = jnp.zeros((batch, FEAT_PIC), jnp.float32)
    else:
        raise ValueError(mode)

    # torch.cat((bert_out.last_hidden_state[:, 0], vgg_feature), dim=1) in bf16,
    # batch padded to a packed-bf16 sublane multiple (never truncates).
    x = jnp.concatenate([bert_feat.astype(jnp.bfloat16),
                         vgg_feat.astype(jnp.bfloat16)], axis=1)        # (B, 4864) bf16
    b_pad = -(-batch // BATCH_PAD) * BATCH_PAD
    x_pad = jnp.pad(x, ((0, b_pad - batch), (0, 0)))                    # (b_pad, 4864)

    # Fused fc1 + ReLU + fc2 partial logits; padded rows are sliced away below.
    partials = _fused_head(x_pad, params["w1_q"], params["w1_scale"],
                           params["b1"], params["w2_pad"])              # (NB, b_pad, 128)
    logits = partials.sum(axis=0)[:batch, :NUM_CLASSES] + params["b2"]  # (B, 3)
    return logits


# ---------------------------------------------------------------------------
# Deterministic parameter construction
# ---------------------------------------------------------------------------
def init_params(key, vocab_size=100, pic_channels=3):
    ks = jax.random.split(key, 8)
    s = 0.02

    # fc1 weight (nn.Linear(4864, 4096)) stored transposed as (in, out), then
    # symmetric per-output-column int8 quantization; scale applied in-kernel before bias.
    w1 = jax.random.normal(ks[3], (FEAT_CAT, HIDDEN), jnp.float32) * s
    w1_scale = jnp.maximum(jnp.max(jnp.abs(w1), axis=0, keepdims=True), 1e-8) / 127.0
    w1_q = jnp.clip(jnp.round(w1 / w1_scale), -127, 127).astype(jnp.int8)
    # Pre-tile so each grid block is one contiguous (FEAT_CAT, TN_FC1) int8 region.
    w1_q_tiled = w1_q.reshape(FEAT_CAT, N_BLOCKS, TN_FC1).transpose(1, 0, 2)

    w2 = jax.random.normal(ks[4], (HIDDEN, NUM_CLASSES), jnp.float32) * s
    b2 = jax.random.normal(ks[5], (NUM_CLASSES,), jnp.float32) * s

    return {
        # stand-in backbones (f32)
        "tok_emb": jax.random.normal(ks[0], (vocab_size, FEAT_TEXT), jnp.float32) * s,
        "type_emb": jax.random.normal(ks[1], (2, FEAT_TEXT), jnp.float32) * s,
        "vgg_w": jax.random.normal(ks[2], (pic_channels, FEAT_PIC), jnp.float32) * s,
        "vgg_b": jnp.zeros((FEAT_PIC,), jnp.float32),
        # fusion head (nn.Linear(4864, 4096), nn.Linear(4096, 3))
        "w1_q": w1_q_tiled,                                   # (NB, 4864, TN) int8
        "w1_scale": w1_scale,                                 # (1, 4096) f32
        "b1": (jax.random.normal(ks[6], (HIDDEN,), jnp.float32) * s).reshape(1, HIDDEN),
        "w2_pad": (jnp.zeros((HIDDEN, OUT_PAD), jnp.float32)
                   .at[:, :NUM_CLASSES].set(w2)).astype(jnp.bfloat16),
        "b2": b2,                                             # (3,) f32, added in wrapper
    }


if __name__ == "__main__":
    key = jax.random.PRNGKey(0)
    k_pic, k_ids, k_mask, k_params = jax.random.split(key, 4)

    B, C, H, W, S = 2, 3, 16, 16, 8
    pic = jax.random.normal(k_pic, (B, C, H, W), jnp.float32)            # NCHW
    input_ids = jax.random.randint(k_ids, (B, S), 0, 100, jnp.int32)
    token_type_ids = jnp.zeros((B, S), jnp.int32)
    attention_mask = jnp.ones((B, S), jnp.int32)

    params = init_params(k_params, vocab_size=100, pic_channels=C)

    out = mutil_model_classifier(params, pic, input_ids, token_type_ids,
                                 attention_mask, mode="all")
    out = jax.block_until_ready(out)
    assert out.shape == (B, NUM_CLASSES), out.shape
    assert bool(jnp.all(jnp.isfinite(out))), "non-finite logits"
    print("KERNEL_OK")
</pallas_src>

<mosaic_0001>
module attributes {stable_mosaic.version = 11 : i64} {
  func.func @_fused_head_kernel(%arg0: i32, %arg1: memref<16x4864xbf16, #tpu.memory_space<vmem>>, %arg2: memref<1x4864x1024xi8, #tpu.memory_space<vmem>>, %arg3: memref<1x1024xf32, #tpu.memory_space<vmem>>, %arg4: memref<1x1024xf32, #tpu.memory_space<vmem>>, %arg5: memref<1024x128xbf16, #tpu.memory_space<vmem>>, %arg6: memref<1x16x128xf32, #tpu.memory_space<vmem>>) attributes {dimension_semantics = [#tpu.dimension_semantics<parallel>], iteration_bounds = array<i64: 4>, scalar_prefetch = 0 : i64, scratch_operands = 0 : i64, tpu.core_type = #tpu.core_type<tc>, window_params = [{pipeline_mode = #tpu.pipeline_mode<synchronous>, transform_indices = @transform_0, window_bounds = array<i64: 16, 4864>}, {transform_indices = @transform_1, window_bounds = array<i64: 1, 4864, 1024>}, {transform_indices = @transform_2, window_bounds = array<i64: 1, 1024>}, {transform_indices = @transform_3, window_bounds = array<i64: 1, 1024>}, {transform_indices = @transform_4, window_bounds = array<i64: 1024, 128>}, {transform_indices = @transform_5, window_bounds = array<i64: 1, 16, 128>}]} {
    %c0 = arith.constant 0 : index
    %c0_0 = arith.constant 0 : index
    %c0_1 = arith.constant 0 : index
    %0 = vector.load %arg2[%c0, %c0_0, %c0_1] : memref<1x4864x1024xi8, #tpu.memory_space<vmem>>, vector<1x4864x1024xi8>
    %1 = vector.shape_cast %0 : vector<1x4864x1024xi8> to vector<4864x1024xi8>
    %2 = arith.sitofp %1 : vector<4864x1024xi8> to vector<4864x1024xbf16>
    %c0_2 = arith.constant 0 : index
    %c0_3 = arith.constant 0 : index
    %3 = vector.load %arg1[%c0_2, %c0_3] : memref<16x4864xbf16, #tpu.memory_space<vmem>>, vector<16x4864xbf16>
    %cst = arith.constant dense<0.000000e+00> : vector<16x1024xf32>
    %4 = tpu.matmul %3, %2, %cst {dimension_numbers = #tpu.dot_dimension_numbers<[1], [0], [0], [1], [0, 0, 1, 1], [], []>} : vector<16x4864xbf16>, vector<4864x1024xbf16>, vector<16x1024xf32> -> vector<16x1024xf32>
    %c0_4 = arith.constant 0 : index
    %c0_5 = arith.constant 0 : index
    %5 = vector.load %arg3[%c0_4, %c0_5] : memref<1x1024xf32, #tpu.memory_space<vmem>>, vector<1x1024xf32>
    %6 = vector.broadcast %5 : vector<1x1024xf32> to vector<16x1024xf32>
    %7 = arith.mulf %4, %6 : vector<16x1024xf32>
    %c0_6 = arith.constant 0 : index
    %c0_7 = arith.constant 0 : index
    %8 = vector.load %arg4[%c0_6, %c0_7] : memref<1x1024xf32, #tpu.memory_space<vmem>>, vector<1x1024xf32>
    %9 = vector.broadcast %8 : vector<1x1024xf32> to vector<16x1024xf32>
    %10 = arith.addf %7, %9 : vector<16x1024xf32>
    %cst_8 = arith.constant 0.000000e+00 : f32
    %11 = vector.broadcast %cst_8 : f32 to vector<16x1024xf32>
    %12 = arith.maximumf %10, %11 : vector<16x1024xf32>
    %13 = arith.truncf %12 : vector<16x1024xf32> to vector<16x1024xbf16>
    %c0_9 = arith.constant 0 : index
    %c0_10 = arith.constant 0 : index
    %14 = vector.load %arg5[%c0_9, %c0_10] : memref<1024x128xbf16, #tpu.memory_space<vmem>>, vector<1024x128xbf16>
    %cst_11 = arith.constant dense<0.000000e+00> : vector<16x128xf32>
    %15 = tpu.matmul %13, %14, %cst_11 {dimension_numbers = #tpu.dot_dimension_numbers<[1], [0], [0], [1], [0, 0, 1, 1], [], []>} : vector<16x1024xbf16>, vector<1024x128xbf16>, vector<16x128xf32> -> vector<16x128xf32>
    %c0_12 = arith.constant 0 : index
    %c0_13 = arith.constant 0 : index
    %c0_14 = arith.constant 0 : index
    %16 = vector.load %arg6[%c0_12, %c0_13, %c0_14] : memref<1x16x128xf32, #tpu.memory_space<vmem>>, vector<1x16x128xf32>
    %17 = vector.shape_cast %16 : vector<1x16x128xf32> to vector<16x128xf32>
    %18 = vector.shape_cast %15 : vector<16x128xf32> to vector<1x16x128xf32>
    tpu.vector_store %arg6[%c0_12, %c0_13, %c0_14], %18 {strides = array<i32>} : memref<1x16x128xf32, #tpu.memory_space<vmem>>, vector<1x16x128xf32>,
    return
  }
  func.func @transform_0(%arg0: i32) -> (i32, i32) {
    %c0_i32 = arith.constant 0 : i32
    %c0_i32_0 = arith.constant 0 : i32
    %c0_i32_1 = arith.constant 0 : i32
    return %c0_i32, %c0_i32_0 : i32, i32
  }
  func.func @transform_1(%arg0: i32) -> (i32, i32, i32) {
    %c0_i32 = arith.constant 0 : i32
    %c0_i32_0 = arith.constant 0 : i32
    %c0_i32_1 = arith.constant 0 : i32
    return %arg0, %c0_i32, %c0_i32_0 : i32, i32, i32
  }
  func.func @transform_2(%arg0: i32) -> (i32, i32) {
    %c0_i32 = arith.constant 0 : i32
    %c0_i32_0 = arith.constant 0 : i32
    return %c0_i32, %arg0 : i32, i32
  }
  func.func @transform_3(%arg0: i32) -> (i32, i32) {
    %c0_i32 = arith.constant 0 : i32
    %c0_i32_0 = arith.constant 0 : i32
    return %c0_i32, %arg0 : i32, i32
  }
  func.func @transform_4(%arg0: i32) -> (i32, i32) {
    %c0_i32 = arith.constant 0 : i32
    %c0_i32_0 = arith.constant 0 : i32
    return %arg0, %c0_i32 : i32, i32
  }
  func.func @transform_5(%arg0: i32) -> (i32, i32, i32) {
    %c0_i32 = arith.constant 0 : i32
    %c0_i32_0 = arith.constant 0 : i32
    %c0_i32_1 = arith.constant 0 : i32
    return %arg0, %c0_i32, %c0_i32_0 : i32, i32, i32
  }
}

</mosaic_0001>

<bundles_post_ra>
// kernel: mutil_model_classifier.1
= control target key start
LH: loop header
LB: loop body
LE: loop exit
PB: predicated region body
PF: predicated region fallthrough
CT: control target
= control target key end

     0   :  { %s11165_s0 = inlined_call_operand.vmem [shape: bf16[16,4864], index: 0, kind: input, shape index: {}]   ;;  %s11166_s1 = inlined_call_operand.hbm [shape: s8[4,4864,1024], index: 1, kind: input, shape index: {}]   ;;  %s11167_s2 = inlined_call_operand.hbm [shape: f32[1,4096], index: 2, kind: input, shape index: {}]   ;;  %s11168_s3 = inlined_call_operand.hbm [shape: f32[1,4096], index: 3, kind: input, shape index: {}]   ;;  %s11169_s4 = inlined_call_operand.hbm [shape: bf16[4096,128], index: 4, kind: input, shape index: {}]   ;;  %s11170_s5 = inlined_call_operand.vmem [shape: f32[4,16,128], index: 5, kind: output, shape index: {}]  }
   0x1   :  { %11174 = sst [smem:[#allocation13_spill]] %s11166_s1 }
   0x2   :  { %11175 = sst [smem:[#allocation14_spill]] %s11167_s2 }
   0x3   :  { %10 = vsyncpa [#allocation3], 0 }
   0x4   :  { %12 = vsyncpa [#allocation3 + $0x1], 0 }
   0x5   :  { %13 = vsyncpa [#allocation5], 0 }
   0x6   :  { %15 = vsyncpa [#allocation5 + $0x1], 0 }
   0x7   :  { %16 = vsyncpa [#allocation8], 0 }
   0x8   :  { %18 = vsyncpa [#allocation8 + $0x1], 0  ;;  %s9382_s18 = smov 0   ;;  %s9384_s19 = smov 0  }
   0x9   :  { %s9386_s20 = smov 0   ;;  %s9388_s21 = smov 0  }
   0xa LB: > { %s9401_s22 = sadd.s32 4294967295, %s9343_s21   ;;  %s9404_s23 = sadd.s32 1, %s9343_s21   ;;  %s9343_s21 = sphi %s9388_s21, %s11190_s21   ;;  %s9339_s20 = sphi %s9386_s20, %s11189_s20   ;;  %s9335_s19 = sphi %s9384_s19, %s11188_s19   ;;  %s9331_s18 = sphi %s9382_s18, %s11187_s18  }
   0xb   : > { %s49_s24 = ssub.s32 %s9343_s21, %s9404_s23  ;;  %s52_s25 = sadd.s32 1, %s9339_s20 }
   0xc   : > { %p50_p0 = scmp.eq.s32.totalorder %s49_s24, 0  ;;  %p59_p1 = scmp.ne.s32.totalorder %s9339_s20, %s9335_s19 }
   0xd   : > { %p60_p2 = scmp.eq.s32.totalorder %s9343_s21, 0  ;;  %p65_p3 = scmp.ne.s32.totalorder %s9335_s19, %s9331_s18 }
   0xe   : > { %s9414_s26 = scalar_select %p50_p0, %s9339_s20, %s52_s25  }
   0xf   : > { %p61_p4 = por %p60_p2, %p59_p1  ;;  %p66_p5 = scmp.eq.s32.totalorder %s9401_s22, 0 }
  0x10   : > { %11176 = sst [smem:[#allocation12_spill]] %s9414_s26  ;;  %p8984_p6 = scmp.lt.s32.totalorder %s9343_s21, 4 }
  0x11   : > { %p9418_p7 = por %p66_p5, %p65_p3  ;;  %s9423_s28 = sand.u32 1, %s9339_s20  }
  0x12   : > { %p9425_p8 = pnand %p8984_p6, %p61_p4  ;;  %s217_s30 = sand.u32 1, %s9343_s21  }
  0x13   : > { %s11177_s27 = scalar_select %p9418_p7, 1, 0 }
  0x14   : > { %s11178_s29 = scalar_select %p9425_p8, 1, 0 }
  0x15   : > { %s8461_s6 = sshll.u32 %s9423_s28, 3  ;;  %s8580_s7 = sshll.u32 %s9343_s21, 7 }
  0x16   : > { %s221_s8 = scalar_lea.vmem [#allocation4], %s8461_s6  ;;  %s11179_s2 = sld [smem:[#allocation14_spill]] }
  0x17   : > { %s229_s9 = sshll.u32 %s221_s8, 4  ;;  %s9443_s13 = scalar_lea.sflag [#allocation5], %s217_s30  ;;  %s9441_s9 = int_to_ptr.vmem [resolvable:$true] %s229_s9 }
  0x18   : > { %p9449_p10 = pneg %p9425_p8 }
  0x1c   : > { %s9439_s12 = scalar_lea.hbm %s11179_s2, %s8580_s7  ;;  %s9186_s18 = scalar_lea.hbm %s11179_s2, 512 }
  0x1d   : > { %s9181_s14 = scalar_lea.hbm %s9439_s12, 128  ;;  %p9187_p13 = scmp.lt.u32.totalorder %s9439_s12, %s11179_s2 }
  0x1e   : > { %p9182_p9 = scmp.ne.s32.totalorder %s9439_s12, %s9181_s14  ;;  %p9188_p0 = scmp.lt.u32.totalorder %s9186_s18, %s9181_s14 }
  0x1f   : > { %p9190_p2 = scmp.lt.u32.totalorder %s9181_s14, %s9439_s12 }
  0x20   : > { %p9184_p11 = pnand %p9449_p10, %p9182_p9  ;;  %p9189_p1 = por %p9188_p0, %p9187_p13 }
  0x22   : > { %p9185_p12 = pneg %p9184_p11  ;;  %p9191_p3 = por %p9190_p2, %p9189_p1 }
  0x24   : > { %p9192_p4 = pnand %p9191_p3, %p9185_p12 }
  0x26   : > { %9195 = shalt.err (!%p9192_p4)
}
  0x27   : > { %s9196_s30 = scalar_lea.vmem %s9441_s9, 128  ;;  %s9345_s8 = smov [#allocation4]  }
  0x28   : > { %p9197_p5 = scmp.ne.s32.totalorder %s9441_s9, %s9196_s30  ;;  %s9201_s10 = sshll.u32 %s9345_s8, 4  ;;  %s9202_s10 = int_to_ptr.vmem [resolvable:$false] %s9201_s10 }
  0x29   : > { %s9203_s11 = scalar_lea.vmem %s9202_s10, 256  ;;  %p9204_p11 = scmp.lt.s32.totalorder %s9441_s9, %s9202_s10 }
  0x2a   : > { %p9199_p6 = pnand %p9197_p5, %p9449_p10  ;;  %p9205_p7 = scmp.lt.s32.totalorder %s9203_s11, %s9196_s30 }
  0x2c   : > { %p9200_p9 = pneg %p9199_p6  ;;  %p9206_p13 = por %p9205_p7, %p9204_p11 }
  0x2e   : > { %p9207_p0 = pnand %p9206_p13, %p9200_p9 }
  0x30   : > { %9210 = shalt.err (!%p9207_p0)
}
  0x31   : > { %8977 = dma.hbm_to_vmem [thread:$0]  (!%p9425_p8), %s9439_s12, 128, %s9441_s9, %s9443_s13  }
  0x32   : > { %s9478_s17 = scalar_lea.hbm %s11168_s3, %s8580_s7  ;;  %p8470_p7 = scmp.ge.s32.totalorder %s9343_s21, 1 }
  0x33   : > { %p274_p12 = scmp.lt.s32.totalorder %s9343_s21, 5  ;;  %s8960_s18 = smul.u32 9728, %s9423_s28 }
  0x34   : > { %s8961_s25 = smul.u32 155648, %s9343_s21  ;;  %s11182_s1 = sld [smem:[#allocation13_spill]] }
  0x35   : > { %p9483_p1 = pnand %p8470_p7, %p274_p12  ;;  %s200_s9 = scalar_lea.vmem [#allocation2], %s8960_s18 }
  0x36   : > { %s207_s7 = sshll.u32 %s200_s9, 4  ;;  %s197_s12 = scalar_lea.sflag [#allocation3], %s9423_s28  ;;  %s9493_s7 = int_to_ptr.vmem [resolvable:$true] %s207_s7 }
  0x37   : > { %s11181_s24 = scalar_select %p9483_p1, 1, 0 }
  0x3a   : > { %s9491_s10 = scalar_lea.hbm %s11182_s1, %s8961_s25  ;;  %s9216_s30 = scalar_lea.hbm %s11182_s1, 622592 }
  0x3b   : > { %s9211_s11 = scalar_lea.hbm %s9491_s10, 155648  ;;  %p9217_p5 = scmp.lt.u32.totalorder %s9491_s10, %s11182_s1 }
  0x3c   : > { %p9212_p2 = scmp.ne.s32.totalorder %s9491_s10, %s9211_s11  ;;  %p9218_p6 = scmp.lt.u32.totalorder %s9216_s30, %s9211_s11 }
  0x3d   : > { %p9220_p11 = scmp.lt.u32.totalorder %s9211_s11, %s9491_s10 }
  0x3e   : > { %p9214_p3 = pnand %p9212_p2, %p9449_p10  ;;  %p9219_p9 = por %p9218_p6, %p9217_p5 }
  0x40   : > { %p9215_p4 = pneg %p9214_p3  ;;  %p9221_p13 = por %p9220_p11, %p9219_p9 }
  0x42   : > { %p9222_p0 = pnand %p9221_p13, %p9215_p4 }
  0x44   : > { %9225 = shalt.err (!%p9222_p0)
}
  0x45   : > { %s9226_s18 = scalar_lea.vmem %s9493_s7, 155648  ;;  %s9346_s9 = smov [#allocation2]  }
  0x46   : > { %p9227_p7 = scmp.ne.s32.totalorder %s9493_s7, %s9226_s18  ;;  %s9231_s14 = sshll.u32 %s9346_s9, 4  ;;  %s9232_s14 = int_to_ptr.vmem [resolvable:$false] %s9231_s14 }
  0x47   : > { %s9233_s16 = scalar_lea.vmem %s9232_s14, 311296  ;;  %p9234_p3 = scmp.lt.s32.totalorder %s9493_s7, %s9232_s14 }
  0x48   : > { %p9229_p12 = pnand %p9227_p7, %p9449_p10  ;;  %p9235_p1 = scmp.lt.s32.totalorder %s9233_s16, %s9226_s18 }
  0x4a   : > { %p9230_p2 = pneg %p9229_p12  ;;  %p9236_p5 = por %p9235_p1, %p9234_p3 }
  0x4c   : > { %p9237_p6 = pnand %p9236_p5, %p9230_p2 }
  0x4e   : > { %9240 = shalt.err (!%p9237_p6)
}
  0x4f   : > { %s9347_s11 = smov 1024   ;;  %s9348_s30 = smov 64  }
  0x50   : > { %8974 = dma.hbm_to_vmem [thread:$0]  (!%p9425_p8), %s9491_s10, 155648, %s9493_s7, %s197_s12, %s9347_s11, %s9347_s11, %s9348_s30  }
  0x51   : > { %s240_s25 = scalar_lea.vmem [#allocation6], %s8461_s6  ;;  %s8467_s18 = sshll.u32 %s9423_s28, 9 }
  0x52   : > { %s248_s8 = sshll.u32 %s240_s25, 4  ;;  %s9241_s9 = scalar_lea.hbm %s9478_s17, 128  ;;  %s249_s8 = int_to_ptr.vmem [resolvable:$true] %s248_s8 }
  0x53   : > { %p9242_p1 = scmp.ne.s32.totalorder %s9478_s17, %s9241_s9  ;;  %s9246_s1 = scalar_lea.hbm %s11168_s3, 512 }
  0x54   : > { %p9247_p11 = scmp.lt.u32.totalorder %s9478_s17, %s11168_s3  ;;  %p9248_p13 = scmp.lt.u32.totalorder %s9246_s1, %s9241_s9 }
  0x55   : > { %p9244_p4 = pnand %p9242_p1, %p9449_p10  ;;  %p9250_p7 = scmp.lt.u32.totalorder %s9241_s9, %s9478_s17 }
  0x56   : > { %p9249_p0 = por %p9248_p13, %p9247_p11 }
  0x57   : > { %p9245_p9 = pneg %p9244_p4 }
  0x58   : > { %p9251_p12 = por %p9250_p7, %p9249_p0 }
  0x5a   : > { %p9252_p2 = pnand %p9251_p12, %p9245_p9 }
  0x5c   : > { %9255 = shalt.err (!%p9252_p2)
}
  0x5d   : > { %s9256_s6 = scalar_lea.vmem %s249_s8, 128  ;;  %s9349_s10 = smov [#allocation6]  }
  0x5e   : > { %p9257_p3 = scmp.ne.s32.totalorder %s249_s8, %s9256_s6  ;;  %s9261_s7 = sshll.u32 %s9349_s10, 4  ;;  %s9262_s7 = int_to_ptr.vmem [resolvable:$false] %s9261_s7 }
  0x5f   : > { %s9263_s12 = scalar_lea.vmem %s9262_s7, 256  ;;  %p9264_p1 = scmp.lt.s32.totalorder %s249_s8, %s9262_s7 }
  0x60   : > { %p9259_p5 = pnand %p9257_p3, %p9449_p10  ;;  %p9265_p4 = scmp.lt.s32.totalorder %s9263_s12, %s9256_s6 }
  0x62   : > { %p9260_p6 = pneg %p9259_p5  ;;  %p9266_p8 = por %p9265_p4, %p9264_p1 }
  0x64   : > { %p9267_p11 = pnand %p9266_p8, %p9260_p6 }
  0x66   : > { %9270 = shalt.err (!%p9267_p11)
}
  0x67   : > { %p11183_p13 = scmp.ne.s32.totalorder %s11178_s29, 0  ;;  %s8582_s1 = sshll.u32 %s9343_s21, 13 }
  0x68   : > { %s9545_s11 = scalar_lea.hbm %s11169_s4, %s8582_s1  ;;  %s259_s25 = scalar_lea.vmem [#allocation7], %s8467_s18 }
  0x69   : > { %8980 = dma.hbm_to_vmem [thread:$0]  (!%p11183_p13), %s9478_s17, 128, %s249_s8, %s9443_s13  }
  0x6a   : > { %s266_s9 = sshll.u32 %s259_s25, 4  ;;  %s256_s14 = scalar_lea.sflag [#allocation8], %s9423_s28  ;;  %s9549_s9 = int_to_ptr.vmem [resolvable:$true] %s266_s9 }
  0x6b   : > { %s9271_s16 = scalar_lea.hbm %s9545_s11, 8192  ;;  %s9276_s17 = scalar_lea.hbm %s11169_s4, 32768 }
  0x6c   : > { %p9272_p8 = scmp.ne.s32.totalorder %s9545_s11, %s9271_s16  ;;  %p9277_p7 = scmp.lt.u32.totalorder %s9545_s11, %s11169_s4 }
  0x6d   : > { %p9278_p12 = scmp.lt.u32.totalorder %s9276_s17, %s9271_s16  ;;  %p9280_p3 = scmp.lt.u32.totalorder %s9271_s16, %s9545_s11 }
  0x6e   : > { %p9274_p9 = pnand %p9272_p8, %p9449_p10 }
  0x6f   : > { %p9279_p2 = por %p9278_p12, %p9277_p7 }
  0x70   : > { %p9275_p0 = pneg %p9274_p9 }
  0x71   : > { %p9281_p5 = por %p9280_p3, %p9279_p2 }
  0x73   : > { %p9282_p6 = pnand %p9281_p5, %p9275_p0 }
  0x75   : > { %9285 = shalt.err (!%p9282_p6)
}
  0x76   : > { %s9286_s18 = scalar_lea.vmem %s9549_s9, 8192  ;;  %s9350_s10 = smov [#allocation7]  }
  0x77   : > { %p9287_p1 = scmp.ne.s32.totalorder %s9549_s9, %s9286_s18  ;;  %s9291_s7 = sshll.u32 %s9350_s10, 4  ;;  %s9292_s7 = int_to_ptr.vmem [resolvable:$false] %s9291_s7 }
  0x78   : > { %s9293_s12 = scalar_lea.vmem %s9292_s7, 16384  ;;  %p9294_p8 = scmp.lt.s32.totalorder %s9549_s9, %s9292_s7 }
  0x79   : > { %p9289_p4 = pnand %p9287_p1, %p9449_p10  ;;  %p9295_p9 = scmp.lt.s32.totalorder %s9293_s12, %s9286_s18 }
  0x7b   : > { %p9290_p11 = pneg %p9289_p4  ;;  %p9296_p7 = por %p9295_p9, %p9294_p8 }
  0x7d   : > { %p9297_p12 = pnand %p9296_p7, %p9290_p11 }
  0x7f   : > { %9300 = shalt.err (!%p9297_p12)
}
  0x80   : > { %s9351_s1 = smov 4   ;;  %p11184_p10 = scmp.ne.s32.totalorder %s11181_s24, 0 }
  0x81   : > { %8983 = dma.hbm_to_vmem [thread:$0]  (!%p11183_p13), %s9545_s11, 8192, %s9549_s9, %s256_s14, %s9348_s30, %s9348_s30, %s9351_s1  }
  0x82   : > { %278 = sbr.rel (%p11184_p10) target bundleno = 3025 (0xbd1), region = 40  ;;  %s280_s15 = sand.u32 (!%p11184_p10), 1, %s9335_s19  }
  0x83   : > { %s8962_s2 = smul.u32 (!%p11184_p10), 9728, %s280_s15  ;;  %s281_s26 = scalar_lea.sflag (!%p11184_p10), [#allocation3], %s280_s15 }
  0x84   : > { %p11185_p0 = scmp.ne.s32.totalorder (!%p11184_p10), %s11177_s27, 0 }
  0x85   : > { %s9580_s25 = scalar_lea.vmem (!%p11184_p10), [#allocation2], %s8962_s2 }
  0x89   : > { %9318 = dma.done.wait (%p11185_p0), %s281_s26, 155648  }
  0x8a   : > { %9320 = vsyncadd (%p11185_p0), %s281_s26, 4294811648  ;;  %s289_s28 = sand.u32 1, %s9401_s22   ;;  %s8471_s29 = sshll.u32 %s280_s15, 3 }
  0x8b   : > { %s290_s30 = scalar_lea.sflag [#allocation5], %s289_s28  ;;  %s9587_s11 = scalar_lea.vmem [#allocation4], %s8471_s29 }
  0x8c   : > { %9322 = dma.done.wait (%p11185_p0), %s290_s30, 256  }
  0x8d   : > { %9324 = vsyncadd (%p11185_p0), %s290_s30, 4294967040  ;;  %s8473_s24 = sshll.u32 %s280_s15, 9  ;;  %s9593_s9 = scalar_lea.vmem [#allocation6], %s8471_s29 }
  0x8e   : > { %s308_s14 = scalar_lea.sflag [#allocation8], %s280_s15  ;;  %s9595_s16 = scalar_lea.vmem [#allocation7], %s8473_s24 }
  0x8f   : > { %9326 = dma.done.wait (%p11185_p0), %s308_s14, 8192  }
  0x90   : > { %9328 = vsyncadd (%p11185_p0), %s308_s14, 4294959104  ;;  %v363_v0 = vld [vmem:[%s9580_s25 + $0x8] sm:$0xff]  ;;  %v365_v1 = vld [vmem:[%s9580_s25 + $0x18] sm:$0xff]  ;;  %p356_p13 = scmp.lt.s32.totalorder %s9401_s22, 3 }
  0x91   : > { %v362_v2 = vld [vmem:[%s9580_s25] sm:$0xff]  ;;  %v1579_v3 = vunpack.c.l.s8.bf16 %v363_v0  ;;  %v1587_v4 = vunpack.c.h.s8.bf16 %v363_v0  ;;  %v1581_v5 = vunpack.c.l.s8.bf16 %v365_v1  ;;  %v1589_v6 = vunpack.c.h.s8.bf16 %v365_v1  ;;  %v364_v7 = vld [vmem:[%s9580_s25 + $0x10] sm:$0xff]  ;;  %v371_v10 = vld [vmem:[%s9580_s25 + $0x48] sm:$0xff] }
  0x92   : > { %v1578_v8 = vunpack.c.l.s8.bf16 %v362_v2  ;;  %v1580_v9 = vunpack.c.l.s8.bf16 %v364_v7  ;;  %v373_v11 = vld [vmem:[%s9580_s25 + $0x58] sm:$0xff]  ;;  %v1586_v12 = vunpack.c.h.s8.bf16 %v362_v2  ;;  %v1588_v13 = vunpack.c.h.s8.bf16 %v364_v7  ;;  %v370_v16 = vld [vmem:[%s9580_s25 + $0x40] sm:$0xff]  ;;  %v372_v17 = vld [vmem:[%s9580_s25 + $0x50] sm:$0xff]  ;;  %s11192_s22 = smov (!%p356_p13, %s9401_s22), 3 }
  0x93   : > { %4238 = vmatprep.subr.bf16.mxu0 %v1579_v3  ;;  %5055 = vmatprep.subr.bf16.mxu1 %v1581_v5  ;;  %v1595_v14 = vunpack.c.l.s8.bf16 %v371_v10  ;;  %v1597_v15 = vunpack.c.l.s8.bf16 %v373_v11  ;;  %v1594_v18 = vunpack.c.l.s8.bf16 %v370_v16  ;;  %v1596_v19 = vunpack.c.l.s8.bf16 %v372_v17  ;;  %v379_v22 = vld [vmem:[%s9580_s25 + $0x88] sm:$0xff]  ;;  %v381_v23 = vld [vmem:[%s9580_s25 + $0x98] sm:$0xff]  ;;  %v378_v29 = vld [vmem:[%s9580_s25 + $0x80] sm:$0xff] }
  0x94   : > { %4239 = vmatpush1.bf16.msra.mxu0 %v1578_v8  ;;  %5056 = vmatpush1.bf16.msra.mxu1 %v1580_v9  ;;  %v1603_v20 = vunpack.c.h.s8.bf16 %v371_v10  ;;  %v1605_v21 = vunpack.c.h.s8.bf16 %v373_v11  ;;  %v9020_v24 = vld [vmem:[%s11165_s0 + $0x4] ss:$152 sps:$4 sm:$0xff]   ;;  %v1602_v25 = vunpack.c.h.s8.bf16 %v370_v16  ;;  %v1604_v26 = vunpack.c.h.s8.bf16 %v372_v17  ;;  %v380_v30 = vld [vmem:[%s9580_s25 + $0x90] sm:$0xff]  ;;  %v387_v35 = vld [vmem:[%s9580_s25 + $0xc8] sm:$0xff] }
  0x95   : > { %4240 = vmatprep.subr.bf16.mxu0 %v1587_v4  ;;  %5057 = vmatprep.subr.bf16.mxu1 %v1589_v6  ;;  %v1611_v27 = vunpack.c.l.s8.bf16 %v379_v22  ;;  %v1613_v28 = vunpack.c.l.s8.bf16 %v381_v23  ;;  %v1610_v31 = vunpack.c.l.s8.bf16 %v378_v29  ;;  %v1612_v32 = vunpack.c.l.s8.bf16 %v380_v30  ;;  %v389_v36 = vld [vmem:[%s9580_s25 + $0xd8] sm:$0xff]  ;;  %v386_v41 = vld [vmem:[%s9580_s25 + $0xc0] sm:$0xff]  ;;  %v388_v42 = vld [vmem:[%s9580_s25 + $0xd0] sm:$0xff] }
  0x96   : > { %4270 = vmatprep.mubr.bf16.mxu0 %v9020_v24  ;;  %5087 = vmatprep.mubr.bf16.mxu1 %v9020_v24  ;;  %v1619_v33 = vunpack.c.h.s8.bf16 %v379_v22  ;;  %v1621_v34 = vunpack.c.h.s8.bf16 %v381_v23  ;;  %v1618_v37 = vunpack.c.h.s8.bf16 %v378_v29  ;;  %v1620_v38 = vunpack.c.h.s8.bf16 %v380_v30  ;;  %v395_v47 = vld [vmem:[%s9580_s25 + $0x108] sm:$0xff]  ;;  %v397_v48 = vld [vmem:[%s9580_s25 + $0x118] sm:$0xff]  ;;  %v394_v51 = vld [vmem:[%s9580_s25 + $0x100] sm:$0xff] }
  0x97   : > { %v1627_v39 = vunpack.c.l.s8.bf16 %v387_v35  ;;  %v1629_v40 = vunpack.c.l.s8.bf16 %v389_v36  ;;  %v1626_v43 = vunpack.c.l.s8.bf16 %v386_v41  ;;  %v1628_v44 = vunpack.c.l.s8.bf16 %v388_v42  ;;  %v396_v54 = vld [vmem:[%s9580_s25 + $0x110] sm:$0xff]  ;;  %v403_v59 = vld [vmem:[%s9580_s25 + $0x148] sm:$0xff]  ;;  %v405_v60 = vld [vmem:[%s9580_s25 + $0x158] sm:$0xff] }
  0x98   : > { %4241 = vmatpush1.bf16.msra.mxu0 %v1586_v12  ;;  %5058 = vmatpush1.bf16.msra.mxu1 %v1588_v13  ;;  %v1635_v45 = vunpack.c.h.s8.bf16 %v387_v35  ;;  %v1637_v46 = vunpack.c.h.s8.bf16 %v389_v36  ;;  %v1634_v49 = vunpack.c.h.s8.bf16 %v386_v41  ;;  %v1636_v50 = vunpack.c.h.s8.bf16 %v388_v42  ;;  %v402_v61 = vld [vmem:[%s9580_s25 + $0x140] sm:$0xff]  ;;  %v404_v62 = vld [vmem:[%s9580_s25 + $0x150] sm:$0xff]  ;;  %v411_v7 = vld [vmem:[%s9580_s25 + $0x188] sm:$0xff] }
  0x99   : > { %4242 = vmatprep.subr.bf16.mxu0 %v1595_v14  ;;  %5059 = vmatprep.subr.bf16.mxu1 %v1597_v15  ;;  %v1643_v52 = vunpack.c.l.s8.bf16 %v395_v47  ;;  %v1645_v53 = vunpack.c.l.s8.bf16 %v397_v48  ;;  %v1642_v55 = vunpack.c.l.s8.bf16 %v394_v51  ;;  %v1644_v56 = vunpack.c.l.s8.bf16 %v396_v54  ;;  %v413_v8 = vld [vmem:[%s9580_s25 + $0x198] sm:$0xff]  ;;  %v410_v9 = vld [vmem:[%s9580_s25 + $0x180] sm:$0xff]  ;;  %v412_v10 = vld [vmem:[%s9580_s25 + $0x190] sm:$0xff] }
  0x9a   : > { %v1651_v57 = vunpack.c.h.s8.bf16 %v395_v47  ;;  %v1653_v58 = vunpack.c.h.s8.bf16 %v397_v48  ;;  %v1650_v63 = vunpack.c.h.s8.bf16 %v394_v51  ;;  %v1652_v0 = vunpack.c.h.s8.bf16 %v396_v54  ;;  %v420_v22 = vld [vmem:[%s9580_s25 + $0x1d0] sm:$0xff]  ;;  %v434_v47 = vld [vmem:[%s9580_s25 + $0x240] sm:$0xff] }
  0x9b   : > { %v1659_v1 = vunpack.c.l.s8.bf16 %v403_v59  ;;  %v1661_v2 = vunpack.c.l.s8.bf16 %v405_v60  ;;  %v1658_v3 = vunpack.c.l.s8.bf16 %v402_v61  ;;  %v1660_v4 = vunpack.c.l.s8.bf16 %v404_v62  ;;  %v436_v48 = vld [vmem:[%s9580_s25 + $0x250] sm:$0xff] }
  0x9c   : > { %4243 = vmatpush1.bf16.msra.mxu0 %v1594_v18  ;;  %5060 = vmatpush1.bf16.msra.mxu1 %v1596_v19  ;;  %v1667_v5 = vunpack.c.h.s8.bf16 %v403_v59  ;;  %v1669_v6 = vunpack.c.h.s8.bf16 %v405_v60  ;;  %v1666_v11 = vunpack.c.h.s8.bf16 %v402_v61  ;;  %v1668_v12 = vunpack.c.h.s8.bf16 %v404_v62  ;;  %v419_v19 = vld [vmem:[%s9580_s25 + $0x1c8] sm:$0xff]  ;;  %v442_v59 = vld [vmem:[%s9580_s25 + $0x280] sm:$0xff]  ;;  %v444_v60 = vld [vmem:[%s9580_s25 + $0x290] sm:$0xff] }
  0x9d   : > { %4244 = vmatprep.subr.bf16.mxu0 %v1603_v20  ;;  %5061 = vmatprep.subr.bf16.mxu1 %v1605_v21  ;;  %v1675_v13 = vunpack.c.l.s8.bf16 %v411_v7  ;;  %v1677_v14 = vunpack.c.l.s8.bf16 %v413_v8  ;;  %v1674_v15 = vunpack.c.l.s8.bf16 %v410_v9  ;;  %v1676_v16 = vunpack.c.l.s8.bf16 %v412_v10  ;;  %v421_v20 = vld [vmem:[%s9580_s25 + $0x1d8] sm:$0xff]  ;;  %v418_v21 = vld [vmem:[%s9580_s25 + $0x1c0] sm:$0xff] }
  0x9e   : > { %v1683_v17 = vunpack.c.h.s8.bf16 %v411_v7  ;;  %v1685_v18 = vunpack.c.h.s8.bf16 %v413_v8  ;;  %v1682_v23 = vunpack.c.h.s8.bf16 %v410_v9  ;;  %v1684_v24 = vunpack.c.h.s8.bf16 %v412_v10  ;;  %v450_v7 = vld [vmem:[%s9580_s25 + $0x2c0] sm:$0xff]  ;;  %v452_v8 = vld [vmem:[%s9580_s25 + $0x2d0] sm:$0xff] }
  0x9f   : > { %v1699_v29 = vunpack.c.h.s8.bf16 %v419_v19  ;;  %v1701_v30 = vunpack.c.h.s8.bf16 %v421_v20  ;;  %v1698_v35 = vunpack.c.h.s8.bf16 %v418_v21  ;;  %v1700_v36 = vunpack.c.h.s8.bf16 %v420_v22 }
  0xa0   : > { %4245 = vmatpush1.bf16.msra.mxu0 %v1602_v25  ;;  %5062 = vmatpush1.bf16.msra.mxu1 %v1604_v26  ;;  %v1691_v25 = vunpack.c.l.s8.bf16 %v419_v19  ;;  %v1693_v26 = vunpack.c.l.s8.bf16 %v421_v20  ;;  %v1724_v54 = vunpack.c.l.s8.bf16 %v436_v48  ;;  %v1730_v61 = vunpack.c.h.s8.bf16 %v434_v47  ;;  %v458_v19 = vld [vmem:[%s9580_s25 + $0x300] sm:$0xff]  ;;  %v460_v20 = vld [vmem:[%s9580_s25 + $0x310] sm:$0xff] }
  0xa1   : > { %4246 = vmatprep.subr.bf16.mxu0 %v1611_v27  ;;  %5063 = vmatprep.subr.bf16.mxu1 %v1613_v28  ;;  %v1690_v27 = vunpack.c.l.s8.bf16 %v418_v21  ;;  %v1692_v28 = vunpack.c.l.s8.bf16 %v420_v22  ;;  %v1732_v62 = vunpack.c.h.s8.bf16 %v436_v48  ;;  %v1746_v9 = vunpack.c.h.s8.bf16 %v442_v59  ;;  %v476_v48 = vld [vmem:[%s9580_s25 + $0x390] sm:$0xff] }
  0xa2   : > { %v1748_v10 = vunpack.c.h.s8.bf16 %v444_v60  ;;  %v1762_v21 = vunpack.c.h.s8.bf16 %v450_v7  ;;  %v1764_v22 = vunpack.c.h.s8.bf16 %v452_v8 }
  0xa4   : > { %4247 = vmatpush1.bf16.msra.mxu0 %v1610_v31  ;;  %5064 = vmatpush1.bf16.msra.mxu1 %v1612_v32  ;;  %v427_v31 = vld [vmem:[%s9580_s25 + $0x208] sm:$0xff]  ;;  %v429_v32 = vld [vmem:[%s9580_s25 + $0x218] sm:$0xff] }
  0xa5   : > { %4248 = vmatprep.subr.bf16.mxu0 %v1619_v33  ;;  %5065 = vmatprep.subr.bf16.mxu1 %v1621_v34  ;;  %v426_v33 = vld [vmem:[%s9580_s25 + $0x200] sm:$0xff]  ;;  %v428_v34 = vld [vmem:[%s9580_s25 + $0x210] sm:$0xff]  ;;  %v1715_v42 = vunpack.c.h.s8.bf16 %v427_v31 }
  0xa6   : > { %v1708_v41 = vunpack.c.l.s8.bf16 %v428_v34 }
  0xa8   : > { %4249 = vmatpush1.bf16.msra.mxu0 %v1618_v37  ;;  %5066 = vmatpush1.bf16.msra.mxu1 %v1620_v38  ;;  %v1707_v37 = vunpack.c.l.s8.bf16 %v427_v31  ;;  %v1709_v38 = vunpack.c.l.s8.bf16 %v429_v32  ;;  %v1778_v31 = vunpack.c.h.s8.bf16 %v458_v19 }
  0xa9   : > { %4250 = vmatprep.subr.bf16.mxu0 %v1627_v39  ;;  %5067 = vmatprep.subr.bf16.mxu1 %v1629_v40  ;;  %v9022_v39 = vld [vmem:[%s11165_s0] ss:$152 sps:$4 sm:$0xff]   ;;  %v1706_v40 = vunpack.c.l.s8.bf16 %v426_v33 }
  0xac   : > { %4251 = vmatpush1.bf16.msra.mxu0 %v1626_v43  ;;  %5068 = vmatpush1.bf16.msra.mxu1 %v1628_v44  ;;  %v1717_v43 = vunpack.c.h.s8.bf16 %v429_v32  ;;  %v435_v44 = vld [vmem:[%s9580_s25 + $0x248] sm:$0xff]  ;;  %v1780_v32 = vunpack.c.h.s8.bf16 %v460_v20 }
  0xad   : > { %4252 = vmatprep.subr.bf16.mxu0 %v1635_v45  ;;  %5069 = vmatprep.subr.bf16.mxu1 %v1637_v46  ;;  %v437_v45 = vld [vmem:[%s9580_s25 + $0x258] sm:$0xff]  ;;  %v9023_v46 = vld [vmem:[%s11165_s0 + $0xc] ss:$152 sps:$4 sm:$0xff]   ;;  %v1723_v51 = vunpack.c.l.s8.bf16 %v435_v44 }
  0xb0   : > { %4253 = vmatpush1.bf16.msra.mxu0 %v1634_v49  ;;  %5070 = vmatpush1.bf16.msra.mxu1 %v1636_v50  ;;  %v1714_v49 = vunpack.c.h.s8.bf16 %v426_v33  ;;  %v1716_v50 = vunpack.c.h.s8.bf16 %v428_v34 }
  0xb1   : > { %4254 = vmatprep.subr.bf16.mxu0 %v1643_v52  ;;  %5071 = vmatprep.subr.bf16.mxu1 %v1645_v53  ;;  %v1725_v52 = vunpack.c.l.s8.bf16 %v437_v45  ;;  %v1722_v53 = vunpack.c.l.s8.bf16 %v434_v47  ;;  %v474_v47 = vld [vmem:[%s9580_s25 + $0x380] sm:$0xff] }
  0xb4   : > { %4255 = vmatpush1.bf16.msra.mxu0 %v1642_v55  ;;  %5072 = vmatpush1.bf16.msra.mxu1 %v1644_v56  ;;  %v1731_v55 = vunpack.c.h.s8.bf16 %v435_v44  ;;  %v1733_v56 = vunpack.c.h.s8.bf16 %v437_v45 }
  0xb5   : > { %4256 = vmatprep.subr.bf16.mxu0 %v1651_v57  ;;  %5073 = vmatprep.subr.bf16.mxu1 %v1653_v58  ;;  %v443_v57 = vld [vmem:[%s9580_s25 + $0x288] sm:$0xff]  ;;  %v445_v58 = vld [vmem:[%s9580_s25 + $0x298] sm:$0xff] }
  0xb8   : > { %4257 = vmatpush1.bf16.msra.mxu0 %v1650_v63  ;;  %5074 = vmatpush1.bf16.msra.mxu1 %v1652_v0  ;;  %v1739_v63 = vunpack.c.l.s8.bf16 %v443_v57  ;;  %v1741_v0 = vunpack.c.l.s8.bf16 %v445_v58 }
  0xb9   : > { %4258 = vmatprep.subr.bf16.mxu0 %v1659_v1  ;;  %5075 = vmatprep.subr.bf16.mxu1 %v1661_v2  ;;  %v1738_v1 = vunpack.c.l.s8.bf16 %v442_v59  ;;  %v1740_v2 = vunpack.c.l.s8.bf16 %v444_v60  ;;  %v482_v59 = vld [vmem:[%s9580_s25 + $0x3c0] sm:$0xff]  ;;  %v484_v60 = vld [vmem:[%s9580_s25 + $0x3d0] sm:$0xff] }
  0xbc   : > { %4259 = vmatpush1.bf16.msra.mxu0 %v1658_v3  ;;  %5076 = vmatpush1.bf16.msra.mxu1 %v1660_v4  ;;  %v1747_v3 = vunpack.c.h.s8.bf16 %v443_v57  ;;  %v1749_v4 = vunpack.c.h.s8.bf16 %v445_v58 }
  0xbd   : > { %4260 = vmatprep.subr.bf16.mxu0 %v1667_v5  ;;  %5077 = vmatprep.subr.bf16.mxu1 %v1669_v6  ;;  %v451_v5 = vld [vmem:[%s9580_s25 + $0x2c8] sm:$0xff]  ;;  %v453_v6 = vld [vmem:[%s9580_s25 + $0x2d8] sm:$0xff] }
  0xc0   : > { %4261 = vmatpush1.bf16.msra.mxu0 %v1666_v11  ;;  %5078 = vmatpush1.bf16.msra.mxu1 %v1668_v12  ;;  %v1755_v11 = vunpack.c.l.s8.bf16 %v451_v5  ;;  %v1757_v12 = vunpack.c.l.s8.bf16 %v453_v6 }
  0xc1   : > { %4262 = vmatprep.subr.bf16.mxu0 %v1675_v13  ;;  %5079 = vmatprep.subr.bf16.mxu1 %v1677_v14  ;;  %v1754_v13 = vunpack.c.l.s8.bf16 %v450_v7  ;;  %v1756_v14 = vunpack.c.l.s8.bf16 %v452_v8  ;;  %v490_v7 = vld [vmem:[%s9580_s25 + $0x400] sm:$0xff]  ;;  %v492_v8 = vld [vmem:[%s9580_s25 + $0x410] sm:$0xff] }
  0xc4   : > { %4263 = vmatpush1.bf16.msra.mxu0 %v1674_v15  ;;  %5080 = vmatpush1.bf16.msra.mxu1 %v1676_v16  ;;  %v1763_v15 = vunpack.c.h.s8.bf16 %v451_v5  ;;  %v1765_v16 = vunpack.c.h.s8.bf16 %v453_v6 }
  0xc5   : > { %4264 = vmatprep.subr.bf16.mxu0 %v1683_v17  ;;  %5081 = vmatprep.subr.bf16.mxu1 %v1685_v18  ;;  %v459_v17 = vld [vmem:[%s9580_s25 + $0x308] sm:$0xff]  ;;  %v461_v18 = vld [vmem:[%s9580_s25 + $0x318] sm:$0xff] }
  0xc8   : > { %4265 = vmatpush1.bf16.msra.mxu0 %v1682_v23  ;;  %5082 = vmatpush1.bf16.msra.mxu1 %v1684_v24  ;;  %v1771_v23 = vunpack.c.l.s8.bf16 %v459_v17  ;;  %v1773_v24 = vunpack.c.l.s8.bf16 %v461_v18 }
  0xc9   : > { %4266 = vmatprep.subr.bf16.mxu0 %v1691_v25  ;;  %5083 = vmatprep.subr.bf16.mxu1 %v1693_v26  ;;  %v1770_v25 = vunpack.c.l.s8.bf16 %v458_v19  ;;  %v1772_v26 = vunpack.c.l.s8.bf16 %v460_v20 }
  0xcc   : > { %4267 = vmatpush1.bf16.msra.mxu0 %v1690_v27  ;;  %5084 = vmatpush1.bf16.msra.mxu1 %v1692_v28  ;;  %v1779_v27 = vunpack.c.h.s8.bf16 %v459_v17  ;;  %v1781_v28 = vunpack.c.h.s8.bf16 %v461_v18  ;;  %v1842_v17 = vunpack.c.h.s8.bf16 %v490_v7  ;;  %v1844_v18 = vunpack.c.h.s8.bf16 %v492_v8 }
  0xcd   : > { %4268 = vmatprep.subr.bf16.mxu0 %v1699_v29  ;;  %5085 = vmatprep.subr.bf16.mxu1 %v1701_v30  ;;  %v467_v29 = vld [vmem:[%s9580_s25 + $0x348] sm:$0xff]  ;;  %v469_v30 = vld [vmem:[%s9580_s25 + $0x358] sm:$0xff] }
  0xce   : > { %v1787_v33 = vunpack.c.l.s8.bf16 %v467_v29  ;;  %v1789_v34 = vunpack.c.l.s8.bf16 %v469_v30 }
  0xd0   : > { %4269 = vmatpush1.bf16.msra.mxu0 %v1698_v35  ;;  %5086 = vmatpush1.bf16.msra.mxu1 %v1700_v36  ;;  %v466_v35 = vld [vmem:[%s9580_s25 + $0x340] sm:$0xff]  ;;  %v468_v36 = vld [vmem:[%s9580_s25 + $0x350] sm:$0xff] }
  0xd1   : > { %4281 = vmatprep.subr.bf16.mxu0 %v1707_v37  ;;  %5098 = vmatprep.subr.bf16.mxu1 %v1709_v38  ;;  %v1786_v37 = vunpack.c.l.s8.bf16 %v466_v35  ;;  %v1788_v38 = vunpack.c.l.s8.bf16 %v468_v36  ;;  %v1796_v44 = vunpack.c.h.s8.bf16 %v468_v36 }
  0xd3   : > { %4271 = vmatmul.mubr.bf16.vlgmr.msra.gmra.mrb[0].mxu0 %v9022_v39  ;;  %5088 = vmatmul.mubr.bf16.vlgmr.msra.gmra.mrb[0].mxu1 %v9022_v39  ;;  %v1795_v39 = vunpack.c.h.s8.bf16 %v467_v29 }
  0xd4   : > { %4282 = vmatpush1.bf16.msra.mxu0 %v1706_v40  ;;  %5099 = vmatpush1.bf16.msra.mxu1 %v1708_v41  ;;  %v1797_v40 = vunpack.c.h.s8.bf16 %v469_v30  ;;  %v475_v41 = vld [vmem:[%s9580_s25 + $0x388] sm:$0xff] }
  0xd5   : > { %4283 = vmatprep.subr.bf16.mxu0 %v1715_v42  ;;  %5100 = vmatprep.subr.bf16.mxu1 %v1717_v43  ;;  %v477_v42 = vld [vmem:[%s9580_s25 + $0x398] sm:$0xff]  ;;  %v1794_v43 = vunpack.c.h.s8.bf16 %v466_v35  ;;  %v1803_v45 = vunpack.c.l.s8.bf16 %v475_v41 }
  0xd6   : > { %4313 = vmatprep.mubr.bf16.mxu0 %v9023_v46  ;;  %5130 = vmatprep.mubr.bf16.mxu1 %v9023_v46  ;;  %v1805_v46 = vunpack.c.l.s8.bf16 %v477_v42 }
  0xd8   : > { %4284 = vmatpush1.bf16.msra.mxu0 %v1714_v49  ;;  %5101 = vmatpush1.bf16.msra.mxu1 %v1716_v50  ;;  %v1802_v49 = vunpack.c.l.s8.bf16 %v474_v47  ;;  %v1804_v50 = vunpack.c.l.s8.bf16 %v476_v48 }
  0xd9   : > { %4285 = vmatprep.subr.bf16.mxu0 %v1723_v51  ;;  %5102 = vmatprep.subr.bf16.mxu1 %v1725_v52  ;;  %v1811_v51 = vunpack.c.h.s8.bf16 %v475_v41  ;;  %v1813_v52 = vunpack.c.h.s8.bf16 %v477_v42 }
  0xdc   : > { %4286 = vmatpush1.bf16.msra.mxu0 %v1722_v53  ;;  %5103 = vmatpush1.bf16.msra.mxu1 %v1724_v54  ;;  %v483_v53 = vld [vmem:[%s9580_s25 + $0x3c8] sm:$0xff]  ;;  %v485_v54 = vld [vmem:[%s9580_s25 + $0x3d8] sm:$0xff] }
  0xdd   : > { %4287 = vmatprep.subr.bf16.mxu0 %v1731_v55  ;;  %5104 = vmatprep.subr.bf16.mxu1 %v1733_v56  ;;  %v1810_v55 = vunpack.c.h.s8.bf16 %v474_v47  ;;  %v1812_v56 = vunpack.c.h.s8.bf16 %v476_v48  ;;  %v1819_v57 = vunpack.c.l.s8.bf16 %v483_v53  ;;  %v1821_v58 = vunpack.c.l.s8.bf16 %v485_v54 }
  0xe0   : > { %4288 = vmatpush1.bf16.msra.mxu0 %v1730_v61  ;;  %5105 = vmatpush1.bf16.msra.mxu1 %v1732_v62  ;;  %v1818_v61 = vunpack.c.l.s8.bf16 %v482_v59  ;;  %v1820_v62 = vunpack.c.l.s8.bf16 %v484_v60 }
  0xe1   : > { %4289 = vmatprep.subr.bf16.mxu0 %v1739_v63  ;;  %5106 = vmatprep.subr.bf16.mxu1 %v1741_v0  ;;  %v1827_v63 = vunpack.c.h.s8.bf16 %v483_v53  ;;  %v1829_v0 = vunpack.c.h.s8.bf16 %v485_v54 }
  0xe4   : > { %4290 = vmatpush1.bf16.msra.mxu0 %v1738_v1  ;;  %5107 = vmatpush1.bf16.msra.mxu1 %v1740_v2  ;;  %v491_v1 = vld [vmem:[%s9580_s25 + $0x408] sm:$0xff]  ;;  %v493_v2 = vld [vmem:[%s9580_s25 + $0x418] sm:$0xff] }
  0xe5   : > { %4291 = vmatprep.subr.bf16.mxu0 %v1747_v3  ;;  %5108 = vmatprep.subr.bf16.mxu1 %v1749_v4  ;;  %v1826_v3 = vunpack.c.h.s8.bf16 %v482_v59  ;;  %v1828_v4 = vunpack.c.h.s8.bf16 %v484_v60  ;;  %v1835_v5 = vunpack.c.l.s8.bf16 %v491_v1  ;;  %v1837_v6 = vunpack.c.l.s8.bf16 %v493_v2 }
  0xe8   : > { %4292 = vmatpush1.bf16.msra.mxu0 %v1746_v9  ;;  %5109 = vmatpush1.bf16.msra.mxu1 %v1748_v10  ;;  %v9025_v9 = vld [vmem:[%s11165_s0 + $0x8] ss:$152 sps:$4 sm:$0xff]   ;;  %v1834_v10 = vunpack.c.l.s8.bf16 %v490_v7 }
  0xe9   : > { %4293 = vmatprep.subr.bf16.mxu0 %v1755_v11  ;;  %5110 = vmatprep.subr.bf16.mxu1 %v1757_v12  ;;  %v1836_v11 = vunpack.c.l.s8.bf16 %v492_v8  ;;  %v1843_v12 = vunpack.c.h.s8.bf16 %v491_v1 }
  0xec   : > { %4294 = vmatpush1.bf16.msra.mxu0 %v1754_v13  ;;  %5111 = vmatpush1.bf16.msra.mxu1 %v1756_v14  ;;  %v1845_v13 = vunpack.c.h.s8.bf16 %v493_v2  ;;  %v499_v14 = vld [vmem:[%s9580_s25 + $0x448] sm:$0xff] }
  0xed   : > { %4295 = vmatprep.subr.bf16.mxu0 %v1763_v15  ;;  %5112 = vmatprep.subr.bf16.mxu1 %v1765_v16  ;;  %v501_v15 = vld [vmem:[%s9580_s25 + $0x458] sm:$0xff]  ;;  %v9026_v16 = vld [vmem:[%s11165_s0 + $0x14] ss:$152 sps:$4 sm:$0xff]   ;;  %v1851_v19 = vunpack.c.l.s8.bf16 %v499_v14 }
  0xee   : > { %v1853_v20 = vunpack.c.l.s8.bf16 %v501_v15 }
  0xf0   : > { %4296 = vmatpush1.bf16.msra.mxu0 %v1762_v21  ;;  %5113 = vmatpush1.bf16.msra.mxu1 %v1764_v22  ;;  %v498_v21 = vld [vmem:[%s9580_s25 + $0x440] sm:$0xff]  ;;  %v500_v22 = vld [vmem:[%s9580_s25 + $0x450] sm:$0xff] }
  0xf1   : > { %4297 = vmatprep.subr.bf16.mxu0 %v1771_v23  ;;  %5114 = vmatprep.subr.bf16.mxu1 %v1773_v24  ;;  %v1850_v23 = vunpack.c.l.s8.bf16 %v498_v21  ;;  %v1852_v24 = vunpack.c.l.s8.bf16 %v500_v22  ;;  %v1858_v29 = vunpack.c.h.s8.bf16 %v498_v21  ;;  %v1860_v30 = vunpack.c.h.s8.bf16 %v500_v22 }
  0xf4   : > { %4298 = vmatpush1.bf16.msra.mxu0 %v1770_v25  ;;  %5115 = vmatpush1.bf16.msra.mxu1 %v1772_v26  ;;  %v1859_v25 = vunpack.c.h.s8.bf16 %v499_v14  ;;  %v1861_v26 = vunpack.c.h.s8.bf16 %v501_v15 }
  0xf5   : > { %4299 = vmatprep.subr.bf16.mxu0 %v1779_v27  ;;  %5116 = vmatprep.subr.bf16.mxu1 %v1781_v28  ;;  %v507_v27 = vld [vmem:[%s9580_s25 + $0x488] sm:$0xff]  ;;  %v509_v28 = vld [vmem:[%s9580_s25 + $0x498] sm:$0xff] }
  0xf8   : > { %4300 = vmatpush1.bf16.msra.mxu0 %v1778_v31  ;;  %5117 = vmatpush1.bf16.msra.mxu1 %v1780_v32  ;;  %v1867_v31 = vunpack.c.l.s8.bf16 %v507_v27  ;;  %v1869_v32 = vunpack.c.l.s8.bf16 %v509_v28 }
  0xf9   : > { %4301 = vmatprep.subr.bf16.mxu0 %v1787_v33  ;;  %5118 = vmatprep.subr.bf16.mxu1 %v1789_v34  ;;  %v506_v33 = vld [vmem:[%s9580_s25 + $0x480] sm:$0xff]  ;;  %v508_v34 = vld [vmem:[%s9580_s25 + $0x490] sm:$0xff] }
  0xfa   : > { %v1866_v35 = vunpack.c.l.s8.bf16 %v506_v33  ;;  %v1868_v36 = vunpack.c.l.s8.bf16 %v508_v34  ;;  %v1874_v41 = vunpack.c.h.s8.bf16 %v506_v33  ;;  %v1876_v42 = vunpack.c.h.s8.bf16 %v508_v34 }
  0xfc   : > { %4302 = vmatpush1.bf16.msra.mxu0 %v1786_v37  ;;  %5119 = vmatpush1.bf16.msra.mxu1 %v1788_v38  ;;  %v1875_v37 = vunpack.c.h.s8.bf16 %v507_v27  ;;  %v1877_v38 = vunpack.c.h.s8.bf16 %v509_v28 }
  0xfd   : > { %4303 = vmatprep.subr.bf16.mxu0 %v1795_v39  ;;  %5120 = vmatprep.subr.bf16.mxu1 %v1797_v40  ;;  %v515_v39 = vld [vmem:[%s9580_s25 + $0x4c8] sm:$0xff]  ;;  %v517_v40 = vld [vmem:[%s9580_s25 + $0x4d8] sm:$0xff] }
 0x100   : > { %4304 = vmatpush1.bf16.msra.mxu0 %v1794_v43  ;;  %5121 = vmatpush1.bf16.msra.mxu1 %v1796_v44  ;;  %v1883_v43 = vunpack.c.l.s8.bf16 %v515_v39  ;;  %v1885_v44 = vunpack.c.l.s8.bf16 %v517_v40 }
 0x101   : > { %4305 = vmatprep.subr.bf16.mxu0 %v1803_v45  ;;  %5122 = vmatprep.subr.bf16.mxu1 %v1805_v46  ;;  %v514_v45 = vld [vmem:[%s9580_s25 + $0x4c0] sm:$0xff]  ;;  %v516_v46 = vld [vmem:[%s9580_s25 + $0x4d0] sm:$0xff] }
 0x102   : > { %v1882_v47 = vunpack.c.l.s8.bf16 %v514_v45  ;;  %v1884_v48 = vunpack.c.l.s8.bf16 %v516_v46  ;;  %v1890_v53 = vunpack.c.h.s8.bf16 %v514_v45  ;;  %v1892_v54 = vunpack.c.h.s8.bf16 %v516_v46 }
 0x104   : > { %4306 = vmatpush1.bf16.msra.mxu0 %v1802_v49  ;;  %5123 = vmatpush1.bf16.msra.mxu1 %v1804_v50  ;;  %v1891_v49 = vunpack.c.h.s8.bf16 %v515_v39  ;;  %v1893_v50 = vunpack.c.h.s8.bf16 %v517_v40 }
 0x105   : > { %4307 = vmatprep.subr.bf16.mxu0 %v1811_v51  ;;  %5124 = vmatprep.subr.bf16.mxu1 %v1813_v52  ;;  %v523_v51 = vld [vmem:[%s9580_s25 + $0x508] sm:$0xff]  ;;  %v525_v52 = vld [vmem:[%s9580_s25 + $0x518] sm:$0xff] }
 0x108   : > { %4308 = vmatpush1.bf16.msra.mxu0 %v1810_v55  ;;  %5125 = vmatpush1.bf16.msra.mxu1 %v1812_v56  ;;  %v1899_v55 = vunpack.c.l.s8.bf16 %v523_v51  ;;  %v1901_v56 = vunpack.c.l.s8.bf16 %v525_v52 }
 0x109   : > { %4309 = vmatprep.subr.bf16.mxu0 %v1819_v57  ;;  %5126 = vmatprep.subr.bf16.mxu1 %v1821_v58  ;;  %v522_v57 = vld [vmem:[%s9580_s25 + $0x500] sm:$0xff]  ;;  %v524_v58 = vld [vmem:[%s9580_s25 + $0x510] sm:$0xff] }
 0x10a   : > { %v1898_v59 = vunpack.c.l.s8.bf16 %v522_v57  ;;  %v1900_v60 = vunpack.c.l.s8.bf16 %v524_v58  ;;  %v1906_v1 = vunpack.c.h.s8.bf16 %v522_v57  ;;  %v1908_v2 = vunpack.c.h.s8.bf16 %v524_v58 }
 0x10c   : > { %4310 = vmatpush1.bf16.msra.mxu0 %v1818_v61  ;;  %5127 = vmatpush1.bf16.msra.mxu1 %v1820_v62  ;;  %v1907_v61 = vunpack.c.h.s8.bf16 %v523_v51  ;;  %v1909_v62 = vunpack.c.h.s8.bf16 %v525_v52 }
 0x10d   : > { %4311 = vmatprep.subr.bf16.mxu0 %v1827_v63  ;;  %5128 = vmatprep.subr.bf16.mxu1 %v1829_v0  ;;  %v531_v63 = vld [vmem:[%s9580_s25 + $0x548] sm:$0xff]  ;;  %v533_v0 = vld [vmem:[%s9580_s25 + $0x558] sm:$0xff] }
 0x110   : > { %4312 = vmatpush1.bf16.msra.mxu0 %v1826_v3  ;;  %5129 = vmatpush1.bf16.msra.mxu1 %v1828_v4  ;;  %v1915_v3 = vunpack.c.l.s8.bf16 %v531_v63  ;;  %v1917_v4 = vunpack.c.l.s8.bf16 %v533_v0 }
 0x111   : > { %4324 = vmatprep.subr.bf16.mxu0 %v1835_v5  ;;  %5141 = vmatprep.subr.bf16.mxu1 %v1837_v6  ;;  %v530_v5 = vld [vmem:[%s9580_s25 + $0x540] sm:$0xff]  ;;  %v532_v6 = vld [vmem:[%s9580_s25 + $0x550] sm:$0xff] }
 0x112   : > { %v1914_v7 = vunpack.c.l.s8.bf16 %v530_v5  ;;  %v1916_v8 = vunpack.c.l.s8.bf16 %v532_v6  ;;  %v1924_v14 = vunpack.c.h.s8.bf16 %v532_v6 }
 0x113   : > { %4314 = vmatmul.mubr.bf16.vlgmr.msra.gmra.mrb[0].mxu0 %v9025_v9  ;;  %5131 = vmatmul.mubr.bf16.vlgmr.msra.gmra.mrb[0].mxu1 %v9025_v9  ;;  %v1923_v9 = vunpack.c.h.s8.bf16 %v531_v63 }
 0x114   : > { %4325 = vmatpush1.bf16.msra.mxu0 %v1834_v10  ;;  %5142 = vmatpush1.bf16.msra.mxu1 %v1836_v11  ;;  %v1925_v10 = vunpack.c.h.s8.bf16 %v533_v0  ;;  %v539_v11 = vld [vmem:[%s9580_s25 + $0x588] sm:$0xff] }
 0x115   : > { %4326 = vmatprep.subr.bf16.mxu0 %v1843_v12  ;;  %5143 = vmatprep.subr.bf16.mxu1 %v1845_v13  ;;  %v541_v12 = vld [vmem:[%s9580_s25 + $0x598] sm:$0xff]  ;;  %v1922_v13 = vunpack.c.h.s8.bf16 %v530_v5  ;;  %v1931_v15 = vunpack.c.l.s8.bf16 %v539_v11  ;;  %v1939_v21 = vunpack.c.h.s8.bf16 %v539_v11 }
 0x116   : > { %4356 = vmatprep.mubr.bf16.mxu0 %v9026_v16  ;;  %5173 = vmatprep.mubr.bf16.mxu1 %v9026_v16  ;;  %v1933_v16 = vunpack.c.l.s8.bf16 %v541_v12  ;;  %v1941_v22 = vunpack.c.h.s8.bf16 %v541_v12 }
 0x118   : > { %4327 = vmatpush1.bf16.msra.mxu0 %v1842_v17  ;;  %5144 = vmatpush1.bf16.msra.mxu1 %v1844_v18  ;;  %v538_v17 = vld [vmem:[%s9580_s25 + $0x580] sm:$0xff]  ;;  %v540_v18 = vld [vmem:[%s9580_s25 + $0x590] sm:$0xff] }
 0x119   : > { %4328 = vmatprep.subr.bf16.mxu0 %v1851_v19  ;;  %5145 = vmatprep.subr.bf16.mxu1 %v1853_v20  ;;  %v1930_v19 = vunpack.c.l.s8.bf16 %v538_v17  ;;  %v1932_v20 = vunpack.c.l.s8.bf16 %v540_v18 }
 0x11c   : > { %4329 = vmatpush1.bf16.msra.mxu0 %v1850_v23  ;;  %5146 = vmatpush1.bf16.msra.mxu1 %v1852_v24  ;;  %v547_v23 = vld [vmem:[%s9580_s25 + $0x5c8] sm:$0xff]  ;;  %v549_v24 = vld [vmem:[%s9580_s25 + $0x5d8] sm:$0xff] }
 0x11d   : > { %4330 = vmatprep.subr.bf16.mxu0 %v1859_v25  ;;  %5147 = vmatprep.subr.bf16.mxu1 %v1861_v26  ;;  %v1938_v25 = vunpack.c.h.s8.bf16 %v538_v17  ;;  %v1940_v26 = vunpack.c.h.s8.bf16 %v540_v18  ;;  %v1947_v27 = vunpack.c.l.s8.bf16 %v547_v23  ;;  %v1949_v28 = vunpack.c.l.s8.bf16 %v549_v24 }
 0x11e   : > { %v1955_v33 = vunpack.c.h.s8.bf16 %v547_v23  ;;  %v1957_v34 = vunpack.c.h.s8.bf16 %v549_v24 }
 0x120   : > { %4331 = vmatpush1.bf16.msra.mxu0 %v1858_v29  ;;  %5148 = vmatpush1.bf16.msra.mxu1 %v1860_v30  ;;  %v546_v29 = vld [vmem:[%s9580_s25 + $0x5c0] sm:$0xff]  ;;  %v548_v30 = vld [vmem:[%s9580_s25 + $0x5d0] sm:$0xff] }
 0x121   : > { %4332 = vmatprep.subr.bf16.mxu0 %v1867_v31  ;;  %5149 = vmatprep.subr.bf16.mxu1 %v1869_v32  ;;  %v1946_v31 = vunpack.c.l.s8.bf16 %v546_v29  ;;  %v1948_v32 = vunpack.c.l.s8.bf16 %v548_v30 }
 0x124   : > { %4333 = vmatpush1.bf16.msra.mxu0 %v1866_v35  ;;  %5150 = vmatpush1.bf16.msra.mxu1 %v1868_v36  ;;  %v555_v35 = vld [vmem:[%s9580_s25 + $0x608] sm:$0xff]  ;;  %v557_v36 = vld [vmem:[%s9580_s25 + $0x618] sm:$0xff] }
 0x125   : > { %4334 = vmatprep.subr.bf16.mxu0 %v1875_v37  ;;  %5151 = vmatprep.subr.bf16.mxu1 %v1877_v38  ;;  %v1954_v37 = vunpack.c.h.s8.bf16 %v546_v29  ;;  %v1956_v38 = vunpack.c.h.s8.bf16 %v548_v30  ;;  %v1963_v39 = vunpack.c.l.s8.bf16 %v555_v35  ;;  %v1965_v40 = vunpack.c.l.s8.bf16 %v557_v36 }
 0x126   : > { %v1971_v46 = vunpack.c.h.s8.bf16 %v555_v35 }
 0x128   : > { %4335 = vmatpush1.bf16.msra.mxu0 %v1874_v41  ;;  %5152 = vmatpush1.bf16.msra.mxu1 %v1876_v42  ;;  %v554_v41 = vld [vmem:[%s9580_s25 + $0x600] sm:$0xff]  ;;  %v556_v42 = vld [vmem:[%s9580_s25 + $0x610] sm:$0xff] }
 0x129   : > { %4336 = vmatprep.subr.bf16.mxu0 %v1883_v43  ;;  %5153 = vmatprep.subr.bf16.mxu1 %v1885_v44  ;;  %v9028_v43 = vld [vmem:[%s11165_s0 + $0x10] ss:$152 sps:$4 sm:$0xff]   ;;  %v1962_v44 = vunpack.c.l.s8.bf16 %v554_v41  ;;  %v1964_v45 = vunpack.c.l.s8.bf16 %v556_v42  ;;  %v1970_v51 = vunpack.c.h.s8.bf16 %v554_v41  ;;  %v1972_v52 = vunpack.c.h.s8.bf16 %v556_v42 }
 0x12c   : > { %4337 = vmatpush1.bf16.msra.mxu0 %v1882_v47  ;;  %5154 = vmatpush1.bf16.msra.mxu1 %v1884_v48  ;;  %v1973_v47 = vunpack.c.h.s8.bf16 %v557_v36  ;;  %v563_v48 = vld [vmem:[%s9580_s25 + $0x648] sm:$0xff] }
 0x12d   : > { %4338 = vmatprep.subr.bf16.mxu0 %v1891_v49  ;;  %5155 = vmatprep.subr.bf16.mxu1 %v1893_v50  ;;  %v565_v49 = vld [vmem:[%s9580_s25 + $0x658] sm:$0xff] }
 0x12e   : > { %v9029_v50 = vld [vmem:[%s11165_s0 + $0x1c] ss:$152 sps:$4 sm:$0xff]  }
 0x130   : > { %4339 = vmatpush1.bf16.msra.mxu0 %v1890_v53  ;;  %5156 = vmatpush1.bf16.msra.mxu1 %v1892_v54  ;;  %v1979_v53 = vunpack.c.l.s8.bf16 %v563_v48  ;;  %v1981_v54 = vunpack.c.l.s8.bf16 %v565_v49 }
 0x131   : > { %4340 = vmatprep.subr.bf16.mxu0 %v1899_v55  ;;  %5157 = vmatprep.subr.bf16.mxu1 %v1901_v56  ;;  %v562_v55 = vld [vmem:[%s9580_s25 + $0x640] sm:$0xff]  ;;  %v564_v56 = vld [vmem:[%s9580_s25 + $0x650] sm:$0xff] }
 0x132   : > { %v1978_v57 = vunpack.c.l.s8.bf16 %v562_v55  ;;  %v1980_v58 = vunpack.c.l.s8.bf16 %v564_v56  ;;  %v1986_v63 = vunpack.c.h.s8.bf16 %v562_v55  ;;  %v1988_v0 = vunpack.c.h.s8.bf16 %v564_v56 }
 0x134   : > { %4341 = vmatpush1.bf16.msra.mxu0 %v1898_v59  ;;  %5158 = vmatpush1.bf16.msra.mxu1 %v1900_v60  ;;  %v1987_v59 = vunpack.c.h.s8.bf16 %v563_v48  ;;  %v1989_v60 = vunpack.c.h.s8.bf16 %v565_v49 }
 0x135   : > { %4342 = vmatprep.subr.bf16.mxu0 %v1907_v61  ;;  %5159 = vmatprep.subr.bf16.mxu1 %v1909_v62  ;;  %v571_v61 = vld [vmem:[%s9580_s25 + $0x688] sm:$0xff]  ;;  %v573_v62 = vld [vmem:[%s9580_s25 + $0x698] sm:$0xff] }
 0x138   : > { %4343 = vmatpush1.bf16.msra.mxu0 %v1906_v1  ;;  %5160 = vmatpush1.bf16.msra.mxu1 %v1908_v2  ;;  %v1995_v1 = vunpack.c.l.s8.bf16 %v571_v61  ;;  %v1997_v2 = vunpack.c.l.s8.bf16 %v573_v62 }
 0x139   : > { %4344 = vmatprep.subr.bf16.mxu0 %v1915_v3  ;;  %5161 = vmatprep.subr.bf16.mxu1 %v1917_v4  ;;  %v570_v3 = vld [vmem:[%s9580_s25 + $0x680] sm:$0xff]  ;;  %v572_v4 = vld [vmem:[%s9580_s25 + $0x690] sm:$0xff] }
 0x13a   : > { %v1994_v5 = vunpack.c.l.s8.bf16 %v570_v3  ;;  %v1996_v6 = vunpack.c.l.s8.bf16 %v572_v4  ;;  %v2002_v11 = vunpack.c.h.s8.bf16 %v570_v3  ;;  %v2004_v12 = vunpack.c.h.s8.bf16 %v572_v4 }
 0x13c   : > { %4345 = vmatpush1.bf16.msra.mxu0 %v1914_v7  ;;  %5162 = vmatpush1.bf16.msra.mxu1 %v1916_v8  ;;  %v2003_v7 = vunpack.c.h.s8.bf16 %v571_v61  ;;  %v2005_v8 = vunpack.c.h.s8.bf16 %v573_v62 }
 0x13d   : > { %4346 = vmatprep.subr.bf16.mxu0 %v1923_v9  ;;  %5163 = vmatprep.subr.bf16.mxu1 %v1925_v10  ;;  %v579_v9 = vld [vmem:[%s9580_s25 + $0x6c8] sm:$0xff]  ;;  %v581_v10 = vld [vmem:[%s9580_s25 + $0x6d8] sm:$0xff] }
 0x140   : > { %4347 = vmatpush1.bf16.msra.mxu0 %v1922_v13  ;;  %5164 = vmatpush1.bf16.msra.mxu1 %v1924_v14  ;;  %v2011_v13 = vunpack.c.l.s8.bf16 %v579_v9  ;;  %v2013_v14 = vunpack.c.l.s8.bf16 %v581_v10 }
 0x141   : > { %4348 = vmatprep.subr.bf16.mxu0 %v1931_v15  ;;  %5165 = vmatprep.subr.bf16.mxu1 %v1933_v16  ;;  %v578_v15 = vld [vmem:[%s9580_s25 + $0x6c0] sm:$0xff]  ;;  %v580_v16 = vld [vmem:[%s9580_s25 + $0x6d0] sm:$0xff] }
 0x142   : > { %v2010_v17 = vunpack.c.l.s8.bf16 %v578_v15  ;;  %v2012_v18 = vunpack.c.l.s8.bf16 %v580_v16  ;;  %v2018_v23 = vunpack.c.h.s8.bf16 %v578_v15  ;;  %v2020_v24 = vunpack.c.h.s8.bf16 %v580_v16 }
 0x144   : > { %4349 = vmatpush1.bf16.msra.mxu0 %v1930_v19  ;;  %5166 = vmatpush1.bf16.msra.mxu1 %v1932_v20  ;;  %v2019_v19 = vunpack.c.h.s8.bf16 %v579_v9  ;;  %v2021_v20 = vunpack.c.h.s8.bf16 %v581_v10 }
 0x145   : > { %4350 = vmatprep.subr.bf16.mxu0 %v1939_v21  ;;  %5167 = vmatprep.subr.bf16.mxu1 %v1941_v22  ;;  %v587_v21 = vld [vmem:[%s9580_s25 + $0x708] sm:$0xff]  ;;  %v589_v22 = vld [vmem:[%s9580_s25 + $0x718] sm:$0xff] }
 0x148   : > { %4351 = vmatpush1.bf16.msra.mxu0 %v1938_v25  ;;  %5168 = vmatpush1.bf16.msra.mxu1 %v1940_v26  ;;  %v2027_v25 = vunpack.c.l.s8.bf16 %v587_v21  ;;  %v2029_v26 = vunpack.c.l.s8.bf16 %v589_v22 }
 0x149   : > { %4352 = vmatprep.subr.bf16.mxu0 %v1947_v27  ;;  %5169 = vmatprep.subr.bf16.mxu1 %v1949_v28  ;;  %v586_v27 = vld [vmem:[%s9580_s25 + $0x700] sm:$0xff]  ;;  %v588_v28 = vld [vmem:[%s9580_s25 + $0x710] sm:$0xff] }
 0x14a   : > { %v2026_v29 = vunpack.c.l.s8.bf16 %v586_v27  ;;  %v2028_v30 = vunpack.c.l.s8.bf16 %v588_v28  ;;  %v2034_v35 = vunpack.c.h.s8.bf16 %v586_v27  ;;  %v2036_v36 = vunpack.c.h.s8.bf16 %v588_v28 }
 0x14c   : > { %4353 = vmatpush1.bf16.msra.mxu0 %v1946_v31  ;;  %5170 = vmatpush1.bf16.msra.mxu1 %v1948_v32  ;;  %v2035_v31 = vunpack.c.h.s8.bf16 %v587_v21  ;;  %v2037_v32 = vunpack.c.h.s8.bf16 %v589_v22 }
 0x14d   : > { %4354 = vmatprep.subr.bf16.mxu0 %v1955_v33  ;;  %5171 = vmatprep.subr.bf16.mxu1 %v1957_v34  ;;  %v595_v33 = vld [vmem:[%s9580_s25 + $0x748] sm:$0xff]  ;;  %v597_v34 = vld [vmem:[%s9580_s25 + $0x758] sm:$0xff] }
 0x150   : > { %4355 = vmatpush1.bf16.msra.mxu0 %v1954_v37  ;;  %5172 = vmatpush1.bf16.msra.mxu1 %v1956_v38  ;;  %v2043_v37 = vunpack.c.l.s8.bf16 %v595_v33  ;;  %v2045_v38 = vunpack.c.l.s8.bf16 %v597_v34 }
 0x151   : > { %4367 = vmatprep.subr.bf16.mxu0 %v1963_v39  ;;  %5184 = vmatprep.subr.bf16.mxu1 %v1965_v40  ;;  %v594_v39 = vld [vmem:[%s9580_s25 + $0x740] sm:$0xff]  ;;  %v596_v40 = vld [vmem:[%s9580_s25 + $0x750] sm:$0xff] }
 0x152   : > { %v2042_v41 = vunpack.c.l.s8.bf16 %v594_v39  ;;  %v2044_v42 = vunpack.c.l.s8.bf16 %v596_v40  ;;  %v2052_v48 = vunpack.c.h.s8.bf16 %v596_v40 }
 0x153   : > { %4357 = vmatmul.mubr.bf16.vlgmr.msra.gmra.mrb[0].mxu0 %v9028_v43  ;;  %5174 = vmatmul.mubr.bf16.vlgmr.msra.gmra.mrb[0].mxu1 %v9028_v43  ;;  %v2051_v43 = vunpack.c.h.s8.bf16 %v595_v33 }
 0x154   : > { %4368 = vmatpush1.bf16.msra.mxu0 %v1962_v44  ;;  %5185 = vmatpush1.bf16.msra.mxu1 %v1964_v45  ;;  %v2053_v44 = vunpack.c.h.s8.bf16 %v597_v34  ;;  %v603_v45 = vld [vmem:[%s9580_s25 + $0x788] sm:$0xff] }
 0x155   : > { %4369 = vmatprep.subr.bf16.mxu0 %v1971_v46  ;;  %5186 = vmatprep.subr.bf16.mxu1 %v1973_v47  ;;  %v605_v46 = vld [vmem:[%s9580_s25 + $0x798] sm:$0xff]  ;;  %v2050_v47 = vunpack.c.h.s8.bf16 %v594_v39  ;;  %v2059_v49 = vunpack.c.l.s8.bf16 %v603_v45  ;;  %v2067_v55 = vunpack.c.h.s8.bf16 %v603_v45 }
 0x156   : > { %4399 = vmatprep.mubr.bf16.mxu0 %v9029_v50  ;;  %5216 = vmatprep.mubr.bf16.mxu1 %v9029_v50  ;;  %v2061_v50 = vunpack.c.l.s8.bf16 %v605_v46  ;;  %v2069_v56 = vunpack.c.h.s8.bf16 %v605_v46 }
 0x158   : > { %4370 = vmatpush1.bf16.msra.mxu0 %v1970_v51  ;;  %5187 = vmatpush1.bf16.msra.mxu1 %v1972_v52  ;;  %v602_v51 = vld [vmem:[%s9580_s25 + $0x780] sm:$0xff]  ;;  %v604_v52 = vld [vmem:[%s9580_s25 + $0x790] sm:$0xff] }
 0x159   : > { %4371 = vmatprep.subr.bf16.mxu0 %v1979_v53  ;;  %5188 = vmatprep.subr.bf16.mxu1 %v1981_v54  ;;  %v2058_v53 = vunpack.c.l.s8.bf16 %v602_v51  ;;  %v2060_v54 = vunpack.c.l.s8.bf16 %v604_v52 }
 0x15c   : > { %4372 = vmatpush1.bf16.msra.mxu0 %v1978_v57  ;;  %5189 = vmatpush1.bf16.msra.mxu1 %v1980_v58  ;;  %v611_v57 = vld [vmem:[%s9580_s25 + $0x7c8] sm:$0xff]  ;;  %v613_v58 = vld [vmem:[%s9580_s25 + $0x7d8] sm:$0xff] }
 0x15d   : > { %4373 = vmatprep.subr.bf16.mxu0 %v1987_v59  ;;  %5190 = vmatprep.subr.bf16.mxu1 %v1989_v60  ;;  %v2066_v59 = vunpack.c.h.s8.bf16 %v602_v51  ;;  %v2068_v60 = vunpack.c.h.s8.bf16 %v604_v52  ;;  %v2075_v61 = vunpack.c.l.s8.bf16 %v611_v57  ;;  %v2077_v62 = vunpack.c.l.s8.bf16 %v613_v58 }
 0x15e   : > { %v2083_v3 = vunpack.c.h.s8.bf16 %v611_v57  ;;  %v2085_v4 = vunpack.c.h.s8.bf16 %v613_v58 }
 0x160   : > { %4374 = vmatpush1.bf16.msra.mxu0 %v1986_v63  ;;  %5191 = vmatpush1.bf16.msra.mxu1 %v1988_v0  ;;  %v610_v63 = vld [vmem:[%s9580_s25 + $0x7c0] sm:$0xff]  ;;  %v612_v0 = vld [vmem:[%s9580_s25 + $0x7d0] sm:$0xff] }
 0x161   : > { %4375 = vmatprep.subr.bf16.mxu0 %v1995_v1  ;;  %5192 = vmatprep.subr.bf16.mxu1 %v1997_v2  ;;  %v2074_v1 = vunpack.c.l.s8.bf16 %v610_v63  ;;  %v2076_v2 = vunpack.c.l.s8.bf16 %v612_v0 }
 0x164   : > { %4376 = vmatpush1.bf16.msra.mxu0 %v1994_v5  ;;  %5193 = vmatpush1.bf16.msra.mxu1 %v1996_v6  ;;  %v619_v5 = vld [vmem:[%s9580_s25 + $0x808] sm:$0xff]  ;;  %v621_v6 = vld [vmem:[%s9580_s25 + $0x818] sm:$0xff] }
 0x165   : > { %4377 = vmatprep.subr.bf16.mxu0 %v2003_v7  ;;  %5194 = vmatprep.subr.bf16.mxu1 %v2005_v8  ;;  %v2082_v7 = vunpack.c.h.s8.bf16 %v610_v63  ;;  %v2084_v8 = vunpack.c.h.s8.bf16 %v612_v0  ;;  %v2091_v9 = vunpack.c.l.s8.bf16 %v619_v5  ;;  %v2093_v10 = vunpack.c.l.s8.bf16 %v621_v6 }
 0x166   : > { %v2099_v16 = vunpack.c.h.s8.bf16 %v619_v5 }
 0x168   : > { %4378 = vmatpush1.bf16.msra.mxu0 %v2002_v11  ;;  %5195 = vmatpush1.bf16.msra.mxu1 %v2004_v12  ;;  %v618_v11 = vld [vmem:[%s9580_s25 + $0x800] sm:$0xff]  ;;  %v620_v12 = vld [vmem:[%s9580_s25 + $0x810] sm:$0xff] }
 0x169   : > { %4379 = vmatprep.subr.bf16.mxu0 %v2011_v13  ;;  %5196 = vmatprep.subr.bf16.mxu1 %v2013_v14  ;;  %v9031_v13 = vld [vmem:[%s11165_s0 + $0x18] ss:$152 sps:$4 sm:$0xff]   ;;  %v2090_v14 = vunpack.c.l.s8.bf16 %v618_v11  ;;  %v2092_v15 = vunpack.c.l.s8.bf16 %v620_v12  ;;  %v2098_v21 = vunpack.c.h.s8.bf16 %v618_v11  ;;  %v2100_v22 = vunpack.c.h.s8.bf16 %v620_v12 }
 0x16c   : > { %4380 = vmatpush1.bf16.msra.mxu0 %v2010_v17  ;;  %5197 = vmatpush1.bf16.msra.mxu1 %v2012_v18  ;;  %v2101_v17 = vunpack.c.h.s8.bf16 %v621_v6  ;;  %v627_v18 = vld [vmem:[%s9580_s25 + $0x848] sm:$0xff] }
 0x16d   : > { %4381 = vmatprep.subr.bf16.mxu0 %v2019_v19  ;;  %5198 = vmatprep.subr.bf16.mxu1 %v2021_v20  ;;  %v629_v19 = vld [vmem:[%s9580_s25 + $0x858] sm:$0xff] }
 0x16e   : > { %v9032_v20 = vld [vmem:[%s11165_s0 + $0x24] ss:$152 sps:$4 sm:$0xff]  }
 0x170   : > { %4382 = vmatpush1.bf16.msra.mxu0 %v2018_v23  ;;  %5199 = vmatpush1.bf16.msra.mxu1 %v2020_v24  ;;  %v2107_v23 = vunpack.c.l.s8.bf16 %v627_v18  ;;  %v2109_v24 = vunpack.c.l.s8.bf16 %v629_v19 }
 0x171   : > { %4383 = vmatprep.subr.bf16.mxu0 %v2027_v25  ;;  %5200 = vmatprep.subr.bf16.mxu1 %v2029_v26  ;;  %v626_v25 = vld [vmem:[%s9580_s25 + $0x840] sm:$0xff]  ;;  %v628_v26 = vld [vmem:[%s9580_s25 + $0x850] sm:$0xff] }
 0x172   : > { %v2106_v27 = vunpack.c.l.s8.bf16 %v626_v25  ;;  %v2108_v28 = vunpack.c.l.s8.bf16 %v628_v26  ;;  %v2114_v33 = vunpack.c.h.s8.bf16 %v626_v25  ;;  %v2116_v34 = vunpack.c.h.s8.bf16 %v628_v26 }
 0x174   : > { %4384 = vmatpush1.bf16.msra.mxu0 %v2026_v29  ;;  %5201 = vmatpush1.bf16.msra.mxu1 %v2028_v30  ;;  %v2115_v29 = vunpack.c.h.s8.bf16 %v627_v18  ;;  %v2117_v30 = vunpack.c.h.s8.bf16 %v629_v19 }
 0x175   : > { %4385 = vmatprep.subr.bf16.mxu0 %v2035_v31  ;;  %5202 = vmatprep.subr.bf16.mxu1 %v2037_v32  ;;  %v635_v31 = vld [vmem:[%s9580_s25 + $0x888] sm:$0xff]  ;;  %v637_v32 = vld [vmem:[%s9580_s25 + $0x898] sm:$0xff] }
 0x178   : > { %4386 = vmatpush1.bf16.msra.mxu0 %v2034_v35  ;;  %5203 = vmatpush1.bf16.msra.mxu1 %v2036_v36  ;;  %v2123_v35 = vunpack.c.l.s8.bf16 %v635_v31  ;;  %v2125_v36 = vunpack.c.l.s8.bf16 %v637_v32 }
 0x179   : > { %4387 = vmatprep.subr.bf16.mxu0 %v2043_v37  ;;  %5204 = vmatprep.subr.bf16.mxu1 %v2045_v38  ;;  %v634_v37 = vld [vmem:[%s9580_s25 + $0x880] sm:$0xff]  ;;  %v636_v38 = vld [vmem:[%s9580_s25 + $0x890] sm:$0xff] }
 0x17a   : > { %v2122_v39 = vunpack.c.l.s8.bf16 %v634_v37  ;;  %v2124_v40 = vunpack.c.l.s8.bf16 %v636_v38  ;;  %v2130_v45 = vunpack.c.h.s8.bf16 %v634_v37  ;;  %v2132_v46 = vunpack.c.h.s8.bf16 %v636_v38 }
 0x17c   : > { %4388 = vmatpush1.bf16.msra.mxu0 %v2042_v41  ;;  %5205 = vmatpush1.bf16.msra.mxu1 %v2044_v42  ;;  %v2131_v41 = vunpack.c.h.s8.bf16 %v635_v31  ;;  %v2133_v42 = vunpack.c.h.s8.bf16 %v637_v32 }
 0x17d   : > { %4389 = vmatprep.subr.bf16.mxu0 %v2051_v43  ;;  %5206 = vmatprep.subr.bf16.mxu1 %v2053_v44  ;;  %v643_v43 = vld [vmem:[%s9580_s25 + $0x8c8] sm:$0xff]  ;;  %v645_v44 = vld [vmem:[%s9580_s25 + $0x8d8] sm:$0xff] }
 0x180   : > { %4390 = vmatpush1.bf16.msra.mxu0 %v2050_v47  ;;  %5207 = vmatpush1.bf16.msra.mxu1 %v2052_v48  ;;  %v2139_v47 = vunpack.c.l.s8.bf16 %v643_v43  ;;  %v2141_v48 = vunpack.c.l.s8.bf16 %v645_v44 }
 0x181   : > { %4391 = vmatprep.subr.bf16.mxu0 %v2059_v49  ;;  %5208 = vmatprep.subr.bf16.mxu1 %v2061_v50  ;;  %v642_v49 = vld [vmem:[%s9580_s25 + $0x8c0] sm:$0xff]  ;;  %v644_v50 = vld [vmem:[%s9580_s25 + $0x8d0] sm:$0xff] }
 0x182   : > { %v2138_v51 = vunpack.c.l.s8.bf16 %v642_v49  ;;  %v2140_v52 = vunpack.c.l.s8.bf16 %v644_v50  ;;  %v2146_v57 = vunpack.c.h.s8.bf16 %v642_v49  ;;  %v2148_v58 = vunpack.c.h.s8.bf16 %v644_v50 }
 0x184   : > { %4392 = vmatpush1.bf16.msra.mxu0 %v2058_v53  ;;  %5209 = vmatpush1.bf16.msra.mxu1 %v2060_v54  ;;  %v2147_v53 = vunpack.c.h.s8.bf16 %v643_v43  ;;  %v2149_v54 = vunpack.c.h.s8.bf16 %v645_v44 }
 0x185   : > { %4393 = vmatprep.subr.bf16.mxu0 %v2067_v55  ;;  %5210 = vmatprep.subr.bf16.mxu1 %v2069_v56  ;;  %v651_v55 = vld [vmem:[%s9580_s25 + $0x908] sm:$0xff]  ;;  %v653_v56 = vld [vmem:[%s9580_s25 + $0x918] sm:$0xff] }
 0x188   : > { %4394 = vmatpush1.bf16.msra.mxu0 %v2066_v59  ;;  %5211 = vmatpush1.bf16.msra.mxu1 %v2068_v60  ;;  %v2155_v59 = vunpack.c.l.s8.bf16 %v651_v55  ;;  %v2157_v60 = vunpack.c.l.s8.bf16 %v653_v56 }
 0x189   : > { %4395 = vmatprep.subr.bf16.mxu0 %v2075_v61  ;;  %5212 = vmatprep.subr.bf16.mxu1 %v2077_v62  ;;  %v650_v61 = vld [vmem:[%s9580_s25 + $0x900] sm:$0xff]  ;;  %v652_v62 = vld [vmem:[%s9580_s25 + $0x910] sm:$0xff] }
 0x18a   : > { %v2154_v63 = vunpack.c.l.s8.bf16 %v650_v61  ;;  %v2156_v0 = vunpack.c.l.s8.bf16 %v652_v62  ;;  %v2162_v5 = vunpack.c.h.s8.bf16 %v650_v61  ;;  %v2164_v6 = vunpack.c.h.s8.bf16 %v652_v62 }
 0x18c   : > { %4396 = vmatpush1.bf16.msra.mxu0 %v2074_v1  ;;  %5213 = vmatpush1.bf16.msra.mxu1 %v2076_v2  ;;  %v2163_v1 = vunpack.c.h.s8.bf16 %v651_v55  ;;  %v2165_v2 = vunpack.c.h.s8.bf16 %v653_v56 }
 0x18d   : > { %4397 = vmatprep.subr.bf16.mxu0 %v2083_v3  ;;  %5214 = vmatprep.subr.bf16.mxu1 %v2085_v4  ;;  %v659_v3 = vld [vmem:[%s9580_s25 + $0x948] sm:$0xff]  ;;  %v661_v4 = vld [vmem:[%s9580_s25 + $0x958] sm:$0xff] }
 0x190   : > { %4398 = vmatpush1.bf16.msra.mxu0 %v2082_v7  ;;  %5215 = vmatpush1.bf16.msra.mxu1 %v2084_v8  ;;  %v2171_v7 = vunpack.c.l.s8.bf16 %v659_v3  ;;  %v2173_v8 = vunpack.c.l.s8.bf16 %v661_v4 }
 0x191   : > { %4410 = vmatprep.subr.bf16.mxu0 %v2091_v9  ;;  %5227 = vmatprep.subr.bf16.mxu1 %v2093_v10  ;;  %v658_v9 = vld [vmem:[%s9580_s25 + $0x940] sm:$0xff]  ;;  %v660_v10 = vld [vmem:[%s9580_s25 + $0x950] sm:$0xff] }
 0x192   : > { %v2170_v11 = vunpack.c.l.s8.bf16 %v658_v9  ;;  %v2172_v12 = vunpack.c.l.s8.bf16 %v660_v10  ;;  %v2180_v18 = vunpack.c.h.s8.bf16 %v660_v10 }
 0x193   : > { %4400 = vmatmul.mubr.bf16.vlgmr.msra.gmra.mrb[0].mxu0 %v9031_v13  ;;  %5217 = vmatmul.mubr.bf16.vlgmr.msra.gmra.mrb[0].mxu1 %v9031_v13  ;;  %v2179_v13 = vunpack.c.h.s8.bf16 %v659_v3 }
 0x194   : > { %4411 = vmatpush1.bf16.msra.mxu0 %v2090_v14  ;;  %5228 = vmatpush1.bf16.msra.mxu1 %v2092_v15  ;;  %v2181_v14 = vunpack.c.h.s8.bf16 %v661_v4  ;;  %v667_v15 = vld [vmem:[%s9580_s25 + $0x988] sm:$0xff] }
 0x195   : > { %4412 = vmatprep.subr.bf16.mxu0 %v2099_v16  ;;  %5229 = vmatprep.subr.bf16.mxu1 %v2101_v17  ;;  %v669_v16 = vld [vmem:[%s9580_s25 + $0x998] sm:$0xff]  ;;  %v2178_v17 = vunpack.c.h.s8.bf16 %v658_v9  ;;  %v2187_v19 = vunpack.c.l.s8.bf16 %v667_v15  ;;  %v2195_v25 = vunpack.c.h.s8.bf16 %v667_v15 }
 0x196   : > { %4442 = vmatprep.mubr.bf16.mxu0 %v9032_v20  ;;  %5259 = vmatprep.mubr.bf16.mxu1 %v9032_v20  ;;  %v2189_v20 = vunpack.c.l.s8.bf16 %v669_v16  ;;  %v2197_v26 = vunpack.c.h.s8.bf16 %v669_v16 }
 0x198   : > { %4413 = vmatpush1.bf16.msra.mxu0 %v2098_v21  ;;  %5230 = vmatpush1.bf16.msra.mxu1 %v2100_v22  ;;  %v666_v21 = vld [vmem:[%s9580_s25 + $0x980] sm:$0xff]  ;;  %v668_v22 = vld [vmem:[%s9580_s25 + $0x990] sm:$0xff] }
 0x199   : > { %4414 = vmatprep.subr.bf16.mxu0 %v2107_v23  ;;  %5231 = vmatprep.subr.bf16.mxu1 %v2109_v24  ;;  %v2186_v23 = vunpack.c.l.s8.bf16 %v666_v21  ;;  %v2188_v24 = vunpack.c.l.s8.bf16 %v668_v22 }
 0x19c   : > { %4415 = vmatpush1.bf16.msra.mxu0 %v2106_v27  ;;  %5232 = vmatpush1.bf16.msra.mxu1 %v2108_v28  ;;  %v675_v27 = vld [vmem:[%s9580_s25 + $0x9c8] sm:$0xff]  ;;  %v677_v28 = vld [vmem:[%s9580_s25 + $0x9d8] sm:$0xff] }
 0x19d   : > { %4416 = vmatprep.subr.bf16.mxu0 %v2115_v29  ;;  %5233 = vmatprep.subr.bf16.mxu1 %v2117_v30  ;;  %v2194_v29 = vunpack.c.h.s8.bf16 %v666_v21  ;;  %v2196_v30 = vunpack.c.h.s8.bf16 %v668_v22  ;;  %v2203_v31 = vunpack.c.l.s8.bf16 %v675_v27  ;;  %v2205_v32 = vunpack.c.l.s8.bf16 %v677_v28 }
 0x19e   : > { %v2211_v37 = vunpack.c.h.s8.bf16 %v675_v27  ;;  %v2213_v38 = vunpack.c.h.s8.bf16 %v677_v28 }
 0x1a0   : > { %4417 = vmatpush1.bf16.msra.mxu0 %v2114_v33  ;;  %5234 = vmatpush1.bf16.msra.mxu1 %v2116_v34  ;;  %v674_v33 = vld [vmem:[%s9580_s25 + $0x9c0] sm:$0xff]  ;;  %v676_v34 = vld [vmem:[%s9580_s25 + $0x9d0] sm:$0xff] }
 0x1a1   : > { %4418 = vmatprep.subr.bf16.mxu0 %v2123_v35  ;;  %5235 = vmatprep.subr.bf16.mxu1 %v2125_v36  ;;  %v2202_v35 = vunpack.c.l.s8.bf16 %v674_v33  ;;  %v2204_v36 = vunpack.c.l.s8.bf16 %v676_v34 }
 0x1a4   : > { %4419 = vmatpush1.bf16.msra.mxu0 %v2122_v39  ;;  %5236 = vmatpush1.bf16.msra.mxu1 %v2124_v40  ;;  %v683_v39 = vld [vmem:[%s9580_s25 + $0xa08] sm:$0xff]  ;;  %v685_v40 = vld [vmem:[%s9580_s25 + $0xa18] sm:$0xff] }
 0x1a5   : > { %4420 = vmatprep.subr.bf16.mxu0 %v2131_v41  ;;  %5237 = vmatprep.subr.bf16.mxu1 %v2133_v42  ;;  %v2210_v41 = vunpack.c.h.s8.bf16 %v674_v33  ;;  %v2212_v42 = vunpack.c.h.s8.bf16 %v676_v34  ;;  %v2219_v43 = vunpack.c.l.s8.bf16 %v683_v39  ;;  %v2221_v44 = vunpack.c.l.s8.bf16 %v685_v40 }
 0x1a6   : > { %v2227_v50 = vunpack.c.h.s8.bf16 %v683_v39 }
 0x1a8   : > { %4421 = vmatpush1.bf16.msra.mxu0 %v2130_v45  ;;  %5238 = vmatpush1.bf16.msra.mxu1 %v2132_v46  ;;  %v682_v45 = vld [vmem:[%s9580_s25 + $0xa00] sm:$0xff]  ;;  %v684_v46 = vld [vmem:[%s9580_s25 + $0xa10] sm:$0xff] }
 0x1a9   : > { %4422 = vmatprep.subr.bf16.mxu0 %v2139_v47  ;;  %5239 = vmatprep.subr.bf16.mxu1 %v2141_v48  ;;  %v9034_v47 = vld [vmem:[%s11165_s0 + $0x20] ss:$152 sps:$4 sm:$0xff]   ;;  %v2218_v48 = vunpack.c.l.s8.bf16 %v682_v45  ;;  %v2220_v49 = vunpack.c.l.s8.bf16 %v684_v46  ;;  %v2226_v55 = vunpack.c.h.s8.bf16 %v682_v45  ;;  %v2228_v56 = vunpack.c.h.s8.bf16 %v684_v46 }
 0x1ac   : > { %4423 = vmatpush1.bf16.msra.mxu0 %v2138_v51  ;;  %5240 = vmatpush1.bf16.msra.mxu1 %v2140_v52  ;;  %v2229_v51 = vunpack.c.h.s8.bf16 %v685_v40  ;;  %v691_v52 = vld [vmem:[%s9580_s25 + $0xa48] sm:$0xff] }
 0x1ad   : > { %4424 = vmatprep.subr.bf16.mxu0 %v2147_v53  ;;  %5241 = vmatprep.subr.bf16.mxu1 %v2149_v54  ;;  %v693_v53 = vld [vmem:[%s9580_s25 + $0xa58] sm:$0xff]  ;;  %v9035_v54 = vld [vmem:[%s11165_s0 + $0x2c] ss:$152 sps:$4 sm:$0xff]  }
 0x1b0   : > { %4425 = vmatpush1.bf16.msra.mxu0 %v2146_v57  ;;  %5242 = vmatpush1.bf16.msra.mxu1 %v2148_v58  ;;  %v2235_v57 = vunpack.c.l.s8.bf16 %v691_v52  ;;  %v2237_v58 = vunpack.c.l.s8.bf16 %v693_v53 }
 0x1b1   : > { %4426 = vmatprep.subr.bf16.mxu0 %v2155_v59  ;;  %5243 = vmatprep.subr.bf16.mxu1 %v2157_v60  ;;  %v690_v59 = vld [vmem:[%s9580_s25 + $0xa40] sm:$0xff]  ;;  %v692_v60 = vld [vmem:[%s9580_s25 + $0xa50] sm:$0xff] }
 0x1b2   : > { %v2234_v61 = vunpack.c.l.s8.bf16 %v690_v59  ;;  %v2236_v62 = vunpack.c.l.s8.bf16 %v692_v60  ;;  %v2242_v3 = vunpack.c.h.s8.bf16 %v690_v59  ;;  %v2244_v4 = vunpack.c.h.s8.bf16 %v692_v60 }
 0x1b4   : > { %4427 = vmatpush1.bf16.msra.mxu0 %v2154_v63  ;;  %5244 = vmatpush1.bf16.msra.mxu1 %v2156_v0  ;;  %v2243_v63 = vunpack.c.h.s8.bf16 %v691_v52  ;;  %v2245_v0 = vunpack.c.h.s8.bf16 %v693_v53 }
 0x1b5   : > { %4428 = vmatprep.subr.bf16.mxu0 %v2163_v1  ;;  %5245 = vmatprep.subr.bf16.mxu1 %v2165_v2  ;;  %v699_v1 = vld [vmem:[%s9580_s25 + $0xa88] sm:$0xff]  ;;  %v701_v2 = vld [vmem:[%s9580_s25 + $0xa98] sm:$0xff] }
 0x1b8   : > { %4429 = vmatpush1.bf16.msra.mxu0 %v2162_v5  ;;  %5246 = vmatpush1.bf16.msra.mxu1 %v2164_v6  ;;  %v2251_v5 = vunpack.c.l.s8.bf16 %v699_v1  ;;  %v2253_v6 = vunpack.c.l.s8.bf16 %v701_v2 }
 0x1b9   : > { %4430 = vmatprep.subr.bf16.mxu0 %v2171_v7  ;;  %5247 = vmatprep.subr.bf16.mxu1 %v2173_v8  ;;  %v698_v7 = vld [vmem:[%s9580_s25 + $0xa80] sm:$0xff]  ;;  %v700_v8 = vld [vmem:[%s9580_s25 + $0xa90] sm:$0xff] }
 0x1ba   : > { %v2250_v9 = vunpack.c.l.s8.bf16 %v698_v7  ;;  %v2252_v10 = vunpack.c.l.s8.bf16 %v700_v8  ;;  %v2258_v15 = vunpack.c.h.s8.bf16 %v698_v7  ;;  %v2260_v16 = vunpack.c.h.s8.bf16 %v700_v8 }
 0x1bc   : > { %4431 = vmatpush1.bf16.msra.mxu0 %v2170_v11  ;;  %5248 = vmatpush1.bf16.msra.mxu1 %v2172_v12  ;;  %v2259_v11 = vunpack.c.h.s8.bf16 %v699_v1  ;;  %v2261_v12 = vunpack.c.h.s8.bf16 %v701_v2 }
 0x1bd   : > { %4432 = vmatprep.subr.bf16.mxu0 %v2179_v13  ;;  %5249 = vmatprep.subr.bf16.mxu1 %v2181_v14  ;;  %v707_v13 = vld [vmem:[%s9580_s25 + $0xac8] sm:$0xff]  ;;  %v709_v14 = vld [vmem:[%s9580_s25 + $0xad8] sm:$0xff] }
 0x1c0   : > { %4433 = vmatpush1.bf16.msra.mxu0 %v2178_v17  ;;  %5250 = vmatpush1.bf16.msra.mxu1 %v2180_v18  ;;  %v2267_v17 = vunpack.c.l.s8.bf16 %v707_v13  ;;  %v2269_v18 = vunpack.c.l.s8.bf16 %v709_v14 }
 0x1c1   : > { %4434 = vmatprep.subr.bf16.mxu0 %v2187_v19  ;;  %5251 = vmatprep.subr.bf16.mxu1 %v2189_v20  ;;  %v706_v19 = vld [vmem:[%s9580_s25 + $0xac0] sm:$0xff]  ;;  %v708_v20 = vld [vmem:[%s9580_s25 + $0xad0] sm:$0xff] }
 0x1c2   : > { %v2266_v21 = vunpack.c.l.s8.bf16 %v706_v19  ;;  %v2268_v22 = vunpack.c.l.s8.bf16 %v708_v20  ;;  %v2274_v27 = vunpack.c.h.s8.bf16 %v706_v19  ;;  %v2276_v28 = vunpack.c.h.s8.bf16 %v708_v20 }
 0x1c4   : > { %4435 = vmatpush1.bf16.msra.mxu0 %v2186_v23  ;;  %5252 = vmatpush1.bf16.msra.mxu1 %v2188_v24  ;;  %v2275_v23 = vunpack.c.h.s8.bf16 %v707_v13  ;;  %v2277_v24 = vunpack.c.h.s8.bf16 %v709_v14 }
 0x1c5   : > { %4436 = vmatprep.subr.bf16.mxu0 %v2195_v25  ;;  %5253 = vmatprep.subr.bf16.mxu1 %v2197_v26  ;;  %v715_v25 = vld [vmem:[%s9580_s25 + $0xb08] sm:$0xff]  ;;  %v717_v26 = vld [vmem:[%s9580_s25 + $0xb18] sm:$0xff] }
 0x1c8   : > { %4437 = vmatpush1.bf16.msra.mxu0 %v2194_v29  ;;  %5254 = vmatpush1.bf16.msra.mxu1 %v2196_v30  ;;  %v2283_v29 = vunpack.c.l.s8.bf16 %v715_v25  ;;  %v2285_v30 = vunpack.c.l.s8.bf16 %v717_v26 }
 0x1c9   : > { %4438 = vmatprep.subr.bf16.mxu0 %v2203_v31  ;;  %5255 = vmatprep.subr.bf16.mxu1 %v2205_v32  ;;  %v714_v31 = vld [vmem:[%s9580_s25 + $0xb00] sm:$0xff]  ;;  %v716_v32 = vld [vmem:[%s9580_s25 + $0xb10] sm:$0xff] }
 0x1ca   : > { %v2282_v33 = vunpack.c.l.s8.bf16 %v714_v31  ;;  %v2284_v34 = vunpack.c.l.s8.bf16 %v716_v32  ;;  %v2290_v39 = vunpack.c.h.s8.bf16 %v714_v31  ;;  %v2292_v40 = vunpack.c.h.s8.bf16 %v716_v32 }
 0x1cc   : > { %4439 = vmatpush1.bf16.msra.mxu0 %v2202_v35  ;;  %5256 = vmatpush1.bf16.msra.mxu1 %v2204_v36  ;;  %v2291_v35 = vunpack.c.h.s8.bf16 %v715_v25  ;;  %v2293_v36 = vunpack.c.h.s8.bf16 %v717_v26 }
 0x1cd   : > { %4440 = vmatprep.subr.bf16.mxu0 %v2211_v37  ;;  %5257 = vmatprep.subr.bf16.mxu1 %v2213_v38  ;;  %v723_v37 = vld [vmem:[%s9580_s25 + $0xb48] sm:$0xff]  ;;  %v725_v38 = vld [vmem:[%s9580_s25 + $0xb58] sm:$0xff] }
 0x1d0   : > { %4441 = vmatpush1.bf16.msra.mxu0 %v2210_v41  ;;  %5258 = vmatpush1.bf16.msra.mxu1 %v2212_v42  ;;  %v2299_v41 = vunpack.c.l.s8.bf16 %v723_v37  ;;  %v2301_v42 = vunpack.c.l.s8.bf16 %v725_v38 }
 0x1d1   : > { %4453 = vmatprep.subr.bf16.mxu0 %v2219_v43  ;;  %5270 = vmatprep.subr.bf16.mxu1 %v2221_v44  ;;  %v722_v43 = vld [vmem:[%s9580_s25 + $0xb40] sm:$0xff]  ;;  %v724_v44 = vld [vmem:[%s9580_s25 + $0xb50] sm:$0xff] }
 0x1d2   : > { %v2298_v45 = vunpack.c.l.s8.bf16 %v722_v43  ;;  %v2300_v46 = vunpack.c.l.s8.bf16 %v724_v44  ;;  %v2308_v52 = vunpack.c.h.s8.bf16 %v724_v44 }
 0x1d3   : > { %4443 = vmatmul.mubr.bf16.vlgmr.msra.gmra.mrb[0].mxu0 %v9034_v47  ;;  %5260 = vmatmul.mubr.bf16.vlgmr.msra.gmra.mrb[0].mxu1 %v9034_v47  ;;  %v2307_v47 = vunpack.c.h.s8.bf16 %v723_v37 }
 0x1d4   : > { %4454 = vmatpush1.bf16.msra.mxu0 %v2218_v48  ;;  %5271 = vmatpush1.bf16.msra.mxu1 %v2220_v49  ;;  %v2309_v48 = vunpack.c.h.s8.bf16 %v725_v38  ;;  %v731_v49 = vld [vmem:[%s9580_s25 + $0xb88] sm:$0xff] }
 0x1d5   : > { %4455 = vmatprep.subr.bf16.mxu0 %v2227_v50  ;;  %5272 = vmatprep.subr.bf16.mxu1 %v2229_v51  ;;  %v733_v50 = vld [vmem:[%s9580_s25 + $0xb98] sm:$0xff]  ;;  %v2306_v51 = vunpack.c.h.s8.bf16 %v722_v43  ;;  %v2315_v53 = vunpack.c.l.s8.bf16 %v731_v49  ;;  %v2323_v59 = vunpack.c.h.s8.bf16 %v731_v49 }
 0x1d6   : > { %4485 = vmatprep.mubr.bf16.mxu0 %v9035_v54  ;;  %5302 = vmatprep.mubr.bf16.mxu1 %v9035_v54  ;;  %v2317_v54 = vunpack.c.l.s8.bf16 %v733_v50  ;;  %v2325_v60 = vunpack.c.h.s8.bf16 %v733_v50 }
 0x1d8   : > { %4456 = vmatpush1.bf16.msra.mxu0 %v2226_v55  ;;  %5273 = vmatpush1.bf16.msra.mxu1 %v2228_v56  ;;  %v730_v55 = vld [vmem:[%s9580_s25 + $0xb80] sm:$0xff]  ;;  %v732_v56 = vld [vmem:[%s9580_s25 + $0xb90] sm:$0xff] }
 0x1d9   : > { %4457 = vmatprep.subr.bf16.mxu0 %v2235_v57  ;;  %5274 = vmatprep.subr.bf16.mxu1 %v2237_v58  ;;  %v2314_v57 = vunpack.c.l.s8.bf16 %v730_v55  ;;  %v2316_v58 = vunpack.c.l.s8.bf16 %v732_v56 }
 0x1dc   : > { %4458 = vmatpush1.bf16.msra.mxu0 %v2234_v61  ;;  %5275 = vmatpush1.bf16.msra.mxu1 %v2236_v62  ;;  %v739_v61 = vld [vmem:[%s9580_s25 + $0xbc8] sm:$0xff]  ;;  %v741_v62 = vld [vmem:[%s9580_s25 + $0xbd8] sm:$0xff] }
 0x1dd   : > { %4459 = vmatprep.subr.bf16.mxu0 %v2243_v63  ;;  %5276 = vmatprep.subr.bf16.mxu1 %v2245_v0  ;;  %v2322_v63 = vunpack.c.h.s8.bf16 %v730_v55  ;;  %v2324_v0 = vunpack.c.h.s8.bf16 %v732_v56  ;;  %v2331_v1 = vunpack.c.l.s8.bf16 %v739_v61  ;;  %v2333_v2 = vunpack.c.l.s8.bf16 %v741_v62 }
 0x1de   : > { %v2339_v7 = vunpack.c.h.s8.bf16 %v739_v61  ;;  %v2341_v8 = vunpack.c.h.s8.bf16 %v741_v62 }
 0x1e0   : > { %4460 = vmatpush1.bf16.msra.mxu0 %v2242_v3  ;;  %5277 = vmatpush1.bf16.msra.mxu1 %v2244_v4  ;;  %v738_v3 = vld [vmem:[%s9580_s25 + $0xbc0] sm:$0xff]  ;;  %v740_v4 = vld [vmem:[%s9580_s25 + $0xbd0] sm:$0xff] }
 0x1e1   : > { %4461 = vmatprep.subr.bf16.mxu0 %v2251_v5  ;;  %5278 = vmatprep.subr.bf16.mxu1 %v2253_v6  ;;  %v2330_v5 = vunpack.c.l.s8.bf16 %v738_v3  ;;  %v2332_v6 = vunpack.c.l.s8.bf16 %v740_v4 }
 0x1e4   : > { %4462 = vmatpush1.bf16.msra.mxu0 %v2250_v9  ;;  %5279 = vmatpush1.bf16.msra.mxu1 %v2252_v10  ;;  %v747_v9 = vld [vmem:[%s9580_s25 + $0xc08] sm:$0xff]  ;;  %v749_v10 = vld [vmem:[%s9580_s25 + $0xc18] sm:$0xff] }
 0x1e5   : > { %4463 = vmatprep.subr.bf16.mxu0 %v2259_v11  ;;  %5280 = vmatprep.subr.bf16.mxu1 %v2261_v12  ;;  %v2338_v11 = vunpack.c.h.s8.bf16 %v738_v3  ;;  %v2340_v12 = vunpack.c.h.s8.bf16 %v740_v4  ;;  %v2347_v13 = vunpack.c.l.s8.bf16 %v747_v9  ;;  %v2349_v14 = vunpack.c.l.s8.bf16 %v749_v10 }
 0x1e6   : > { %v2355_v20 = vunpack.c.h.s8.bf16 %v747_v9 }
 0x1e8   : > { %4464 = vmatpush1.bf16.msra.mxu0 %v2258_v15  ;;  %5281 = vmatpush1.bf16.msra.mxu1 %v2260_v16  ;;  %v746_v15 = vld [vmem:[%s9580_s25 + $0xc00] sm:$0xff]  ;;  %v748_v16 = vld [vmem:[%s9580_s25 + $0xc10] sm:$0xff] }
 0x1e9   : > { %4465 = vmatprep.subr.bf16.mxu0 %v2267_v17  ;;  %5282 = vmatprep.subr.bf16.mxu1 %v2269_v18  ;;  %v9037_v17 = vld [vmem:[%s11165_s0 + $0x28] ss:$152 sps:$4 sm:$0xff]   ;;  %v2346_v18 = vunpack.c.l.s8.bf16 %v746_v15  ;;  %v2348_v19 = vunpack.c.l.s8.bf16 %v748_v16  ;;  %v2354_v25 = vunpack.c.h.s8.bf16 %v746_v15  ;;  %v2356_v26 = vunpack.c.h.s8.bf16 %v748_v16 }
 0x1ec   : > { %4466 = vmatpush1.bf16.msra.mxu0 %v2266_v21  ;;  %5283 = vmatpush1.bf16.msra.mxu1 %v2268_v22  ;;  %v2357_v21 = vunpack.c.h.s8.bf16 %v749_v10  ;;  %v755_v22 = vld [vmem:[%s9580_s25 + $0xc48] sm:$0xff] }
 0x1ed   : > { %4467 = vmatprep.subr.bf16.mxu0 %v2275_v23  ;;  %5284 = vmatprep.subr.bf16.mxu1 %v2277_v24  ;;  %v757_v23 = vld [vmem:[%s9580_s25 + $0xc58] sm:$0xff]  ;;  %v9038_v24 = vld [vmem:[%s11165_s0 + $0x34] ss:$152 sps:$4 sm:$0xff]  }
 0x1f0   : > { %4468 = vmatpush1.bf16.msra.mxu0 %v2274_v27  ;;  %5285 = vmatpush1.bf16.msra.mxu1 %v2276_v28  ;;  %v2363_v27 = vunpack.c.l.s8.bf16 %v755_v22  ;;  %v2365_v28 = vunpack.c.l.s8.bf16 %v757_v23 }
 0x1f1   : > { %4469 = vmatprep.subr.bf16.mxu0 %v2283_v29  ;;  %5286 = vmatprep.subr.bf16.mxu1 %v2285_v30  ;;  %v754_v29 = vld [vmem:[%s9580_s25 + $0xc40] sm:$0xff]  ;;  %v756_v30 = vld [vmem:[%s9580_s25 + $0xc50] sm:$0xff] }
 0x1f2   : > { %v2362_v31 = vunpack.c.l.s8.bf16 %v754_v29  ;;  %v2364_v32 = vunpack.c.l.s8.bf16 %v756_v30  ;;  %v2370_v37 = vunpack.c.h.s8.bf16 %v754_v29  ;;  %v2372_v38 = vunpack.c.h.s8.bf16 %v756_v30 }
 0x1f4   : > { %4470 = vmatpush1.bf16.msra.mxu0 %v2282_v33  ;;  %5287 = vmatpush1.bf16.msra.mxu1 %v2284_v34  ;;  %v2371_v33 = vunpack.c.h.s8.bf16 %v755_v22  ;;  %v2373_v34 = vunpack.c.h.s8.bf16 %v757_v23 }
 0x1f5   : > { %4471 = vmatprep.subr.bf16.mxu0 %v2291_v35  ;;  %5288 = vmatprep.subr.bf16.mxu1 %v2293_v36  ;;  %v763_v35 = vld [vmem:[%s9580_s25 + $0xc88] sm:$0xff]  ;;  %v765_v36 = vld [vmem:[%s9580_s25 + $0xc98] sm:$0xff] }
 0x1f8   : > { %4472 = vmatpush1.bf16.msra.mxu0 %v2290_v39  ;;  %5289 = vmatpush1.bf16.msra.mxu1 %v2292_v40  ;;  %v2379_v39 = vunpack.c.l.s8.bf16 %v763_v35  ;;  %v2381_v40 = vunpack.c.l.s8.bf16 %v765_v36 }
 0x1f9   : > { %4473 = vmatprep.subr.bf16.mxu0 %v2299_v41  ;;  %5290 = vmatprep.subr.bf16.mxu1 %v2301_v42  ;;  %v762_v41 = vld [vmem:[%s9580_s25 + $0xc80] sm:$0xff]  ;;  %v764_v42 = vld [vmem:[%s9580_s25 + $0xc90] sm:$0xff] }
 0x1fa   : > { %v2378_v43 = vunpack.c.l.s8.bf16 %v762_v41  ;;  %v2380_v44 = vunpack.c.l.s8.bf16 %v764_v42  ;;  %v2386_v49 = vunpack.c.h.s8.bf16 %v762_v41  ;;  %v2388_v50 = vunpack.c.h.s8.bf16 %v764_v42 }
 0x1fc   : > { %4474 = vmatpush1.bf16.msra.mxu0 %v2298_v45  ;;  %5291 = vmatpush1.bf16.msra.mxu1 %v2300_v46  ;;  %v2387_v45 = vunpack.c.h.s8.bf16 %v763_v35  ;;  %v2389_v46 = vunpack.c.h.s8.bf16 %v765_v36 }
 0x1fd   : > { %4475 = vmatprep.subr.bf16.mxu0 %v2307_v47  ;;  %5292 = vmatprep.subr.bf16.mxu1 %v2309_v48  ;;  %v771_v47 = vld [vmem:[%s9580_s25 + $0xcc8] sm:$0xff]  ;;  %v773_v48 = vld [vmem:[%s9580_s25 + $0xcd8] sm:$0xff] }
 0x200   : > { %4476 = vmatpush1.bf16.msra.mxu0 %v2306_v51  ;;  %5293 = vmatpush1.bf16.msra.mxu1 %v2308_v52  ;;  %v2395_v51 = vunpack.c.l.s8.bf16 %v771_v47  ;;  %v2397_v52 = vunpack.c.l.s8.bf16 %v773_v48 }
 0x201   : > { %4477 = vmatprep.subr.bf16.mxu0 %v2315_v53  ;;  %5294 = vmatprep.subr.bf16.mxu1 %v2317_v54  ;;  %v770_v53 = vld [vmem:[%s9580_s25 + $0xcc0] sm:$0xff]  ;;  %v772_v54 = vld [vmem:[%s9580_s25 + $0xcd0] sm:$0xff] }
 0x202   : > { %v2394_v55 = vunpack.c.l.s8.bf16 %v770_v53  ;;  %v2396_v56 = vunpack.c.l.s8.bf16 %v772_v54  ;;  %v2402_v61 = vunpack.c.h.s8.bf16 %v770_v53  ;;  %v2404_v62 = vunpack.c.h.s8.bf16 %v772_v54 }
 0x204   : > { %4478 = vmatpush1.bf16.msra.mxu0 %v2314_v57  ;;  %5295 = vmatpush1.bf16.msra.mxu1 %v2316_v58  ;;  %v2403_v57 = vunpack.c.h.s8.bf16 %v771_v47  ;;  %v2405_v58 = vunpack.c.h.s8.bf16 %v773_v48 }
 0x205   : > { %4479 = vmatprep.subr.bf16.mxu0 %v2323_v59  ;;  %5296 = vmatprep.subr.bf16.mxu1 %v2325_v60  ;;  %v779_v59 = vld [vmem:[%s9580_s25 + $0xd08] sm:$0xff]  ;;  %v781_v60 = vld [vmem:[%s9580_s25 + $0xd18] sm:$0xff] }
 0x208   : > { %4480 = vmatpush1.bf16.msra.mxu0 %v2322_v63  ;;  %5297 = vmatpush1.bf16.msra.mxu1 %v2324_v0  ;;  %v2411_v63 = vunpack.c.l.s8.bf16 %v779_v59  ;;  %v2413_v0 = vunpack.c.l.s8.bf16 %v781_v60 }
 0x209   : > { %4481 = vmatprep.subr.bf16.mxu0 %v2331_v1  ;;  %5298 = vmatprep.subr.bf16.mxu1 %v2333_v2  ;;  %v778_v1 = vld [vmem:[%s9580_s25 + $0xd00] sm:$0xff]  ;;  %v780_v2 = vld [vmem:[%s9580_s25 + $0xd10] sm:$0xff] }
 0x20a   : > { %v2410_v3 = vunpack.c.l.s8.bf16 %v778_v1  ;;  %v2412_v4 = vunpack.c.l.s8.bf16 %v780_v2  ;;  %v2418_v9 = vunpack.c.h.s8.bf16 %v778_v1  ;;  %v2420_v10 = vunpack.c.h.s8.bf16 %v780_v2 }
 0x20c   : > { %4482 = vmatpush1.bf16.msra.mxu0 %v2330_v5  ;;  %5299 = vmatpush1.bf16.msra.mxu1 %v2332_v6  ;;  %v2419_v5 = vunpack.c.h.s8.bf16 %v779_v59  ;;  %v2421_v6 = vunpack.c.h.s8.bf16 %v781_v60 }
 0x20d   : > { %4483 = vmatprep.subr.bf16.mxu0 %v2339_v7  ;;  %5300 = vmatprep.subr.bf16.mxu1 %v2341_v8  ;;  %v787_v7 = vld [vmem:[%s9580_s25 + $0xd48] sm:$0xff]  ;;  %v789_v8 = vld [vmem:[%s9580_s25 + $0xd58] sm:$0xff] }
 0x210   : > { %4484 = vmatpush1.bf16.msra.mxu0 %v2338_v11  ;;  %5301 = vmatpush1.bf16.msra.mxu1 %v2340_v12  ;;  %v2427_v11 = vunpack.c.l.s8.bf16 %v787_v7  ;;  %v2429_v12 = vunpack.c.l.s8.bf16 %v789_v8 }
 0x211   : > { %4496 = vmatprep.subr.bf16.mxu0 %v2347_v13  ;;  %5313 = vmatprep.subr.bf16.mxu1 %v2349_v14  ;;  %v786_v13 = vld [vmem:[%s9580_s25 + $0xd40] sm:$0xff]  ;;  %v788_v14 = vld [vmem:[%s9580_s25 + $0xd50] sm:$0xff] }
 0x212   : > { %v2426_v15 = vunpack.c.l.s8.bf16 %v786_v13  ;;  %v2428_v16 = vunpack.c.l.s8.bf16 %v788_v14  ;;  %v2436_v22 = vunpack.c.h.s8.bf16 %v788_v14 }
 0x213   : > { %4486 = vmatmul.mubr.bf16.vlgmr.msra.gmra.mrb[0].mxu0 %v9037_v17  ;;  %5303 = vmatmul.mubr.bf16.vlgmr.msra.gmra.mrb[0].mxu1 %v9037_v17  ;;  %v2435_v17 = vunpack.c.h.s8.bf16 %v787_v7 }
 0x214   : > { %4497 = vmatpush1.bf16.msra.mxu0 %v2346_v18  ;;  %5314 = vmatpush1.bf16.msra.mxu1 %v2348_v19  ;;  %v2437_v18 = vunpack.c.h.s8.bf16 %v789_v8  ;;  %v795_v19 = vld [vmem:[%s9580_s25 + $0xd88] sm:$0xff] }
 0x215   : > { %4498 = vmatprep.subr.bf16.mxu0 %v2355_v20  ;;  %5315 = vmatprep.subr.bf16.mxu1 %v2357_v21  ;;  %v797_v20 = vld [vmem:[%s9580_s25 + $0xd98] sm:$0xff]  ;;  %v2434_v21 = vunpack.c.h.s8.bf16 %v786_v13  ;;  %v2443_v23 = vunpack.c.l.s8.bf16 %v795_v19  ;;  %v2451_v29 = vunpack.c.h.s8.bf16 %v795_v19 }
 0x216   : > { %4528 = vmatprep.mubr.bf16.mxu0 %v9038_v24  ;;  %5345 = vmatprep.mubr.bf16.mxu1 %v9038_v24  ;;  %v2445_v24 = vunpack.c.l.s8.bf16 %v797_v20  ;;  %v2453_v30 = vunpack.c.h.s8.bf16 %v797_v20 }
 0x218   : > { %4499 = vmatpush1.bf16.msra.mxu0 %v2354_v25  ;;  %5316 = vmatpush1.bf16.msra.mxu1 %v2356_v26  ;;  %v794_v25 = vld [vmem:[%s9580_s25 + $0xd80] sm:$0xff]  ;;  %v796_v26 = vld [vmem:[%s9580_s25 + $0xd90] sm:$0xff] }
 0x219   : > { %4500 = vmatprep.subr.bf16.mxu0 %v2363_v27  ;;  %5317 = vmatprep.subr.bf16.mxu1 %v2365_v28  ;;  %v2442_v27 = vunpack.c.l.s8.bf16 %v794_v25  ;;  %v2444_v28 = vunpack.c.l.s8.bf16 %v796_v26 }
 0x21c   : > { %4501 = vmatpush1.bf16.msra.mxu0 %v2362_v31  ;;  %5318 = vmatpush1.bf16.msra.mxu1 %v2364_v32  ;;  %v803_v31 = vld [vmem:[%s9580_s25 + $0xdc8] sm:$0xff]  ;;  %v805_v32 = vld [vmem:[%s9580_s25 + $0xdd8] sm:$0xff] }
 0x21d   : > { %4502 = vmatprep.subr.bf16.mxu0 %v2371_v33  ;;  %5319 = vmatprep.subr.bf16.mxu1 %v2373_v34  ;;  %v2450_v33 = vunpack.c.h.s8.bf16 %v794_v25  ;;  %v2452_v34 = vunpack.c.h.s8.bf16 %v796_v26  ;;  %v2459_v35 = vunpack.c.l.s8.bf16 %v803_v31  ;;  %v2461_v36 = vunpack.c.l.s8.bf16 %v805_v32 }
 0x21e   : > { %v2467_v41 = vunpack.c.h.s8.bf16 %v803_v31  ;;  %v2469_v42 = vunpack.c.h.s8.bf16 %v805_v32 }
 0x220   : > { %4503 = vmatpush1.bf16.msra.mxu0 %v2370_v37  ;;  %5320 = vmatpush1.bf16.msra.mxu1 %v2372_v38  ;;  %v802_v37 = vld [vmem:[%s9580_s25 + $0xdc0] sm:$0xff]  ;;  %v804_v38 = vld [vmem:[%s9580_s25 + $0xdd0] sm:$0xff] }
 0x221   : > { %4504 = vmatprep.subr.bf16.mxu0 %v2379_v39  ;;  %5321 = vmatprep.subr.bf16.mxu1 %v2381_v40  ;;  %v2458_v39 = vunpack.c.l.s8.bf16 %v802_v37  ;;  %v2460_v40 = vunpack.c.l.s8.bf16 %v804_v38 }
 0x224   : > { %4505 = vmatpush1.bf16.msra.mxu0 %v2378_v43  ;;  %5322 = vmatpush1.bf16.msra.mxu1 %v2380_v44  ;;  %v811_v43 = vld [vmem:[%s9580_s25 + $0xe08] sm:$0xff]  ;;  %v813_v44 = vld [vmem:[%s9580_s25 + $0xe18] sm:$0xff] }
 0x225   : > { %4506 = vmatprep.subr.bf16.mxu0 %v2387_v45  ;;  %5323 = vmatprep.subr.bf16.mxu1 %v2389_v46  ;;  %v2466_v45 = vunpack.c.h.s8.bf16 %v802_v37  ;;  %v2468_v46 = vunpack.c.h.s8.bf16 %v804_v38  ;;  %v2475_v47 = vunpack.c.l.s8.bf16 %v811_v43  ;;  %v2477_v48 = vunpack.c.l.s8.bf16 %v813_v44 }
 0x226   : > { %v2483_v54 = vunpack.c.h.s8.bf16 %v811_v43 }
 0x228   : > { %4507 = vmatpush1.bf16.msra.mxu0 %v2386_v49  ;;  %5324 = vmatpush1.bf16.msra.mxu1 %v2388_v50  ;;  %v810_v49 = vld [vmem:[%s9580_s25 + $0xe00] sm:$0xff]  ;;  %v812_v50 = vld [vmem:[%s9580_s25 + $0xe10] sm:$0xff] }
 0x229   : > { %4508 = vmatprep.subr.bf16.mxu0 %v2395_v51  ;;  %5325 = vmatprep.subr.bf16.mxu1 %v2397_v52  ;;  %v9040_v51 = vld [vmem:[%s11165_s0 + $0x30] ss:$152 sps:$4 sm:$0xff]   ;;  %v2474_v52 = vunpack.c.l.s8.bf16 %v810_v49  ;;  %v2476_v53 = vunpack.c.l.s8.bf16 %v812_v50  ;;  %v2482_v59 = vunpack.c.h.s8.bf16 %v810_v49  ;;  %v2484_v60 = vunpack.c.h.s8.bf16 %v812_v50 }
 0x22c   : > { %4509 = vmatpush1.bf16.msra.mxu0 %v2394_v55  ;;  %5326 = vmatpush1.bf16.msra.mxu1 %v2396_v56  ;;  %v2485_v55 = vunpack.c.h.s8.bf16 %v813_v44  ;;  %v819_v56 = vld [vmem:[%s9580_s25 + $0xe48] sm:$0xff] }
 0x22d   : > { %4510 = vmatprep.subr.bf16.mxu0 %v2403_v57  ;;  %5327 = vmatprep.subr.bf16.mxu1 %v2405_v58  ;;  %v821_v57 = vld [vmem:[%s9580_s25 + $0xe58] sm:$0xff] }
 0x22e   : > { %v9041_v58 = vld [vmem:[%s11165_s0 + $0x3c] ss:$152 sps:$4 sm:$0xff]  }
 0x230   : > { %4511 = vmatpush1.bf16.msra.mxu0 %v2402_v61  ;;  %5328 = vmatpush1.bf16.msra.mxu1 %v2404_v62  ;;  %v2491_v61 = vunpack.c.l.s8.bf16 %v819_v56  ;;  %v2493_v62 = vunpack.c.l.s8.bf16 %v821_v57 }
 0x231   : > { %4512 = vmatprep.subr.bf16.mxu0 %v2411_v63  ;;  %5329 = vmatprep.subr.bf16.mxu1 %v2413_v0  ;;  %v818_v63 = vld [vmem:[%s9580_s25 + $0xe40] sm:$0xff]  ;;  %v820_v0 = vld [vmem:[%s9580_s25 + $0xe50] sm:$0xff] }
 0x232   : > { %v2490_v1 = vunpack.c.l.s8.bf16 %v818_v63  ;;  %v2492_v2 = vunpack.c.l.s8.bf16 %v820_v0  ;;  %v2498_v7 = vunpack.c.h.s8.bf16 %v818_v63  ;;  %v2500_v8 = vunpack.c.h.s8.bf16 %v820_v0 }
 0x234   : > { %4513 = vmatpush1.bf16.msra.mxu0 %v2410_v3  ;;  %5330 = vmatpush1.bf16.msra.mxu1 %v2412_v4  ;;  %v2499_v3 = vunpack.c.h.s8.bf16 %v819_v56  ;;  %v2501_v4 = vunpack.c.h.s8.bf16 %v821_v57 }
 0x235   : > { %4514 = vmatprep.subr.bf16.mxu0 %v2419_v5  ;;  %5331 = vmatprep.subr.bf16.mxu1 %v2421_v6  ;;  %v827_v5 = vld [vmem:[%s9580_s25 + $0xe88] sm:$0xff]  ;;  %v829_v6 = vld [vmem:[%s9580_s25 + $0xe98] sm:$0xff] }
 0x238   : > { %4515 = vmatpush1.bf16.msra.mxu0 %v2418_v9  ;;  %5332 = vmatpush1.bf16.msra.mxu1 %v2420_v10  ;;  %v2507_v9 = vunpack.c.l.s8.bf16 %v827_v5  ;;  %v2509_v10 = vunpack.c.l.s8.bf16 %v829_v6 }
 0x239   : > { %4516 = vmatprep.subr.bf16.mxu0 %v2427_v11  ;;  %5333 = vmatprep.subr.bf16.mxu1 %v2429_v12  ;;  %v826_v11 = vld [vmem:[%s9580_s25 + $0xe80] sm:$0xff]  ;;  %v828_v12 = vld [vmem:[%s9580_s25 + $0xe90] sm:$0xff] }
 0x23a   : > { %v2506_v13 = vunpack.c.l.s8.bf16 %v826_v11  ;;  %v2508_v14 = vunpack.c.l.s8.bf16 %v828_v12  ;;  %v2514_v19 = vunpack.c.h.s8.bf16 %v826_v11  ;;  %v2516_v20 = vunpack.c.h.s8.bf16 %v828_v12 }
 0x23c   : > { %4517 = vmatpush1.bf16.msra.mxu0 %v2426_v15  ;;  %5334 = vmatpush1.bf16.msra.mxu1 %v2428_v16  ;;  %v2515_v15 = vunpack.c.h.s8.bf16 %v827_v5  ;;  %v2517_v16 = vunpack.c.h.s8.bf16 %v829_v6 }
 0x23d   : > { %4518 = vmatprep.subr.bf16.mxu0 %v2435_v17  ;;  %5335 = vmatprep.subr.bf16.mxu1 %v2437_v18  ;;  %v835_v17 = vld [vmem:[%s9580_s25 + $0xec8] sm:$0xff]  ;;  %v837_v18 = vld [vmem:[%s9580_s25 + $0xed8] sm:$0xff] }
 0x240   : > { %4519 = vmatpush1.bf16.msra.mxu0 %v2434_v21  ;;  %5336 = vmatpush1.bf16.msra.mxu1 %v2436_v22  ;;  %v2523_v21 = vunpack.c.l.s8.bf16 %v835_v17  ;;  %v2525_v22 = vunpack.c.l.s8.bf16 %v837_v18 }
 0x241   : > { %4520 = vmatprep.subr.bf16.mxu0 %v2443_v23  ;;  %5337 = vmatprep.subr.bf16.mxu1 %v2445_v24  ;;  %v834_v23 = vld [vmem:[%s9580_s25 + $0xec0] sm:$0xff]  ;;  %v836_v24 = vld [vmem:[%s9580_s25 + $0xed0] sm:$0xff] }
 0x242   : > { %v2522_v25 = vunpack.c.l.s8.bf16 %v834_v23  ;;  %v2524_v26 = vunpack.c.l.s8.bf16 %v836_v24  ;;  %v2530_v31 = vunpack.c.h.s8.bf16 %v834_v23  ;;  %v2532_v32 = vunpack.c.h.s8.bf16 %v836_v24 }
 0x244   : > { %4521 = vmatpush1.bf16.msra.mxu0 %v2442_v27  ;;  %5338 = vmatpush1.bf16.msra.mxu1 %v2444_v28  ;;  %v2531_v27 = vunpack.c.h.s8.bf16 %v835_v17  ;;  %v2533_v28 = vunpack.c.h.s8.bf16 %v837_v18 }
 0x245   : > { %4522 = vmatprep.subr.bf16.mxu0 %v2451_v29  ;;  %5339 = vmatprep.subr.bf16.mxu1 %v2453_v30  ;;  %v843_v29 = vld [vmem:[%s9580_s25 + $0xf08] sm:$0xff]  ;;  %v845_v30 = vld [vmem:[%s9580_s25 + $0xf18] sm:$0xff] }
 0x248   : > { %4523 = vmatpush1.bf16.msra.mxu0 %v2450_v33  ;;  %5340 = vmatpush1.bf16.msra.mxu1 %v2452_v34  ;;  %v2539_v33 = vunpack.c.l.s8.bf16 %v843_v29  ;;  %v2541_v34 = vunpack.c.l.s8.bf16 %v845_v30 }
 0x249   : > { %4524 = vmatprep.subr.bf16.mxu0 %v2459_v35  ;;  %5341 = vmatprep.subr.bf16.mxu1 %v2461_v36  ;;  %v842_v35 = vld [vmem:[%s9580_s25 + $0xf00] sm:$0xff]  ;;  %v844_v36 = vld [vmem:[%s9580_s25 + $0xf10] sm:$0xff] }
 0x24a   : > { %v2538_v37 = vunpack.c.l.s8.bf16 %v842_v35  ;;  %v2540_v38 = vunpack.c.l.s8.bf16 %v844_v36  ;;  %v2546_v43 = vunpack.c.h.s8.bf16 %v842_v35  ;;  %v2548_v44 = vunpack.c.h.s8.bf16 %v844_v36 }
 0x24c   : > { %4525 = vmatpush1.bf16.msra.mxu0 %v2458_v39  ;;  %5342 = vmatpush1.bf16.msra.mxu1 %v2460_v40  ;;  %v2547_v39 = vunpack.c.h.s8.bf16 %v843_v29  ;;  %v2549_v40 = vunpack.c.h.s8.bf16 %v845_v30 }
 0x24d   : > { %4526 = vmatprep.subr.bf16.mxu0 %v2467_v41  ;;  %5343 = vmatprep.subr.bf16.mxu1 %v2469_v42  ;;  %v851_v41 = vld [vmem:[%s9580_s25 + $0xf48] sm:$0xff]  ;;  %v853_v42 = vld [vmem:[%s9580_s25 + $0xf58] sm:$0xff] }
 0x250   : > { %4527 = vmatpush1.bf16.msra.mxu0 %v2466_v45  ;;  %5344 = vmatpush1.bf16.msra.mxu1 %v2468_v46  ;;  %v2555_v45 = vunpack.c.l.s8.bf16 %v851_v41  ;;  %v2557_v46 = vunpack.c.l.s8.bf16 %v853_v42 }
 0x251   : > { %4539 = vmatprep.subr.bf16.mxu0 %v2475_v47  ;;  %5356 = vmatprep.subr.bf16.mxu1 %v2477_v48  ;;  %v850_v47 = vld [vmem:[%s9580_s25 + $0xf40] sm:$0xff]  ;;  %v852_v48 = vld [vmem:[%s9580_s25 + $0xf50] sm:$0xff] }
 0x252   : > { %v2554_v49 = vunpack.c.l.s8.bf16 %v850_v47  ;;  %v2556_v50 = vunpack.c.l.s8.bf16 %v852_v48  ;;  %v2564_v56 = vunpack.c.h.s8.bf16 %v852_v48 }
 0x253   : > { %4529 = vmatmul.mubr.bf16.vlgmr.msra.gmra.mrb[0].mxu0 %v9040_v51  ;;  %5346 = vmatmul.mubr.bf16.vlgmr.msra.gmra.mrb[0].mxu1 %v9040_v51  ;;  %v2563_v51 = vunpack.c.h.s8.bf16 %v851_v41 }
 0x254   : > { %4540 = vmatpush1.bf16.msra.mxu0 %v2474_v52  ;;  %5357 = vmatpush1.bf16.msra.mxu1 %v2476_v53  ;;  %v2565_v52 = vunpack.c.h.s8.bf16 %v853_v42  ;;  %v859_v53 = vld [vmem:[%s9580_s25 + $0xf88] sm:$0xff] }
 0x255   : > { %4541 = vmatprep.subr.bf16.mxu0 %v2483_v54  ;;  %5358 = vmatprep.subr.bf16.mxu1 %v2485_v55  ;;  %v861_v54 = vld [vmem:[%s9580_s25 + $0xf98] sm:$0xff]  ;;  %v2562_v55 = vunpack.c.h.s8.bf16 %v850_v47  ;;  %v2571_v57 = vunpack.c.l.s8.bf16 %v859_v53  ;;  %v2579_v63 = vunpack.c.h.s8.bf16 %v859_v53 }
 0x256   : > { %4571 = vmatprep.mubr.bf16.mxu0 %v9041_v58  ;;  %5388 = vmatprep.mubr.bf16.mxu1 %v9041_v58  ;;  %v2573_v58 = vunpack.c.l.s8.bf16 %v861_v54  ;;  %v2581_v0 = vunpack.c.h.s8.bf16 %v861_v54 }
 0x258   : > { %4542 = vmatpush1.bf16.msra.mxu0 %v2482_v59  ;;  %5359 = vmatpush1.bf16.msra.mxu1 %v2484_v60  ;;  %v858_v59 = vld [vmem:[%s9580_s25 + $0xf80] sm:$0xff]  ;;  %v860_v60 = vld [vmem:[%s9580_s25 + $0xf90] sm:$0xff] }
 0x259   : > { %4543 = vmatprep.subr.bf16.mxu0 %v2491_v61  ;;  %5360 = vmatprep.subr.bf16.mxu1 %v2493_v62  ;;  %v2570_v61 = vunpack.c.l.s8.bf16 %v858_v59  ;;  %v2572_v62 = vunpack.c.l.s8.bf16 %v860_v60 }
 0x25c   : > { %4544 = vmatpush1.bf16.msra.mxu0 %v2490_v1  ;;  %5361 = vmatpush1.bf16.msra.mxu1 %v2492_v2  ;;  %v867_v1 = vld [vmem:[%s9580_s25 + $0xfc8] sm:$0xff]  ;;  %v869_v2 = vld [vmem:[%s9580_s25 + $0xfd8] sm:$0xff] }
 0x25d   : > { %4545 = vmatprep.subr.bf16.mxu0 %v2499_v3  ;;  %5362 = vmatprep.subr.bf16.mxu1 %v2501_v4  ;;  %v2578_v3 = vunpack.c.h.s8.bf16 %v858_v59  ;;  %v2580_v4 = vunpack.c.h.s8.bf16 %v860_v60  ;;  %v2587_v5 = vunpack.c.l.s8.bf16 %v867_v1  ;;  %v2589_v6 = vunpack.c.l.s8.bf16 %v869_v2 }
 0x25e   : > { %v2595_v11 = vunpack.c.h.s8.bf16 %v867_v1  ;;  %v2597_v12 = vunpack.c.h.s8.bf16 %v869_v2 }
 0x260   : > { %4546 = vmatpush1.bf16.msra.mxu0 %v2498_v7  ;;  %5363 = vmatpush1.bf16.msra.mxu1 %v2500_v8  ;;  %v866_v7 = vld [vmem:[%s9580_s25 + $0xfc0] sm:$0xff]  ;;  %v868_v8 = vld [vmem:[%s9580_s25 + $0xfd0] sm:$0xff] }
 0x261   : > { %4547 = vmatprep.subr.bf16.mxu0 %v2507_v9  ;;  %5364 = vmatprep.subr.bf16.mxu1 %v2509_v10  ;;  %v2586_v9 = vunpack.c.l.s8.bf16 %v866_v7  ;;  %v2588_v10 = vunpack.c.l.s8.bf16 %v868_v8 }
 0x264   : > { %4548 = vmatpush1.bf16.msra.mxu0 %v2506_v13  ;;  %5365 = vmatpush1.bf16.msra.mxu1 %v2508_v14  ;;  %v875_v13 = vld [vmem:[%s9580_s25 + $0x1008] sm:$0xff]  ;;  %v877_v14 = vld [vmem:[%s9580_s25 + $0x1018] sm:$0xff] }
 0x265   : > { %4549 = vmatprep.subr.bf16.mxu0 %v2515_v15  ;;  %5366 = vmatprep.subr.bf16.mxu1 %v2517_v16  ;;  %v2594_v15 = vunpack.c.h.s8.bf16 %v866_v7  ;;  %v2596_v16 = vunpack.c.h.s8.bf16 %v868_v8  ;;  %v2603_v17 = vunpack.c.l.s8.bf16 %v875_v13  ;;  %v2605_v18 = vunpack.c.l.s8.bf16 %v877_v14 }
 0x266   : > { %v2611_v24 = vunpack.c.h.s8.bf16 %v875_v13 }
 0x268   : > { %4550 = vmatpush1.bf16.msra.mxu0 %v2514_v19  ;;  %5367 = vmatpush1.bf16.msra.mxu1 %v2516_v20  ;;  %v874_v19 = vld [vmem:[%s9580_s25 + $0x1000] sm:$0xff]  ;;  %v876_v20 = vld [vmem:[%s9580_s25 + $0x1010] sm:$0xff] }
 0x269   : > { %4551 = vmatprep.subr.bf16.mxu0 %v2523_v21  ;;  %5368 = vmatprep.subr.bf16.mxu1 %v2525_v22  ;;  %v9043_v21 = vld [vmem:[%s11165_s0 + $0x38] ss:$152 sps:$4 sm:$0xff]   ;;  %v2602_v22 = vunpack.c.l.s8.bf16 %v874_v19  ;;  %v2604_v23 = vunpack.c.l.s8.bf16 %v876_v20  ;;  %v2610_v29 = vunpack.c.h.s8.bf16 %v874_v19  ;;  %v2612_v30 = vunpack.c.h.s8.bf16 %v876_v20 }
 0x26c   : > { %4552 = vmatpush1.bf16.msra.mxu0 %v2522_v25  ;;  %5369 = vmatpush1.bf16.msra.mxu1 %v2524_v26  ;;  %v2613_v25 = vunpack.c.h.s8.bf16 %v877_v14  ;;  %v883_v26 = vld [vmem:[%s9580_s25 + $0x1048] sm:$0xff] }
 0x26d   : > { %4553 = vmatprep.subr.bf16.mxu0 %v2531_v27  ;;  %5370 = vmatprep.subr.bf16.mxu1 %v2533_v28  ;;  %v885_v27 = vld [vmem:[%s9580_s25 + $0x1058] sm:$0xff] }
 0x26e   : > { %v9044_v28 = vld [vmem:[%s11165_s0 + $0x44] ss:$152 sps:$4 sm:$0xff]  }
 0x270   : > { %4554 = vmatpush1.bf16.msra.mxu0 %v2530_v31  ;;  %5371 = vmatpush1.bf16.msra.mxu1 %v2532_v32  ;;  %v2619_v31 = vunpack.c.l.s8.bf16 %v883_v26  ;;  %v2621_v32 = vunpack.c.l.s8.bf16 %v885_v27 }
 0x271   : > { %4555 = vmatprep.subr.bf16.mxu0 %v2539_v33  ;;  %5372 = vmatprep.subr.bf16.mxu1 %v2541_v34  ;;  %v882_v33 = vld [vmem:[%s9580_s25 + $0x1040] sm:$0xff]  ;;  %v884_v34 = vld [vmem:[%s9580_s25 + $0x1050] sm:$0xff] }
 0x272   : > { %v2618_v35 = vunpack.c.l.s8.bf16 %v882_v33  ;;  %v2620_v36 = vunpack.c.l.s8.bf16 %v884_v34  ;;  %v2626_v41 = vunpack.c.h.s8.bf16 %v882_v33  ;;  %v2628_v42 = vunpack.c.h.s8.bf16 %v884_v34 }
 0x274   : > { %4556 = vmatpush1.bf16.msra.mxu0 %v2538_v37  ;;  %5373 = vmatpush1.bf16.msra.mxu1 %v2540_v38  ;;  %v2627_v37 = vunpack.c.h.s8.bf16 %v883_v26  ;;  %v2629_v38 = vunpack.c.h.s8.bf16 %v885_v27 }
 0x275   : > { %4557 = vmatprep.subr.bf16.mxu0 %v2547_v39  ;;  %5374 = vmatprep.subr.bf16.mxu1 %v2549_v40  ;;  %v891_v39 = vld [vmem:[%s9580_s25 + $0x1088] sm:$0xff]  ;;  %v893_v40 = vld [vmem:[%s9580_s25 + $0x1098] sm:$0xff] }
 0x278   : > { %4558 = vmatpush1.bf16.msra.mxu0 %v2546_v43  ;;  %5375 = vmatpush1.bf16.msra.mxu1 %v2548_v44  ;;  %v2635_v43 = vunpack.c.l.s8.bf16 %v891_v39  ;;  %v2637_v44 = vunpack.c.l.s8.bf16 %v893_v40 }
 0x279   : > { %4559 = vmatprep.subr.bf16.mxu0 %v2555_v45  ;;  %5376 = vmatprep.subr.bf16.mxu1 %v2557_v46  ;;  %v890_v45 = vld [vmem:[%s9580_s25 + $0x1080] sm:$0xff]  ;;  %v892_v46 = vld [vmem:[%s9580_s25 + $0x1090] sm:$0xff] }
 0x27a   : > { %v2634_v47 = vunpack.c.l.s8.bf16 %v890_v45  ;;  %v2636_v48 = vunpack.c.l.s8.bf16 %v892_v46  ;;  %v2642_v53 = vunpack.c.h.s8.bf16 %v890_v45  ;;  %v2644_v54 = vunpack.c.h.s8.bf16 %v892_v46 }
 0x27c   : > { %4560 = vmatpush1.bf16.msra.mxu0 %v2554_v49  ;;  %5377 = vmatpush1.bf16.msra.mxu1 %v2556_v50  ;;  %v2643_v49 = vunpack.c.h.s8.bf16 %v891_v39  ;;  %v2645_v50 = vunpack.c.h.s8.bf16 %v893_v40 }
 0x27d   : > { %4561 = vmatprep.subr.bf16.mxu0 %v2563_v51  ;;  %5378 = vmatprep.subr.bf16.mxu1 %v2565_v52  ;;  %v899_v51 = vld [vmem:[%s9580_s25 + $0x10c8] sm:$0xff]  ;;  %v901_v52 = vld [vmem:[%s9580_s25 + $0x10d8] sm:$0xff] }
 0x280   : > { %4562 = vmatpush1.bf16.msra.mxu0 %v2562_v55  ;;  %5379 = vmatpush1.bf16.msra.mxu1 %v2564_v56  ;;  %v2651_v55 = vunpack.c.l.s8.bf16 %v899_v51  ;;  %v2653_v56 = vunpack.c.l.s8.bf16 %v901_v52 }
 0x281   : > { %4563 = vmatprep.subr.bf16.mxu0 %v2571_v57  ;;  %5380 = vmatprep.subr.bf16.mxu1 %v2573_v58  ;;  %v898_v57 = vld [vmem:[%s9580_s25 + $0x10c0] sm:$0xff]  ;;  %v900_v58 = vld [vmem:[%s9580_s25 + $0x10d0] sm:$0xff] }
 0x282   : > { %v2650_v59 = vunpack.c.l.s8.bf16 %v898_v57  ;;  %v2652_v60 = vunpack.c.l.s8.bf16 %v900_v58  ;;  %v2658_v1 = vunpack.c.h.s8.bf16 %v898_v57  ;;  %v2660_v2 = vunpack.c.h.s8.bf16 %v900_v58 }
 0x284   : > { %4564 = vmatpush1.bf16.msra.mxu0 %v2570_v61  ;;  %5381 = vmatpush1.bf16.msra.mxu1 %v2572_v62  ;;  %v2659_v61 = vunpack.c.h.s8.bf16 %v899_v51  ;;  %v2661_v62 = vunpack.c.h.s8.bf16 %v901_v52 }
 0x285   : > { %4565 = vmatprep.subr.bf16.mxu0 %v2579_v63  ;;  %5382 = vmatprep.subr.bf16.mxu1 %v2581_v0  ;;  %v907_v63 = vld [vmem:[%s9580_s25 + $0x1108] sm:$0xff]  ;;  %v909_v0 = vld [vmem:[%s9580_s25 + $0x1118] sm:$0xff] }
 0x288   : > { %4566 = vmatpush1.bf16.msra.mxu0 %v2578_v3  ;;  %5383 = vmatpush1.bf16.msra.mxu1 %v2580_v4  ;;  %v2667_v3 = vunpack.c.l.s8.bf16 %v907_v63  ;;  %v2669_v4 = vunpack.c.l.s8.bf16 %v909_v0 }
 0x289   : > { %4567 = vmatprep.subr.bf16.mxu0 %v2587_v5  ;;  %5384 = vmatprep.subr.bf16.mxu1 %v2589_v6  ;;  %v906_v5 = vld [vmem:[%s9580_s25 + $0x1100] sm:$0xff]  ;;  %v908_v6 = vld [vmem:[%s9580_s25 + $0x1110] sm:$0xff] }
 0x28a   : > { %v2666_v7 = vunpack.c.l.s8.bf16 %v906_v5  ;;  %v2668_v8 = vunpack.c.l.s8.bf16 %v908_v6  ;;  %v2674_v13 = vunpack.c.h.s8.bf16 %v906_v5  ;;  %v2676_v14 = vunpack.c.h.s8.bf16 %v908_v6 }
 0x28c   : > { %4568 = vmatpush1.bf16.msra.mxu0 %v2586_v9  ;;  %5385 = vmatpush1.bf16.msra.mxu1 %v2588_v10  ;;  %v2675_v9 = vunpack.c.h.s8.bf16 %v907_v63  ;;  %v2677_v10 = vunpack.c.h.s8.bf16 %v909_v0 }
 0x28d   : > { %4569 = vmatprep.subr.bf16.mxu0 %v2595_v11  ;;  %5386 = vmatprep.subr.bf16.mxu1 %v2597_v12  ;;  %v915_v11 = vld [vmem:[%s9580_s25 + $0x1148] sm:$0xff]  ;;  %v917_v12 = vld [vmem:[%s9580_s25 + $0x1158] sm:$0xff] }
 0x290   : > { %4570 = vmatpush1.bf16.msra.mxu0 %v2594_v15  ;;  %5387 = vmatpush1.bf16.msra.mxu1 %v2596_v16  ;;  %v2683_v15 = vunpack.c.l.s8.bf16 %v915_v11  ;;  %v2685_v16 = vunpack.c.l.s8.bf16 %v917_v12 }
 0x291   : > { %4582 = vmatprep.subr.bf16.mxu0 %v2603_v17  ;;  %5399 = vmatprep.subr.bf16.mxu1 %v2605_v18  ;;  %v914_v17 = vld [vmem:[%s9580_s25 + $0x1140] sm:$0xff]  ;;  %v916_v18 = vld [vmem:[%s9580_s25 + $0x1150] sm:$0xff] }
 0x292   : > { %v2682_v19 = vunpack.c.l.s8.bf16 %v914_v17  ;;  %v2684_v20 = vunpack.c.l.s8.bf16 %v916_v18  ;;  %v2692_v26 = vunpack.c.h.s8.bf16 %v916_v18 }
 0x293   : > { %4572 = vmatmul.mubr.bf16.vlgmr.msra.gmra.mrb[0].mxu0 %v9043_v21  ;;  %5389 = vmatmul.mubr.bf16.vlgmr.msra.gmra.mrb[0].mxu1 %v9043_v21  ;;  %v2691_v21 = vunpack.c.h.s8.bf16 %v915_v11 }
 0x294   : > { %4583 = vmatpush1.bf16.msra.mxu0 %v2602_v22  ;;  %5400 = vmatpush1.bf16.msra.mxu1 %v2604_v23  ;;  %v2693_v22 = vunpack.c.h.s8.bf16 %v917_v12  ;;  %v923_v23 = vld [vmem:[%s9580_s25 + $0x1188] sm:$0xff] }
 0x295   : > { %4584 = vmatprep.subr.bf16.mxu0 %v2611_v24  ;;  %5401 = vmatprep.subr.bf16.mxu1 %v2613_v25  ;;  %v925_v24 = vld [vmem:[%s9580_s25 + $0x1198] sm:$0xff]  ;;  %v2690_v25 = vunpack.c.h.s8.bf16 %v914_v17  ;;  %v2699_v27 = vunpack.c.l.s8.bf16 %v923_v23  ;;  %v2707_v33 = vunpack.c.h.s8.bf16 %v923_v23 }
 0x296   : > { %4614 = vmatprep.mubr.bf16.mxu0 %v9044_v28  ;;  %5431 = vmatprep.mubr.bf16.mxu1 %v9044_v28  ;;  %v2701_v28 = vunpack.c.l.s8.bf16 %v925_v24  ;;  %v2709_v34 = vunpack.c.h.s8.bf16 %v925_v24 }
 0x298   : > { %4585 = vmatpush1.bf16.msra.mxu0 %v2610_v29  ;;  %5402 = vmatpush1.bf16.msra.mxu1 %v2612_v30  ;;  %v922_v29 = vld [vmem:[%s9580_s25 + $0x1180] sm:$0xff]  ;;  %v924_v30 = vld [vmem:[%s9580_s25 + $0x1190] sm:$0xff] }
 0x299   : > { %4586 = vmatprep.subr.bf16.mxu0 %v2619_v31  ;;  %5403 = vmatprep.subr.bf16.mxu1 %v2621_v32  ;;  %v2698_v31 = vunpack.c.l.s8.bf16 %v922_v29  ;;  %v2700_v32 = vunpack.c.l.s8.bf16 %v924_v30 }
 0x29c   : > { %4587 = vmatpush1.bf16.msra.mxu0 %v2618_v35  ;;  %5404 = vmatpush1.bf16.msra.mxu1 %v2620_v36  ;;  %v931_v35 = vld [vmem:[%s9580_s25 + $0x11c8] sm:$0xff]  ;;  %v933_v36 = vld [vmem:[%s9580_s25 + $0x11d8] sm:$0xff] }
 0x29d   : > { %4588 = vmatprep.subr.bf16.mxu0 %v2627_v37  ;;  %5405 = vmatprep.subr.bf16.mxu1 %v2629_v38  ;;  %v2706_v37 = vunpack.c.h.s8.bf16 %v922_v29  ;;  %v2708_v38 = vunpack.c.h.s8.bf16 %v924_v30  ;;  %v2715_v39 = vunpack.c.l.s8.bf16 %v931_v35  ;;  %v2717_v40 = vunpack.c.l.s8.bf16 %v933_v36 }
 0x29e   : > { %v2723_v45 = vunpack.c.h.s8.bf16 %v931_v35  ;;  %v2725_v46 = vunpack.c.h.s8.bf16 %v933_v36 }
 0x2a0   : > { %4589 = vmatpush1.bf16.msra.mxu0 %v2626_v41  ;;  %5406 = vmatpush1.bf16.msra.mxu1 %v2628_v42  ;;  %v930_v41 = vld [vmem:[%s9580_s25 + $0x11c0] sm:$0xff]  ;;  %v932_v42 = vld [vmem:[%s9580_s25 + $0x11d0] sm:$0xff] }
 0x2a1   : > { %4590 = vmatprep.subr.bf16.mxu0 %v2635_v43  ;;  %5407 = vmatprep.subr.bf16.mxu1 %v2637_v44  ;;  %v2714_v43 = vunpack.c.l.s8.bf16 %v930_v41  ;;  %v2716_v44 = vunpack.c.l.s8.bf16 %v932_v42 }
 0x2a4   : > { %4591 = vmatpush1.bf16.msra.mxu0 %v2634_v47  ;;  %5408 = vmatpush1.bf16.msra.mxu1 %v2636_v48  ;;  %v939_v47 = vld [vmem:[%s9580_s25 + $0x1208] sm:$0xff]  ;;  %v941_v48 = vld [vmem:[%s9580_s25 + $0x1218] sm:$0xff] }
 0x2a5   : > { %4592 = vmatprep.subr.bf16.mxu0 %v2643_v49  ;;  %5409 = vmatprep.subr.bf16.mxu1 %v2645_v50  ;;  %v2722_v49 = vunpack.c.h.s8.bf16 %v930_v41  ;;  %v2724_v50 = vunpack.c.h.s8.bf16 %v932_v42  ;;  %v2731_v51 = vunpack.c.l.s8.bf16 %v939_v47  ;;  %v2733_v52 = vunpack.c.l.s8.bf16 %v941_v48 }
 0x2a6   : > { %v2739_v58 = vunpack.c.h.s8.bf16 %v939_v47 }
 0x2a8   : > { %4593 = vmatpush1.bf16.msra.mxu0 %v2642_v53  ;;  %5410 = vmatpush1.bf16.msra.mxu1 %v2644_v54  ;;  %v938_v53 = vld [vmem:[%s9580_s25 + $0x1200] sm:$0xff]  ;;  %v940_v54 = vld [vmem:[%s9580_s25 + $0x1210] sm:$0xff] }
 0x2a9   : > { %4594 = vmatprep.subr.bf16.mxu0 %v2651_v55  ;;  %5411 = vmatprep.subr.bf16.mxu1 %v2653_v56  ;;  %v9046_v55 = vld [vmem:[%s11165_s0 + $0x40] ss:$152 sps:$4 sm:$0xff]   ;;  %v2730_v56 = vunpack.c.l.s8.bf16 %v938_v53  ;;  %v2732_v57 = vunpack.c.l.s8.bf16 %v940_v54  ;;  %v2738_v63 = vunpack.c.h.s8.bf16 %v938_v53  ;;  %v2740_v0 = vunpack.c.h.s8.bf16 %v940_v54 }
 0x2ac   : > { %4595 = vmatpush1.bf16.msra.mxu0 %v2650_v59  ;;  %5412 = vmatpush1.bf16.msra.mxu1 %v2652_v60  ;;  %v2741_v59 = vunpack.c.h.s8.bf16 %v941_v48  ;;  %v947_v60 = vld [vmem:[%s9580_s25 + $0x1248] sm:$0xff] }
 0x2ad   : > { %4596 = vmatprep.subr.bf16.mxu0 %v2659_v61  ;;  %5413 = vmatprep.subr.bf16.mxu1 %v2661_v62  ;;  %v949_v61 = vld [vmem:[%s9580_s25 + $0x1258] sm:$0xff]  ;;  %v9047_v62 = vld [vmem:[%s11165_s0 + $0x4c] ss:$152 sps:$4 sm:$0xff]  }
 0x2b0   : > { %4597 = vmatpush1.bf16.msra.mxu0 %v2658_v1  ;;  %5414 = vmatpush1.bf16.msra.mxu1 %v2660_v2  ;;  %v2747_v1 = vunpack.c.l.s8.bf16 %v947_v60  ;;  %v2749_v2 = vunpack.c.l.s8.bf16 %v949_v61 }
 0x2b1   : > { %4598 = vmatprep.subr.bf16.mxu0 %v2667_v3  ;;  %5415 = vmatprep.subr.bf16.mxu1 %v2669_v4  ;;  %v946_v3 = vld [vmem:[%s9580_s25 + $0x1240] sm:$0xff]  ;;  %v948_v4 = vld [vmem:[%s9580_s25 + $0x1250] sm:$0xff] }
 0x2b2   : > { %v2746_v5 = vunpack.c.l.s8.bf16 %v946_v3  ;;  %v2748_v6 = vunpack.c.l.s8.bf16 %v948_v4  ;;  %v2754_v11 = vunpack.c.h.s8.bf16 %v946_v3  ;;  %v2756_v12 = vunpack.c.h.s8.bf16 %v948_v4 }
 0x2b4   : > { %4599 = vmatpush1.bf16.msra.mxu0 %v2666_v7  ;;  %5416 = vmatpush1.bf16.msra.mxu1 %v2668_v8  ;;  %v2755_v7 = vunpack.c.h.s8.bf16 %v947_v60  ;;  %v2757_v8 = vunpack.c.h.s8.bf16 %v949_v61 }
 0x2b5   : > { %4600 = vmatprep.subr.bf16.mxu0 %v2675_v9  ;;  %5417 = vmatprep.subr.bf16.mxu1 %v2677_v10  ;;  %v955_v9 = vld [vmem:[%s9580_s25 + $0x1288] sm:$0xff]  ;;  %v957_v10 = vld [vmem:[%s9580_s25 + $0x1298] sm:$0xff] }
 0x2b8   : > { %4601 = vmatpush1.bf16.msra.mxu0 %v2674_v13  ;;  %5418 = vmatpush1.bf16.msra.mxu1 %v2676_v14  ;;  %v2763_v13 = vunpack.c.l.s8.bf16 %v955_v9  ;;  %v2765_v14 = vunpack.c.l.s8.bf16 %v957_v10 }
 0x2b9   : > { %4602 = vmatprep.subr.bf16.mxu0 %v2683_v15  ;;  %5419 = vmatprep.subr.bf16.mxu1 %v2685_v16  ;;  %v954_v15 = vld [vmem:[%s9580_s25 + $0x1280] sm:$0xff]  ;;  %v956_v16 = vld [vmem:[%s9580_s25 + $0x1290] sm:$0xff] }
 0x2ba   : > { %v2762_v17 = vunpack.c.l.s8.bf16 %v954_v15  ;;  %v2764_v18 = vunpack.c.l.s8.bf16 %v956_v16  ;;  %v2770_v23 = vunpack.c.h.s8.bf16 %v954_v15  ;;  %v2772_v24 = vunpack.c.h.s8.bf16 %v956_v16 }
 0x2bc   : > { %4603 = vmatpush1.bf16.msra.mxu0 %v2682_v19  ;;  %5420 = vmatpush1.bf16.msra.mxu1 %v2684_v20  ;;  %v2771_v19 = vunpack.c.h.s8.bf16 %v955_v9  ;;  %v2773_v20 = vunpack.c.h.s8.bf16 %v957_v10 }
 0x2bd   : > { %4604 = vmatprep.subr.bf16.mxu0 %v2691_v21  ;;  %5421 = vmatprep.subr.bf16.mxu1 %v2693_v22  ;;  %v963_v21 = vld [vmem:[%s9580_s25 + $0x12c8] sm:$0xff]  ;;  %v965_v22 = vld [vmem:[%s9580_s25 + $0x12d8] sm:$0xff] }
 0x2c0   : > { %4605 = vmatpush1.bf16.msra.mxu0 %v2690_v25  ;;  %5422 = vmatpush1.bf16.msra.mxu1 %v2692_v26  ;;  %v2779_v25 = vunpack.c.l.s8.bf16 %v963_v21  ;;  %v2781_v26 = vunpack.c.l.s8.bf16 %v965_v22 }
 0x2c1   : > { %4606 = vmatprep.subr.bf16.mxu0 %v2699_v27  ;;  %5423 = vmatprep.subr.bf16.mxu1 %v2701_v28  ;;  %v962_v27 = vld [vmem:[%s9580_s25 + $0x12c0] sm:$0xff]  ;;  %v964_v28 = vld [vmem:[%s9580_s25 + $0x12d0] sm:$0xff] }
 0x2c2   : > { %v2778_v29 = vunpack.c.l.s8.bf16 %v962_v27  ;;  %v2780_v30 = vunpack.c.l.s8.bf16 %v964_v28  ;;  %v2786_v35 = vunpack.c.h.s8.bf16 %v962_v27  ;;  %v2788_v36 = vunpack.c.h.s8.bf16 %v964_v28 }
 0x2c4   : > { %4607 = vmatpush1.bf16.msra.mxu0 %v2698_v31  ;;  %5424 = vmatpush1.bf16.msra.mxu1 %v2700_v32  ;;  %v2787_v31 = vunpack.c.h.s8.bf16 %v963_v21  ;;  %v2789_v32 = vunpack.c.h.s8.bf16 %v965_v22 }
 0x2c5   : > { %4608 = vmatprep.subr.bf16.mxu0 %v2707_v33  ;;  %5425 = vmatprep.subr.bf16.mxu1 %v2709_v34  ;;  %v971_v33 = vld [vmem:[%s9580_s25 + $0x1308] sm:$0xff]  ;;  %v973_v34 = vld [vmem:[%s9580_s25 + $0x1318] sm:$0xff] }
 0x2c8   : > { %4609 = vmatpush1.bf16.msra.mxu0 %v2706_v37  ;;  %5426 = vmatpush1.bf16.msra.mxu1 %v2708_v38  ;;  %v2795_v37 = vunpack.c.l.s8.bf16 %v971_v33  ;;  %v2797_v38 = vunpack.c.l.s8.bf16 %v973_v34 }
 0x2c9   : > { %4610 = vmatprep.subr.bf16.mxu0 %v2715_v39  ;;  %5427 = vmatprep.subr.bf16.mxu1 %v2717_v40  ;;  %v970_v39 = vld [vmem:[%s9580_s25 + $0x1300] sm:$0xff]  ;;  %v972_v40 = vld [vmem:[%s9580_s25 + $0x1310] sm:$0xff] }
 0x2ca   : > { %v2794_v41 = vunpack.c.l.s8.bf16 %v970_v39  ;;  %v2796_v42 = vunpack.c.l.s8.bf16 %v972_v40  ;;  %v2802_v47 = vunpack.c.h.s8.bf16 %v970_v39  ;;  %v2804_v48 = vunpack.c.h.s8.bf16 %v972_v40 }
 0x2cc   : > { %4611 = vmatpush1.bf16.msra.mxu0 %v2714_v43  ;;  %5428 = vmatpush1.bf16.msra.mxu1 %v2716_v44  ;;  %v2803_v43 = vunpack.c.h.s8.bf16 %v971_v33  ;;  %v2805_v44 = vunpack.c.h.s8.bf16 %v973_v34 }
 0x2cd   : > { %4612 = vmatprep.subr.bf16.mxu0 %v2723_v45  ;;  %5429 = vmatprep.subr.bf16.mxu1 %v2725_v46  ;;  %v979_v45 = vld [vmem:[%s9580_s25 + $0x1348] sm:$0xff]  ;;  %v981_v46 = vld [vmem:[%s9580_s25 + $0x1358] sm:$0xff] }
 0x2d0   : > { %4613 = vmatpush1.bf16.msra.mxu0 %v2722_v49  ;;  %5430 = vmatpush1.bf16.msra.mxu1 %v2724_v50  ;;  %v2811_v49 = vunpack.c.l.s8.bf16 %v979_v45  ;;  %v2813_v50 = vunpack.c.l.s8.bf16 %v981_v46 }
 0x2d1   : > { %4625 = vmatprep.subr.bf16.mxu0 %v2731_v51  ;;  %5442 = vmatprep.subr.bf16.mxu1 %v2733_v52  ;;  %v978_v51 = vld [vmem:[%s9580_s25 + $0x1340] sm:$0xff]  ;;  %v980_v52 = vld [vmem:[%s9580_s25 + $0x1350] sm:$0xff] }
 0x2d2   : > { %v2810_v53 = vunpack.c.l.s8.bf16 %v978_v51  ;;  %v2812_v54 = vunpack.c.l.s8.bf16 %v980_v52  ;;  %v2820_v60 = vunpack.c.h.s8.bf16 %v980_v52 }
 0x2d3   : > { %4615 = vmatmul.mubr.bf16.vlgmr.msra.gmra.mrb[0].mxu0 %v9046_v55  ;;  %5432 = vmatmul.mubr.bf16.vlgmr.msra.gmra.mrb[0].mxu1 %v9046_v55  ;;  %v2819_v55 = vunpack.c.h.s8.bf16 %v979_v45 }
 0x2d4   : > { %4626 = vmatpush1.bf16.msra.mxu0 %v2730_v56  ;;  %5443 = vmatpush1.bf16.msra.mxu1 %v2732_v57  ;;  %v2821_v56 = vunpack.c.h.s8.bf16 %v981_v46  ;;  %v987_v57 = vld [vmem:[%s9580_s25 + $0x1388] sm:$0xff] }
 0x2d5   : > { %4627 = vmatprep.subr.bf16.mxu0 %v2739_v58  ;;  %5444 = vmatprep.subr.bf16.mxu1 %v2741_v59  ;;  %v989_v58 = vld [vmem:[%s9580_s25 + $0x1398] sm:$0xff]  ;;  %v2818_v59 = vunpack.c.h.s8.bf16 %v978_v51  ;;  %v2827_v61 = vunpack.c.l.s8.bf16 %v987_v57  ;;  %v2835_v3 = vunpack.c.h.s8.bf16 %v987_v57 }
 0x2d6   : > { %4657 = vmatprep.mubr.bf16.mxu0 %v9047_v62  ;;  %5474 = vmatprep.mubr.bf16.mxu1 %v9047_v62  ;;  %v2829_v62 = vunpack.c.l.s8.bf16 %v989_v58  ;;  %v2837_v4 = vunpack.c.h.s8.bf16 %v989_v58 }
 0x2d8   : > { %4628 = vmatpush1.bf16.msra.mxu0 %v2738_v63  ;;  %5445 = vmatpush1.bf16.msra.mxu1 %v2740_v0  ;;  %v986_v63 = vld [vmem:[%s9580_s25 + $0x1380] sm:$0xff]  ;;  %v988_v0 = vld [vmem:[%s9580_s25 + $0x1390] sm:$0xff] }
 0x2d9   : > { %4629 = vmatprep.subr.bf16.mxu0 %v2747_v1  ;;  %5446 = vmatprep.subr.bf16.mxu1 %v2749_v2  ;;  %v2826_v1 = vunpack.c.l.s8.bf16 %v986_v63  ;;  %v2828_v2 = vunpack.c.l.s8.bf16 %v988_v0 }
 0x2dc   : > { %4630 = vmatpush1.bf16.msra.mxu0 %v2746_v5  ;;  %5447 = vmatpush1.bf16.msra.mxu1 %v2748_v6  ;;  %v995_v5 = vld [vmem:[%s9580_s25 + $0x13c8] sm:$0xff]  ;;  %v997_v6 = vld [vmem:[%s9580_s25 + $0x13d8] sm:$0xff] }
 0x2dd   : > { %4631 = vmatprep.subr.bf16.mxu0 %v2755_v7  ;;  %5448 = vmatprep.subr.bf16.mxu1 %v2757_v8  ;;  %v2834_v7 = vunpack.c.h.s8.bf16 %v986_v63  ;;  %v2836_v8 = vunpack.c.h.s8.bf16 %v988_v0  ;;  %v2843_v9 = vunpack.c.l.s8.bf16 %v995_v5  ;;  %v2845_v10 = vunpack.c.l.s8.bf16 %v997_v6 }
 0x2de   : > { %v2851_v15 = vunpack.c.h.s8.bf16 %v995_v5  ;;  %v2853_v16 = vunpack.c.h.s8.bf16 %v997_v6 }
 0x2e0   : > { %4632 = vmatpush1.bf16.msra.mxu0 %v2754_v11  ;;  %5449 = vmatpush1.bf16.msra.mxu1 %v2756_v12  ;;  %v994_v11 = vld [vmem:[%s9580_s25 + $0x13c0] sm:$0xff]  ;;  %v996_v12 = vld [vmem:[%s9580_s25 + $0x13d0] sm:$0xff] }
 0x2e1   : > { %4633 = vmatprep.subr.bf16.mxu0 %v2763_v13  ;;  %5450 = vmatprep.subr.bf16.mxu1 %v2765_v14  ;;  %v2842_v13 = vunpack.c.l.s8.bf16 %v994_v11  ;;  %v2844_v14 = vunpack.c.l.s8.bf16 %v996_v12 }
 0x2e4   : > { %4634 = vmatpush1.bf16.msra.mxu0 %v2762_v17  ;;  %5451 = vmatpush1.bf16.msra.mxu1 %v2764_v18  ;;  %v1003_v17 = vld [vmem:[%s9580_s25 + $0x1408] sm:$0xff]  ;;  %v1005_v18 = vld [vmem:[%s9580_s25 + $0x1418] sm:$0xff] }
 0x2e5   : > { %4635 = vmatprep.subr.bf16.mxu0 %v2771_v19  ;;  %5452 = vmatprep.subr.bf16.mxu1 %v2773_v20  ;;  %v2850_v19 = vunpack.c.h.s8.bf16 %v994_v11  ;;  %v2852_v20 = vunpack.c.h.s8.bf16 %v996_v12  ;;  %v2859_v21 = vunpack.c.l.s8.bf16 %v1003_v17  ;;  %v2861_v22 = vunpack.c.l.s8.bf16 %v1005_v18 }
 0x2e6   : > { %v2867_v28 = vunpack.c.h.s8.bf16 %v1003_v17 }
 0x2e8   : > { %4636 = vmatpush1.bf16.msra.mxu0 %v2770_v23  ;;  %5453 = vmatpush1.bf16.msra.mxu1 %v2772_v24  ;;  %v1002_v23 = vld [vmem:[%s9580_s25 + $0x1400] sm:$0xff]  ;;  %v1004_v24 = vld [vmem:[%s9580_s25 + $0x1410] sm:$0xff] }
 0x2e9   : > { %4637 = vmatprep.subr.bf16.mxu0 %v2779_v25  ;;  %5454 = vmatprep.subr.bf16.mxu1 %v2781_v26  ;;  %v9049_v25 = vld [vmem:[%s11165_s0 + $0x48] ss:$152 sps:$4 sm:$0xff]   ;;  %v2858_v26 = vunpack.c.l.s8.bf16 %v1002_v23  ;;  %v2860_v27 = vunpack.c.l.s8.bf16 %v1004_v24  ;;  %v2866_v33 = vunpack.c.h.s8.bf16 %v1002_v23  ;;  %v2868_v34 = vunpack.c.h.s8.bf16 %v1004_v24 }
 0x2ec   : > { %4638 = vmatpush1.bf16.msra.mxu0 %v2778_v29  ;;  %5455 = vmatpush1.bf16.msra.mxu1 %v2780_v30  ;;  %v2869_v29 = vunpack.c.h.s8.bf16 %v1005_v18  ;;  %v1011_v30 = vld [vmem:[%s9580_s25 + $0x1448] sm:$0xff] }
 0x2ed   : > { %4639 = vmatprep.subr.bf16.mxu0 %v2787_v31  ;;  %5456 = vmatprep.subr.bf16.mxu1 %v2789_v32  ;;  %v1013_v31 = vld [vmem:[%s9580_s25 + $0x1458] sm:$0xff]  ;;  %v9050_v32 = vld [vmem:[%s11165_s0 + $0x54] ss:$152 sps:$4 sm:$0xff]  }
 0x2f0   : > { %4640 = vmatpush1.bf16.msra.mxu0 %v2786_v35  ;;  %5457 = vmatpush1.bf16.msra.mxu1 %v2788_v36  ;;  %v2875_v35 = vunpack.c.l.s8.bf16 %v1011_v30  ;;  %v2877_v36 = vunpack.c.l.s8.bf16 %v1013_v31 }
 0x2f1   : > { %4641 = vmatprep.subr.bf16.mxu0 %v2795_v37  ;;  %5458 = vmatprep.subr.bf16.mxu1 %v2797_v38  ;;  %v1010_v37 = vld [vmem:[%s9580_s25 + $0x1440] sm:$0xff]  ;;  %v1012_v38 = vld [vmem:[%s9580_s25 + $0x1450] sm:$0xff] }
 0x2f2   : > { %v2874_v39 = vunpack.c.l.s8.bf16 %v1010_v37  ;;  %v2876_v40 = vunpack.c.l.s8.bf16 %v1012_v38  ;;  %v2882_v45 = vunpack.c.h.s8.bf16 %v1010_v37  ;;  %v2884_v46 = vunpack.c.h.s8.bf16 %v1012_v38 }
 0x2f4   : > { %4642 = vmatpush1.bf16.msra.mxu0 %v2794_v41  ;;  %5459 = vmatpush1.bf16.msra.mxu1 %v2796_v42  ;;  %v2883_v41 = vunpack.c.h.s8.bf16 %v1011_v30  ;;  %v2885_v42 = vunpack.c.h.s8.bf16 %v1013_v31 }
 0x2f5   : > { %4643 = vmatprep.subr.bf16.mxu0 %v2803_v43  ;;  %5460 = vmatprep.subr.bf16.mxu1 %v2805_v44  ;;  %v1019_v43 = vld [vmem:[%s9580_s25 + $0x1488] sm:$0xff]  ;;  %v1021_v44 = vld [vmem:[%s9580_s25 + $0x1498] sm:$0xff] }
 0x2f8   : > { %4644 = vmatpush1.bf16.msra.mxu0 %v2802_v47  ;;  %5461 = vmatpush1.bf16.msra.mxu1 %v2804_v48  ;;  %v2891_v47 = vunpack.c.l.s8.bf16 %v1019_v43  ;;  %v2893_v48 = vunpack.c.l.s8.bf16 %v1021_v44 }
 0x2f9   : > { %4645 = vmatprep.subr.bf16.mxu0 %v2811_v49  ;;  %5462 = vmatprep.subr.bf16.mxu1 %v2813_v50  ;;  %v1018_v49 = vld [vmem:[%s9580_s25 + $0x1480] sm:$0xff]  ;;  %v1020_v50 = vld [vmem:[%s9580_s25 + $0x1490] sm:$0xff] }
 0x2fa   : > { %v2890_v51 = vunpack.c.l.s8.bf16 %v1018_v49  ;;  %v2892_v52 = vunpack.c.l.s8.bf16 %v1020_v50  ;;  %v2898_v57 = vunpack.c.h.s8.bf16 %v1018_v49  ;;  %v2900_v58 = vunpack.c.h.s8.bf16 %v1020_v50 }
 0x2fc   : > { %4646 = vmatpush1.bf16.msra.mxu0 %v2810_v53  ;;  %5463 = vmatpush1.bf16.msra.mxu1 %v2812_v54  ;;  %v2899_v53 = vunpack.c.h.s8.bf16 %v1019_v43  ;;  %v2901_v54 = vunpack.c.h.s8.bf16 %v1021_v44 }
 0x2fd   : > { %4647 = vmatprep.subr.bf16.mxu0 %v2819_v55  ;;  %5464 = vmatprep.subr.bf16.mxu1 %v2821_v56  ;;  %v1027_v55 = vld [vmem:[%s9580_s25 + $0x14c8] sm:$0xff]  ;;  %v1029_v56 = vld [vmem:[%s9580_s25 + $0x14d8] sm:$0xff] }
 0x300   : > { %4648 = vmatpush1.bf16.msra.mxu0 %v2818_v59  ;;  %5465 = vmatpush1.bf16.msra.mxu1 %v2820_v60  ;;  %v2907_v59 = vunpack.c.l.s8.bf16 %v1027_v55  ;;  %v2909_v60 = vunpack.c.l.s8.bf16 %v1029_v56 }
 0x301   : > { %4649 = vmatprep.subr.bf16.mxu0 %v2827_v61  ;;  %5466 = vmatprep.subr.bf16.mxu1 %v2829_v62  ;;  %v1026_v61 = vld [vmem:[%s9580_s25 + $0x14c0] sm:$0xff]  ;;  %v1028_v62 = vld [vmem:[%s9580_s25 + $0x14d0] sm:$0xff] }
 0x302   : > { %v2906_v63 = vunpack.c.l.s8.bf16 %v1026_v61  ;;  %v2908_v0 = vunpack.c.l.s8.bf16 %v1028_v62  ;;  %v2914_v5 = vunpack.c.h.s8.bf16 %v1026_v61  ;;  %v2916_v6 = vunpack.c.h.s8.bf16 %v1028_v62 }
 0x304   : > { %4650 = vmatpush1.bf16.msra.mxu0 %v2826_v1  ;;  %5467 = vmatpush1.bf16.msra.mxu1 %v2828_v2  ;;  %v2915_v1 = vunpack.c.h.s8.bf16 %v1027_v55  ;;  %v2917_v2 = vunpack.c.h.s8.bf16 %v1029_v56 }
 0x305   : > { %4651 = vmatprep.subr.bf16.mxu0 %v2835_v3  ;;  %5468 = vmatprep.subr.bf16.mxu1 %v2837_v4  ;;  %v1035_v3 = vld [vmem:[%s9580_s25 + $0x1508] sm:$0xff]  ;;  %v1037_v4 = vld [vmem:[%s9580_s25 + $0x1518] sm:$0xff] }
 0x308   : > { %4652 = vmatpush1.bf16.msra.mxu0 %v2834_v7  ;;  %5469 = vmatpush1.bf16.msra.mxu1 %v2836_v8  ;;  %v2923_v7 = vunpack.c.l.s8.bf16 %v1035_v3  ;;  %v2925_v8 = vunpack.c.l.s8.bf16 %v1037_v4 }
 0x309   : > { %4653 = vmatprep.subr.bf16.mxu0 %v2843_v9  ;;  %5470 = vmatprep.subr.bf16.mxu1 %v2845_v10  ;;  %v1034_v9 = vld [vmem:[%s9580_s25 + $0x1500] sm:$0xff]  ;;  %v1036_v10 = vld [vmem:[%s9580_s25 + $0x1510] sm:$0xff] }
 0x30a   : > { %v2922_v11 = vunpack.c.l.s8.bf16 %v1034_v9  ;;  %v2924_v12 = vunpack.c.l.s8.bf16 %v1036_v10  ;;  %v2930_v17 = vunpack.c.h.s8.bf16 %v1034_v9  ;;  %v2932_v18 = vunpack.c.h.s8.bf16 %v1036_v10 }
 0x30c   : > { %4654 = vmatpush1.bf16.msra.mxu0 %v2842_v13  ;;  %5471 = vmatpush1.bf16.msra.mxu1 %v2844_v14  ;;  %v2931_v13 = vunpack.c.h.s8.bf16 %v1035_v3  ;;  %v2933_v14 = vunpack.c.h.s8.bf16 %v1037_v4 }
 0x30d   : > { %4655 = vmatprep.subr.bf16.mxu0 %v2851_v15  ;;  %5472 = vmatprep.subr.bf16.mxu1 %v2853_v16  ;;  %v1043_v15 = vld [vmem:[%s9580_s25 + $0x1548] sm:$0xff]  ;;  %v1045_v16 = vld [vmem:[%s9580_s25 + $0x1558] sm:$0xff] }
 0x310   : > { %4656 = vmatpush1.bf16.msra.mxu0 %v2850_v19  ;;  %5473 = vmatpush1.bf16.msra.mxu1 %v2852_v20  ;;  %v2939_v19 = vunpack.c.l.s8.bf16 %v1043_v15  ;;  %v2941_v20 = vunpack.c.l.s8.bf16 %v1045_v16 }
 0x311   : > { %4668 = vmatprep.subr.bf16.mxu0 %v2859_v21  ;;  %5485 = vmatprep.subr.bf16.mxu1 %v2861_v22  ;;  %v1042_v21 = vld [vmem:[%s9580_s25 + $0x1540] sm:$0xff]  ;;  %v1044_v22 = vld [vmem:[%s9580_s25 + $0x1550] sm:$0xff] }
 0x312   : > { %v2938_v23 = vunpack.c.l.s8.bf16 %v1042_v21  ;;  %v2940_v24 = vunpack.c.l.s8.bf16 %v1044_v22  ;;  %v2948_v30 = vunpack.c.h.s8.bf16 %v1044_v22 }
 0x313   : > { %4658 = vmatmul.mubr.bf16.vlgmr.msra.gmra.mrb[0].mxu0 %v9049_v25  ;;  %5475 = vmatmul.mubr.bf16.vlgmr.msra.gmra.mrb[0].mxu1 %v9049_v25  ;;  %v2947_v25 = vunpack.c.h.s8.bf16 %v1043_v15 }
 0x314   : > { %4669 = vmatpush1.bf16.msra.mxu0 %v2858_v26  ;;  %5486 = vmatpush1.bf16.msra.mxu1 %v2860_v27  ;;  %v2949_v26 = vunpack.c.h.s8.bf16 %v1045_v16  ;;  %v1051_v27 = vld [vmem:[%s9580_s25 + $0x1588] sm:$0xff] }
 0x315   : > { %4670 = vmatprep.subr.bf16.mxu0 %v2867_v28  ;;  %5487 = vmatprep.subr.bf16.mxu1 %v2869_v29  ;;  %v1053_v28 = vld [vmem:[%s9580_s25 + $0x1598] sm:$0xff]  ;;  %v2946_v29 = vunpack.c.h.s8.bf16 %v1042_v21  ;;  %v2955_v31 = vunpack.c.l.s8.bf16 %v1051_v27  ;;  %v2963_v37 = vunpack.c.h.s8.bf16 %v1051_v27 }
 0x316   : > { %4700 = vmatprep.mubr.bf16.mxu0 %v9050_v32  ;;  %5517 = vmatprep.mubr.bf16.mxu1 %v9050_v32  ;;  %v2957_v32 = vunpack.c.l.s8.bf16 %v1053_v28  ;;  %v2965_v38 = vunpack.c.h.s8.bf16 %v1053_v28 }
 0x318   : > { %4671 = vmatpush1.bf16.msra.mxu0 %v2866_v33  ;;  %5488 = vmatpush1.bf16.msra.mxu1 %v2868_v34  ;;  %v1050_v33 = vld [vmem:[%s9580_s25 + $0x1580] sm:$0xff]  ;;  %v1052_v34 = vld [vmem:[%s9580_s25 + $0x1590] sm:$0xff] }
 0x319   : > { %4672 = vmatprep.subr.bf16.mxu0 %v2875_v35  ;;  %5489 = vmatprep.subr.bf16.mxu1 %v2877_v36  ;;  %v2954_v35 = vunpack.c.l.s8.bf16 %v1050_v33  ;;  %v2956_v36 = vunpack.c.l.s8.bf16 %v1052_v34 }
 0x31c   : > { %4673 = vmatpush1.bf16.msra.mxu0 %v2874_v39  ;;  %5490 = vmatpush1.bf16.msra.mxu1 %v2876_v40  ;;  %v1059_v39 = vld [vmem:[%s9580_s25 + $0x15c8] sm:$0xff]  ;;  %v1061_v40 = vld [vmem:[%s9580_s25 + $0x15d8] sm:$0xff] }
 0x31d   : > { %4674 = vmatprep.subr.bf16.mxu0 %v2883_v41  ;;  %5491 = vmatprep.subr.bf16.mxu1 %v2885_v42  ;;  %v2962_v41 = vunpack.c.h.s8.bf16 %v1050_v33  ;;  %v2964_v42 = vunpack.c.h.s8.bf16 %v1052_v34  ;;  %v2971_v43 = vunpack.c.l.s8.bf16 %v1059_v39  ;;  %v2973_v44 = vunpack.c.l.s8.bf16 %v1061_v40 }
 0x31e   : > { %v2979_v49 = vunpack.c.h.s8.bf16 %v1059_v39  ;;  %v2981_v50 = vunpack.c.h.s8.bf16 %v1061_v40 }
 0x320   : > { %4675 = vmatpush1.bf16.msra.mxu0 %v2882_v45  ;;  %5492 = vmatpush1.bf16.msra.mxu1 %v2884_v46  ;;  %v1058_v45 = vld [vmem:[%s9580_s25 + $0x15c0] sm:$0xff]  ;;  %v1060_v46 = vld [vmem:[%s9580_s25 + $0x15d0] sm:$0xff] }
 0x321   : > { %4676 = vmatprep.subr.bf16.mxu0 %v2891_v47  ;;  %5493 = vmatprep.subr.bf16.mxu1 %v2893_v48  ;;  %v2970_v47 = vunpack.c.l.s8.bf16 %v1058_v45  ;;  %v2972_v48 = vunpack.c.l.s8.bf16 %v1060_v46 }
 0x324   : > { %4677 = vmatpush1.bf16.msra.mxu0 %v2890_v51  ;;  %5494 = vmatpush1.bf16.msra.mxu1 %v2892_v52  ;;  %v1067_v51 = vld [vmem:[%s9580_s25 + $0x1608] sm:$0xff]  ;;  %v1069_v52 = vld [vmem:[%s9580_s25 + $0x1618] sm:$0xff] }
 0x325   : > { %4678 = vmatprep.subr.bf16.mxu0 %v2899_v53  ;;  %5495 = vmatprep.subr.bf16.mxu1 %v2901_v54  ;;  %v2978_v53 = vunpack.c.h.s8.bf16 %v1058_v45  ;;  %v2980_v54 = vunpack.c.h.s8.bf16 %v1060_v46  ;;  %v2987_v55 = vunpack.c.l.s8.bf16 %v1067_v51  ;;  %v2989_v56 = vunpack.c.l.s8.bf16 %v1069_v52 }
 0x326   : > { %v2995_v62 = vunpack.c.h.s8.bf16 %v1067_v51 }
 0x328   : > { %4679 = vmatpush1.bf16.msra.mxu0 %v2898_v57  ;;  %5496 = vmatpush1.bf16.msra.mxu1 %v2900_v58  ;;  %v1066_v57 = vld [vmem:[%s9580_s25 + $0x1600] sm:$0xff]  ;;  %v1068_v58 = vld [vmem:[%s9580_s25 + $0x1610] sm:$0xff] }
 0x329   : > { %4680 = vmatprep.subr.bf16.mxu0 %v2907_v59  ;;  %5497 = vmatprep.subr.bf16.mxu1 %v2909_v60  ;;  %v9052_v59 = vld [vmem:[%s11165_s0 + $0x50] ss:$152 sps:$4 sm:$0xff]   ;;  %v2986_v60 = vunpack.c.l.s8.bf16 %v1066_v57  ;;  %v2988_v61 = vunpack.c.l.s8.bf16 %v1068_v58  ;;  %v2994_v3 = vunpack.c.h.s8.bf16 %v1066_v57  ;;  %v2996_v4 = vunpack.c.h.s8.bf16 %v1068_v58 }
 0x32c   : > { %4681 = vmatpush1.bf16.msra.mxu0 %v2906_v63  ;;  %5498 = vmatpush1.bf16.msra.mxu1 %v2908_v0  ;;  %v2997_v63 = vunpack.c.h.s8.bf16 %v1069_v52  ;;  %v1075_v0 = vld [vmem:[%s9580_s25 + $0x1648] sm:$0xff] }
 0x32d   : > { %4682 = vmatprep.subr.bf16.mxu0 %v2915_v1  ;;  %5499 = vmatprep.subr.bf16.mxu1 %v2917_v2  ;;  %v1077_v1 = vld [vmem:[%s9580_s25 + $0x1658] sm:$0xff] }
 0x32e   : > { %v9053_v2 = vld [vmem:[%s11165_s0 + $0x5c] ss:$152 sps:$4 sm:$0xff]  }
 0x330   : > { %4683 = vmatpush1.bf16.msra.mxu0 %v2914_v5  ;;  %5500 = vmatpush1.bf16.msra.mxu1 %v2916_v6  ;;  %v3003_v5 = vunpack.c.l.s8.bf16 %v1075_v0  ;;  %v3005_v6 = vunpack.c.l.s8.bf16 %v1077_v1 }
 0x331   : > { %4684 = vmatprep.subr.bf16.mxu0 %v2923_v7  ;;  %5501 = vmatprep.subr.bf16.mxu1 %v2925_v8  ;;  %v1074_v7 = vld [vmem:[%s9580_s25 + $0x1640] sm:$0xff]  ;;  %v1076_v8 = vld [vmem:[%s9580_s25 + $0x1650] sm:$0xff] }
 0x332   : > { %v3002_v9 = vunpack.c.l.s8.bf16 %v1074_v7  ;;  %v3004_v10 = vunpack.c.l.s8.bf16 %v1076_v8  ;;  %v3010_v15 = vunpack.c.h.s8.bf16 %v1074_v7  ;;  %v3012_v16 = vunpack.c.h.s8.bf16 %v1076_v8 }
 0x334   : > { %4685 = vmatpush1.bf16.msra.mxu0 %v2922_v11  ;;  %5502 = vmatpush1.bf16.msra.mxu1 %v2924_v12  ;;  %v3011_v11 = vunpack.c.h.s8.bf16 %v1075_v0  ;;  %v3013_v12 = vunpack.c.h.s8.bf16 %v1077_v1 }
 0x335   : > { %4686 = vmatprep.subr.bf16.mxu0 %v2931_v13  ;;  %5503 = vmatprep.subr.bf16.mxu1 %v2933_v14  ;;  %v1083_v13 = vld [vmem:[%s9580_s25 + $0x1688] sm:$0xff]  ;;  %v1085_v14 = vld [vmem:[%s9580_s25 + $0x1698] sm:$0xff] }
 0x338   : > { %4687 = vmatpush1.bf16.msra.mxu0 %v2930_v17  ;;  %5504 = vmatpush1.bf16.msra.mxu1 %v2932_v18  ;;  %v3019_v17 = vunpack.c.l.s8.bf16 %v1083_v13  ;;  %v3021_v18 = vunpack.c.l.s8.bf16 %v1085_v14 }
 0x339   : > { %4688 = vmatprep.subr.bf16.mxu0 %v2939_v19  ;;  %5505 = vmatprep.subr.bf16.mxu1 %v2941_v20  ;;  %v1082_v19 = vld [vmem:[%s9580_s25 + $0x1680] sm:$0xff]  ;;  %v1084_v20 = vld [vmem:[%s9580_s25 + $0x1690] sm:$0xff] }
 0x33a   : > { %v3018_v21 = vunpack.c.l.s8.bf16 %v1082_v19  ;;  %v3020_v22 = vunpack.c.l.s8.bf16 %v1084_v20  ;;  %v3026_v27 = vunpack.c.h.s8.bf16 %v1082_v19  ;;  %v3028_v28 = vunpack.c.h.s8.bf16 %v1084_v20 }
 0x33c   : > { %4689 = vmatpush1.bf16.msra.mxu0 %v2938_v23  ;;  %5506 = vmatpush1.bf16.msra.mxu1 %v2940_v24  ;;  %v3027_v23 = vunpack.c.h.s8.bf16 %v1083_v13  ;;  %v3029_v24 = vunpack.c.h.s8.bf16 %v1085_v14 }
 0x33d   : > { %4690 = vmatprep.subr.bf16.mxu0 %v2947_v25  ;;  %5507 = vmatprep.subr.bf16.mxu1 %v2949_v26  ;;  %v1091_v25 = vld [vmem:[%s9580_s25 + $0x16c8] sm:$0xff]  ;;  %v1093_v26 = vld [vmem:[%s9580_s25 + $0x16d8] sm:$0xff] }
 0x340   : > { %4691 = vmatpush1.bf16.msra.mxu0 %v2946_v29  ;;  %5508 = vmatpush1.bf16.msra.mxu1 %v2948_v30  ;;  %v3035_v29 = vunpack.c.l.s8.bf16 %v1091_v25  ;;  %v3037_v30 = vunpack.c.l.s8.bf16 %v1093_v26 }
 0x341   : > { %4692 = vmatprep.subr.bf16.mxu0 %v2955_v31  ;;  %5509 = vmatprep.subr.bf16.mxu1 %v2957_v32  ;;  %v1090_v31 = vld [vmem:[%s9580_s25 + $0x16c0] sm:$0xff]  ;;  %v1092_v32 = vld [vmem:[%s9580_s25 + $0x16d0] sm:$0xff] }
 0x342   : > { %v3034_v33 = vunpack.c.l.s8.bf16 %v1090_v31  ;;  %v3036_v34 = vunpack.c.l.s8.bf16 %v1092_v32  ;;  %v3042_v39 = vunpack.c.h.s8.bf16 %v1090_v31  ;;  %v3044_v40 = vunpack.c.h.s8.bf16 %v1092_v32 }
 0x344   : > { %4693 = vmatpush1.bf16.msra.mxu0 %v2954_v35  ;;  %5510 = vmatpush1.bf16.msra.mxu1 %v2956_v36  ;;  %v3043_v35 = vunpack.c.h.s8.bf16 %v1091_v25  ;;  %v3045_v36 = vunpack.c.h.s8.bf16 %v1093_v26 }
 0x345   : > { %4694 = vmatprep.subr.bf16.mxu0 %v2963_v37  ;;  %5511 = vmatprep.subr.bf16.mxu1 %v2965_v38  ;;  %v1099_v37 = vld [vmem:[%s9580_s25 + $0x1708] sm:$0xff]  ;;  %v1101_v38 = vld [vmem:[%s9580_s25 + $0x1718] sm:$0xff] }
 0x348   : > { %4695 = vmatpush1.bf16.msra.mxu0 %v2962_v41  ;;  %5512 = vmatpush1.bf16.msra.mxu1 %v2964_v42  ;;  %v3051_v41 = vunpack.c.l.s8.bf16 %v1099_v37  ;;  %v3053_v42 = vunpack.c.l.s8.bf16 %v1101_v38 }
 0x349   : > { %4696 = vmatprep.subr.bf16.mxu0 %v2971_v43  ;;  %5513 = vmatprep.subr.bf16.mxu1 %v2973_v44  ;;  %v1098_v43 = vld [vmem:[%s9580_s25 + $0x1700] sm:$0xff]  ;;  %v1100_v44 = vld [vmem:[%s9580_s25 + $0x1710] sm:$0xff] }
 0x34a   : > { %v3050_v45 = vunpack.c.l.s8.bf16 %v1098_v43  ;;  %v3052_v46 = vunpack.c.l.s8.bf16 %v1100_v44  ;;  %v3058_v51 = vunpack.c.h.s8.bf16 %v1098_v43  ;;  %v3060_v52 = vunpack.c.h.s8.bf16 %v1100_v44 }
 0x34c   : > { %4697 = vmatpush1.bf16.msra.mxu0 %v2970_v47  ;;  %5514 = vmatpush1.bf16.msra.mxu1 %v2972_v48  ;;  %v3059_v47 = vunpack.c.h.s8.bf16 %v1099_v37  ;;  %v3061_v48 = vunpack.c.h.s8.bf16 %v1101_v38 }
 0x34d   : > { %4698 = vmatprep.subr.bf16.mxu0 %v2979_v49  ;;  %5515 = vmatprep.subr.bf16.mxu1 %v2981_v50  ;;  %v1107_v49 = vld [vmem:[%s9580_s25 + $0x1748] sm:$0xff]  ;;  %v1109_v50 = vld [vmem:[%s9580_s25 + $0x1758] sm:$0xff] }
 0x350   : > { %4699 = vmatpush1.bf16.msra.mxu0 %v2978_v53  ;;  %5516 = vmatpush1.bf16.msra.mxu1 %v2980_v54  ;;  %v3067_v53 = vunpack.c.l.s8.bf16 %v1107_v49  ;;  %v3069_v54 = vunpack.c.l.s8.bf16 %v1109_v50 }
 0x351   : > { %4711 = vmatprep.subr.bf16.mxu0 %v2987_v55  ;;  %5528 = vmatprep.subr.bf16.mxu1 %v2989_v56  ;;  %v1106_v55 = vld [vmem:[%s9580_s25 + $0x1740] sm:$0xff]  ;;  %v1108_v56 = vld [vmem:[%s9580_s25 + $0x1750] sm:$0xff] }
 0x352   : > { %v3066_v57 = vunpack.c.l.s8.bf16 %v1106_v55  ;;  %v3068_v58 = vunpack.c.l.s8.bf16 %v1108_v56  ;;  %v3076_v0 = vunpack.c.h.s8.bf16 %v1108_v56 }
 0x353   : > { %4701 = vmatmul.mubr.bf16.vlgmr.msra.gmra.mrb[0].mxu0 %v9052_v59  ;;  %5518 = vmatmul.mubr.bf16.vlgmr.msra.gmra.mrb[0].mxu1 %v9052_v59  ;;  %v3075_v59 = vunpack.c.h.s8.bf16 %v1107_v49 }
 0x354   : > { %4712 = vmatpush1.bf16.msra.mxu0 %v2986_v60  ;;  %5529 = vmatpush1.bf16.msra.mxu1 %v2988_v61  ;;  %v3077_v60 = vunpack.c.h.s8.bf16 %v1109_v50  ;;  %v1115_v61 = vld [vmem:[%s9580_s25 + $0x1788] sm:$0xff] }
 0x355   : > { %4713 = vmatprep.subr.bf16.mxu0 %v2995_v62  ;;  %5530 = vmatprep.subr.bf16.mxu1 %v2997_v63  ;;  %v1117_v62 = vld [vmem:[%s9580_s25 + $0x1798] sm:$0xff]  ;;  %v3074_v63 = vunpack.c.h.s8.bf16 %v1106_v55  ;;  %v3083_v1 = vunpack.c.l.s8.bf16 %v1115_v61  ;;  %v3091_v7 = vunpack.c.h.s8.bf16 %v1115_v61 }
 0x356   : > { %4743 = vmatprep.mubr.bf16.mxu0 %v9053_v2  ;;  %5560 = vmatprep.mubr.bf16.mxu1 %v9053_v2  ;;  %v3085_v2 = vunpack.c.l.s8.bf16 %v1117_v62  ;;  %v3093_v8 = vunpack.c.h.s8.bf16 %v1117_v62 }
 0x358   : > { %4714 = vmatpush1.bf16.msra.mxu0 %v2994_v3  ;;  %5531 = vmatpush1.bf16.msra.mxu1 %v2996_v4  ;;  %v1114_v3 = vld [vmem:[%s9580_s25 + $0x1780] sm:$0xff]  ;;  %v1116_v4 = vld [vmem:[%s9580_s25 + $0x1790] sm:$0xff] }
 0x359   : > { %4715 = vmatprep.subr.bf16.mxu0 %v3003_v5  ;;  %5532 = vmatprep.subr.bf16.mxu1 %v3005_v6  ;;  %v3082_v5 = vunpack.c.l.s8.bf16 %v1114_v3  ;;  %v3084_v6 = vunpack.c.l.s8.bf16 %v1116_v4 }
 0x35c   : > { %4716 = vmatpush1.bf16.msra.mxu0 %v3002_v9  ;;  %5533 = vmatpush1.bf16.msra.mxu1 %v3004_v10  ;;  %v1123_v9 = vld [vmem:[%s9580_s25 + $0x17c8] sm:$0xff]  ;;  %v1125_v10 = vld [vmem:[%s9580_s25 + $0x17d8] sm:$0xff] }
 0x35d   : > { %4717 = vmatprep.subr.bf16.mxu0 %v3011_v11  ;;  %5534 = vmatprep.subr.bf16.mxu1 %v3013_v12  ;;  %v3090_v11 = vunpack.c.h.s8.bf16 %v1114_v3  ;;  %v3092_v12 = vunpack.c.h.s8.bf16 %v1116_v4  ;;  %v3099_v13 = vunpack.c.l.s8.bf16 %v1123_v9  ;;  %v3101_v14 = vunpack.c.l.s8.bf16 %v1125_v10 }
 0x35e   : > { %v3107_v19 = vunpack.c.h.s8.bf16 %v1123_v9  ;;  %v3109_v20 = vunpack.c.h.s8.bf16 %v1125_v10 }
 0x360   : > { %4718 = vmatpush1.bf16.msra.mxu0 %v3010_v15  ;;  %5535 = vmatpush1.bf16.msra.mxu1 %v3012_v16  ;;  %v1122_v15 = vld [vmem:[%s9580_s25 + $0x17c0] sm:$0xff]  ;;  %v1124_v16 = vld [vmem:[%s9580_s25 + $0x17d0] sm:$0xff] }
 0x361   : > { %4719 = vmatprep.subr.bf16.mxu0 %v3019_v17  ;;  %5536 = vmatprep.subr.bf16.mxu1 %v3021_v18  ;;  %v3098_v17 = vunpack.c.l.s8.bf16 %v1122_v15  ;;  %v3100_v18 = vunpack.c.l.s8.bf16 %v1124_v16 }
 0x364   : > { %4720 = vmatpush1.bf16.msra.mxu0 %v3018_v21  ;;  %5537 = vmatpush1.bf16.msra.mxu1 %v3020_v22  ;;  %v1131_v21 = vld [vmem:[%s9580_s25 + $0x1808] sm:$0xff]  ;;  %v1133_v22 = vld [vmem:[%s9580_s25 + $0x1818] sm:$0xff] }
 0x365   : > { %4721 = vmatprep.subr.bf16.mxu0 %v3027_v23  ;;  %5538 = vmatprep.subr.bf16.mxu1 %v3029_v24  ;;  %v3106_v23 = vunpack.c.h.s8.bf16 %v1122_v15  ;;  %v3108_v24 = vunpack.c.h.s8.bf16 %v1124_v16  ;;  %v3115_v25 = vunpack.c.l.s8.bf16 %v1131_v21  ;;  %v3117_v26 = vunpack.c.l.s8.bf16 %v1133_v22 }
 0x366   : > { %v3123_v32 = vunpack.c.h.s8.bf16 %v1131_v21 }
 0x368   : > { %4722 = vmatpush1.bf16.msra.mxu0 %v3026_v27  ;;  %5539 = vmatpush1.bf16.msra.mxu1 %v3028_v28  ;;  %v1130_v27 = vld [vmem:[%s9580_s25 + $0x1800] sm:$0xff]  ;;  %v1132_v28 = vld [vmem:[%s9580_s25 + $0x1810] sm:$0xff] }
 0x369   : > { %4723 = vmatprep.subr.bf16.mxu0 %v3035_v29  ;;  %5540 = vmatprep.subr.bf16.mxu1 %v3037_v30  ;;  %v9055_v29 = vld [vmem:[%s11165_s0 + $0x58] ss:$152 sps:$4 sm:$0xff]   ;;  %v3114_v30 = vunpack.c.l.s8.bf16 %v1130_v27  ;;  %v3116_v31 = vunpack.c.l.s8.bf16 %v1132_v28  ;;  %v3122_v37 = vunpack.c.h.s8.bf16 %v1130_v27  ;;  %v3124_v38 = vunpack.c.h.s8.bf16 %v1132_v28 }
 0x36c   : > { %4724 = vmatpush1.bf16.msra.mxu0 %v3034_v33  ;;  %5541 = vmatpush1.bf16.msra.mxu1 %v3036_v34  ;;  %v3125_v33 = vunpack.c.h.s8.bf16 %v1133_v22  ;;  %v1139_v34 = vld [vmem:[%s9580_s25 + $0x1848] sm:$0xff] }
 0x36d   : > { %4725 = vmatprep.subr.bf16.mxu0 %v3043_v35  ;;  %5542 = vmatprep.subr.bf16.mxu1 %v3045_v36  ;;  %v1141_v35 = vld [vmem:[%s9580_s25 + $0x1858] sm:$0xff] }
 0x36e   : > { %v9056_v36 = vld [vmem:[%s11165_s0 + $0x64] ss:$152 sps:$4 sm:$0xff]  }
 0x370   : > { %4726 = vmatpush1.bf16.msra.mxu0 %v3042_v39  ;;  %5543 = vmatpush1.bf16.msra.mxu1 %v3044_v40  ;;  %v3131_v39 = vunpack.c.l.s8.bf16 %v1139_v34  ;;  %v3133_v40 = vunpack.c.l.s8.bf16 %v1141_v35 }
 0x371   : > { %4727 = vmatprep.subr.bf16.mxu0 %v3051_v41  ;;  %5544 = vmatprep.subr.bf16.mxu1 %v3053_v42  ;;  %v1138_v41 = vld [vmem:[%s9580_s25 + $0x1840] sm:$0xff]  ;;  %v1140_v42 = vld [vmem:[%s9580_s25 + $0x1850] sm:$0xff] }
 0x372   : > { %v3130_v43 = vunpack.c.l.s8.bf16 %v1138_v41  ;;  %v3132_v44 = vunpack.c.l.s8.bf16 %v1140_v42  ;;  %v3138_v49 = vunpack.c.h.s8.bf16 %v1138_v41  ;;  %v3140_v50 = vunpack.c.h.s8.bf16 %v1140_v42 }
 0x374   : > { %4728 = vmatpush1.bf16.msra.mxu0 %v3050_v45  ;;  %5545 = vmatpush1.bf16.msra.mxu1 %v3052_v46  ;;  %v3139_v45 = vunpack.c.h.s8.bf16 %v1139_v34  ;;  %v3141_v46 = vunpack.c.h.s8.bf16 %v1141_v35 }
 0x375   : > { %4729 = vmatprep.subr.bf16.mxu0 %v3059_v47  ;;  %5546 = vmatprep.subr.bf16.mxu1 %v3061_v48  ;;  %v1147_v47 = vld [vmem:[%s9580_s25 + $0x1888] sm:$0xff]  ;;  %v1149_v48 = vld [vmem:[%s9580_s25 + $0x1898] sm:$0xff] }
 0x378   : > { %4730 = vmatpush1.bf16.msra.mxu0 %v3058_v51  ;;  %5547 = vmatpush1.bf16.msra.mxu1 %v3060_v52  ;;  %v3147_v51 = vunpack.c.l.s8.bf16 %v1147_v47  ;;  %v3149_v52 = vunpack.c.l.s8.bf16 %v1149_v48 }
 0x379   : > { %4731 = vmatprep.subr.bf16.mxu0 %v3067_v53  ;;  %5548 = vmatprep.subr.bf16.mxu1 %v3069_v54  ;;  %v1146_v53 = vld [vmem:[%s9580_s25 + $0x1880] sm:$0xff]  ;;  %v1148_v54 = vld [vmem:[%s9580_s25 + $0x1890] sm:$0xff] }
 0x37a   : > { %v3146_v55 = vunpack.c.l.s8.bf16 %v1146_v53  ;;  %v3148_v56 = vunpack.c.l.s8.bf16 %v1148_v54  ;;  %v3154_v61 = vunpack.c.h.s8.bf16 %v1146_v53  ;;  %v3156_v62 = vunpack.c.h.s8.bf16 %v1148_v54 }
 0x37c   : > { %4732 = vmatpush1.bf16.msra.mxu0 %v3066_v57  ;;  %5549 = vmatpush1.bf16.msra.mxu1 %v3068_v58  ;;  %v3155_v57 = vunpack.c.h.s8.bf16 %v1147_v47  ;;  %v3157_v58 = vunpack.c.h.s8.bf16 %v1149_v48 }
 0x37d   : > { %4733 = vmatprep.subr.bf16.mxu0 %v3075_v59  ;;  %5550 = vmatprep.subr.bf16.mxu1 %v3077_v60  ;;  %v1155_v59 = vld [vmem:[%s9580_s25 + $0x18c8] sm:$0xff]  ;;  %v1157_v60 = vld [vmem:[%s9580_s25 + $0x18d8] sm:$0xff] }
 0x380   : > { %4734 = vmatpush1.bf16.msra.mxu0 %v3074_v63  ;;  %5551 = vmatpush1.bf16.msra.mxu1 %v3076_v0  ;;  %v3163_v63 = vunpack.c.l.s8.bf16 %v1155_v59  ;;  %v3165_v0 = vunpack.c.l.s8.bf16 %v1157_v60 }
 0x381   : > { %4735 = vmatprep.subr.bf16.mxu0 %v3083_v1  ;;  %5552 = vmatprep.subr.bf16.mxu1 %v3085_v2  ;;  %v1154_v1 = vld [vmem:[%s9580_s25 + $0x18c0] sm:$0xff]  ;;  %v1156_v2 = vld [vmem:[%s9580_s25 + $0x18d0] sm:$0xff] }
 0x382   : > { %v3162_v3 = vunpack.c.l.s8.bf16 %v1154_v1  ;;  %v3164_v4 = vunpack.c.l.s8.bf16 %v1156_v2  ;;  %v3170_v9 = vunpack.c.h.s8.bf16 %v1154_v1  ;;  %v3172_v10 = vunpack.c.h.s8.bf16 %v1156_v2 }
 0x384   : > { %4736 = vmatpush1.bf16.msra.mxu0 %v3082_v5  ;;  %5553 = vmatpush1.bf16.msra.mxu1 %v3084_v6  ;;  %v3171_v5 = vunpack.c.h.s8.bf16 %v1155_v59  ;;  %v3173_v6 = vunpack.c.h.s8.bf16 %v1157_v60 }
 0x385   : > { %4737 = vmatprep.subr.bf16.mxu0 %v3091_v7  ;;  %5554 = vmatprep.subr.bf16.mxu1 %v3093_v8  ;;  %v1163_v7 = vld [vmem:[%s9580_s25 + $0x1908] sm:$0xff]  ;;  %v1165_v8 = vld [vmem:[%s9580_s25 + $0x1918] sm:$0xff] }
 0x388   : > { %4738 = vmatpush1.bf16.msra.mxu0 %v3090_v11  ;;  %5555 = vmatpush1.bf16.msra.mxu1 %v3092_v12  ;;  %v3179_v11 = vunpack.c.l.s8.bf16 %v1163_v7  ;;  %v3181_v12 = vunpack.c.l.s8.bf16 %v1165_v8 }
 0x389   : > { %4739 = vmatprep.subr.bf16.mxu0 %v3099_v13  ;;  %5556 = vmatprep.subr.bf16.mxu1 %v3101_v14  ;;  %v1162_v13 = vld [vmem:[%s9580_s25 + $0x1900] sm:$0xff]  ;;  %v1164_v14 = vld [vmem:[%s9580_s25 + $0x1910] sm:$0xff] }
 0x38a   : > { %v3178_v15 = vunpack.c.l.s8.bf16 %v1162_v13  ;;  %v3180_v16 = vunpack.c.l.s8.bf16 %v1164_v14  ;;  %v3186_v21 = vunpack.c.h.s8.bf16 %v1162_v13  ;;  %v3188_v22 = vunpack.c.h.s8.bf16 %v1164_v14 }
 0x38c   : > { %4740 = vmatpush1.bf16.msra.mxu0 %v3098_v17  ;;  %5557 = vmatpush1.bf16.msra.mxu1 %v3100_v18  ;;  %v3187_v17 = vunpack.c.h.s8.bf16 %v1163_v7  ;;  %v3189_v18 = vunpack.c.h.s8.bf16 %v1165_v8 }
 0x38d   : > { %4741 = vmatprep.subr.bf16.mxu0 %v3107_v19  ;;  %5558 = vmatprep.subr.bf16.mxu1 %v3109_v20  ;;  %v1171_v19 = vld [vmem:[%s9580_s25 + $0x1948] sm:$0xff]  ;;  %v1173_v20 = vld [vmem:[%s9580_s25 + $0x1958] sm:$0xff] }
 0x390   : > { %4742 = vmatpush1.bf16.msra.mxu0 %v3106_v23  ;;  %5559 = vmatpush1.bf16.msra.mxu1 %v3108_v24  ;;  %v3195_v23 = vunpack.c.l.s8.bf16 %v1171_v19  ;;  %v3197_v24 = vunpack.c.l.s8.bf16 %v1173_v20 }
 0x391   : > { %4754 = vmatprep.subr.bf16.mxu0 %v3115_v25  ;;  %5571 = vmatprep.subr.bf16.mxu1 %v3117_v26  ;;  %v1170_v25 = vld [vmem:[%s9580_s25 + $0x1940] sm:$0xff]  ;;  %v1172_v26 = vld [vmem:[%s9580_s25 + $0x1950] sm:$0xff] }
 0x392   : > { %v3194_v27 = vunpack.c.l.s8.bf16 %v1170_v25  ;;  %v3196_v28 = vunpack.c.l.s8.bf16 %v1172_v26  ;;  %v3204_v34 = vunpack.c.h.s8.bf16 %v1172_v26 }
 0x393   : > { %4744 = vmatmul.mubr.bf16.vlgmr.msra.gmra.mrb[0].mxu0 %v9055_v29  ;;  %5561 = vmatmul.mubr.bf16.vlgmr.msra.gmra.mrb[0].mxu1 %v9055_v29  ;;  %v3203_v29 = vunpack.c.h.s8.bf16 %v1171_v19 }
 0x394   : > { %4755 = vmatpush1.bf16.msra.mxu0 %v3114_v30  ;;  %5572 = vmatpush1.bf16.msra.mxu1 %v3116_v31  ;;  %v3205_v30 = vunpack.c.h.s8.bf16 %v1173_v20  ;;  %v1179_v31 = vld [vmem:[%s9580_s25 + $0x1988] sm:$0xff] }
 0x395   : > { %4756 = vmatprep.subr.bf16.mxu0 %v3123_v32  ;;  %5573 = vmatprep.subr.bf16.mxu1 %v3125_v33  ;;  %v1181_v32 = vld [vmem:[%s9580_s25 + $0x1998] sm:$0xff]  ;;  %v3202_v33 = vunpack.c.h.s8.bf16 %v1170_v25  ;;  %v3211_v35 = vunpack.c.l.s8.bf16 %v1179_v31  ;;  %v3219_v41 = vunpack.c.h.s8.bf16 %v1179_v31 }
 0x396   : > { %4786 = vmatprep.mubr.bf16.mxu0 %v9056_v36  ;;  %5603 = vmatprep.mubr.bf16.mxu1 %v9056_v36  ;;  %v3213_v36 = vunpack.c.l.s8.bf16 %v1181_v32  ;;  %v3221_v42 = vunpack.c.h.s8.bf16 %v1181_v32 }
 0x398   : > { %4757 = vmatpush1.bf16.msra.mxu0 %v3122_v37  ;;  %5574 = vmatpush1.bf16.msra.mxu1 %v3124_v38  ;;  %v1178_v37 = vld [vmem:[%s9580_s25 + $0x1980] sm:$0xff]  ;;  %v1180_v38 = vld [vmem:[%s9580_s25 + $0x1990] sm:$0xff] }
 0x399   : > { %4758 = vmatprep.subr.bf16.mxu0 %v3131_v39  ;;  %5575 = vmatprep.subr.bf16.mxu1 %v3133_v40  ;;  %v3210_v39 = vunpack.c.l.s8.bf16 %v1178_v37  ;;  %v3212_v40 = vunpack.c.l.s8.bf16 %v1180_v38 }
 0x39c   : > { %4759 = vmatpush1.bf16.msra.mxu0 %v3130_v43  ;;  %5576 = vmatpush1.bf16.msra.mxu1 %v3132_v44  ;;  %v1187_v43 = vld [vmem:[%s9580_s25 + $0x19c8] sm:$0xff]  ;;  %v1189_v44 = vld [vmem:[%s9580_s25 + $0x19d8] sm:$0xff] }
 0x39d   : > { %4760 = vmatprep.subr.bf16.mxu0 %v3139_v45  ;;  %5577 = vmatprep.subr.bf16.mxu1 %v3141_v46  ;;  %v3218_v45 = vunpack.c.h.s8.bf16 %v1178_v37  ;;  %v3220_v46 = vunpack.c.h.s8.bf16 %v1180_v38  ;;  %v3227_v47 = vunpack.c.l.s8.bf16 %v1187_v43  ;;  %v3229_v48 = vunpack.c.l.s8.bf16 %v1189_v44 }
 0x39e   : > { %v3235_v53 = vunpack.c.h.s8.bf16 %v1187_v43  ;;  %v3237_v54 = vunpack.c.h.s8.bf16 %v1189_v44 }
 0x3a0   : > { %4761 = vmatpush1.bf16.msra.mxu0 %v3138_v49  ;;  %5578 = vmatpush1.bf16.msra.mxu1 %v3140_v50  ;;  %v1186_v49 = vld [vmem:[%s9580_s25 + $0x19c0] sm:$0xff]  ;;  %v1188_v50 = vld [vmem:[%s9580_s25 + $0x19d0] sm:$0xff] }
 0x3a1   : > { %4762 = vmatprep.subr.bf16.mxu0 %v3147_v51  ;;  %5579 = vmatprep.subr.bf16.mxu1 %v3149_v52  ;;  %v3226_v51 = vunpack.c.l.s8.bf16 %v1186_v49  ;;  %v3228_v52 = vunpack.c.l.s8.bf16 %v1188_v50 }
 0x3a4   : > { %4763 = vmatpush1.bf16.msra.mxu0 %v3146_v55  ;;  %5580 = vmatpush1.bf16.msra.mxu1 %v3148_v56  ;;  %v1195_v55 = vld [vmem:[%s9580_s25 + $0x1a08] sm:$0xff]  ;;  %v1197_v56 = vld [vmem:[%s9580_s25 + $0x1a18] sm:$0xff] }
 0x3a5   : > { %4764 = vmatprep.subr.bf16.mxu0 %v3155_v57  ;;  %5581 = vmatprep.subr.bf16.mxu1 %v3157_v58  ;;  %v3234_v57 = vunpack.c.h.s8.bf16 %v1186_v49  ;;  %v3236_v58 = vunpack.c.h.s8.bf16 %v1188_v50  ;;  %v3243_v59 = vunpack.c.l.s8.bf16 %v1195_v55  ;;  %v3245_v60 = vunpack.c.l.s8.bf16 %v1197_v56 }
 0x3a6   : > { %v3251_v2 = vunpack.c.h.s8.bf16 %v1195_v55 }
 0x3a8   : > { %4765 = vmatpush1.bf16.msra.mxu0 %v3154_v61  ;;  %5582 = vmatpush1.bf16.msra.mxu1 %v3156_v62  ;;  %v1194_v61 = vld [vmem:[%s9580_s25 + $0x1a00] sm:$0xff]  ;;  %v1196_v62 = vld [vmem:[%s9580_s25 + $0x1a10] sm:$0xff] }
 0x3a9   : > { %4766 = vmatprep.subr.bf16.mxu0 %v3163_v63  ;;  %5583 = vmatprep.subr.bf16.mxu1 %v3165_v0  ;;  %v9058_v63 = vld [vmem:[%s11165_s0 + $0x60] ss:$152 sps:$4 sm:$0xff]   ;;  %v3242_v0 = vunpack.c.l.s8.bf16 %v1194_v61  ;;  %v3244_v1 = vunpack.c.l.s8.bf16 %v1196_v62  ;;  %v3250_v7 = vunpack.c.h.s8.bf16 %v1194_v61  ;;  %v3252_v8 = vunpack.c.h.s8.bf16 %v1196_v62 }
 0x3ac   : > { %4767 = vmatpush1.bf16.msra.mxu0 %v3162_v3  ;;  %5584 = vmatpush1.bf16.msra.mxu1 %v3164_v4  ;;  %v3253_v3 = vunpack.c.h.s8.bf16 %v1197_v56  ;;  %v1203_v4 = vld [vmem:[%s9580_s25 + $0x1a48] sm:$0xff] }
 0x3ad   : > { %4768 = vmatprep.subr.bf16.mxu0 %v3171_v5  ;;  %5585 = vmatprep.subr.bf16.mxu1 %v3173_v6  ;;  %v1205_v5 = vld [vmem:[%s9580_s25 + $0x1a58] sm:$0xff]  ;;  %v9059_v6 = vld [vmem:[%s11165_s0 + $0x6c] ss:$152 sps:$4 sm:$0xff]  }
 0x3b0   : > { %4769 = vmatpush1.bf16.msra.mxu0 %v3170_v9  ;;  %5586 = vmatpush1.bf16.msra.mxu1 %v3172_v10  ;;  %v3259_v9 = vunpack.c.l.s8.bf16 %v1203_v4  ;;  %v3261_v10 = vunpack.c.l.s8.bf16 %v1205_v5 }
 0x3b1   : > { %4770 = vmatprep.subr.bf16.mxu0 %v3179_v11  ;;  %5587 = vmatprep.subr.bf16.mxu1 %v3181_v12  ;;  %v1202_v11 = vld [vmem:[%s9580_s25 + $0x1a40] sm:$0xff]  ;;  %v1204_v12 = vld [vmem:[%s9580_s25 + $0x1a50] sm:$0xff] }
 0x3b2   : > { %v3258_v13 = vunpack.c.l.s8.bf16 %v1202_v11  ;;  %v3260_v14 = vunpack.c.l.s8.bf16 %v1204_v12  ;;  %v3266_v19 = vunpack.c.h.s8.bf16 %v1202_v11  ;;  %v3268_v20 = vunpack.c.h.s8.bf16 %v1204_v12 }
 0x3b4   : > { %4771 = vmatpush1.bf16.msra.mxu0 %v3178_v15  ;;  %5588 = vmatpush1.bf16.msra.mxu1 %v3180_v16  ;;  %v3267_v15 = vunpack.c.h.s8.bf16 %v1203_v4  ;;  %v3269_v16 = vunpack.c.h.s8.bf16 %v1205_v5 }
 0x3b5   : > { %4772 = vmatprep.subr.bf16.mxu0 %v3187_v17  ;;  %5589 = vmatprep.subr.bf16.mxu1 %v3189_v18  ;;  %v1211_v17 = vld [vmem:[%s9580_s25 + $0x1a88] sm:$0xff]  ;;  %v1213_v18 = vld [vmem:[%s9580_s25 + $0x1a98] sm:$0xff] }
 0x3b8   : > { %4773 = vmatpush1.bf16.msra.mxu0 %v3186_v21  ;;  %5590 = vmatpush1.bf16.msra.mxu1 %v3188_v22  ;;  %v3275_v21 = vunpack.c.l.s8.bf16 %v1211_v17  ;;  %v3277_v22 = vunpack.c.l.s8.bf16 %v1213_v18 }
 0x3b9   : > { %4774 = vmatprep.subr.bf16.mxu0 %v3195_v23  ;;  %5591 = vmatprep.subr.bf16.mxu1 %v3197_v24  ;;  %v1210_v23 = vld [vmem:[%s9580_s25 + $0x1a80] sm:$0xff]  ;;  %v1212_v24 = vld [vmem:[%s9580_s25 + $0x1a90] sm:$0xff] }
 0x3ba   : > { %v3274_v25 = vunpack.c.l.s8.bf16 %v1210_v23  ;;  %v3276_v26 = vunpack.c.l.s8.bf16 %v1212_v24  ;;  %v3282_v31 = vunpack.c.h.s8.bf16 %v1210_v23  ;;  %v3284_v32 = vunpack.c.h.s8.bf16 %v1212_v24 }
 0x3bc   : > { %4775 = vmatpush1.bf16.msra.mxu0 %v3194_v27  ;;  %5592 = vmatpush1.bf16.msra.mxu1 %v3196_v28  ;;  %v3283_v27 = vunpack.c.h.s8.bf16 %v1211_v17  ;;  %v3285_v28 = vunpack.c.h.s8.bf16 %v1213_v18 }
 0x3bd   : > { %4776 = vmatprep.subr.bf16.mxu0 %v3203_v29  ;;  %5593 = vmatprep.subr.bf16.mxu1 %v3205_v30  ;;  %v1219_v29 = vld [vmem:[%s9580_s25 + $0x1ac8] sm:$0xff]  ;;  %v1221_v30 = vld [vmem:[%s9580_s25 + $0x1ad8] sm:$0xff] }
 0x3c0   : > { %4777 = vmatpush1.bf16.msra.mxu0 %v3202_v33  ;;  %5594 = vmatpush1.bf16.msra.mxu1 %v3204_v34  ;;  %v3291_v33 = vunpack.c.l.s8.bf16 %v1219_v29  ;;  %v3293_v34 = vunpack.c.l.s8.bf16 %v1221_v30 }
 0x3c1   : > { %4778 = vmatprep.subr.bf16.mxu0 %v3211_v35  ;;  %5595 = vmatprep.subr.bf16.mxu1 %v3213_v36  ;;  %v1218_v35 = vld [vmem:[%s9580_s25 + $0x1ac0] sm:$0xff]  ;;  %v1220_v36 = vld [vmem:[%s9580_s25 + $0x1ad0] sm:$0xff] }
 0x3c2   : > { %v3290_v37 = vunpack.c.l.s8.bf16 %v1218_v35  ;;  %v3292_v38 = vunpack.c.l.s8.bf16 %v1220_v36  ;;  %v3298_v43 = vunpack.c.h.s8.bf16 %v1218_v35  ;;  %v3300_v44 = vunpack.c.h.s8.bf16 %v1220_v36 }
 0x3c4   : > { %4779 = vmatpush1.bf16.msra.mxu0 %v3210_v39  ;;  %5596 = vmatpush1.bf16.msra.mxu1 %v3212_v40  ;;  %v3299_v39 = vunpack.c.h.s8.bf16 %v1219_v29  ;;  %v3301_v40 = vunpack.c.h.s8.bf16 %v1221_v30 }
 0x3c5   : > { %4780 = vmatprep.subr.bf16.mxu0 %v3219_v41  ;;  %5597 = vmatprep.subr.bf16.mxu1 %v3221_v42  ;;  %v1227_v41 = vld [vmem:[%s9580_s25 + $0x1b08] sm:$0xff]  ;;  %v1229_v42 = vld [vmem:[%s9580_s25 + $0x1b18] sm:$0xff] }
 0x3c8   : > { %4781 = vmatpush1.bf16.msra.mxu0 %v3218_v45  ;;  %5598 = vmatpush1.bf16.msra.mxu1 %v3220_v46  ;;  %v3307_v45 = vunpack.c.l.s8.bf16 %v1227_v41  ;;  %v3309_v46 = vunpack.c.l.s8.bf16 %v1229_v42 }
 0x3c9   : > { %4782 = vmatprep.subr.bf16.mxu0 %v3227_v47  ;;  %5599 = vmatprep.subr.bf16.mxu1 %v3229_v48  ;;  %v1226_v47 = vld [vmem:[%s9580_s25 + $0x1b00] sm:$0xff]  ;;  %v1228_v48 = vld [vmem:[%s9580_s25 + $0x1b10] sm:$0xff] }
 0x3ca   : > { %v3306_v49 = vunpack.c.l.s8.bf16 %v1226_v47  ;;  %v3308_v50 = vunpack.c.l.s8.bf16 %v1228_v48  ;;  %v3314_v55 = vunpack.c.h.s8.bf16 %v1226_v47  ;;  %v3316_v56 = vunpack.c.h.s8.bf16 %v1228_v48 }
 0x3cc   : > { %4783 = vmatpush1.bf16.msra.mxu0 %v3226_v51  ;;  %5600 = vmatpush1.bf16.msra.mxu1 %v3228_v52  ;;  %v3315_v51 = vunpack.c.h.s8.bf16 %v1227_v41  ;;  %v3317_v52 = vunpack.c.h.s8.bf16 %v1229_v42 }
 0x3cd   : > { %4784 = vmatprep.subr.bf16.mxu0 %v3235_v53  ;;  %5601 = vmatprep.subr.bf16.mxu1 %v3237_v54  ;;  %v1235_v53 = vld [vmem:[%s9580_s25 + $0x1b48] sm:$0xff]  ;;  %v1237_v54 = vld [vmem:[%s9580_s25 + $0x1b58] sm:$0xff] }
 0x3d0   : > { %4785 = vmatpush1.bf16.msra.mxu0 %v3234_v57  ;;  %5602 = vmatpush1.bf16.msra.mxu1 %v3236_v58  ;;  %v3323_v57 = vunpack.c.l.s8.bf16 %v1235_v53  ;;  %v3325_v58 = vunpack.c.l.s8.bf16 %v1237_v54 }
 0x3d1   : > { %4797 = vmatprep.subr.bf16.mxu0 %v3243_v59  ;;  %5614 = vmatprep.subr.bf16.mxu1 %v3245_v60  ;;  %v1234_v59 = vld [vmem:[%s9580_s25 + $0x1b40] sm:$0xff]  ;;  %v1236_v60 = vld [vmem:[%s9580_s25 + $0x1b50] sm:$0xff] }
 0x3d2   : > { %v3322_v61 = vunpack.c.l.s8.bf16 %v1234_v59  ;;  %v3324_v62 = vunpack.c.l.s8.bf16 %v1236_v60  ;;  %v3332_v4 = vunpack.c.h.s8.bf16 %v1236_v60 }
 0x3d3   : > { %4787 = vmatmul.mubr.bf16.vlgmr.msra.gmra.mrb[0].mxu0 %v9058_v63  ;;  %5604 = vmatmul.mubr.bf16.vlgmr.msra.gmra.mrb[0].mxu1 %v9058_v63  ;;  %v3331_v63 = vunpack.c.h.s8.bf16 %v1235_v53 }
 0x3d4   : > { %4798 = vmatpush1.bf16.msra.mxu0 %v3242_v0  ;;  %5615 = vmatpush1.bf16.msra.mxu1 %v3244_v1  ;;  %v3333_v0 = vunpack.c.h.s8.bf16 %v1237_v54  ;;  %v1243_v1 = vld [vmem:[%s9580_s25 + $0x1b88] sm:$0xff] }
 0x3d5   : > { %4799 = vmatprep.subr.bf16.mxu0 %v3251_v2  ;;  %5616 = vmatprep.subr.bf16.mxu1 %v3253_v3  ;;  %v1245_v2 = vld [vmem:[%s9580_s25 + $0x1b98] sm:$0xff]  ;;  %v3330_v3 = vunpack.c.h.s8.bf16 %v1234_v59  ;;  %v3339_v5 = vunpack.c.l.s8.bf16 %v1243_v1  ;;  %v3347_v11 = vunpack.c.h.s8.bf16 %v1243_v1 }
 0x3d6   : > { %4829 = vmatprep.mubr.bf16.mxu0 %v9059_v6  ;;  %5646 = vmatprep.mubr.bf16.mxu1 %v9059_v6  ;;  %v3341_v6 = vunpack.c.l.s8.bf16 %v1245_v2  ;;  %v3349_v12 = vunpack.c.h.s8.bf16 %v1245_v2 }
 0x3d8   : > { %4800 = vmatpush1.bf16.msra.mxu0 %v3250_v7  ;;  %5617 = vmatpush1.bf16.msra.mxu1 %v3252_v8  ;;  %v1242_v7 = vld [vmem:[%s9580_s25 + $0x1b80] sm:$0xff]  ;;  %v1244_v8 = vld [vmem:[%s9580_s25 + $0x1b90] sm:$0xff] }
 0x3d9   : > { %4801 = vmatprep.subr.bf16.mxu0 %v3259_v9  ;;  %5618 = vmatprep.subr.bf16.mxu1 %v3261_v10  ;;  %v3338_v9 = vunpack.c.l.s8.bf16 %v1242_v7  ;;  %v3340_v10 = vunpack.c.l.s8.bf16 %v1244_v8 }
 0x3dc   : > { %4802 = vmatpush1.bf16.msra.mxu0 %v3258_v13  ;;  %5619 = vmatpush1.bf16.msra.mxu1 %v3260_v14  ;;  %v1251_v13 = vld [vmem:[%s9580_s25 + $0x1bc8] sm:$0xff]  ;;  %v1253_v14 = vld [vmem:[%s9580_s25 + $0x1bd8] sm:$0xff] }
 0x3dd   : > { %4803 = vmatprep.subr.bf16.mxu0 %v3267_v15  ;;  %5620 = vmatprep.subr.bf16.mxu1 %v3269_v16  ;;  %v3346_v15 = vunpack.c.h.s8.bf16 %v1242_v7  ;;  %v3348_v16 = vunpack.c.h.s8.bf16 %v1244_v8  ;;  %v3355_v17 = vunpack.c.l.s8.bf16 %v1251_v13  ;;  %v3357_v18 = vunpack.c.l.s8.bf16 %v1253_v14 }
 0x3de   : > { %v3363_v23 = vunpack.c.h.s8.bf16 %v1251_v13  ;;  %v3365_v24 = vunpack.c.h.s8.bf16 %v1253_v14 }
 0x3e0   : > { %4804 = vmatpush1.bf16.msra.mxu0 %v3266_v19  ;;  %5621 = vmatpush1.bf16.msra.mxu1 %v3268_v20  ;;  %v1250_v19 = vld [vmem:[%s9580_s25 + $0x1bc0] sm:$0xff]  ;;  %v1252_v20 = vld [vmem:[%s9580_s25 + $0x1bd0] sm:$0xff] }
 0x3e1   : > { %4805 = vmatprep.subr.bf16.mxu0 %v3275_v21  ;;  %5622 = vmatprep.subr.bf16.mxu1 %v3277_v22  ;;  %v3354_v21 = vunpack.c.l.s8.bf16 %v1250_v19  ;;  %v3356_v22 = vunpack.c.l.s8.bf16 %v1252_v20 }
 0x3e4   : > { %4806 = vmatpush1.bf16.msra.mxu0 %v3274_v25  ;;  %5623 = vmatpush1.bf16.msra.mxu1 %v3276_v26  ;;  %v1259_v25 = vld [vmem:[%s9580_s25 + $0x1c08] sm:$0xff]  ;;  %v1261_v26 = vld [vmem:[%s9580_s25 + $0x1c18] sm:$0xff] }
 0x3e5   : > { %4807 = vmatprep.subr.bf16.mxu0 %v3283_v27  ;;  %5624 = vmatprep.subr.bf16.mxu1 %v3285_v28  ;;  %v3362_v27 = vunpack.c.h.s8.bf16 %v1250_v19  ;;  %v3364_v28 = vunpack.c.h.s8.bf16 %v1252_v20  ;;  %v3371_v29 = vunpack.c.l.s8.bf16 %v1259_v25  ;;  %v3373_v30 = vunpack.c.l.s8.bf16 %v1261_v26 }
 0x3e6   : > { %v3379_v36 = vunpack.c.h.s8.bf16 %v1259_v25 }
 0x3e8   : > { %4808 = vmatpush1.bf16.msra.mxu0 %v3282_v31  ;;  %5625 = vmatpush1.bf16.msra.mxu1 %v3284_v32  ;;  %v1258_v31 = vld [vmem:[%s9580_s25 + $0x1c00] sm:$0xff]  ;;  %v1260_v32 = vld [vmem:[%s9580_s25 + $0x1c10] sm:$0xff] }
 0x3e9   : > { %4809 = vmatprep.subr.bf16.mxu0 %v3291_v33  ;;  %5626 = vmatprep.subr.bf16.mxu1 %v3293_v34  ;;  %v9061_v33 = vld [vmem:[%s11165_s0 + $0x68] ss:$152 sps:$4 sm:$0xff]   ;;  %v3370_v34 = vunpack.c.l.s8.bf16 %v1258_v31  ;;  %v3372_v35 = vunpack.c.l.s8.bf16 %v1260_v32  ;;  %v3378_v41 = vunpack.c.h.s8.bf16 %v1258_v31  ;;  %v3380_v42 = vunpack.c.h.s8.bf16 %v1260_v32 }
 0x3ec   : > { %4810 = vmatpush1.bf16.msra.mxu0 %v3290_v37  ;;  %5627 = vmatpush1.bf16.msra.mxu1 %v3292_v38  ;;  %v3381_v37 = vunpack.c.h.s8.bf16 %v1261_v26  ;;  %v1267_v38 = vld [vmem:[%s9580_s25 + $0x1c48] sm:$0xff] }
 0x3ed   : > { %4811 = vmatprep.subr.bf16.mxu0 %v3299_v39  ;;  %5628 = vmatprep.subr.bf16.mxu1 %v3301_v40  ;;  %v1269_v39 = vld [vmem:[%s9580_s25 + $0x1c58] sm:$0xff]  ;;  %v9062_v40 = vld [vmem:[%s11165_s0 + $0x74] ss:$152 sps:$4 sm:$0xff]  }
 0x3f0   : > { %4812 = vmatpush1.bf16.msra.mxu0 %v3298_v43  ;;  %5629 = vmatpush1.bf16.msra.mxu1 %v3300_v44  ;;  %v3387_v43 = vunpack.c.l.s8.bf16 %v1267_v38  ;;  %v3389_v44 = vunpack.c.l.s8.bf16 %v1269_v39 }
 0x3f1   : > { %4813 = vmatprep.subr.bf16.mxu0 %v3307_v45  ;;  %5630 = vmatprep.subr.bf16.mxu1 %v3309_v46  ;;  %v1266_v45 = vld [vmem:[%s9580_s25 + $0x1c40] sm:$0xff]  ;;  %v1268_v46 = vld [vmem:[%s9580_s25 + $0x1c50] sm:$0xff] }
 0x3f2   : > { %v3386_v47 = vunpack.c.l.s8.bf16 %v1266_v45  ;;  %v3388_v48 = vunpack.c.l.s8.bf16 %v1268_v46  ;;  %v3394_v53 = vunpack.c.h.s8.bf16 %v1266_v45  ;;  %v3396_v54 = vunpack.c.h.s8.bf16 %v1268_v46 }
 0x3f4   : > { %4814 = vmatpush1.bf16.msra.mxu0 %v3306_v49  ;;  %5631 = vmatpush1.bf16.msra.mxu1 %v3308_v50  ;;  %v3395_v49 = vunpack.c.h.s8.bf16 %v1267_v38  ;;  %v3397_v50 = vunpack.c.h.s8.bf16 %v1269_v39 }
 0x3f5   : > { %4815 = vmatprep.subr.bf16.mxu0 %v3315_v51  ;;  %5632 = vmatprep.subr.bf16.mxu1 %v3317_v52  ;;  %v1275_v51 = vld [vmem:[%s9580_s25 + $0x1c88] sm:$0xff]  ;;  %v1277_v52 = vld [vmem:[%s9580_s25 + $0x1c98] sm:$0xff] }
 0x3f8   : > { %4816 = vmatpush1.bf16.msra.mxu0 %v3314_v55  ;;  %5633 = vmatpush1.bf16.msra.mxu1 %v3316_v56  ;;  %v3403_v55 = vunpack.c.l.s8.bf16 %v1275_v51  ;;  %v3405_v56 = vunpack.c.l.s8.bf16 %v1277_v52 }
 0x3f9   : > { %4817 = vmatprep.subr.bf16.mxu0 %v3323_v57  ;;  %5634 = vmatprep.subr.bf16.mxu1 %v3325_v58  ;;  %v1274_v57 = vld [vmem:[%s9580_s25 + $0x1c80] sm:$0xff]  ;;  %v1276_v58 = vld [vmem:[%s9580_s25 + $0x1c90] sm:$0xff] }
 0x3fa   : > { %v3402_v59 = vunpack.c.l.s8.bf16 %v1274_v57  ;;  %v3404_v60 = vunpack.c.l.s8.bf16 %v1276_v58  ;;  %v3410_v1 = vunpack.c.h.s8.bf16 %v1274_v57  ;;  %v3412_v2 = vunpack.c.h.s8.bf16 %v1276_v58 }
 0x3fc   : > { %4818 = vmatpush1.bf16.msra.mxu0 %v3322_v61  ;;  %5635 = vmatpush1.bf16.msra.mxu1 %v3324_v62  ;;  %v3411_v61 = vunpack.c.h.s8.bf16 %v1275_v51  ;;  %v3413_v62 = vunpack.c.h.s8.bf16 %v1277_v52 }
 0x3fd   : > { %4819 = vmatprep.subr.bf16.mxu0 %v3331_v63  ;;  %5636 = vmatprep.subr.bf16.mxu1 %v3333_v0  ;;  %v1283_v63 = vld [vmem:[%s9580_s25 + $0x1cc8] sm:$0xff]  ;;  %v1285_v0 = vld [vmem:[%s9580_s25 + $0x1cd8] sm:$0xff] }
 0x400   : > { %4820 = vmatpush1.bf16.msra.mxu0 %v3330_v3  ;;  %5637 = vmatpush1.bf16.msra.mxu1 %v3332_v4  ;;  %v3419_v3 = vunpack.c.l.s8.bf16 %v1283_v63  ;;  %v3421_v4 = vunpack.c.l.s8.bf16 %v1285_v0 }
 0x401   : > { %4821 = vmatprep.subr.bf16.mxu0 %v3339_v5  ;;  %5638 = vmatprep.subr.bf16.mxu1 %v3341_v6  ;;  %v1282_v5 = vld [vmem:[%s9580_s25 + $0x1cc0] sm:$0xff]  ;;  %v1284_v6 = vld [vmem:[%s9580_s25 + $0x1cd0] sm:$0xff] }
 0x402   : > { %v3418_v7 = vunpack.c.l.s8.bf16 %v1282_v5  ;;  %v3420_v8 = vunpack.c.l.s8.bf16 %v1284_v6  ;;  %v3426_v13 = vunpack.c.h.s8.bf16 %v1282_v5  ;;  %v3428_v14 = vunpack.c.h.s8.bf16 %v1284_v6 }
 0x404   : > { %4822 = vmatpush1.bf16.msra.mxu0 %v3338_v9  ;;  %5639 = vmatpush1.bf16.msra.mxu1 %v3340_v10  ;;  %v3427_v9 = vunpack.c.h.s8.bf16 %v1283_v63  ;;  %v3429_v10 = vunpack.c.h.s8.bf16 %v1285_v0 }
 0x405   : > { %4823 = vmatprep.subr.bf16.mxu0 %v3347_v11  ;;  %5640 = vmatprep.subr.bf16.mxu1 %v3349_v12  ;;  %v1291_v11 = vld [vmem:[%s9580_s25 + $0x1d08] sm:$0xff]  ;;  %v1293_v12 = vld [vmem:[%s9580_s25 + $0x1d18] sm:$0xff] }
 0x408   : > { %4824 = vmatpush1.bf16.msra.mxu0 %v3346_v15  ;;  %5641 = vmatpush1.bf16.msra.mxu1 %v3348_v16  ;;  %v3435_v15 = vunpack.c.l.s8.bf16 %v1291_v11  ;;  %v3437_v16 = vunpack.c.l.s8.bf16 %v1293_v12 }
 0x409   : > { %4825 = vmatprep.subr.bf16.mxu0 %v3355_v17  ;;  %5642 = vmatprep.subr.bf16.mxu1 %v3357_v18  ;;  %v1290_v17 = vld [vmem:[%s9580_s25 + $0x1d00] sm:$0xff]  ;;  %v1292_v18 = vld [vmem:[%s9580_s25 + $0x1d10] sm:$0xff] }
 0x40a   : > { %v3434_v19 = vunpack.c.l.s8.bf16 %v1290_v17  ;;  %v3436_v20 = vunpack.c.l.s8.bf16 %v1292_v18  ;;  %v3442_v25 = vunpack.c.h.s8.bf16 %v1290_v17  ;;  %v3444_v26 = vunpack.c.h.s8.bf16 %v1292_v18 }
 0x40c   : > { %4826 = vmatpush1.bf16.msra.mxu0 %v3354_v21  ;;  %5643 = vmatpush1.bf16.msra.mxu1 %v3356_v22  ;;  %v3443_v21 = vunpack.c.h.s8.bf16 %v1291_v11  ;;  %v3445_v22 = vunpack.c.h.s8.bf16 %v1293_v12 }
 0x40d   : > { %4827 = vmatprep.subr.bf16.mxu0 %v3363_v23  ;;  %5644 = vmatprep.subr.bf16.mxu1 %v3365_v24  ;;  %v1299_v23 = vld [vmem:[%s9580_s25 + $0x1d48] sm:$0xff]  ;;  %v1301_v24 = vld [vmem:[%s9580_s25 + $0x1d58] sm:$0xff] }
 0x410   : > { %4828 = vmatpush1.bf16.msra.mxu0 %v3362_v27  ;;  %5645 = vmatpush1.bf16.msra.mxu1 %v3364_v28  ;;  %v3451_v27 = vunpack.c.l.s8.bf16 %v1299_v23  ;;  %v3453_v28 = vunpack.c.l.s8.bf16 %v1301_v24 }
 0x411   : > { %4840 = vmatprep.subr.bf16.mxu0 %v3371_v29  ;;  %5657 = vmatprep.subr.bf16.mxu1 %v3373_v30  ;;  %v1298_v29 = vld [vmem:[%s9580_s25 + $0x1d40] sm:$0xff]  ;;  %v1300_v30 = vld [vmem:[%s9580_s25 + $0x1d50] sm:$0xff] }
 0x412   : > { %v3450_v31 = vunpack.c.l.s8.bf16 %v1298_v29  ;;  %v3452_v32 = vunpack.c.l.s8.bf16 %v1300_v30  ;;  %v3460_v38 = vunpack.c.h.s8.bf16 %v1300_v30 }
 0x413   : > { %4830 = vmatmul.mubr.bf16.vlgmr.msra.gmra.mrb[0].mxu0 %v9061_v33  ;;  %5647 = vmatmul.mubr.bf16.vlgmr.msra.gmra.mrb[0].mxu1 %v9061_v33  ;;  %v3459_v33 = vunpack.c.h.s8.bf16 %v1299_v23 }
 0x414   : > { %4841 = vmatpush1.bf16.msra.mxu0 %v3370_v34  ;;  %5658 = vmatpush1.bf16.msra.mxu1 %v3372_v35  ;;  %v3461_v34 = vunpack.c.h.s8.bf16 %v1301_v24  ;;  %v1307_v35 = vld [vmem:[%s9580_s25 + $0x1d88] sm:$0xff] }
 0x415   : > { %4842 = vmatprep.subr.bf16.mxu0 %v3379_v36  ;;  %5659 = vmatprep.subr.bf16.mxu1 %v3381_v37  ;;  %v1309_v36 = vld [vmem:[%s9580_s25 + $0x1d98] sm:$0xff]  ;;  %v3458_v37 = vunpack.c.h.s8.bf16 %v1298_v29  ;;  %v3467_v39 = vunpack.c.l.s8.bf16 %v1307_v35  ;;  %v3475_v45 = vunpack.c.h.s8.bf16 %v1307_v35 }
 0x416   : > { %4872 = vmatprep.mubr.bf16.mxu0 %v9062_v40  ;;  %5689 = vmatprep.mubr.bf16.mxu1 %v9062_v40  ;;  %v3469_v40 = vunpack.c.l.s8.bf16 %v1309_v36  ;;  %v3477_v46 = vunpack.c.h.s8.bf16 %v1309_v36 }
 0x418   : > { %4843 = vmatpush1.bf16.msra.mxu0 %v3378_v41  ;;  %5660 = vmatpush1.bf16.msra.mxu1 %v3380_v42  ;;  %v1306_v41 = vld [vmem:[%s9580_s25 + $0x1d80] sm:$0xff]  ;;  %v1308_v42 = vld [vmem:[%s9580_s25 + $0x1d90] sm:$0xff] }
 0x419   : > { %4844 = vmatprep.subr.bf16.mxu0 %v3387_v43  ;;  %5661 = vmatprep.subr.bf16.mxu1 %v3389_v44  ;;  %v3466_v43 = vunpack.c.l.s8.bf16 %v1306_v41  ;;  %v3468_v44 = vunpack.c.l.s8.bf16 %v1308_v42 }
 0x41c   : > { %4845 = vmatpush1.bf16.msra.mxu0 %v3386_v47  ;;  %5662 = vmatpush1.bf16.msra.mxu1 %v3388_v48  ;;  %v1315_v47 = vld [vmem:[%s9580_s25 + $0x1dc8] sm:$0xff]  ;;  %v1317_v48 = vld [vmem:[%s9580_s25 + $0x1dd8] sm:$0xff] }
 0x41d   : > { %4846 = vmatprep.subr.bf16.mxu0 %v3395_v49  ;;  %5663 = vmatprep.subr.bf16.mxu1 %v3397_v50  ;;  %v3474_v49 = vunpack.c.h.s8.bf16 %v1306_v41  ;;  %v3476_v50 = vunpack.c.h.s8.bf16 %v1308_v42  ;;  %v3483_v51 = vunpack.c.l.s8.bf16 %v1315_v47  ;;  %v3485_v52 = vunpack.c.l.s8.bf16 %v1317_v48 }
 0x41e   : > { %v3491_v57 = vunpack.c.h.s8.bf16 %v1315_v47  ;;  %v3493_v58 = vunpack.c.h.s8.bf16 %v1317_v48 }
 0x420   : > { %4847 = vmatpush1.bf16.msra.mxu0 %v3394_v53  ;;  %5664 = vmatpush1.bf16.msra.mxu1 %v3396_v54  ;;  %v1314_v53 = vld [vmem:[%s9580_s25 + $0x1dc0] sm:$0xff]  ;;  %v1316_v54 = vld [vmem:[%s9580_s25 + $0x1dd0] sm:$0xff] }
 0x421   : > { %4848 = vmatprep.subr.bf16.mxu0 %v3403_v55  ;;  %5665 = vmatprep.subr.bf16.mxu1 %v3405_v56  ;;  %v3482_v55 = vunpack.c.l.s8.bf16 %v1314_v53  ;;  %v3484_v56 = vunpack.c.l.s8.bf16 %v1316_v54 }
 0x424   : > { %4849 = vmatpush1.bf16.msra.mxu0 %v3402_v59  ;;  %5666 = vmatpush1.bf16.msra.mxu1 %v3404_v60  ;;  %v1323_v59 = vld [vmem:[%s9580_s25 + $0x1e08] sm:$0xff]  ;;  %v1325_v60 = vld [vmem:[%s9580_s25 + $0x1e18] sm:$0xff] }
 0x425   : > { %4850 = vmatprep.subr.bf16.mxu0 %v3411_v61  ;;  %5667 = vmatprep.subr.bf16.mxu1 %v3413_v62  ;;  %v3490_v61 = vunpack.c.h.s8.bf16 %v1314_v53  ;;  %v3492_v62 = vunpack.c.h.s8.bf16 %v1316_v54  ;;  %v3499_v63 = vunpack.c.l.s8.bf16 %v1323_v59  ;;  %v3501_v0 = vunpack.c.l.s8.bf16 %v1325_v60 }
 0x426   : > { %v3507_v6 = vunpack.c.h.s8.bf16 %v1323_v59 }
 0x428   : > { %4851 = vmatpush1.bf16.msra.mxu0 %v3410_v1  ;;  %5668 = vmatpush1.bf16.msra.mxu1 %v3412_v2  ;;  %v1322_v1 = vld [vmem:[%s9580_s25 + $0x1e00] sm:$0xff]  ;;  %v1324_v2 = vld [vmem:[%s9580_s25 + $0x1e10] sm:$0xff] }
 0x429   : > { %4852 = vmatprep.subr.bf16.mxu0 %v3419_v3  ;;  %5669 = vmatprep.subr.bf16.mxu1 %v3421_v4  ;;  %v9064_v3 = vld [vmem:[%s11165_s0 + $0x70] ss:$152 sps:$4 sm:$0xff]   ;;  %v3498_v4 = vunpack.c.l.s8.bf16 %v1322_v1  ;;  %v3500_v5 = vunpack.c.l.s8.bf16 %v1324_v2  ;;  %v3506_v11 = vunpack.c.h.s8.bf16 %v1322_v1  ;;  %v3508_v12 = vunpack.c.h.s8.bf16 %v1324_v2 }
 0x42c   : > { %4853 = vmatpush1.bf16.msra.mxu0 %v3418_v7  ;;  %5670 = vmatpush1.bf16.msra.mxu1 %v3420_v8  ;;  %v3509_v7 = vunpack.c.h.s8.bf16 %v1325_v60  ;;  %v1331_v8 = vld [vmem:[%s9580_s25 + $0x1e48] sm:$0xff] }
 0x42d   : > { %4854 = vmatprep.subr.bf16.mxu0 %v3427_v9  ;;  %5671 = vmatprep.subr.bf16.mxu1 %v3429_v10  ;;  %v1333_v9 = vld [vmem:[%s9580_s25 + $0x1e58] sm:$0xff] }
 0x42e   : > { %v9065_v10 = vld [vmem:[%s11165_s0 + $0x7c] ss:$152 sps:$4 sm:$0xff]  }
 0x430   : > { %4855 = vmatpush1.bf16.msra.mxu0 %v3426_v13  ;;  %5672 = vmatpush1.bf16.msra.mxu1 %v3428_v14  ;;  %v3515_v13 = vunpack.c.l.s8.bf16 %v1331_v8  ;;  %v3517_v14 = vunpack.c.l.s8.bf16 %v1333_v9 }
 0x431   : > { %4856 = vmatprep.subr.bf16.mxu0 %v3435_v15  ;;  %5673 = vmatprep.subr.bf16.mxu1 %v3437_v16  ;;  %v1330_v15 = vld [vmem:[%s9580_s25 + $0x1e40] sm:$0xff]  ;;  %v1332_v16 = vld [vmem:[%s9580_s25 + $0x1e50] sm:$0xff] }
 0x432   : > { %v3514_v17 = vunpack.c.l.s8.bf16 %v1330_v15  ;;  %v3516_v18 = vunpack.c.l.s8.bf16 %v1332_v16  ;;  %v3522_v23 = vunpack.c.h.s8.bf16 %v1330_v15  ;;  %v3524_v24 = vunpack.c.h.s8.bf16 %v1332_v16 }
 0x434   : > { %4857 = vmatpush1.bf16.msra.mxu0 %v3434_v19  ;;  %5674 = vmatpush1.bf16.msra.mxu1 %v3436_v20  ;;  %v3523_v19 = vunpack.c.h.s8.bf16 %v1331_v8  ;;  %v3525_v20 = vunpack.c.h.s8.bf16 %v1333_v9 }
 0x435   : > { %4858 = vmatprep.subr.bf16.mxu0 %v3443_v21  ;;  %5675 = vmatprep.subr.bf16.mxu1 %v3445_v22  ;;  %v1339_v21 = vld [vmem:[%s9580_s25 + $0x1e88] sm:$0xff]  ;;  %v1341_v22 = vld [vmem:[%s9580_s25 + $0x1e98] sm:$0xff] }
 0x438   : > { %4859 = vmatpush1.bf16.msra.mxu0 %v3442_v25  ;;  %5676 = vmatpush1.bf16.msra.mxu1 %v3444_v26  ;;  %v3531_v25 = vunpack.c.l.s8.bf16 %v1339_v21  ;;  %v3533_v26 = vunpack.c.l.s8.bf16 %v1341_v22 }
 0x439   : > { %4860 = vmatprep.subr.bf16.mxu0 %v3451_v27  ;;  %5677 = vmatprep.subr.bf16.mxu1 %v3453_v28  ;;  %v1338_v27 = vld [vmem:[%s9580_s25 + $0x1e80] sm:$0xff]  ;;  %v1340_v28 = vld [vmem:[%s9580_s25 + $0x1e90] sm:$0xff] }
 0x43a   : > { %v3530_v29 = vunpack.c.l.s8.bf16 %v1338_v27  ;;  %v3532_v30 = vunpack.c.l.s8.bf16 %v1340_v28  ;;  %v3538_v35 = vunpack.c.h.s8.bf16 %v1338_v27  ;;  %v3540_v36 = vunpack.c.h.s8.bf16 %v1340_v28 }
 0x43c   : > { %4861 = vmatpush1.bf16.msra.mxu0 %v3450_v31  ;;  %5678 = vmatpush1.bf16.msra.mxu1 %v3452_v32  ;;  %v3539_v31 = vunpack.c.h.s8.bf16 %v1339_v21  ;;  %v3541_v32 = vunpack.c.h.s8.bf16 %v1341_v22 }
 0x43d   : > { %4862 = vmatprep.subr.bf16.mxu0 %v3459_v33  ;;  %5679 = vmatprep.subr.bf16.mxu1 %v3461_v34  ;;  %v1347_v33 = vld [vmem:[%s9580_s25 + $0x1ec8] sm:$0xff]  ;;  %v1349_v34 = vld [vmem:[%s9580_s25 + $0x1ed8] sm:$0xff] }
 0x440   : > { %4863 = vmatpush1.bf16.msra.mxu0 %v3458_v37  ;;  %5680 = vmatpush1.bf16.msra.mxu1 %v3460_v38  ;;  %v3547_v37 = vunpack.c.l.s8.bf16 %v1347_v33  ;;  %v3549_v38 = vunpack.c.l.s8.bf16 %v1349_v34 }
 0x441   : > { %4864 = vmatprep.subr.bf16.mxu0 %v3467_v39  ;;  %5681 = vmatprep.subr.bf16.mxu1 %v3469_v40  ;;  %v1346_v39 = vld [vmem:[%s9580_s25 + $0x1ec0] sm:$0xff]  ;;  %v1348_v40 = vld [vmem:[%s9580_s25 + $0x1ed0] sm:$0xff] }
 0x442   : > { %v3546_v41 = vunpack.c.l.s8.bf16 %v1346_v39  ;;  %v3548_v42 = vunpack.c.l.s8.bf16 %v1348_v40  ;;  %v3554_v47 = vunpack.c.h.s8.bf16 %v1346_v39  ;;  %v3556_v48 = vunpack.c.h.s8.bf16 %v1348_v40 }
 0x444   : > { %4865 = vmatpush1.bf16.msra.mxu0 %v3466_v43  ;;  %5682 = vmatpush1.bf16.msra.mxu1 %v3468_v44  ;;  %v3555_v43 = vunpack.c.h.s8.bf16 %v1347_v33  ;;  %v3557_v44 = vunpack.c.h.s8.bf16 %v1349_v34 }
 0x445   : > { %4866 = vmatprep.subr.bf16.mxu0 %v3475_v45  ;;  %5683 = vmatprep.subr.bf16.mxu1 %v3477_v46  ;;  %v1355_v45 = vld [vmem:[%s9580_s25 + $0x1f08] sm:$0xff]  ;;  %v1357_v46 = vld [vmem:[%s9580_s25 + $0x1f18] sm:$0xff] }
 0x448   : > { %4867 = vmatpush1.bf16.msra.mxu0 %v3474_v49  ;;  %5684 = vmatpush1.bf16.msra.mxu1 %v3476_v50  ;;  %v3563_v49 = vunpack.c.l.s8.bf16 %v1355_v45  ;;  %v3565_v50 = vunpack.c.l.s8.bf16 %v1357_v46 }
 0x449   : > { %4868 = vmatprep.subr.bf16.mxu0 %v3483_v51  ;;  %5685 = vmatprep.subr.bf16.mxu1 %v3485_v52  ;;  %v1354_v51 = vld [vmem:[%s9580_s25 + $0x1f00] sm:$0xff]  ;;  %v1356_v52 = vld [vmem:[%s9580_s25 + $0x1f10] sm:$0xff] }
 0x44a   : > { %v3562_v53 = vunpack.c.l.s8.bf16 %v1354_v51  ;;  %v3564_v54 = vunpack.c.l.s8.bf16 %v1356_v52  ;;  %v3570_v59 = vunpack.c.h.s8.bf16 %v1354_v51  ;;  %v3572_v60 = vunpack.c.h.s8.bf16 %v1356_v52 }
 0x44c   : > { %4869 = vmatpush1.bf16.msra.mxu0 %v3482_v55  ;;  %5686 = vmatpush1.bf16.msra.mxu1 %v3484_v56  ;;  %v3571_v55 = vunpack.c.h.s8.bf16 %v1355_v45  ;;  %v3573_v56 = vunpack.c.h.s8.bf16 %v1357_v46 }
 0x44d   : > { %4870 = vmatprep.subr.bf16.mxu0 %v3491_v57  ;;  %5687 = vmatprep.subr.bf16.mxu1 %v3493_v58  ;;  %v1363_v57 = vld [vmem:[%s9580_s25 + $0x1f48] sm:$0xff]  ;;  %v1365_v58 = vld [vmem:[%s9580_s25 + $0x1f58] sm:$0xff] }
 0x450   : > { %4871 = vmatpush1.bf16.msra.mxu0 %v3490_v61  ;;  %5688 = vmatpush1.bf16.msra.mxu1 %v3492_v62  ;;  %v3579_v61 = vunpack.c.l.s8.bf16 %v1363_v57  ;;  %v3581_v62 = vunpack.c.l.s8.bf16 %v1365_v58 }
 0x451   : > { %4883 = vmatprep.subr.bf16.mxu0 %v3499_v63  ;;  %5700 = vmatprep.subr.bf16.mxu1 %v3501_v0  ;;  %v1362_v63 = vld [vmem:[%s9580_s25 + $0x1f40] sm:$0xff]  ;;  %v1364_v0 = vld [vmem:[%s9580_s25 + $0x1f50] sm:$0xff] }
 0x452   : > { %v3578_v1 = vunpack.c.l.s8.bf16 %v1362_v63  ;;  %v3580_v2 = vunpack.c.l.s8.bf16 %v1364_v0  ;;  %v3588_v8 = vunpack.c.h.s8.bf16 %v1364_v0 }
 0x453   : > { %4873 = vmatmul.mubr.bf16.vlgmr.msra.gmra.mrb[0].mxu0 %v9064_v3  ;;  %5690 = vmatmul.mubr.bf16.vlgmr.msra.gmra.mrb[0].mxu1 %v9064_v3  ;;  %v3587_v3 = vunpack.c.h.s8.bf16 %v1363_v57 }
 0x454   : > { %4884 = vmatpush1.bf16.msra.mxu0 %v3498_v4  ;;  %5701 = vmatpush1.bf16.msra.mxu1 %v3500_v5  ;;  %v3589_v4 = vunpack.c.h.s8.bf16 %v1365_v58  ;;  %v1371_v5 = vld [vmem:[%s9580_s25 + $0x1f88] sm:$0xff] }
 0x455   : > { %4885 = vmatprep.subr.bf16.mxu0 %v3507_v6  ;;  %5702 = vmatprep.subr.bf16.mxu1 %v3509_v7  ;;  %v1373_v6 = vld [vmem:[%s9580_s25 + $0x1f98] sm:$0xff]  ;;  %v3586_v7 = vunpack.c.h.s8.bf16 %v1362_v63  ;;  %v3595_v9 = vunpack.c.l.s8.bf16 %v1371_v5  ;;  %v3603_v15 = vunpack.c.h.s8.bf16 %v1371_v5 }
 0x456   : > { %4915 = vmatprep.mubr.bf16.mxu0 %v9065_v10  ;;  %5732 = vmatprep.mubr.bf16.mxu1 %v9065_v10  ;;  %v3597_v10 = vunpack.c.l.s8.bf16 %v1373_v6  ;;  %v3605_v16 = vunpack.c.h.s8.bf16 %v1373_v6 }
 0x458   : > { %4886 = vmatpush1.bf16.msra.mxu0 %v3506_v11  ;;  %5703 = vmatpush1.bf16.msra.mxu1 %v3508_v12  ;;  %v1370_v11 = vld [vmem:[%s9580_s25 + $0x1f80] sm:$0xff]  ;;  %v1372_v12 = vld [vmem:[%s9580_s25 + $0x1f90] sm:$0xff] }
 0x459   : > { %4887 = vmatprep.subr.bf16.mxu0 %v3515_v13  ;;  %5704 = vmatprep.subr.bf16.mxu1 %v3517_v14  ;;  %v3594_v13 = vunpack.c.l.s8.bf16 %v1370_v11  ;;  %v3596_v14 = vunpack.c.l.s8.bf16 %v1372_v12 }
 0x45c   : > { %4888 = vmatpush1.bf16.msra.mxu0 %v3514_v17  ;;  %5705 = vmatpush1.bf16.msra.mxu1 %v3516_v18  ;;  %v1379_v17 = vld [vmem:[%s9580_s25 + $0x1fc8] sm:$0xff]  ;;  %v1381_v18 = vld [vmem:[%s9580_s25 + $0x1fd8] sm:$0xff] }
 0x45d   : > { %4889 = vmatprep.subr.bf16.mxu0 %v3523_v19  ;;  %5706 = vmatprep.subr.bf16.mxu1 %v3525_v20  ;;  %v3602_v19 = vunpack.c.h.s8.bf16 %v1370_v11  ;;  %v3604_v20 = vunpack.c.h.s8.bf16 %v1372_v12  ;;  %v3611_v21 = vunpack.c.l.s8.bf16 %v1379_v17  ;;  %v3613_v22 = vunpack.c.l.s8.bf16 %v1381_v18 }
 0x45e   : > { %v3619_v27 = vunpack.c.h.s8.bf16 %v1379_v17  ;;  %v3621_v28 = vunpack.c.h.s8.bf16 %v1381_v18 }
 0x460   : > { %4890 = vmatpush1.bf16.msra.mxu0 %v3522_v23  ;;  %5707 = vmatpush1.bf16.msra.mxu1 %v3524_v24  ;;  %v1378_v23 = vld [vmem:[%s9580_s25 + $0x1fc0] sm:$0xff]  ;;  %v1380_v24 = vld [vmem:[%s9580_s25 + $0x1fd0] sm:$0xff] }
 0x461   : > { %4891 = vmatprep.subr.bf16.mxu0 %v3531_v25  ;;  %5708 = vmatprep.subr.bf16.mxu1 %v3533_v26  ;;  %v3610_v25 = vunpack.c.l.s8.bf16 %v1378_v23  ;;  %v3612_v26 = vunpack.c.l.s8.bf16 %v1380_v24 }
 0x464   : > { %4892 = vmatpush1.bf16.msra.mxu0 %v3530_v29  ;;  %5709 = vmatpush1.bf16.msra.mxu1 %v3532_v30  ;;  %v1387_v29 = vld [vmem:[%s9580_s25 + $0x2008] sm:$0xff]  ;;  %v1389_v30 = vld [vmem:[%s9580_s25 + $0x2018] sm:$0xff] }
 0x465   : > { %4893 = vmatprep.subr.bf16.mxu0 %v3539_v31  ;;  %5710 = vmatprep.subr.bf16.mxu1 %v3541_v32  ;;  %v3618_v31 = vunpack.c.h.s8.bf16 %v1378_v23  ;;  %v3620_v32 = vunpack.c.h.s8.bf16 %v1380_v24  ;;  %v3627_v33 = vunpack.c.l.s8.bf16 %v1387_v29  ;;  %v3629_v34 = vunpack.c.l.s8.bf16 %v1389_v30 }
 0x466   : > { %v3635_v40 = vunpack.c.h.s8.bf16 %v1387_v29 }
 0x468   : > { %4894 = vmatpush1.bf16.msra.mxu0 %v3538_v35  ;;  %5711 = vmatpush1.bf16.msra.mxu1 %v3540_v36  ;;  %v1386_v35 = vld [vmem:[%s9580_s25 + $0x2000] sm:$0xff]  ;;  %v1388_v36 = vld [vmem:[%s9580_s25 + $0x2010] sm:$0xff] }
 0x469   : > { %4895 = vmatprep.subr.bf16.mxu0 %v3547_v37  ;;  %5712 = vmatprep.subr.bf16.mxu1 %v3549_v38  ;;  %v9067_v37 = vld [vmem:[%s11165_s0 + $0x78] ss:$152 sps:$4 sm:$0xff]   ;;  %v3626_v38 = vunpack.c.l.s8.bf16 %v1386_v35  ;;  %v3628_v39 = vunpack.c.l.s8.bf16 %v1388_v36  ;;  %v3634_v45 = vunpack.c.h.s8.bf16 %v1386_v35  ;;  %v3636_v46 = vunpack.c.h.s8.bf16 %v1388_v36 }
 0x46c   : > { %4896 = vmatpush1.bf16.msra.mxu0 %v3546_v41  ;;  %5713 = vmatpush1.bf16.msra.mxu1 %v3548_v42  ;;  %v3637_v41 = vunpack.c.h.s8.bf16 %v1389_v30  ;;  %v1395_v42 = vld [vmem:[%s9580_s25 + $0x2048] sm:$0xff] }
 0x46d   : > { %4897 = vmatprep.subr.bf16.mxu0 %v3555_v43  ;;  %5714 = vmatprep.subr.bf16.mxu1 %v3557_v44  ;;  %v1397_v43 = vld [vmem:[%s9580_s25 + $0x2058] sm:$0xff] }
 0x46e   : > { %v9068_v44 = vld [vmem:[%s11165_s0 + $0x84] ss:$152 sps:$4 sm:$0xff]  }
 0x470   : > { %4898 = vmatpush1.bf16.msra.mxu0 %v3554_v47  ;;  %5715 = vmatpush1.bf16.msra.mxu1 %v3556_v48  ;;  %v3643_v47 = vunpack.c.l.s8.bf16 %v1395_v42  ;;  %v3645_v48 = vunpack.c.l.s8.bf16 %v1397_v43 }
 0x471   : > { %4899 = vmatprep.subr.bf16.mxu0 %v3563_v49  ;;  %5716 = vmatprep.subr.bf16.mxu1 %v3565_v50  ;;  %v1394_v49 = vld [vmem:[%s9580_s25 + $0x2040] sm:$0xff]  ;;  %v1396_v50 = vld [vmem:[%s9580_s25 + $0x2050] sm:$0xff] }
 0x472   : > { %v3642_v51 = vunpack.c.l.s8.bf16 %v1394_v49  ;;  %v3644_v52 = vunpack.c.l.s8.bf16 %v1396_v50  ;;  %v3650_v57 = vunpack.c.h.s8.bf16 %v1394_v49  ;;  %v3652_v58 = vunpack.c.h.s8.bf16 %v1396_v50 }
 0x474   : > { %4900 = vmatpush1.bf16.msra.mxu0 %v3562_v53  ;;  %5717 = vmatpush1.bf16.msra.mxu1 %v3564_v54  ;;  %v3651_v53 = vunpack.c.h.s8.bf16 %v1395_v42  ;;  %v3653_v54 = vunpack.c.h.s8.bf16 %v1397_v43 }
 0x475   : > { %4901 = vmatprep.subr.bf16.mxu0 %v3571_v55  ;;  %5718 = vmatprep.subr.bf16.mxu1 %v3573_v56  ;;  %v1403_v55 = vld [vmem:[%s9580_s25 + $0x2088] sm:$0xff]  ;;  %v1405_v56 = vld [vmem:[%s9580_s25 + $0x2098] sm:$0xff] }
 0x478   : > { %4902 = vmatpush1.bf16.msra.mxu0 %v3570_v59  ;;  %5719 = vmatpush1.bf16.msra.mxu1 %v3572_v60  ;;  %v3659_v59 = vunpack.c.l.s8.bf16 %v1403_v55  ;;  %v3661_v60 = vunpack.c.l.s8.bf16 %v1405_v56 }
 0x479   : > { %4903 = vmatprep.subr.bf16.mxu0 %v3579_v61  ;;  %5720 = vmatprep.subr.bf16.mxu1 %v3581_v62  ;;  %v1402_v61 = vld [vmem:[%s9580_s25 + $0x2080] sm:$0xff]  ;;  %v1404_v62 = vld [vmem:[%s9580_s25 + $0x2090] sm:$0xff] }
 0x47a   : > { %v3658_v63 = vunpack.c.l.s8.bf16 %v1402_v61  ;;  %v3660_v0 = vunpack.c.l.s8.bf16 %v1404_v62  ;;  %v3666_v5 = vunpack.c.h.s8.bf16 %v1402_v61  ;;  %v3668_v6 = vunpack.c.h.s8.bf16 %v1404_v62 }
 0x47c   : > { %4904 = vmatpush1.bf16.msra.mxu0 %v3578_v1  ;;  %5721 = vmatpush1.bf16.msra.mxu1 %v3580_v2  ;;  %v3667_v1 = vunpack.c.h.s8.bf16 %v1403_v55  ;;  %v3669_v2 = vunpack.c.h.s8.bf16 %v1405_v56 }
 0x47d   : > { %4905 = vmatprep.subr.bf16.mxu0 %v3587_v3  ;;  %5722 = vmatprep.subr.bf16.mxu1 %v3589_v4  ;;  %v1411_v3 = vld [vmem:[%s9580_s25 + $0x20c8] sm:$0xff]  ;;  %v1413_v4 = vld [vmem:[%s9580_s25 + $0x20d8] sm:$0xff] }
 0x480   : > { %4906 = vmatpush1.bf16.msra.mxu0 %v3586_v7  ;;  %5723 = vmatpush1.bf16.msra.mxu1 %v3588_v8  ;;  %v3675_v7 = vunpack.c.l.s8.bf16 %v1411_v3  ;;  %v3677_v8 = vunpack.c.l.s8.bf16 %v1413_v4 }
 0x481   : > { %4907 = vmatprep.subr.bf16.mxu0 %v3595_v9  ;;  %5724 = vmatprep.subr.bf16.mxu1 %v3597_v10  ;;  %v1410_v9 = vld [vmem:[%s9580_s25 + $0x20c0] sm:$0xff]  ;;  %v1412_v10 = vld [vmem:[%s9580_s25 + $0x20d0] sm:$0xff] }
 0x482   : > { %v3674_v11 = vunpack.c.l.s8.bf16 %v1410_v9  ;;  %v3676_v12 = vunpack.c.l.s8.bf16 %v1412_v10  ;;  %v3682_v17 = vunpack.c.h.s8.bf16 %v1410_v9  ;;  %v3684_v18 = vunpack.c.h.s8.bf16 %v1412_v10 }
 0x484   : > { %4908 = vmatpush1.bf16.msra.mxu0 %v3594_v13  ;;  %5725 = vmatpush1.bf16.msra.mxu1 %v3596_v14  ;;  %v3683_v13 = vunpack.c.h.s8.bf16 %v1411_v3  ;;  %v3685_v14 = vunpack.c.h.s8.bf16 %v1413_v4 }
 0x485   : > { %4909 = vmatprep.subr.bf16.mxu0 %v3603_v15  ;;  %5726 = vmatprep.subr.bf16.mxu1 %v3605_v16  ;;  %v1419_v15 = vld [vmem:[%s9580_s25 + $0x2108] sm:$0xff]  ;;  %v1421_v16 = vld [vmem:[%s9580_s25 + $0x2118] sm:$0xff] }
 0x488   : > { %4910 = vmatpush1.bf16.msra.mxu0 %v3602_v19  ;;  %5727 = vmatpush1.bf16.msra.mxu1 %v3604_v20  ;;  %v3691_v19 = vunpack.c.l.s8.bf16 %v1419_v15  ;;  %v3693_v20 = vunpack.c.l.s8.bf16 %v1421_v16 }
 0x489   : > { %4911 = vmatprep.subr.bf16.mxu0 %v3611_v21  ;;  %5728 = vmatprep.subr.bf16.mxu1 %v3613_v22  ;;  %v1418_v21 = vld [vmem:[%s9580_s25 + $0x2100] sm:$0xff]  ;;  %v1420_v22 = vld [vmem:[%s9580_s25 + $0x2110] sm:$0xff] }
 0x48a   : > { %v3690_v23 = vunpack.c.l.s8.bf16 %v1418_v21  ;;  %v3692_v24 = vunpack.c.l.s8.bf16 %v1420_v22  ;;  %v3698_v29 = vunpack.c.h.s8.bf16 %v1418_v21  ;;  %v3700_v30 = vunpack.c.h.s8.bf16 %v1420_v22 }
 0x48c   : > { %4912 = vmatpush1.bf16.msra.mxu0 %v3610_v25  ;;  %5729 = vmatpush1.bf16.msra.mxu1 %v3612_v26  ;;  %v3699_v25 = vunpack.c.h.s8.bf16 %v1419_v15  ;;  %v3701_v26 = vunpack.c.h.s8.bf16 %v1421_v16 }
 0x48d   : > { %4913 = vmatprep.subr.bf16.mxu0 %v3619_v27  ;;  %5730 = vmatprep.subr.bf16.mxu1 %v3621_v28  ;;  %v1427_v27 = vld [vmem:[%s9580_s25 + $0x2148] sm:$0xff]  ;;  %v1429_v28 = vld [vmem:[%s9580_s25 + $0x2158] sm:$0xff] }
 0x490   : > { %4914 = vmatpush1.bf16.msra.mxu0 %v3618_v31  ;;  %5731 = vmatpush1.bf16.msra.mxu1 %v3620_v32  ;;  %v3707_v31 = vunpack.c.l.s8.bf16 %v1427_v27  ;;  %v3709_v32 = vunpack.c.l.s8.bf16 %v1429_v28 }
 0x491   : > { %4926 = vmatprep.subr.bf16.mxu0 %v3627_v33  ;;  %5743 = vmatprep.subr.bf16.mxu1 %v3629_v34  ;;  %v1426_v33 = vld [vmem:[%s9580_s25 + $0x2140] sm:$0xff]  ;;  %v1428_v34 = vld [vmem:[%s9580_s25 + $0x2150] sm:$0xff] }
 0x492   : > { %v3706_v35 = vunpack.c.l.s8.bf16 %v1426_v33  ;;  %v3708_v36 = vunpack.c.l.s8.bf16 %v1428_v34  ;;  %v3716_v42 = vunpack.c.h.s8.bf16 %v1428_v34 }
 0x493   : > { %4916 = vmatmul.mubr.bf16.vlgmr.msra.gmra.mrb[0].mxu0 %v9067_v37  ;;  %5733 = vmatmul.mubr.bf16.vlgmr.msra.gmra.mrb[0].mxu1 %v9067_v37  ;;  %v3715_v37 = vunpack.c.h.s8.bf16 %v1427_v27 }
 0x494   : > { %4927 = vmatpush1.bf16.msra.mxu0 %v3626_v38  ;;  %5744 = vmatpush1.bf16.msra.mxu1 %v3628_v39  ;;  %v3717_v38 = vunpack.c.h.s8.bf16 %v1429_v28  ;;  %v1435_v39 = vld [vmem:[%s9580_s25 + $0x2188] sm:$0xff] }
 0x495   : > { %4928 = vmatprep.subr.bf16.mxu0 %v3635_v40  ;;  %5745 = vmatprep.subr.bf16.mxu1 %v3637_v41  ;;  %v1437_v40 = vld [vmem:[%s9580_s25 + $0x2198] sm:$0xff]  ;;  %v3714_v41 = vunpack.c.h.s8.bf16 %v1426_v33  ;;  %v3723_v43 = vunpack.c.l.s8.bf16 %v1435_v39  ;;  %v3731_v49 = vunpack.c.h.s8.bf16 %v1435_v39 }
 0x496   : > { %4958 = vmatprep.mubr.bf16.mxu0 %v9068_v44  ;;  %5775 = vmatprep.mubr.bf16.mxu1 %v9068_v44  ;;  %v3725_v44 = vunpack.c.l.s8.bf16 %v1437_v40  ;;  %v3733_v50 = vunpack.c.h.s8.bf16 %v1437_v40 }
 0x498   : > { %4929 = vmatpush1.bf16.msra.mxu0 %v3634_v45  ;;  %5746 = vmatpush1.bf16.msra.mxu1 %v3636_v46  ;;  %v1434_v45 = vld [vmem:[%s9580_s25 + $0x2180] sm:$0xff]  ;;  %v1436_v46 = vld [vmem:[%s9580_s25 + $0x2190] sm:$0xff] }
 0x499   : > { %4930 = vmatprep.subr.bf16.mxu0 %v3643_v47  ;;  %5747 = vmatprep.subr.bf16.mxu1 %v3645_v48  ;;  %v3722_v47 = vunpack.c.l.s8.bf16 %v1434_v45  ;;  %v3724_v48 = vunpack.c.l.s8.bf16 %v1436_v46 }
 0x49c   : > { %4931 = vmatpush1.bf16.msra.mxu0 %v3642_v51  ;;  %5748 = vmatpush1.bf16.msra.mxu1 %v3644_v52  ;;  %v1443_v51 = vld [vmem:[%s9580_s25 + $0x21c8] sm:$0xff]  ;;  %v1445_v52 = vld [vmem:[%s9580_s25 + $0x21d8] sm:$0xff] }
 0x49d   : > { %4932 = vmatprep.subr.bf16.mxu0 %v3651_v53  ;;  %5749 = vmatprep.subr.bf16.mxu1 %v3653_v54  ;;  %v3730_v53 = vunpack.c.h.s8.bf16 %v1434_v45  ;;  %v3732_v54 = vunpack.c.h.s8.bf16 %v1436_v46  ;;  %v3739_v55 = vunpack.c.l.s8.bf16 %v1443_v51  ;;  %v3741_v56 = vunpack.c.l.s8.bf16 %v1445_v52 }
 0x49e   : > { %v3747_v61 = vunpack.c.h.s8.bf16 %v1443_v51  ;;  %v3749_v62 = vunpack.c.h.s8.bf16 %v1445_v52 }
 0x4a0   : > { %4933 = vmatpush1.bf16.msra.mxu0 %v3650_v57  ;;  %5750 = vmatpush1.bf16.msra.mxu1 %v3652_v58  ;;  %v1442_v57 = vld [vmem:[%s9580_s25 + $0x21c0] sm:$0xff]  ;;  %v1444_v58 = vld [vmem:[%s9580_s25 + $0x21d0] sm:$0xff] }
 0x4a1   : > { %4934 = vmatprep.subr.bf16.mxu0 %v3659_v59  ;;  %5751 = vmatprep.subr.bf16.mxu1 %v3661_v60  ;;  %v3738_v59 = vunpack.c.l.s8.bf16 %v1442_v57  ;;  %v3740_v60 = vunpack.c.l.s8.bf16 %v1444_v58 }
 0x4a4   : > { %4935 = vmatpush1.bf16.msra.mxu0 %v3658_v63  ;;  %5752 = vmatpush1.bf16.msra.mxu1 %v3660_v0  ;;  %v1451_v63 = vld [vmem:[%s9580_s25 + $0x2208] sm:$0xff]  ;;  %v1453_v0 = vld [vmem:[%s9580_s25 + $0x2218] sm:$0xff] }
 0x4a5   : > { %4936 = vmatprep.subr.bf16.mxu0 %v3667_v1  ;;  %5753 = vmatprep.subr.bf16.mxu1 %v3669_v2  ;;  %v3746_v1 = vunpack.c.h.s8.bf16 %v1442_v57  ;;  %v3748_v2 = vunpack.c.h.s8.bf16 %v1444_v58  ;;  %v3755_v3 = vunpack.c.l.s8.bf16 %v1451_v63  ;;  %v3757_v4 = vunpack.c.l.s8.bf16 %v1453_v0 }
 0x4a6   : > { %v3763_v10 = vunpack.c.h.s8.bf16 %v1451_v63 }
 0x4a8   : > { %4937 = vmatpush1.bf16.msra.mxu0 %v3666_v5  ;;  %5754 = vmatpush1.bf16.msra.mxu1 %v3668_v6  ;;  %v1450_v5 = vld [vmem:[%s9580_s25 + $0x2200] sm:$0xff]  ;;  %v1452_v6 = vld [vmem:[%s9580_s25 + $0x2210] sm:$0xff] }
 0x4a9   : > { %4938 = vmatprep.subr.bf16.mxu0 %v3675_v7  ;;  %5755 = vmatprep.subr.bf16.mxu1 %v3677_v8  ;;  %v9070_v7 = vld [vmem:[%s11165_s0 + $0x80] ss:$152 sps:$4 sm:$0xff]   ;;  %v3754_v8 = vunpack.c.l.s8.bf16 %v1450_v5  ;;  %v3756_v9 = vunpack.c.l.s8.bf16 %v1452_v6  ;;  %v3762_v15 = vunpack.c.h.s8.bf16 %v1450_v5  ;;  %v3764_v16 = vunpack.c.h.s8.bf16 %v1452_v6 }
 0x4ac   : > { %4939 = vmatpush1.bf16.msra.mxu0 %v3674_v11  ;;  %5756 = vmatpush1.bf16.msra.mxu1 %v3676_v12  ;;  %v3765_v11 = vunpack.c.h.s8.bf16 %v1453_v0  ;;  %v1459_v12 = vld [vmem:[%s9580_s25 + $0x2248] sm:$0xff] }
 0x4ad   : > { %4940 = vmatprep.subr.bf16.mxu0 %v3683_v13  ;;  %5757 = vmatprep.subr.bf16.mxu1 %v3685_v14  ;;  %v1461_v13 = vld [vmem:[%s9580_s25 + $0x2258] sm:$0xff]  ;;  %v9071_v14 = vld [vmem:[%s11165_s0 + $0x8c] ss:$152 sps:$4 sm:$0xff]  }
 0x4b0   : > { %4941 = vmatpush1.bf16.msra.mxu0 %v3682_v17  ;;  %5758 = vmatpush1.bf16.msra.mxu1 %v3684_v18  ;;  %v3771_v17 = vunpack.c.l.s8.bf16 %v1459_v12  ;;  %v3773_v18 = vunpack.c.l.s8.bf16 %v1461_v13 }
 0x4b1   : > { %4942 = vmatprep.subr.bf16.mxu0 %v3691_v19  ;;  %5759 = vmatprep.subr.bf16.mxu1 %v3693_v20  ;;  %v1458_v19 = vld [vmem:[%s9580_s25 + $0x2240] sm:$0xff]  ;;  %v1460_v20 = vld [vmem:[%s9580_s25 + $0x2250] sm:$0xff] }
 0x4b2   : > { %v3770_v21 = vunpack.c.l.s8.bf16 %v1458_v19  ;;  %v3772_v22 = vunpack.c.l.s8.bf16 %v1460_v20  ;;  %v3778_v27 = vunpack.c.h.s8.bf16 %v1458_v19  ;;  %v3780_v28 = vunpack.c.h.s8.bf16 %v1460_v20 }
 0x4b4   : > { %4943 = vmatpush1.bf16.msra.mxu0 %v3690_v23  ;;  %5760 = vmatpush1.bf16.msra.mxu1 %v3692_v24  ;;  %v3779_v23 = vunpack.c.h.s8.bf16 %v1459_v12  ;;  %v3781_v24 = vunpack.c.h.s8.bf16 %v1461_v13 }
 0x4b5   : > { %4944 = vmatprep.subr.bf16.mxu0 %v3699_v25  ;;  %5761 = vmatprep.subr.bf16.mxu1 %v3701_v26  ;;  %v1467_v25 = vld [vmem:[%s9580_s25 + $0x2288] sm:$0xff]  ;;  %v1469_v26 = vld [vmem:[%s9580_s25 + $0x2298] sm:$0xff] }
 0x4b8   : > { %4945 = vmatpush1.bf16.msra.mxu0 %v3698_v29  ;;  %5762 = vmatpush1.bf16.msra.mxu1 %v3700_v30  ;;  %v3787_v29 = vunpack.c.l.s8.bf16 %v1467_v25  ;;  %v3789_v30 = vunpack.c.l.s8.bf16 %v1469_v26 }
 0x4b9   : > { %4946 = vmatprep.subr.bf16.mxu0 %v3707_v31  ;;  %5763 = vmatprep.subr.bf16.mxu1 %v3709_v32  ;;  %v1466_v31 = vld [vmem:[%s9580_s25 + $0x2280] sm:$0xff]  ;;  %v1468_v32 = vld [vmem:[%s9580_s25 + $0x2290] sm:$0xff] }
 0x4ba   : > { %v3786_v33 = vunpack.c.l.s8.bf16 %v1466_v31  ;;  %v3788_v34 = vunpack.c.l.s8.bf16 %v1468_v32  ;;  %v3794_v39 = vunpack.c.h.s8.bf16 %v1466_v31  ;;  %v3796_v40 = vunpack.c.h.s8.bf16 %v1468_v32 }
 0x4bc   : > { %4947 = vmatpush1.bf16.msra.mxu0 %v3706_v35  ;;  %5764 = vmatpush1.bf16.msra.mxu1 %v3708_v36  ;;  %v3795_v35 = vunpack.c.h.s8.bf16 %v1467_v25  ;;  %v3797_v36 = vunpack.c.h.s8.bf16 %v1469_v26 }
 0x4bd   : > { %4948 = vmatprep.subr.bf16.mxu0 %v3715_v37  ;;  %5765 = vmatprep.subr.bf16.mxu1 %v3717_v38  ;;  %v1475_v37 = vld [vmem:[%s9580_s25 + $0x22c8] sm:$0xff]  ;;  %v1477_v38 = vld [vmem:[%s9580_s25 + $0x22d8] sm:$0xff] }
 0x4c0   : > { %4949 = vmatpush1.bf16.msra.mxu0 %v3714_v41  ;;  %5766 = vmatpush1.bf16.msra.mxu1 %v3716_v42  ;;  %v3803_v41 = vunpack.c.l.s8.bf16 %v1475_v37  ;;  %v3805_v42 = vunpack.c.l.s8.bf16 %v1477_v38 }
 0x4c1   : > { %4950 = vmatprep.subr.bf16.mxu0 %v3723_v43  ;;  %5767 = vmatprep.subr.bf16.mxu1 %v3725_v44  ;;  %v1474_v43 = vld [vmem:[%s9580_s25 + $0x22c0] sm:$0xff]  ;;  %v1476_v44 = vld [vmem:[%s9580_s25 + $0x22d0] sm:$0xff] }
 0x4c2   : > { %v3802_v45 = vunpack.c.l.s8.bf16 %v1474_v43  ;;  %v3804_v46 = vunpack.c.l.s8.bf16 %v1476_v44  ;;  %v3810_v51 = vunpack.c.h.s8.bf16 %v1474_v43  ;;  %v3812_v52 = vunpack.c.h.s8.bf16 %v1476_v44 }
 0x4c4   : > { %4951 = vmatpush1.bf16.msra.mxu0 %v3722_v47  ;;  %5768 = vmatpush1.bf16.msra.mxu1 %v3724_v48  ;;  %v3811_v47 = vunpack.c.h.s8.bf16 %v1475_v37  ;;  %v3813_v48 = vunpack.c.h.s8.bf16 %v1477_v38 }
 0x4c5   : > { %4952 = vmatprep.subr.bf16.mxu0 %v3731_v49  ;;  %5769 = vmatprep.subr.bf16.mxu1 %v3733_v50  ;;  %v1483_v49 = vld [vmem:[%s9580_s25 + $0x2308] sm:$0xff]  ;;  %v1485_v50 = vld [vmem:[%s9580_s25 + $0x2318] sm:$0xff] }
 0x4c8   : > { %4953 = vmatpush1.bf16.msra.mxu0 %v3730_v53  ;;  %5770 = vmatpush1.bf16.msra.mxu1 %v3732_v54  ;;  %v3819_v53 = vunpack.c.l.s8.bf16 %v1483_v49  ;;  %v3821_v54 = vunpack.c.l.s8.bf16 %v1485_v50 }
 0x4c9   : > { %4954 = vmatprep.subr.bf16.mxu0 %v3739_v55  ;;  %5771 = vmatprep.subr.bf16.mxu1 %v3741_v56  ;;  %v1482_v55 = vld [vmem:[%s9580_s25 + $0x2300] sm:$0xff]  ;;  %v1484_v56 = vld [vmem:[%s9580_s25 + $0x2310] sm:$0xff] }
 0x4ca   : > { %v3818_v57 = vunpack.c.l.s8.bf16 %v1482_v55  ;;  %v3820_v58 = vunpack.c.l.s8.bf16 %v1484_v56  ;;  %v3826_v63 = vunpack.c.h.s8.bf16 %v1482_v55  ;;  %v3828_v0 = vunpack.c.h.s8.bf16 %v1484_v56 }
 0x4cc   : > { %4955 = vmatpush1.bf16.msra.mxu0 %v3738_v59  ;;  %5772 = vmatpush1.bf16.msra.mxu1 %v3740_v60  ;;  %v3827_v59 = vunpack.c.h.s8.bf16 %v1483_v49  ;;  %v3829_v60 = vunpack.c.h.s8.bf16 %v1485_v50 }
 0x4cd   : > { %4956 = vmatprep.subr.bf16.mxu0 %v3747_v61  ;;  %5773 = vmatprep.subr.bf16.mxu1 %v3749_v62  ;;  %v1491_v61 = vld [vmem:[%s9580_s25 + $0x2348] sm:$0xff]  ;;  %v1493_v62 = vld [vmem:[%s9580_s25 + $0x2358] sm:$0xff] }
 0x4d0   : > { %4957 = vmatpush1.bf16.msra.mxu0 %v3746_v1  ;;  %5774 = vmatpush1.bf16.msra.mxu1 %v3748_v2  ;;  %v3835_v1 = vunpack.c.l.s8.bf16 %v1491_v61  ;;  %v3837_v2 = vunpack.c.l.s8.bf16 %v1493_v62 }
 0x4d1   : > { %4969 = vmatprep.subr.bf16.mxu0 %v3755_v3  ;;  %5786 = vmatprep.subr.bf16.mxu1 %v3757_v4  ;;  %v1490_v3 = vld [vmem:[%s9580_s25 + $0x2340] sm:$0xff]  ;;  %v1492_v4 = vld [vmem:[%s9580_s25 + $0x2350] sm:$0xff] }
 0x4d2   : > { %v3834_v5 = vunpack.c.l.s8.bf16 %v1490_v3  ;;  %v3836_v6 = vunpack.c.l.s8.bf16 %v1492_v4  ;;  %v3844_v12 = vunpack.c.h.s8.bf16 %v1492_v4 }
 0x4d3   : > { %4959 = vmatmul.mubr.bf16.vlgmr.msra.gmra.mrb[0].mxu0 %v9070_v7  ;;  %5776 = vmatmul.mubr.bf16.vlgmr.msra.gmra.mrb[0].mxu1 %v9070_v7  ;;  %v3843_v7 = vunpack.c.h.s8.bf16 %v1491_v61 }
 0x4d4   : > { %4970 = vmatpush1.bf16.msra.mxu0 %v3754_v8  ;;  %5787 = vmatpush1.bf16.msra.mxu1 %v3756_v9  ;;  %v3845_v8 = vunpack.c.h.s8.bf16 %v1493_v62  ;;  %v1499_v9 = vld [vmem:[%s9580_s25 + $0x2388] sm:$0xff] }
 0x4d5   : > { %4971 = vmatprep.subr.bf16.mxu0 %v3763_v10  ;;  %5788 = vmatprep.subr.bf16.mxu1 %v3765_v11  ;;  %v1501_v10 = vld [vmem:[%s9580_s25 + $0x2398] sm:$0xff]  ;;  %v3842_v11 = vunpack.c.h.s8.bf16 %v1490_v3  ;;  %v3851_v13 = vunpack.c.l.s8.bf16 %v1499_v9  ;;  %v3859_v19 = vunpack.c.h.s8.bf16 %v1499_v9 }
 0x4d6   : > { %5001 = vmatprep.mubr.bf16.mxu0 %v9071_v14  ;;  %5818 = vmatprep.mubr.bf16.mxu1 %v9071_v14  ;;  %v3853_v14 = vunpack.c.l.s8.bf16 %v1501_v10  ;;  %v3861_v20 = vunpack.c.h.s8.bf16 %v1501_v10 }
 0x4d8   : > { %4972 = vmatpush1.bf16.msra.mxu0 %v3762_v15  ;;  %5789 = vmatpush1.bf16.msra.mxu1 %v3764_v16  ;;  %v1498_v15 = vld [vmem:[%s9580_s25 + $0x2380] sm:$0xff]  ;;  %v1500_v16 = vld [vmem:[%s9580_s25 + $0x2390] sm:$0xff] }
 0x4d9   : > { %4973 = vmatprep.subr.bf16.mxu0 %v3771_v17  ;;  %5790 = vmatprep.subr.bf16.mxu1 %v3773_v18  ;;  %v3850_v17 = vunpack.c.l.s8.bf16 %v1498_v15  ;;  %v3852_v18 = vunpack.c.l.s8.bf16 %v1500_v16 }
 0x4dc   : > { %4974 = vmatpush1.bf16.msra.mxu0 %v3770_v21  ;;  %5791 = vmatpush1.bf16.msra.mxu1 %v3772_v22  ;;  %v1507_v21 = vld [vmem:[%s9580_s25 + $0x23c8] sm:$0xff]  ;;  %v1509_v22 = vld [vmem:[%s9580_s25 + $0x23d8] sm:$0xff] }
 0x4dd   : > { %4975 = vmatprep.subr.bf16.mxu0 %v3779_v23  ;;  %5792 = vmatprep.subr.bf16.mxu1 %v3781_v24  ;;  %v3858_v23 = vunpack.c.h.s8.bf16 %v1498_v15  ;;  %v3860_v24 = vunpack.c.h.s8.bf16 %v1500_v16  ;;  %v3867_v25 = vunpack.c.l.s8.bf16 %v1507_v21  ;;  %v3869_v26 = vunpack.c.l.s8.bf16 %v1509_v22 }
 0x4de   : > { %v3875_v31 = vunpack.c.h.s8.bf16 %v1507_v21  ;;  %v3877_v32 = vunpack.c.h.s8.bf16 %v1509_v22 }
 0x4e0   : > { %4976 = vmatpush1.bf16.msra.mxu0 %v3778_v27  ;;  %5793 = vmatpush1.bf16.msra.mxu1 %v3780_v28  ;;  %v1506_v27 = vld [vmem:[%s9580_s25 + $0x23c0] sm:$0xff]  ;;  %v1508_v28 = vld [vmem:[%s9580_s25 + $0x23d0] sm:$0xff] }
 0x4e1   : > { %4977 = vmatprep.subr.bf16.mxu0 %v3787_v29  ;;  %5794 = vmatprep.subr.bf16.mxu1 %v3789_v30  ;;  %v3866_v29 = vunpack.c.l.s8.bf16 %v1506_v27  ;;  %v3868_v30 = vunpack.c.l.s8.bf16 %v1508_v28 }
 0x4e4   : > { %4978 = vmatpush1.bf16.msra.mxu0 %v3786_v33  ;;  %5795 = vmatpush1.bf16.msra.mxu1 %v3788_v34  ;;  %v1515_v33 = vld [vmem:[%s9580_s25 + $0x2408] sm:$0xff]  ;;  %v1517_v34 = vld [vmem:[%s9580_s25 + $0x2418] sm:$0xff] }
 0x4e5   : > { %4979 = vmatprep.subr.bf16.mxu0 %v3795_v35  ;;  %5796 = vmatprep.subr.bf16.mxu1 %v3797_v36  ;;  %v3874_v35 = vunpack.c.h.s8.bf16 %v1506_v27  ;;  %v3876_v36 = vunpack.c.h.s8.bf16 %v1508_v28  ;;  %v3883_v37 = vunpack.c.l.s8.bf16 %v1515_v33  ;;  %v3885_v38 = vunpack.c.l.s8.bf16 %v1517_v34 }
 0x4e6   : > { %v3891_v44 = vunpack.c.h.s8.bf16 %v1515_v33 }
 0x4e8   : > { %4980 = vmatpush1.bf16.msra.mxu0 %v3794_v39  ;;  %5797 = vmatpush1.bf16.msra.mxu1 %v3796_v40  ;;  %v1514_v39 = vld [vmem:[%s9580_s25 + $0x2400] sm:$0xff]  ;;  %v1516_v40 = vld [vmem:[%s9580_s25 + $0x2410] sm:$0xff] }
 0x4e9   : > { %4981 = vmatprep.subr.bf16.mxu0 %v3803_v41  ;;  %5798 = vmatprep.subr.bf16.mxu1 %v3805_v42  ;;  %v9073_v41 = vld [vmem:[%s11165_s0 + $0x88] ss:$152 sps:$4 sm:$0xff]   ;;  %v3882_v42 = vunpack.c.l.s8.bf16 %v1514_v39  ;;  %v3884_v43 = vunpack.c.l.s8.bf16 %v1516_v40  ;;  %v3890_v49 = vunpack.c.h.s8.bf16 %v1514_v39  ;;  %v3892_v50 = vunpack.c.h.s8.bf16 %v1516_v40 }
 0x4ec   : > { %4982 = vmatpush1.bf16.msra.mxu0 %v3802_v45  ;;  %5799 = vmatpush1.bf16.msra.mxu1 %v3804_v46  ;;  %v3893_v45 = vunpack.c.h.s8.bf16 %v1517_v34  ;;  %v1523_v46 = vld [vmem:[%s9580_s25 + $0x2448] sm:$0xff] }
 0x4ed   : > { %4983 = vmatprep.subr.bf16.mxu0 %v3811_v47  ;;  %5800 = vmatprep.subr.bf16.mxu1 %v3813_v48  ;;  %v1525_v47 = vld [vmem:[%s9580_s25 + $0x2458] sm:$0xff]  ;;  %v9074_v48 = vld [vmem:[%s11165_s0 + $0x94] ss:$152 sps:$4 sm:$0xff]  }
 0x4f0   : > { %4984 = vmatpush1.bf16.msra.mxu0 %v3810_v51  ;;  %5801 = vmatpush1.bf16.msra.mxu1 %v3812_v52  ;;  %v3899_v51 = vunpack.c.l.s8.bf16 %v1523_v46  ;;  %v3901_v52 = vunpack.c.l.s8.bf16 %v1525_v47 }
 0x4f1   : > { %4985 = vmatprep.subr.bf16.mxu0 %v3819_v53  ;;  %5802 = vmatprep.subr.bf16.mxu1 %v3821_v54  ;;  %v1522_v53 = vld [vmem:[%s9580_s25 + $0x2440] sm:$0xff]  ;;  %v1524_v54 = vld [vmem:[%s9580_s25 + $0x2450] sm:$0xff] }
 0x4f2   : > { %v3898_v55 = vunpack.c.l.s8.bf16 %v1522_v53  ;;  %v3900_v56 = vunpack.c.l.s8.bf16 %v1524_v54  ;;  %v3906_v61 = vunpack.c.h.s8.bf16 %v1522_v53  ;;  %v3908_v62 = vunpack.c.h.s8.bf16 %v1524_v54 }
 0x4f4   : > { %4986 = vmatpush1.bf16.msra.mxu0 %v3818_v57  ;;  %5803 = vmatpush1.bf16.msra.mxu1 %v3820_v58  ;;  %v3907_v57 = vunpack.c.h.s8.bf16 %v1523_v46  ;;  %v3909_v58 = vunpack.c.h.s8.bf16 %v1525_v47 }
 0x4f5   : > { %4987 = vmatprep.subr.bf16.mxu0 %v3827_v59  ;;  %5804 = vmatprep.subr.bf16.mxu1 %v3829_v60  ;;  %v1531_v59 = vld [vmem:[%s9580_s25 + $0x2488] sm:$0xff]  ;;  %v1533_v60 = vld [vmem:[%s9580_s25 + $0x2498] sm:$0xff] }
 0x4f8   : > { %4988 = vmatpush1.bf16.msra.mxu0 %v3826_v63  ;;  %5805 = vmatpush1.bf16.msra.mxu1 %v3828_v0  ;;  %v3915_v63 = vunpack.c.l.s8.bf16 %v1531_v59  ;;  %v3917_v0 = vunpack.c.l.s8.bf16 %v1533_v60 }
 0x4f9   : > { %4989 = vmatprep.subr.bf16.mxu0 %v3835_v1  ;;  %5806 = vmatprep.subr.bf16.mxu1 %v3837_v2  ;;  %v1530_v1 = vld [vmem:[%s9580_s25 + $0x2480] sm:$0xff]  ;;  %v1532_v2 = vld [vmem:[%s9580_s25 + $0x2490] sm:$0xff] }
 0x4fa   : > { %v3914_v3 = vunpack.c.l.s8.bf16 %v1530_v1  ;;  %v3916_v4 = vunpack.c.l.s8.bf16 %v1532_v2  ;;  %v3922_v9 = vunpack.c.h.s8.bf16 %v1530_v1  ;;  %v3924_v10 = vunpack.c.h.s8.bf16 %v1532_v2 }
 0x4fc   : > { %4990 = vmatpush1.bf16.msra.mxu0 %v3834_v5  ;;  %5807 = vmatpush1.bf16.msra.mxu1 %v3836_v6  ;;  %v3923_v5 = vunpack.c.h.s8.bf16 %v1531_v59  ;;  %v3925_v6 = vunpack.c.h.s8.bf16 %v1533_v60 }
 0x4fd   : > { %4991 = vmatprep.subr.bf16.mxu0 %v3843_v7  ;;  %5808 = vmatprep.subr.bf16.mxu1 %v3845_v8  ;;  %v1539_v7 = vld [vmem:[%s9580_s25 + $0x24c8] sm:$0xff]  ;;  %v1541_v8 = vld [vmem:[%s9580_s25 + $0x24d8] sm:$0xff] }
 0x500   : > { %4992 = vmatpush1.bf16.msra.mxu0 %v3842_v11  ;;  %5809 = vmatpush1.bf16.msra.mxu1 %v3844_v12  ;;  %v3931_v11 = vunpack.c.l.s8.bf16 %v1539_v7  ;;  %v3933_v12 = vunpack.c.l.s8.bf16 %v1541_v8 }
 0x501   : > { %4993 = vmatprep.subr.bf16.mxu0 %v3851_v13  ;;  %5810 = vmatprep.subr.bf16.mxu1 %v3853_v14  ;;  %v1538_v13 = vld [vmem:[%s9580_s25 + $0x24c0] sm:$0xff]  ;;  %v1540_v14 = vld [vmem:[%s9580_s25 + $0x24d0] sm:$0xff] }
 0x502   : > { %v3930_v15 = vunpack.c.l.s8.bf16 %v1538_v13  ;;  %v3932_v16 = vunpack.c.l.s8.bf16 %v1540_v14  ;;  %v3938_v21 = vunpack.c.h.s8.bf16 %v1538_v13  ;;  %v3940_v22 = vunpack.c.h.s8.bf16 %v1540_v14 }
 0x504   : > { %4994 = vmatpush1.bf16.msra.mxu0 %v3850_v17  ;;  %5811 = vmatpush1.bf16.msra.mxu1 %v3852_v18  ;;  %v3939_v17 = vunpack.c.h.s8.bf16 %v1539_v7  ;;  %v3941_v18 = vunpack.c.h.s8.bf16 %v1541_v8 }
 0x505   : > { %4995 = vmatprep.subr.bf16.mxu0 %v3859_v19  ;;  %5812 = vmatprep.subr.bf16.mxu1 %v3861_v20  ;;  %v1547_v19 = vld [vmem:[%s9580_s25 + $0x2508] sm:$0xff]  ;;  %v1549_v20 = vld [vmem:[%s9580_s25 + $0x2518] sm:$0xff] }
 0x508   : > { %4996 = vmatpush1.bf16.msra.mxu0 %v3858_v23  ;;  %5813 = vmatpush1.bf16.msra.mxu1 %v3860_v24  ;;  %v3947_v23 = vunpack.c.l.s8.bf16 %v1547_v19  ;;  %v3949_v24 = vunpack.c.l.s8.bf16 %v1549_v20 }
 0x509   : > { %4997 = vmatprep.subr.bf16.mxu0 %v3867_v25  ;;  %5814 = vmatprep.subr.bf16.mxu1 %v3869_v26  ;;  %v1546_v25 = vld [vmem:[%s9580_s25 + $0x2500] sm:$0xff]  ;;  %v1548_v26 = vld [vmem:[%s9580_s25 + $0x2510] sm:$0xff] }
 0x50a   : > { %v3946_v27 = vunpack.c.l.s8.bf16 %v1546_v25  ;;  %v3948_v28 = vunpack.c.l.s8.bf16 %v1548_v26  ;;  %v3954_v33 = vunpack.c.h.s8.bf16 %v1546_v25  ;;  %v3956_v34 = vunpack.c.h.s8.bf16 %v1548_v26 }
 0x50c   : > { %4998 = vmatpush1.bf16.msra.mxu0 %v3866_v29  ;;  %5815 = vmatpush1.bf16.msra.mxu1 %v3868_v30  ;;  %v3955_v29 = vunpack.c.h.s8.bf16 %v1547_v19  ;;  %v3957_v30 = vunpack.c.h.s8.bf16 %v1549_v20 }
 0x50d   : > { %4999 = vmatprep.subr.bf16.mxu0 %v3875_v31  ;;  %5816 = vmatprep.subr.bf16.mxu1 %v3877_v32  ;;  %v1555_v31 = vld [vmem:[%s9580_s25 + $0x2548] sm:$0xff]  ;;  %v1557_v32 = vld [vmem:[%s9580_s25 + $0x2558] sm:$0xff] }
 0x510   : > { %5000 = vmatpush1.bf16.msra.mxu0 %v3874_v35  ;;  %5817 = vmatpush1.bf16.msra.mxu1 %v3876_v36  ;;  %v3963_v35 = vunpack.c.l.s8.bf16 %v1555_v31  ;;  %v3965_v36 = vunpack.c.l.s8.bf16 %v1557_v32 }
 0x511   : > { %5012 = vmatprep.subr.bf16.mxu0 %v3883_v37  ;;  %5829 = vmatprep.subr.bf16.mxu1 %v3885_v38  ;;  %v1554_v37 = vld [vmem:[%s9580_s25 + $0x2540] sm:$0xff]  ;;  %v1556_v38 = vld [vmem:[%s9580_s25 + $0x2550] sm:$0xff] }
 0x512   : > { %v3962_v39 = vunpack.c.l.s8.bf16 %v1554_v37  ;;  %v3964_v40 = vunpack.c.l.s8.bf16 %v1556_v38  ;;  %v3972_v46 = vunpack.c.h.s8.bf16 %v1556_v38 }
 0x513   : > { %5002 = vmatmul.mubr.bf16.vlgmr.msra.gmra.mrb[0].mxu0 %v9073_v41  ;;  %5819 = vmatmul.mubr.bf16.vlgmr.msra.gmra.mrb[0].mxu1 %v9073_v41  ;;  %v3971_v41 = vunpack.c.h.s8.bf16 %v1555_v31 }
 0x514   : > { %5013 = vmatpush1.bf16.msra.mxu0 %v3882_v42  ;;  %5830 = vmatpush1.bf16.msra.mxu1 %v3884_v43  ;;  %v3973_v42 = vunpack.c.h.s8.bf16 %v1557_v32  ;;  %v1563_v43 = vld [vmem:[%s9580_s25 + $0x2588] sm:$0xff] }
 0x515   : > { %5014 = vmatprep.subr.bf16.mxu0 %v3891_v44  ;;  %5831 = vmatprep.subr.bf16.mxu1 %v3893_v45  ;;  %v1565_v44 = vld [vmem:[%s9580_s25 + $0x2598] sm:$0xff]  ;;  %v3970_v45 = vunpack.c.h.s8.bf16 %v1554_v37  ;;  %v3979_v47 = vunpack.c.l.s8.bf16 %v1563_v43  ;;  %v3987_v53 = vunpack.c.h.s8.bf16 %v1563_v43 }
 0x516   : > { %5044 = vmatprep.mubr.bf16.mxu0 %v9074_v48  ;;  %5861 = vmatprep.mubr.bf16.mxu1 %v9074_v48  ;;  %v3981_v48 = vunpack.c.l.s8.bf16 %v1565_v44  ;;  %v3989_v54 = vunpack.c.h.s8.bf16 %v1565_v44 }
 0x518   : > { %5015 = vmatpush1.bf16.msra.mxu0 %v3890_v49  ;;  %5832 = vmatpush1.bf16.msra.mxu1 %v3892_v50  ;;  %v1562_v49 = vld [vmem:[%s9580_s25 + $0x2580] sm:$0xff]  ;;  %v1564_v50 = vld [vmem:[%s9580_s25 + $0x2590] sm:$0xff] }
 0x519   : > { %5016 = vmatprep.subr.bf16.mxu0 %v3899_v51  ;;  %5833 = vmatprep.subr.bf16.mxu1 %v3901_v52  ;;  %v3978_v51 = vunpack.c.l.s8.bf16 %v1562_v49  ;;  %v3980_v52 = vunpack.c.l.s8.bf16 %v1564_v50 }
 0x51c   : > { %5017 = vmatpush1.bf16.msra.mxu0 %v3898_v55  ;;  %5834 = vmatpush1.bf16.msra.mxu1 %v3900_v56  ;;  %v1571_v55 = vld [vmem:[%s9580_s25 + $0x25c8] sm:$0xff]  ;;  %v1573_v56 = vld [vmem:[%s9580_s25 + $0x25d8] sm:$0xff] }
 0x51d   : > { %5018 = vmatprep.subr.bf16.mxu0 %v3907_v57  ;;  %5835 = vmatprep.subr.bf16.mxu1 %v3909_v58  ;;  %v3986_v57 = vunpack.c.h.s8.bf16 %v1562_v49  ;;  %v3988_v58 = vunpack.c.h.s8.bf16 %v1564_v50  ;;  %v3995_v59 = vunpack.c.l.s8.bf16 %v1571_v55  ;;  %v3997_v60 = vunpack.c.l.s8.bf16 %v1573_v56 }
 0x51e   : > { %v4003_v1 = vunpack.c.h.s8.bf16 %v1571_v55  ;;  %v4005_v2 = vunpack.c.h.s8.bf16 %v1573_v56 }
 0x520   : > { %5019 = vmatpush1.bf16.msra.mxu0 %v3906_v61  ;;  %5836 = vmatpush1.bf16.msra.mxu1 %v3908_v62  ;;  %v1570_v61 = vld [vmem:[%s9580_s25 + $0x25c0] sm:$0xff]  ;;  %v1572_v62 = vld [vmem:[%s9580_s25 + $0x25d0] sm:$0xff] }
 0x521   : > { %5020 = vmatprep.subr.bf16.mxu0 %v3915_v63  ;;  %5837 = vmatprep.subr.bf16.mxu1 %v3917_v0  ;;  %v3994_v63 = vunpack.c.l.s8.bf16 %v1570_v61  ;;  %v3996_v0 = vunpack.c.l.s8.bf16 %v1572_v62 }
 0x524   : > { %5021 = vmatpush1.bf16.msra.mxu0 %v3914_v3  ;;  %5838 = vmatpush1.bf16.msra.mxu1 %v3916_v4  ;;  %v367_v3 = vld [vmem:[%s9580_s25 + $0x28] sm:$0xff]  ;;  %v369_v4 = vld [vmem:[%s9580_s25 + $0x38] sm:$0xff] }
 0x525   : > { %5022 = vmatprep.subr.bf16.mxu0 %v3923_v5  ;;  %5839 = vmatprep.subr.bf16.mxu1 %v3925_v6  ;;  %v4002_v5 = vunpack.c.h.s8.bf16 %v1570_v61  ;;  %v4004_v6 = vunpack.c.h.s8.bf16 %v1572_v62  ;;  %v1583_v7 = vunpack.c.l.s8.bf16 %v367_v3  ;;  %v1585_v8 = vunpack.c.l.s8.bf16 %v369_v4 }
 0x526   : > { %v1591_v14 = vunpack.c.h.s8.bf16 %v367_v3 }
 0x528   : > { %5023 = vmatpush1.bf16.msra.mxu0 %v3922_v9  ;;  %5840 = vmatpush1.bf16.msra.mxu1 %v3924_v10  ;;  %v366_v9 = vld [vmem:[%s9580_s25 + $0x20] sm:$0xff]  ;;  %v368_v10 = vld [vmem:[%s9580_s25 + $0x30] sm:$0xff] }
 0x529   : > { %5024 = vmatprep.subr.bf16.mxu0 %v3931_v11  ;;  %5841 = vmatprep.subr.bf16.mxu1 %v3933_v12  ;;  %v9076_v11 = vld [vmem:[%s11165_s0 + $0x90] ss:$152 sps:$4 sm:$0xff]   ;;  %v1582_v12 = vunpack.c.l.s8.bf16 %v366_v9  ;;  %v1584_v13 = vunpack.c.l.s8.bf16 %v368_v10  ;;  %v1592_v19 = vunpack.c.h.s8.bf16 %v368_v10 }
 0x52c   : > { %5025 = vmatpush1.bf16.msra.mxu0 %v3930_v15  ;;  %5842 = vmatpush1.bf16.msra.mxu1 %v3932_v16  ;;  %v1593_v15 = vunpack.c.h.s8.bf16 %v369_v4  ;;  %v375_v16 = vld [vmem:[%s9580_s25 + $0x68] sm:$0xff] }
 0x52d   : > { %5026 = vmatprep.subr.bf16.mxu0 %v3939_v17  ;;  %5843 = vmatprep.subr.bf16.mxu1 %v3941_v18  ;;  %v377_v17 = vld [vmem:[%s9580_s25 + $0x78] sm:$0xff]  ;;  %v1590_v18 = vunpack.c.h.s8.bf16 %v366_v9  ;;  %v1599_v20 = vunpack.c.l.s8.bf16 %v375_v16 }
 0x530   : > { %5027 = vmatpush1.bf16.msra.mxu0 %v3938_v21  ;;  %5844 = vmatpush1.bf16.msra.mxu1 %v3940_v22  ;;  %v1601_v21 = vunpack.c.l.s8.bf16 %v377_v17  ;;  %v374_v22 = vld [vmem:[%s9580_s25 + $0x60] sm:$0xff] }
 0x531   : > { %5028 = vmatprep.subr.bf16.mxu0 %v3947_v23  ;;  %5845 = vmatprep.subr.bf16.mxu1 %v3949_v24  ;;  %v376_v23 = vld [vmem:[%s9580_s25 + $0x70] sm:$0xff]  ;;  %v9141_v24 = vld [vmem:[%s11165_s0 + $0x4] ss:$152 sps:$4 sm:$0xff]   ;;  %v1598_v25 = vunpack.c.l.s8.bf16 %v374_v22  ;;  %v1606_v31 = vunpack.c.h.s8.bf16 %v374_v22 }
 0x532   : > { %v1600_v26 = vunpack.c.l.s8.bf16 %v376_v23  ;;  %v1608_v32 = vunpack.c.h.s8.bf16 %v376_v23 }
 0x534   : > { %5029 = vmatpush1.bf16.msra.mxu0 %v3946_v27  ;;  %5846 = vmatpush1.bf16.msra.mxu1 %v3948_v28  ;;  %v1607_v27 = vunpack.c.h.s8.bf16 %v375_v16  ;;  %v1609_v28 = vunpack.c.h.s8.bf16 %v377_v17 }
 0x535   : > { %5030 = vmatprep.subr.bf16.mxu0 %v3955_v29  ;;  %5847 = vmatprep.subr.bf16.mxu1 %v3957_v30  ;;  %v383_v29 = vld [vmem:[%s9580_s25 + $0xa8] sm:$0xff]  ;;  %v385_v30 = vld [vmem:[%s9580_s25 + $0xb8] sm:$0xff] }
 0x538   : > { %5031 = vmatpush1.bf16.msra.mxu0 %v3954_v33  ;;  %5848 = vmatpush1.bf16.msra.mxu1 %v3956_v34  ;;  %v1615_v33 = vunpack.c.l.s8.bf16 %v383_v29  ;;  %v1617_v34 = vunpack.c.l.s8.bf16 %v385_v30 }
 0x539   : > { %5032 = vmatprep.subr.bf16.mxu0 %v3963_v35  ;;  %5849 = vmatprep.subr.bf16.mxu1 %v3965_v36  ;;  %v382_v35 = vld [vmem:[%s9580_s25 + $0xa0] sm:$0xff]  ;;  %v384_v36 = vld [vmem:[%s9580_s25 + $0xb0] sm:$0xff] }
 0x53a   : > { %v1614_v37 = vunpack.c.l.s8.bf16 %v382_v35  ;;  %v1616_v38 = vunpack.c.l.s8.bf16 %v384_v36  ;;  %v1622_v43 = vunpack.c.h.s8.bf16 %v382_v35  ;;  %v1624_v44 = vunpack.c.h.s8.bf16 %v384_v36 }
 0x53c   : > { %5033 = vmatpush1.bf16.msra.mxu0 %v3962_v39  ;;  %5850 = vmatpush1.bf16.msra.mxu1 %v3964_v40  ;;  %v1623_v39 = vunpack.c.h.s8.bf16 %v383_v29  ;;  %v1625_v40 = vunpack.c.h.s8.bf16 %v385_v30 }
 0x53d   : > { %5034 = vmatprep.subr.bf16.mxu0 %v3971_v41  ;;  %5851 = vmatprep.subr.bf16.mxu1 %v3973_v42  ;;  %v391_v41 = vld [vmem:[%s9580_s25 + $0xe8] sm:$0xff]  ;;  %v393_v42 = vld [vmem:[%s9580_s25 + $0xf8] sm:$0xff] }
 0x540   : > { %5035 = vmatpush1.bf16.msra.mxu0 %v3970_v45  ;;  %5852 = vmatpush1.bf16.msra.mxu1 %v3972_v46  ;;  %v1631_v45 = vunpack.c.l.s8.bf16 %v391_v41  ;;  %v1633_v46 = vunpack.c.l.s8.bf16 %v393_v42 }
 0x541   : > { %5036 = vmatprep.subr.bf16.mxu0 %v3979_v47  ;;  %5853 = vmatprep.subr.bf16.mxu1 %v3981_v48  ;;  %v390_v47 = vld [vmem:[%s9580_s25 + $0xe0] sm:$0xff]  ;;  %v392_v48 = vld [vmem:[%s9580_s25 + $0xf0] sm:$0xff] }
 0x542   : > { %v1630_v49 = vunpack.c.l.s8.bf16 %v390_v47  ;;  %v1632_v50 = vunpack.c.l.s8.bf16 %v392_v48  ;;  %v1638_v55 = vunpack.c.h.s8.bf16 %v390_v47  ;;  %v1640_v56 = vunpack.c.h.s8.bf16 %v392_v48 }
 0x544   : > { %5037 = vmatpush1.bf16.msra.mxu0 %v3978_v51  ;;  %5854 = vmatpush1.bf16.msra.mxu1 %v3980_v52  ;;  %v1639_v51 = vunpack.c.h.s8.bf16 %v391_v41  ;;  %v1641_v52 = vunpack.c.h.s8.bf16 %v393_v42 }
 0x545   : > { %5038 = vmatprep.subr.bf16.mxu0 %v3987_v53  ;;  %5855 = vmatprep.subr.bf16.mxu1 %v3989_v54  ;;  %v399_v53 = vld [vmem:[%s9580_s25 + $0x128] sm:$0xff]  ;;  %v401_v54 = vld [vmem:[%s9580_s25 + $0x138] sm:$0xff] }
 0x548   : > { %5039 = vmatpush1.bf16.msra.mxu0 %v3986_v57  ;;  %5856 = vmatpush1.bf16.msra.mxu1 %v3988_v58  ;;  %v1647_v57 = vunpack.c.l.s8.bf16 %v399_v53  ;;  %v1649_v58 = vunpack.c.l.s8.bf16 %v401_v54 }
 0x549   : > { %5040 = vmatprep.subr.bf16.mxu0 %v3995_v59  ;;  %5857 = vmatprep.subr.bf16.mxu1 %v3997_v60  ;;  %v398_v59 = vld [vmem:[%s9580_s25 + $0x120] sm:$0xff]  ;;  %v400_v60 = vld [vmem:[%s9580_s25 + $0x130] sm:$0xff] }
 0x54a   : > { %v1646_v61 = vunpack.c.l.s8.bf16 %v398_v59  ;;  %v1648_v62 = vunpack.c.l.s8.bf16 %v400_v60  ;;  %v1654_v3 = vunpack.c.h.s8.bf16 %v398_v59  ;;  %v1656_v4 = vunpack.c.h.s8.bf16 %v400_v60 }
 0x54c   : > { %5041 = vmatpush1.bf16.msra.mxu0 %v3994_v63  ;;  %5858 = vmatpush1.bf16.msra.mxu1 %v3996_v0  ;;  %v1655_v63 = vunpack.c.h.s8.bf16 %v399_v53  ;;  %v1657_v0 = vunpack.c.h.s8.bf16 %v401_v54 }
 0x54d   : > { %5042 = vmatprep.subr.bf16.mxu0 %v4003_v1  ;;  %5859 = vmatprep.subr.bf16.mxu1 %v4005_v2  ;;  %v407_v1 = vld [vmem:[%s9580_s25 + $0x168] sm:$0xff]  ;;  %v409_v2 = vld [vmem:[%s9580_s25 + $0x178] sm:$0xff] }
 0x550   : > { %5043 = vmatpush1.bf16.msra.mxu0 %v4002_v5  ;;  %5860 = vmatpush1.bf16.msra.mxu1 %v4004_v6  ;;  %v1663_v5 = vunpack.c.l.s8.bf16 %v407_v1  ;;  %v1665_v6 = vunpack.c.l.s8.bf16 %v409_v2 }
 0x551   : > { %5872 = vmatprep.subr.bf16.mxu0 %v1583_v7  ;;  %6689 = vmatprep.subr.bf16.mxu1 %v1585_v8  ;;  %v406_v7 = vld [vmem:[%s9580_s25 + $0x160] sm:$0xff]  ;;  %v408_v8 = vld [vmem:[%s9580_s25 + $0x170] sm:$0xff] }
 0x552   : > { %v1662_v9 = vunpack.c.l.s8.bf16 %v406_v7  ;;  %v1664_v10 = vunpack.c.l.s8.bf16 %v408_v8  ;;  %v1672_v16 = vunpack.c.h.s8.bf16 %v408_v8 }
 0x553   : > { %5045 = vmatmul.mubr.bf16.vlgmr.msra.gmra.mrb[0].mxu0 %v9076_v11  ;;  %5862 = vmatmul.mubr.bf16.vlgmr.msra.gmra.mrb[0].mxu1 %v9076_v11  ;;  %v1671_v11 = vunpack.c.h.s8.bf16 %v407_v1 }
 0x554   : > { %5873 = vmatpush1.bf16.msra.mxu0 %v1582_v12  ;;  %6690 = vmatpush1.bf16.msra.mxu1 %v1584_v13  ;;  %v1673_v12 = vunpack.c.h.s8.bf16 %v409_v2  ;;  %v415_v13 = vld [vmem:[%s9580_s25 + $0x1a8] sm:$0xff] }
 0x555   : > { %5874 = vmatprep.subr.bf16.mxu0 %v1591_v14  ;;  %6691 = vmatprep.subr.bf16.mxu1 %v1593_v15  ;;  %v417_v14 = vld [vmem:[%s9580_s25 + $0x1b8] sm:$0xff]  ;;  %v1670_v15 = vunpack.c.h.s8.bf16 %v406_v7  ;;  %v1679_v17 = vunpack.c.l.s8.bf16 %v415_v13  ;;  %v1687_v23 = vunpack.c.h.s8.bf16 %v415_v13 }
 0x556   : > { %5904 = vmatprep.mubr.bf16.mxu0 %v9141_v24  ;;  %6721 = vmatprep.mubr.bf16.mxu1 %v9141_v24  ;;  %v1689_v24 = vunpack.c.h.s8.bf16 %v417_v14 }
 0x558   : > { %5875 = vmatpush1.bf16.msra.mxu0 %v1590_v18  ;;  %6692 = vmatpush1.bf16.msra.mxu1 %v1592_v19  ;;  %v1681_v18 = vunpack.c.l.s8.bf16 %v417_v14  ;;  %v414_v19 = vld [vmem:[%s9580_s25 + $0x1a0] sm:$0xff] }
 0x559   : > { %5876 = vmatprep.subr.bf16.mxu0 %v1599_v20  ;;  %6693 = vmatprep.subr.bf16.mxu1 %v1601_v21  ;;  %v416_v20 = vld [vmem:[%s9580_s25 + $0x1b0] sm:$0xff]  ;;  %v1678_v21 = vunpack.c.l.s8.bf16 %v414_v19 }
 0x55a   : > { %v1680_v22 = vunpack.c.l.s8.bf16 %v416_v20 }
 0x55c   : > { %5877 = vmatpush1.bf16.msra.mxu0 %v1598_v25  ;;  %6694 = vmatpush1.bf16.msra.mxu1 %v1600_v26  ;;  %v423_v25 = vld [vmem:[%s9580_s25 + $0x1e8] sm:$0xff]  ;;  %v425_v26 = vld [vmem:[%s9580_s25 + $0x1f8] sm:$0xff] }
 0x55d   : > { %5878 = vmatprep.subr.bf16.mxu0 %v1607_v27  ;;  %6695 = vmatprep.subr.bf16.mxu1 %v1609_v28  ;;  %v1686_v27 = vunpack.c.h.s8.bf16 %v414_v19  ;;  %v1688_v28 = vunpack.c.h.s8.bf16 %v416_v20  ;;  %v1695_v29 = vunpack.c.l.s8.bf16 %v423_v25  ;;  %v1697_v30 = vunpack.c.l.s8.bf16 %v425_v26 }
 0x55e   : > { %v1703_v35 = vunpack.c.h.s8.bf16 %v423_v25  ;;  %v1705_v36 = vunpack.c.h.s8.bf16 %v425_v26 }
 0x560   : > { %5879 = vmatpush1.bf16.msra.mxu0 %v1606_v31  ;;  %6696 = vmatpush1.bf16.msra.mxu1 %v1608_v32  ;;  %v422_v31 = vld [vmem:[%s9580_s25 + $0x1e0] sm:$0xff]  ;;  %v424_v32 = vld [vmem:[%s9580_s25 + $0x1f0] sm:$0xff] }
 0x561   : > { %5880 = vmatprep.subr.bf16.mxu0 %v1615_v33  ;;  %6697 = vmatprep.subr.bf16.mxu1 %v1617_v34  ;;  %v1694_v33 = vunpack.c.l.s8.bf16 %v422_v31  ;;  %v1696_v34 = vunpack.c.l.s8.bf16 %v424_v32 }
 0x564   : > { %5881 = vmatpush1.bf16.msra.mxu0 %v1614_v37  ;;  %6698 = vmatpush1.bf16.msra.mxu1 %v1616_v38  ;;  %v431_v37 = vld [vmem:[%s9580_s25 + $0x228] sm:$0xff]  ;;  %v433_v38 = vld [vmem:[%s9580_s25 + $0x238] sm:$0xff] }
 0x565   : > { %5882 = vmatprep.subr.bf16.mxu0 %v1623_v39  ;;  %6699 = vmatprep.subr.bf16.mxu1 %v1625_v40  ;;  %v1702_v39 = vunpack.c.h.s8.bf16 %v422_v31  ;;  %v1704_v40 = vunpack.c.h.s8.bf16 %v424_v32  ;;  %v1711_v41 = vunpack.c.l.s8.bf16 %v431_v37  ;;  %v1713_v42 = vunpack.c.l.s8.bf16 %v433_v38 }
 0x566   : > { %v1719_v47 = vunpack.c.h.s8.bf16 %v431_v37  ;;  %v1721_v48 = vunpack.c.h.s8.bf16 %v433_v38 }
 0x568   : > { %5883 = vmatpush1.bf16.msra.mxu0 %v1622_v43  ;;  %6700 = vmatpush1.bf16.msra.mxu1 %v1624_v44  ;;  %v430_v43 = vld [vmem:[%s9580_s25 + $0x220] sm:$0xff]  ;;  %v432_v44 = vld [vmem:[%s9580_s25 + $0x230] sm:$0xff] }
 0x569   : > { %5884 = vmatprep.subr.bf16.mxu0 %v1631_v45  ;;  %6701 = vmatprep.subr.bf16.mxu1 %v1633_v46  ;;  %v1710_v45 = vunpack.c.l.s8.bf16 %v430_v43  ;;  %v1712_v46 = vunpack.c.l.s8.bf16 %v432_v44  ;;  %v1720_v53 = vunpack.c.h.s8.bf16 %v432_v44 }
 0x56c   : > { %5885 = vmatpush1.bf16.msra.mxu0 %v1630_v49  ;;  %6702 = vmatpush1.bf16.msra.mxu1 %v1632_v50  ;;  %v439_v49 = vld [vmem:[%s9580_s25 + $0x268] sm:$0xff]  ;;  %v441_v50 = vld [vmem:[%s9580_s25 + $0x278] sm:$0xff] }
 0x56d   : > { %5886 = vmatprep.subr.bf16.mxu0 %v1639_v51  ;;  %6703 = vmatprep.subr.bf16.mxu1 %v1641_v52  ;;  %v9142_v51 = vld [vmem:[%s11165_s0] ss:$152 sps:$4 sm:$0xff]   ;;  %v1718_v52 = vunpack.c.h.s8.bf16 %v430_v43  ;;  %v1727_v54 = vunpack.c.l.s8.bf16 %v439_v49 }
 0x570   : > { %5887 = vmatpush1.bf16.msra.mxu0 %v1638_v55  ;;  %6704 = vmatpush1.bf16.msra.mxu1 %v1640_v56  ;;  %v1729_v55 = vunpack.c.l.s8.bf16 %v441_v50  ;;  %v438_v56 = vld [vmem:[%s9580_s25 + $0x260] sm:$0xff] }
 0x571   : > { %5888 = vmatprep.subr.bf16.mxu0 %v1647_v57  ;;  %6705 = vmatprep.subr.bf16.mxu1 %v1649_v58  ;;  %v440_v57 = vld [vmem:[%s9580_s25 + $0x270] sm:$0xff]  ;;  %v9143_v58 = vld [vmem:[%s11165_s0 + $0xc] ss:$152 sps:$4 sm:$0xff]   ;;  %v1726_v59 = vunpack.c.l.s8.bf16 %v438_v56  ;;  %v1734_v1 = vunpack.c.h.s8.bf16 %v438_v56 }
 0x572   : > { %v1728_v60 = vunpack.c.l.s8.bf16 %v440_v57  ;;  %v1736_v2 = vunpack.c.h.s8.bf16 %v440_v57 }
 0x574   : > { %5889 = vmatpush1.bf16.msra.mxu0 %v1646_v61  ;;  %6706 = vmatpush1.bf16.msra.mxu1 %v1648_v62  ;;  %v1735_v61 = vunpack.c.h.s8.bf16 %v439_v49  ;;  %v1737_v62 = vunpack.c.h.s8.bf16 %v441_v50 }
 0x575   : > { %5890 = vmatprep.subr.bf16.mxu0 %v1655_v63  ;;  %6707 = vmatprep.subr.bf16.mxu1 %v1657_v0  ;;  %v447_v63 = vld [vmem:[%s9580_s25 + $0x2a8] sm:$0xff]  ;;  %v449_v0 = vld [vmem:[%s9580_s25 + $0x2b8] sm:$0xff] }
 0x578   : > { %5891 = vmatpush1.bf16.msra.mxu0 %v1654_v3  ;;  %6708 = vmatpush1.bf16.msra.mxu1 %v1656_v4  ;;  %v1743_v3 = vunpack.c.l.s8.bf16 %v447_v63  ;;  %v1745_v4 = vunpack.c.l.s8.bf16 %v449_v0 }
 0x579   : > { %5892 = vmatprep.subr.bf16.mxu0 %v1663_v5  ;;  %6709 = vmatprep.subr.bf16.mxu1 %v1665_v6  ;;  %v446_v5 = vld [vmem:[%s9580_s25 + $0x2a0] sm:$0xff]  ;;  %v448_v6 = vld [vmem:[%s9580_s25 + $0x2b0] sm:$0xff] }
 0x57a   : > { %v1742_v7 = vunpack.c.l.s8.bf16 %v446_v5  ;;  %v1744_v8 = vunpack.c.l.s8.bf16 %v448_v6  ;;  %v1750_v13 = vunpack.c.h.s8.bf16 %v446_v5  ;;  %v1752_v14 = vunpack.c.h.s8.bf16 %v448_v6 }
 0x57c   : > { %5893 = vmatpush1.bf16.msra.mxu0 %v1662_v9  ;;  %6710 = vmatpush1.bf16.msra.mxu1 %v1664_v10  ;;  %v1751_v9 = vunpack.c.h.s8.bf16 %v447_v63  ;;  %v1753_v10 = vunpack.c.h.s8.bf16 %v449_v0 }
 0x57d   : > { %5894 = vmatprep.subr.bf16.mxu0 %v1671_v11  ;;  %6711 = vmatprep.subr.bf16.mxu1 %v1673_v12  ;;  %v455_v11 = vld [vmem:[%s9580_s25 + $0x2e8] sm:$0xff]  ;;  %v457_v12 = vld [vmem:[%s9580_s25 + $0x2f8] sm:$0xff] }
 0x580   : > { %5895 = vmatpush1.bf16.msra.mxu0 %v1670_v15  ;;  %6712 = vmatpush1.bf16.msra.mxu1 %v1672_v16  ;;  %v1759_v15 = vunpack.c.l.s8.bf16 %v455_v11  ;;  %v1761_v16 = vunpack.c.l.s8.bf16 %v457_v12 }
 0x581   : > { %5896 = vmatprep.subr.bf16.mxu0 %v1679_v17  ;;  %6713 = vmatprep.subr.bf16.mxu1 %v1681_v18  ;;  %v454_v17 = vld [vmem:[%s9580_s25 + $0x2e0] sm:$0xff]  ;;  %v456_v18 = vld [vmem:[%s9580_s25 + $0x2f0] sm:$0xff] }
 0x582   : > { %v1758_v19 = vunpack.c.l.s8.bf16 %v454_v17  ;;  %v1760_v20 = vunpack.c.l.s8.bf16 %v456_v18  ;;  %v1766_v25 = vunpack.c.h.s8.bf16 %v454_v17  ;;  %v1768_v26 = vunpack.c.h.s8.bf16 %v456_v18 }
 0x584   : > { %5897 = vmatpush1.bf16.msra.mxu0 %v1678_v21  ;;  %6714 = vmatpush1.bf16.msra.mxu1 %v1680_v22  ;;  %v1767_v21 = vunpack.c.h.s8.bf16 %v455_v11  ;;  %v1769_v22 = vunpack.c.h.s8.bf16 %v457_v12 }
 0x585   : > { %5898 = vmatprep.subr.bf16.mxu0 %v1687_v23  ;;  %6715 = vmatprep.subr.bf16.mxu1 %v1689_v24  ;;  %v463_v23 = vld [vmem:[%s9580_s25 + $0x328] sm:$0xff]  ;;  %v465_v24 = vld [vmem:[%s9580_s25 + $0x338] sm:$0xff] }
 0x588   : > { %5899 = vmatpush1.bf16.msra.mxu0 %v1686_v27  ;;  %6716 = vmatpush1.bf16.msra.mxu1 %v1688_v28  ;;  %v1775_v27 = vunpack.c.l.s8.bf16 %v463_v23  ;;  %v1777_v28 = vunpack.c.l.s8.bf16 %v465_v24 }
 0x589   : > { %5900 = vmatprep.subr.bf16.mxu0 %v1695_v29  ;;  %6717 = vmatprep.subr.bf16.mxu1 %v1697_v30  ;;  %v462_v29 = vld [vmem:[%s9580_s25 + $0x320] sm:$0xff]  ;;  %v464_v30 = vld [vmem:[%s9580_s25 + $0x330] sm:$0xff] }
 0x58a   : > { %v1774_v31 = vunpack.c.l.s8.bf16 %v462_v29  ;;  %v1776_v32 = vunpack.c.l.s8.bf16 %v464_v30  ;;  %v1782_v37 = vunpack.c.h.s8.bf16 %v462_v29  ;;  %v1784_v38 = vunpack.c.h.s8.bf16 %v464_v30 }
 0x58c   : > { %5901 = vmatpush1.bf16.msra.mxu0 %v1694_v33  ;;  %6718 = vmatpush1.bf16.msra.mxu1 %v1696_v34  ;;  %v1783_v33 = vunpack.c.h.s8.bf16 %v463_v23  ;;  %v1785_v34 = vunpack.c.h.s8.bf16 %v465_v24 }
 0x58d   : > { %5902 = vmatprep.subr.bf16.mxu0 %v1703_v35  ;;  %6719 = vmatprep.subr.bf16.mxu1 %v1705_v36  ;;  %v471_v35 = vld [vmem:[%s9580_s25 + $0x368] sm:$0xff]  ;;  %v473_v36 = vld [vmem:[%s9580_s25 + $0x378] sm:$0xff] }
 0x590   : > { %5903 = vmatpush1.bf16.msra.mxu0 %v1702_v39  ;;  %6720 = vmatpush1.bf16.msra.mxu1 %v1704_v40  ;;  %v1791_v39 = vunpack.c.l.s8.bf16 %v471_v35  ;;  %v1793_v40 = vunpack.c.l.s8.bf16 %v473_v36 }
 0x591   : > { %5915 = vmatprep.subr.bf16.mxu0 %v1711_v41  ;;  %6732 = vmatprep.subr.bf16.mxu1 %v1713_v42  ;;  %v470_v41 = vld [vmem:[%s9580_s25 + $0x360] sm:$0xff]  ;;  %v472_v42 = vld [vmem:[%s9580_s25 + $0x370] sm:$0xff] }
 0x592   : > { %v1790_v43 = vunpack.c.l.s8.bf16 %v470_v41  ;;  %v1792_v44 = vunpack.c.l.s8.bf16 %v472_v42  ;;  %v1798_v49 = vunpack.c.h.s8.bf16 %v470_v41  ;;  %v1800_v50 = vunpack.c.h.s8.bf16 %v472_v42 }
 0x593   : > { %5905 = vmatmul.mubr.bf16.vlgmr.msra.gmra.mrb[4].mxu0 %v9142_v51  ;;  %6722 = vmatmul.mubr.bf16.vlgmr.msra.gmra.mrb[4].mxu1 %v9142_v51 }
 0x594   : > { %5916 = vmatpush1.bf16.msra.mxu0 %v1710_v45  ;;  %6733 = vmatpush1.bf16.msra.mxu1 %v1712_v46  ;;  %v1799_v45 = vunpack.c.h.s8.bf16 %v471_v35  ;;  %v1801_v46 = vunpack.c.h.s8.bf16 %v473_v36 }
 0x595   : > { %5917 = vmatprep.subr.bf16.mxu0 %v1719_v47  ;;  %6734 = vmatprep.subr.bf16.mxu1 %v1721_v48  ;;  %v479_v47 = vld [vmem:[%s9580_s25 + $0x3a8] sm:$0xff]  ;;  %v481_v48 = vld [vmem:[%s9580_s25 + $0x3b8] sm:$0xff] }
 0x596   : > { %5947 = vmatprep.mubr.bf16.mxu0 %v9143_v58  ;;  %6764 = vmatprep.mubr.bf16.mxu1 %v9143_v58  ;;  %v1807_v51 = vunpack.c.l.s8.bf16 %v479_v47  ;;  %v1815_v57 = vunpack.c.h.s8.bf16 %v479_v47  ;;  %v1817_v58 = vunpack.c.h.s8.bf16 %v481_v48 }
 0x598   : > { %5918 = vmatpush1.bf16.msra.mxu0 %v1718_v52  ;;  %6735 = vmatpush1.bf16.msra.mxu1 %v1720_v53  ;;  %v1809_v52 = vunpack.c.l.s8.bf16 %v481_v48  ;;  %v478_v53 = vld [vmem:[%s9580_s25 + $0x3a0] sm:$0xff] }
 0x599   : > { %5919 = vmatprep.subr.bf16.mxu0 %v1727_v54  ;;  %6736 = vmatprep.subr.bf16.mxu1 %v1729_v55  ;;  %v480_v54 = vld [vmem:[%s9580_s25 + $0x3b0] sm:$0xff]  ;;  %v1806_v55 = vunpack.c.l.s8.bf16 %v478_v53 }
 0x59a   : > { %v1808_v56 = vunpack.c.l.s8.bf16 %v480_v54 }
 0x59c   : > { %5920 = vmatpush1.bf16.msra.mxu0 %v1726_v59  ;;  %6737 = vmatpush1.bf16.msra.mxu1 %v1728_v60  ;;  %v487_v59 = vld [vmem:[%s9580_s25 + $0x3e8] sm:$0xff]  ;;  %v489_v60 = vld [vmem:[%s9580_s25 + $0x3f8] sm:$0xff] }
 0x59d   : > { %5921 = vmatprep.subr.bf16.mxu0 %v1735_v61  ;;  %6738 = vmatprep.subr.bf16.mxu1 %v1737_v62  ;;  %v1814_v61 = vunpack.c.h.s8.bf16 %v478_v53  ;;  %v1816_v62 = vunpack.c.h.s8.bf16 %v480_v54  ;;  %v1823_v63 = vunpack.c.l.s8.bf16 %v487_v59  ;;  %v1825_v0 = vunpack.c.l.s8.bf16 %v489_v60 }
 0x59e   : > { %v1831_v5 = vunpack.c.h.s8.bf16 %v487_v59  ;;  %v1833_v6 = vunpack.c.h.s8.bf16 %v489_v60 }
 0x5a0   : > { %5922 = vmatpush1.bf16.msra.mxu0 %v1734_v1  ;;  %6739 = vmatpush1.bf16.msra.mxu1 %v1736_v2  ;;  %v486_v1 = vld [vmem:[%s9580_s25 + $0x3e0] sm:$0xff]  ;;  %v488_v2 = vld [vmem:[%s9580_s25 + $0x3f0] sm:$0xff] }
 0x5a1   : > { %5923 = vmatprep.subr.bf16.mxu0 %v1743_v3  ;;  %6740 = vmatprep.subr.bf16.mxu1 %v1745_v4  ;;  %v1822_v3 = vunpack.c.l.s8.bf16 %v486_v1  ;;  %v1824_v4 = vunpack.c.l.s8.bf16 %v488_v2 }
 0x5a4   : > { %5924 = vmatpush1.bf16.msra.mxu0 %v1742_v7  ;;  %6741 = vmatpush1.bf16.msra.mxu1 %v1744_v8  ;;  %v495_v7 = vld [vmem:[%s9580_s25 + $0x428] sm:$0xff]  ;;  %v497_v8 = vld [vmem:[%s9580_s25 + $0x438] sm:$0xff] }
 0x5a5   : > { %5925 = vmatprep.subr.bf16.mxu0 %v1751_v9  ;;  %6742 = vmatprep.subr.bf16.mxu1 %v1753_v10  ;;  %v1830_v9 = vunpack.c.h.s8.bf16 %v486_v1  ;;  %v1832_v10 = vunpack.c.h.s8.bf16 %v488_v2  ;;  %v1839_v11 = vunpack.c.l.s8.bf16 %v495_v7  ;;  %v1841_v12 = vunpack.c.l.s8.bf16 %v497_v8 }
 0x5a6   : > { %v1847_v17 = vunpack.c.h.s8.bf16 %v495_v7  ;;  %v1849_v18 = vunpack.c.h.s8.bf16 %v497_v8 }
 0x5a8   : > { %5926 = vmatpush1.bf16.msra.mxu0 %v1750_v13  ;;  %6743 = vmatpush1.bf16.msra.mxu1 %v1752_v14  ;;  %v494_v13 = vld [vmem:[%s9580_s25 + $0x420] sm:$0xff]  ;;  %v496_v14 = vld [vmem:[%s9580_s25 + $0x430] sm:$0xff] }
 0x5a9   : > { %5927 = vmatprep.subr.bf16.mxu0 %v1759_v15  ;;  %6744 = vmatprep.subr.bf16.mxu1 %v1761_v16  ;;  %v1838_v15 = vunpack.c.l.s8.bf16 %v494_v13  ;;  %v1840_v16 = vunpack.c.l.s8.bf16 %v496_v14  ;;  %v1848_v23 = vunpack.c.h.s8.bf16 %v496_v14 }
 0x5ac   : > { %5928 = vmatpush1.bf16.msra.mxu0 %v1758_v19  ;;  %6745 = vmatpush1.bf16.msra.mxu1 %v1760_v20  ;;  %v503_v19 = vld [vmem:[%s9580_s25 + $0x468] sm:$0xff]  ;;  %v505_v20 = vld [vmem:[%s9580_s25 + $0x478] sm:$0xff] }
 0x5ad   : > { %5929 = vmatprep.subr.bf16.mxu0 %v1767_v21  ;;  %6746 = vmatprep.subr.bf16.mxu1 %v1769_v22  ;;  %v9144_v21 = vld [vmem:[%s11165_s0 + $0x8] ss:$152 sps:$4 sm:$0xff]   ;;  %v1846_v22 = vunpack.c.h.s8.bf16 %v494_v13  ;;  %v1855_v24 = vunpack.c.l.s8.bf16 %v503_v19 }
 0x5b0   : > { %5930 = vmatpush1.bf16.msra.mxu0 %v1766_v25  ;;  %6747 = vmatpush1.bf16.msra.mxu1 %v1768_v26  ;;  %v1857_v25 = vunpack.c.l.s8.bf16 %v505_v20  ;;  %v502_v26 = vld [vmem:[%s9580_s25 + $0x460] sm:$0xff] }
 0x5b1   : > { %5931 = vmatprep.subr.bf16.mxu0 %v1775_v27  ;;  %6748 = vmatprep.subr.bf16.mxu1 %v1777_v28  ;;  %v504_v27 = vld [vmem:[%s9580_s25 + $0x470] sm:$0xff]  ;;  %v1854_v29 = vunpack.c.l.s8.bf16 %v502_v26  ;;  %v1862_v35 = vunpack.c.h.s8.bf16 %v502_v26 }
 0x5b2   : > { %v9145_v28 = vld [vmem:[%s11165_s0 + $0x14] ss:$152 sps:$4 sm:$0xff]   ;;  %v1856_v30 = vunpack.c.l.s8.bf16 %v504_v27  ;;  %v1864_v36 = vunpack.c.h.s8.bf16 %v504_v27 }
 0x5b4   : > { %5932 = vmatpush1.bf16.msra.mxu0 %v1774_v31  ;;  %6749 = vmatpush1.bf16.msra.mxu1 %v1776_v32  ;;  %v1863_v31 = vunpack.c.h.s8.bf16 %v503_v19  ;;  %v1865_v32 = vunpack.c.h.s8.bf16 %v505_v20 }
 0x5b5   : > { %5933 = vmatprep.subr.bf16.mxu0 %v1783_v33  ;;  %6750 = vmatprep.subr.bf16.mxu1 %v1785_v34  ;;  %v511_v33 = vld [vmem:[%s9580_s25 + $0x4a8] sm:$0xff]  ;;  %v513_v34 = vld [vmem:[%s9580_s25 + $0x4b8] sm:$0xff] }
 0x5b8   : > { %5934 = vmatpush1.bf16.msra.mxu0 %v1782_v37  ;;  %6751 = vmatpush1.bf16.msra.mxu1 %v1784_v38  ;;  %v1871_v37 = vunpack.c.l.s8.bf16 %v511_v33  ;;  %v1873_v38 = vunpack.c.l.s8.bf16 %v513_v34 }
 0x5b9   : > { %5935 = vmatprep.subr.bf16.mxu0 %v1791_v39  ;;  %6752 = vmatprep.subr.bf16.mxu1 %v1793_v40  ;;  %v510_v39 = vld [vmem:[%s9580_s25 + $0x4a0] sm:$0xff]  ;;  %v512_v40 = vld [vmem:[%s9580_s25 + $0x4b0] sm:$0xff] }
 0x5ba   : > { %v1870_v41 = vunpack.c.l.s8.bf16 %v510_v39  ;;  %v1872_v42 = vunpack.c.l.s8.bf16 %v512_v40  ;;  %v1878_v47 = vunpack.c.h.s8.bf16 %v510_v39  ;;  %v1880_v48 = vunpack.c.h.s8.bf16 %v512_v40 }
 0x5bc   : > { %5936 = vmatpush1.bf16.msra.mxu0 %v1790_v43  ;;  %6753 = vmatpush1.bf16.msra.mxu1 %v1792_v44  ;;  %v1879_v43 = vunpack.c.h.s8.bf16 %v511_v33  ;;  %v1881_v44 = vunpack.c.h.s8.bf16 %v513_v34 }
 0x5bd   : > { %5937 = vmatprep.subr.bf16.mxu0 %v1799_v45  ;;  %6754 = vmatprep.subr.bf16.mxu1 %v1801_v46  ;;  %v519_v45 = vld [vmem:[%s9580_s25 + $0x4e8] sm:$0xff]  ;;  %v521_v46 = vld [vmem:[%s9580_s25 + $0x4f8] sm:$0xff] }
 0x5c0   : > { %5938 = vmatpush1.bf16.msra.mxu0 %v1798_v49  ;;  %6755 = vmatpush1.bf16.msra.mxu1 %v1800_v50  ;;  %v1887_v49 = vunpack.c.l.s8.bf16 %v519_v45  ;;  %v1889_v50 = vunpack.c.l.s8.bf16 %v521_v46 }
 0x5c1   : > { %5939 = vmatprep.subr.bf16.mxu0 %v1807_v51  ;;  %6756 = vmatprep.subr.bf16.mxu1 %v1809_v52  ;;  %v518_v51 = vld [vmem:[%s9580_s25 + $0x4e0] sm:$0xff]  ;;  %v520_v52 = vld [vmem:[%s9580_s25 + $0x4f0] sm:$0xff] }
 0x5c2   : > { %v1886_v53 = vunpack.c.l.s8.bf16 %v518_v51  ;;  %v1888_v54 = vunpack.c.l.s8.bf16 %v520_v52  ;;  %v1894_v59 = vunpack.c.h.s8.bf16 %v518_v51  ;;  %v1896_v60 = vunpack.c.h.s8.bf16 %v520_v52 }
 0x5c4   : > { %5940 = vmatpush1.bf16.msra.mxu0 %v1806_v55  ;;  %6757 = vmatpush1.bf16.msra.mxu1 %v1808_v56  ;;  %v1895_v55 = vunpack.c.h.s8.bf16 %v519_v45  ;;  %v1897_v56 = vunpack.c.h.s8.bf16 %v521_v46 }
 0x5c5   : > { %5941 = vmatprep.subr.bf16.mxu0 %v1815_v57  ;;  %6758 = vmatprep.subr.bf16.mxu1 %v1817_v58  ;;  %v527_v57 = vld [vmem:[%s9580_s25 + $0x528] sm:$0xff]  ;;  %v529_v58 = vld [vmem:[%s9580_s25 + $0x538] sm:$0xff] }
 0x5c8   : > { %5942 = vmatpush1.bf16.msra.mxu0 %v1814_v61  ;;  %6759 = vmatpush1.bf16.msra.mxu1 %v1816_v62  ;;  %v1903_v61 = vunpack.c.l.s8.bf16 %v527_v57  ;;  %v1905_v62 = vunpack.c.l.s8.bf16 %v529_v58 }
 0x5c9   : > { %5943 = vmatprep.subr.bf16.mxu0 %v1823_v63  ;;  %6760 = vmatprep.subr.bf16.mxu1 %v1825_v0  ;;  %v526_v63 = vld [vmem:[%s9580_s25 + $0x520] sm:$0xff]  ;;  %v528_v0 = vld [vmem:[%s9580_s25 + $0x530] sm:$0xff] }
 0x5ca   : > { %v1902_v1 = vunpack.c.l.s8.bf16 %v526_v63  ;;  %v1904_v2 = vunpack.c.l.s8.bf16 %v528_v0  ;;  %v1910_v7 = vunpack.c.h.s8.bf16 %v526_v63  ;;  %v1912_v8 = vunpack.c.h.s8.bf16 %v528_v0 }
 0x5cb   : > { %v7508_v63 = vlaneseq }
 0x5cc   : > { %5944 = vmatpush1.bf16.msra.mxu0 %v1822_v3  ;;  %6761 = vmatpush1.bf16.msra.mxu1 %v1824_v4  ;;  %v1911_v3 = vunpack.c.h.s8.bf16 %v527_v57  ;;  %v1913_v4 = vunpack.c.h.s8.bf16 %v529_v58 }
 0x5cd   : > { %5945 = vmatprep.subr.bf16.mxu0 %v1831_v5  ;;  %6762 = vmatprep.subr.bf16.mxu1 %v1833_v6  ;;  %v535_v5 = vld [vmem:[%s9580_s25 + $0x568] sm:$0xff]  ;;  %v537_v6 = vld [vmem:[%s9580_s25 + $0x578] sm:$0xff] }
 0x5d0   : > { %5946 = vmatpush1.bf16.msra.mxu0 %v1830_v9  ;;  %6763 = vmatpush1.bf16.msra.mxu1 %v1832_v10  ;;  %v1919_v9 = vunpack.c.l.s8.bf16 %v535_v5  ;;  %v1921_v10 = vunpack.c.l.s8.bf16 %v537_v6 }
 0x5d1   : > { %5958 = vmatprep.subr.bf16.mxu0 %v1839_v11  ;;  %6775 = vmatprep.subr.bf16.mxu1 %v1841_v12  ;;  %v534_v11 = vld [vmem:[%s9580_s25 + $0x560] sm:$0xff]  ;;  %v536_v12 = vld [vmem:[%s9580_s25 + $0x570] sm:$0xff] }
 0x5d2   : > { %v1918_v13 = vunpack.c.l.s8.bf16 %v534_v11  ;;  %v1920_v14 = vunpack.c.l.s8.bf16 %v536_v12  ;;  %v1926_v19 = vunpack.c.h.s8.bf16 %v534_v11  ;;  %v1928_v20 = vunpack.c.h.s8.bf16 %v536_v12  ;;  %v574_v11 = vld [vmem:[%s9580_s25 + $0x6a0] sm:$0xff]  ;;  %v576_v12 = vld [vmem:[%s9580_s25 + $0x6b0] sm:$0xff] }
 0x5d3   : > { %5948 = vmatmul.mubr.bf16.vlgmr.msra.gmra.mrb[4].mxu0 %v9144_v21  ;;  %6765 = vmatmul.mubr.bf16.vlgmr.msra.gmra.mrb[4].mxu1 %v9144_v21 }
 0x5d4   : > { %5959 = vmatpush1.bf16.msra.mxu0 %v1838_v15  ;;  %6776 = vmatpush1.bf16.msra.mxu1 %v1840_v16  ;;  %v1927_v15 = vunpack.c.h.s8.bf16 %v535_v5  ;;  %v1929_v16 = vunpack.c.h.s8.bf16 %v537_v6  ;;  %v577_v5 = vld [vmem:[%s9580_s25 + $0x6b8] sm:$0xff]  ;;  %v10450_v6 = vshrl.u32 %v7508_v63, 7 }
 0x5d5   : > { %5960 = vmatprep.subr.bf16.mxu0 %v1847_v17  ;;  %6777 = vmatprep.subr.bf16.mxu1 %v1849_v18  ;;  %v543_v17 = vld [vmem:[%s9580_s25 + $0x5a8] sm:$0xff]  ;;  %v545_v18 = vld [vmem:[%s9580_s25 + $0x5b8] sm:$0xff] }
 0x5d6   : > { %5990 = vmatprep.mubr.bf16.mxu0 %v9145_v28  ;;  %6807 = vmatprep.mubr.bf16.mxu1 %v9145_v28  ;;  %v1935_v21 = vunpack.c.l.s8.bf16 %v543_v17  ;;  %v1943_v27 = vunpack.c.h.s8.bf16 %v543_v17  ;;  %v1945_v28 = vunpack.c.h.s8.bf16 %v545_v18  ;;  %v7506_v17 = vld [vmem:[%s9587_s11] sm:$0xff] }
 0x5d8   : > { %5961 = vmatpush1.bf16.msra.mxu0 %v1846_v22  ;;  %6778 = vmatpush1.bf16.msra.mxu1 %v1848_v23  ;;  %v1937_v22 = vunpack.c.l.s8.bf16 %v545_v18  ;;  %v542_v23 = vld [vmem:[%s9580_s25 + $0x5a0] sm:$0xff]  ;;  %v7514_v18 = vsub.s32 1, %v10450_v6 }
 0x5d9   : > { %5962 = vmatprep.subr.bf16.mxu0 %v1855_v24  ;;  %6779 = vmatprep.subr.bf16.mxu1 %v1857_v25  ;;  %v544_v24 = vld [vmem:[%s9580_s25 + $0x5b0] sm:$0xff]  ;;  %v1934_v25 = vunpack.c.l.s8.bf16 %v542_v23 }
 0x5da   : > { %v1936_v26 = vunpack.c.l.s8.bf16 %v544_v24 }
 0x5dc   : > { %5963 = vmatpush1.bf16.msra.mxu0 %v1854_v29  ;;  %6780 = vmatpush1.bf16.msra.mxu1 %v1856_v30  ;;  %v551_v29 = vld [vmem:[%s9580_s25 + $0x5e8] sm:$0xff]  ;;  %v553_v30 = vld [vmem:[%s9580_s25 + $0x5f8] sm:$0xff] }
 0x5dd   : > { %5964 = vmatprep.subr.bf16.mxu0 %v1863_v31  ;;  %6781 = vmatprep.subr.bf16.mxu1 %v1865_v32  ;;  %v1942_v31 = vunpack.c.h.s8.bf16 %v542_v23  ;;  %v1944_v32 = vunpack.c.h.s8.bf16 %v544_v24  ;;  %v1951_v33 = vunpack.c.l.s8.bf16 %v551_v29  ;;  %v1953_v34 = vunpack.c.l.s8.bf16 %v553_v30  ;;  %v10461_v23 = vld [vmem:[%s9580_s25 + $0x6e8] sm:$0xff] }
 0x5de   : > { %v1959_v39 = vunpack.c.h.s8.bf16 %v551_v29  ;;  %v1961_v40 = vunpack.c.h.s8.bf16 %v553_v30  ;;  %v2006_v29 = vunpack.c.h.s8.bf16 %v574_v11  ;;  %v2008_v30 = vunpack.c.h.s8.bf16 %v576_v12 }
 0x5e0   : > { %5965 = vmatpush1.bf16.msra.mxu0 %v1862_v35  ;;  %6782 = vmatpush1.bf16.msra.mxu1 %v1864_v36  ;;  %v550_v35 = vld [vmem:[%s9580_s25 + $0x5e0] sm:$0xff]  ;;  %v552_v36 = vld [vmem:[%s9580_s25 + $0x5f0] sm:$0xff] }
 0x5e1   : > { %5966 = vmatprep.subr.bf16.mxu0 %v1871_v37  ;;  %6783 = vmatprep.subr.bf16.mxu1 %v1873_v38  ;;  %v1950_v37 = vunpack.c.l.s8.bf16 %v550_v35  ;;  %v1952_v38 = vunpack.c.l.s8.bf16 %v552_v36 }
 0x5e4   : > { %5967 = vmatpush1.bf16.msra.mxu0 %v1870_v41  ;;  %6784 = vmatpush1.bf16.msra.mxu1 %v1872_v42  ;;  %v559_v41 = vld [vmem:[%s9580_s25 + $0x628] sm:$0xff]  ;;  %v561_v42 = vld [vmem:[%s9580_s25 + $0x638] sm:$0xff] }
 0x5e5   : > { %5968 = vmatprep.subr.bf16.mxu0 %v1879_v43  ;;  %6785 = vmatprep.subr.bf16.mxu1 %v1881_v44  ;;  %v1958_v43 = vunpack.c.h.s8.bf16 %v550_v35  ;;  %v1960_v44 = vunpack.c.h.s8.bf16 %v552_v36  ;;  %v1967_v45 = vunpack.c.l.s8.bf16 %v559_v41  ;;  %v1969_v46 = vunpack.c.l.s8.bf16 %v561_v42 }
 0x5e6   : > { %v1975_v51 = vunpack.c.h.s8.bf16 %v559_v41  ;;  %v1977_v52 = vunpack.c.h.s8.bf16 %v561_v42  ;;  %v2015_v35 = vunpack.c.l.s8.bf16 %v10461_v23 }
 0x5e8   : > { %5969 = vmatpush1.bf16.msra.mxu0 %v1878_v47  ;;  %6786 = vmatpush1.bf16.msra.mxu1 %v1880_v48  ;;  %v558_v47 = vld [vmem:[%s9580_s25 + $0x620] sm:$0xff]  ;;  %v560_v48 = vld [vmem:[%s9580_s25 + $0x630] sm:$0xff] }
 0x5e9   : > { %5970 = vmatprep.subr.bf16.mxu0 %v1887_v49  ;;  %6787 = vmatprep.subr.bf16.mxu1 %v1889_v50  ;;  %v1966_v49 = vunpack.c.l.s8.bf16 %v558_v47  ;;  %v1968_v50 = vunpack.c.l.s8.bf16 %v560_v48  ;;  %v1976_v57 = vunpack.c.h.s8.bf16 %v560_v48 }
 0x5ec   : > { %5971 = vmatpush1.bf16.msra.mxu0 %v1886_v53  ;;  %6788 = vmatpush1.bf16.msra.mxu1 %v1888_v54  ;;  %v567_v53 = vld [vmem:[%s9580_s25 + $0x668] sm:$0xff]  ;;  %v569_v54 = vld [vmem:[%s9580_s25 + $0x678] sm:$0xff] }
 0x5ed   : > { %5972 = vmatprep.subr.bf16.mxu0 %v1895_v55  ;;  %6789 = vmatprep.subr.bf16.mxu1 %v1897_v56  ;;  %v9146_v55 = vld [vmem:[%s11165_s0 + $0x10] ss:$152 sps:$4 sm:$0xff]   ;;  %v1974_v56 = vunpack.c.h.s8.bf16 %v558_v47  ;;  %v1983_v58 = vunpack.c.l.s8.bf16 %v567_v53 }
 0x5f0   : > { %5973 = vmatpush1.bf16.msra.mxu0 %v1894_v59  ;;  %6790 = vmatpush1.bf16.msra.mxu1 %v1896_v60  ;;  %v1985_v59 = vunpack.c.l.s8.bf16 %v569_v54  ;;  %v566_v60 = vld [vmem:[%s9580_s25 + $0x660] sm:$0xff] }
 0x5f1   : > { %5974 = vmatprep.subr.bf16.mxu0 %v1903_v61  ;;  %6791 = vmatprep.subr.bf16.mxu1 %v1905_v62  ;;  %v568_v61 = vld [vmem:[%s9580_s25 + $0x670] sm:$0xff]  ;;  %v1982_v0 = vunpack.c.l.s8.bf16 %v566_v60 }
 0x5f2   : > { %v9147_v62 = vld [vmem:[%s11165_s0 + $0x1c] ss:$152 sps:$4 sm:$0xff]  }
 0x5f4   : > { %5975 = vmatpush1.bf16.msra.mxu0 %v1902_v1  ;;  %6792 = vmatpush1.bf16.msra.mxu1 %v1904_v2  ;;  %v1984_v1 = vunpack.c.l.s8.bf16 %v568_v61  ;;  %v1991_v2 = vunpack.c.h.s8.bf16 %v567_v53 }
 0x5f5   : > { %5976 = vmatprep.subr.bf16.mxu0 %v1911_v3  ;;  %6793 = vmatprep.subr.bf16.mxu1 %v1913_v4  ;;  %v1993_v3 = vunpack.c.h.s8.bf16 %v569_v54  ;;  %v575_v4 = vld [vmem:[%s9580_s25 + $0x6a8] sm:$0xff] }
 0x5f8   : > { %5977 = vmatpush1.bf16.msra.mxu0 %v1910_v7  ;;  %6794 = vmatpush1.bf16.msra.mxu1 %v1912_v8  ;;  %v1990_v7 = vunpack.c.h.s8.bf16 %v566_v60  ;;  %v1992_v8 = vunpack.c.h.s8.bf16 %v568_v61  ;;  %v593_v60 = vld [vmem:[%s9580_s25 + $0x738] sm:$0xff] }
 0x5f9   : > { %5978 = vmatprep.subr.bf16.mxu0 %v1919_v9  ;;  %6795 = vmatprep.subr.bf16.mxu1 %v1921_v10  ;;  %v1999_v9 = vunpack.c.l.s8.bf16 %v575_v4  ;;  %v2001_v10 = vunpack.c.l.s8.bf16 %v577_v5 }
 0x5fc   : > { %5979 = vmatpush1.bf16.msra.mxu0 %v1918_v13  ;;  %6796 = vmatpush1.bf16.msra.mxu1 %v1920_v14  ;;  %v7510_v13 = vsub.s32 0, %v10450_v6  ;;  %v7518_v14 = vsub.s32 2, %v10450_v6 }
 0x5fd   : > { %5980 = vmatprep.subr.bf16.mxu0 %v1927_v15  ;;  %6797 = vmatprep.subr.bf16.mxu1 %v1929_v16  ;;  %v1998_v15 = vunpack.c.l.s8.bf16 %v574_v11  ;;  %v2000_v16 = vunpack.c.l.s8.bf16 %v576_v12 }
 0x5fe   : > { %v7511_v24 = vrot.slane %v7506_v17, %v7510_v13 }
 0x600   : > { %5981 = vmatpush1.bf16.msra.mxu0 %v1926_v19  ;;  %6798 = vmatpush1.bf16.msra.mxu1 %v1928_v20  ;;  %v7522_v19 = vsub.s32 3, %v10450_v6  ;;  %v2007_v20 = vunpack.c.h.s8.bf16 %v575_v4 }
 0x601   : > { %5982 = vmatprep.subr.bf16.mxu0 %v1935_v21  ;;  %6799 = vmatprep.subr.bf16.mxu1 %v1937_v22  ;;  %v2009_v21 = vunpack.c.h.s8.bf16 %v577_v5  ;;  %v7564_v22 = vld [vmem:[%s9593_s9] sm:$0xff] }
 0x604   : > { %5983 = vmatpush1.bf16.msra.mxu0 %v1934_v25  ;;  %6800 = vmatpush1.bf16.msra.mxu1 %v1936_v26  ;;  %v7519_v25 = vrot.slane %v7506_v17, %v7518_v14  ;;  %v585_v26 = vld [vmem:[%s9580_s25 + $0x6f8] sm:$0xff] }
 0x605   : > { %5984 = vmatprep.subr.bf16.mxu0 %v1943_v27  ;;  %6801 = vmatprep.subr.bf16.mxu1 %v1945_v28  ;;  %v7515_v27 = vrot.slane %v7506_v17, %v7514_v18  ;;  %v7523_v28 = vrot.slane %v7506_v17, %v7522_v19 }
 0x608   : > { %5985 = vmatpush1.bf16.msra.mxu0 %v1942_v31  ;;  %6802 = vmatpush1.bf16.msra.mxu1 %v1944_v32  ;;  %v10465_v31 = vld [vmem:[%s9580_s25 + $0x6e0] sm:$0xff]  ;;  %v10468_v32 = vld [vmem:[%s9580_s25 + $0x6f0] sm:$0xff] }
 0x609   : > { %5986 = vmatprep.subr.bf16.mxu0 %v1951_v33  ;;  %6803 = vmatprep.subr.bf16.mxu1 %v1953_v34  ;;  %v7569_v33 = vrot.slane %v7564_v22, %v7510_v13  ;;  %v7577_v34 = vrot.slane %v7564_v22, %v7518_v14  ;;  %v2024_v4 = vunpack.c.h.s8.bf16 %v10468_v32  ;;  %v590_v14 = vld [vmem:[%s9580_s25 + $0x720] sm:$0xff] }
 0x60c   : > { %5987 = vmatpush1.bf16.msra.mxu0 %v1950_v37  ;;  %6804 = vmatpush1.bf16.msra.mxu1 %v1952_v38  ;;  %v7573_v38 = vrot.slane %v7564_v22, %v7514_v18 }
 0x60d   : > { %5988 = vmatprep.subr.bf16.mxu0 %v1959_v39  ;;  %6805 = vmatprep.subr.bf16.mxu1 %v1961_v40  ;;  %v7581_v39 = vrot.slane %v7564_v22, %v7522_v19  ;;  %v2017_v40 = vunpack.c.l.s8.bf16 %v585_v26  ;;  %v2030_v22 = vunpack.c.l.s8.bf16 %v590_v14 }
 0x610   : > { %5989 = vmatpush1.bf16.msra.mxu0 %v1958_v43  ;;  %6806 = vmatpush1.bf16.msra.mxu1 %v1960_v44 }
 0x611   : > { %6001 = vmatprep.subr.bf16.mxu0 %v1967_v45  ;;  %6818 = vmatprep.subr.bf16.mxu1 %v1969_v46  ;;  %v2014_v45 = vunpack.c.l.s8.bf16 %v10465_v31  ;;  %v2016_v46 = vunpack.c.l.s8.bf16 %v10468_v32 }
 0x613   : > { %5991 = vmatmul.mubr.bf16.vlgmr.msra.gmra.mrb[4].mxu0 %v9146_v55  ;;  %6808 = vmatmul.mubr.bf16.vlgmr.msra.gmra.mrb[4].mxu1 %v9146_v55 }
 0x614   : > { %6002 = vmatpush1.bf16.msra.mxu0 %v1966_v49  ;;  %6819 = vmatpush1.bf16.msra.mxu1 %v1968_v50 }
 0x615   : > { %6003 = vmatprep.subr.bf16.mxu0 %v1975_v51  ;;  %6820 = vmatprep.subr.bf16.mxu1 %v1977_v52  ;;  %v2023_v51 = vunpack.c.h.s8.bf16 %v10461_v23  ;;  %v2025_v52 = vunpack.c.h.s8.bf16 %v585_v26 }
 0x616   : > { %6033 = vmatprep.mubr.bf16.mxu0 %v9147_v62  ;;  %6850 = vmatprep.mubr.bf16.mxu1 %v9147_v62 }
 0x618   : > { %6004 = vmatpush1.bf16.msra.mxu0 %v1974_v56  ;;  %6821 = vmatpush1.bf16.msra.mxu1 %v1976_v57 }
 0x619   : > { %6005 = vmatprep.subr.bf16.mxu0 %v1983_v58  ;;  %6822 = vmatprep.subr.bf16.mxu1 %v1985_v59  ;;  %v591_v59 = vld [vmem:[%s9580_s25 + $0x728] sm:$0xff] }
 0x61a   : > { %v2039_v26 = vunpack.c.h.s8.bf16 %v591_v59 }
 0x61c   : > { %6006 = vmatpush1.bf16.msra.mxu0 %v1982_v0  ;;  %6823 = vmatpush1.bf16.msra.mxu1 %v1984_v1 }
 0x61d   : > { %6007 = vmatprep.subr.bf16.mxu0 %v1991_v2  ;;  %6824 = vmatprep.subr.bf16.mxu1 %v1993_v3  ;;  %v2022_v3 = vunpack.c.h.s8.bf16 %v10465_v31 }
 0x620   : > { %6008 = vmatpush1.bf16.msra.mxu0 %v1990_v7  ;;  %6825 = vmatpush1.bf16.msra.mxu1 %v1992_v8  ;;  %v2031_v8 = vunpack.c.l.s8.bf16 %v591_v59  ;;  %v616_v59 = vld [vmem:[%s9580_s25 + $0x7f0] sm:$0xff] }
 0x621   : > { %6009 = vmatprep.subr.bf16.mxu0 %v1999_v9  ;;  %6826 = vmatprep.subr.bf16.mxu1 %v2001_v10  ;;  %v2033_v9 = vunpack.c.l.s8.bf16 %v593_v60 }
 0x624   : > { %6010 = vmatpush1.bf16.msra.mxu0 %v1998_v15  ;;  %6827 = vmatpush1.bf16.msra.mxu1 %v2000_v16  ;;  %v592_v15 = vld [vmem:[%s9580_s25 + $0x730] sm:$0xff] }
 0x625   : > { %6011 = vmatprep.subr.bf16.mxu0 %v2007_v20  ;;  %6828 = vmatprep.subr.bf16.mxu1 %v2009_v21  ;;  %v2032_v23 = vunpack.c.l.s8.bf16 %v592_v15  ;;  %v2040_v31 = vunpack.c.h.s8.bf16 %v592_v15  ;;  %v9148_v15 = vld [vmem:[%s11165_s0 + $0x18] ss:$152 sps:$4 sm:$0xff]  }
 0x626   : > { %v5046_v36 = vpop.f32.mrb[0].mxu0  ;;  %v5863_v37 = vpop.f32.mrb[0].mxu1 }
 0x627   : > { %v7548_v41 = vmul.f32 %v7511_v24, %v5046_v36  ;;  %v7550_v42 = vmul.f32 %v7519_v25, %v5863_v37  ;;  %v5048_v43 = vpop.f32.mrb[1].mxu0  ;;  %v5865_v44 = vpop.f32.mrb[1].mxu1 }
 0x628   : > { %v7549_v47 = vmul.f32 %v7515_v27, %v5048_v43  ;;  %v7551_v48 = vmul.f32 %v7523_v28, %v5865_v44  ;;  %v5050_v49 = vpop.f32.mrb[2].mxu0  ;;  %v5867_v50 = vpop.f32.mrb[2].mxu1  ;;  %6012 = vmatpush1.bf16.msra.mxu0 %v2006_v29  ;;  %6829 = vmatpush1.bf16.msra.mxu1 %v2008_v30  ;;  %v601_v29 = vld [vmem:[%s9580_s25 + $0x778] sm:$0xff]  ;;  %v2038_v30 = vunpack.c.h.s8.bf16 %v590_v14 }
 0x629   : > { %v7606_v53 = vadd.f32 %v7569_v33, %v7548_v41  ;;  %v7608_v54 = vadd.f32 %v7577_v34, %v7550_v42  ;;  %v7556_v55 = vmul.f32 %v7511_v24, %v5050_v49  ;;  %v7558_v56 = vmul.f32 %v7519_v25, %v5867_v50  ;;  %v5052_v57 = vpop.f32.mrb[3].mxu0  ;;  %v5869_v58 = vpop.f32.mrb[3].mxu1  ;;  %6013 = vmatprep.subr.bf16.mxu0 %v2015_v35  ;;  %v600_v35 = vld [vmem:[%s9580_s25 + $0x770] sm:$0xff]  ;;  %v609_v41 = vld [vmem:[%s9580_s25 + $0x7b8] sm:$0xff] }
 0x62a   : > { %v7607_v61 = vadd.f32 %v7573_v38, %v7549_v47  ;;  %v7609_v62 = vadd.f32 %v7581_v39, %v7551_v48  ;;  %v7557_v63 = vmul.f32 %v7515_v27, %v5052_v57  ;;  %v7559_v0 = vmul.f32 %v7523_v28, %v5869_v58  ;;  %6830 = vmatprep.subr.bf16.mxu1 %v2017_v40  ;;  %v599_v28 = vld [vmem:[%s9580_s25 + $0x768] sm:$0xff]  ;;  %v608_v47 = vld [vmem:[%s9580_s25 + $0x7b0] sm:$0xff]  ;;  %v614_v58 = vld [vmem:[%s9580_s25 + $0x7e0] sm:$0xff] }
 0x62b   : > { %v7614_v1 = vadd.f32 %v7569_v33, %v7556_v55  ;;  %v7616_v2 = vadd.f32 %v7577_v34, %v7558_v56  ;;  %v7622_v10 = vmax.f32 %v7606_v53, 0.0  ;;  %v7624_v11 = vmax.f32 %v7608_v54, 0.0  ;;  %v598_v34 = vld [vmem:[%s9580_s25 + $0x760] sm:$0xff]  ;;  %v607_v40 = vld [vmem:[%s9580_s25 + $0x7a8] sm:$0xff]  ;;  %v617_v53 = vld [vmem:[%s9580_s25 + $0x7f8] sm:$0xff] }
 0x62c   : > { %v7615_v5 = vadd.f32 %v7573_v38, %v7557_v63  ;;  %v7617_v7 = vadd.f32 %v7581_v39, %v7559_v0  ;;  %6014 = vmatpush1.bf16.msra.mxu0 %v2014_v45  ;;  %6831 = vmatpush1.bf16.msra.mxu1 %v2016_v46  ;;  %v7623_v16 = vmax.f32 %v7607_v61, 0.0  ;;  %v7625_v17 = vmax.f32 %v7609_v62, 0.0  ;;  %v606_v46 = vld [vmem:[%s9580_s25 + $0x7a0] sm:$0xff]  ;;  %v623_v0 = vld [vmem:[%s9580_s25 + $0x828] sm:$0xff]  ;;  %v633_v14 = vld [vmem:[%s9580_s25 + $0x878] sm:$0xff] }
 0x62d   : > { %v7630_v12 = vmax.f32 %v7614_v1, 0.0  ;;  %v7632_v13 = vmax.f32 %v7616_v2, 0.0  ;;  %6015 = vmatprep.subr.bf16.mxu0 %v2023_v51  ;;  %6832 = vmatprep.subr.bf16.mxu1 %v2025_v52  ;;  %v2041_v27 = vunpack.c.h.s8.bf16 %v593_v60  ;;  %v2047_v32 = vunpack.c.l.s8.bf16 %v599_v28  ;;  %v615_v52 = vld [vmem:[%s9580_s25 + $0x7e8] sm:$0xff]  ;;  %v625_v1 = vld [vmem:[%s9580_s25 + $0x838] sm:$0xff] }
 0x62e   : > { %v7631_v18 = vmax.f32 %v7615_v5, 0.0  ;;  %v7633_v19 = vmax.f32 %v7617_v7, 0.0  ;;  %v2049_v33 = vunpack.c.l.s8.bf16 %v601_v29  ;;  %v2046_v36 = vunpack.c.l.s8.bf16 %v598_v34  ;;  %v622_v7 = vld [vmem:[%s9580_s25 + $0x820] sm:$0xff] }
 0x62f   : > { %v10480_v20 = vpack.c.bf16 %v7630_v12, %v7622_v10  ;;  %v10482_v21 = vpack.c.bf16 %v7632_v13, %v7624_v11  ;;  %v2048_v37 = vunpack.c.l.s8.bf16 %v600_v35  ;;  %v2055_v38 = vunpack.c.h.s8.bf16 %v599_v28  ;;  %v631_v13 = vld [vmem:[%s9580_s25 + $0x868] sm:$0xff] }
 0x630   : > { %6016 = vmatpush1.bf16.msra.mxu0 %v2022_v3  ;;  %6833 = vmatpush1.bf16.msra.mxu1 %v2024_v4  ;;  %v10484_v24 = vpack.c.bf16 %v7631_v18, %v7623_v16  ;;  %v10486_v25 = vpack.c.bf16 %v7633_v19, %v7625_v17  ;;  %v2057_v39 = vunpack.c.h.s8.bf16 %v601_v29  ;;  %v2054_v42 = vunpack.c.h.s8.bf16 %v598_v34 }
 0x631   : > { %6017 = vmatprep.subr.bf16.mxu0 %v2031_v8  ;;  %6834 = vmatprep.subr.bf16.mxu1 %v2033_v9  ;;  %v2056_v43 = vunpack.c.h.s8.bf16 %v600_v35  ;;  %v2063_v44 = vunpack.c.l.s8.bf16 %v607_v40  ;;  %v2065_v45 = vunpack.c.l.s8.bf16 %v609_v41  ;;  %v2062_v48 = vunpack.c.l.s8.bf16 %v606_v46  ;;  %v624_v8 = vld [vmem:[%s9580_s25 + $0x830] sm:$0xff] }
 0x632   : > { %v2064_v49 = vunpack.c.l.s8.bf16 %v608_v47  ;;  %v2071_v50 = vunpack.c.h.s8.bf16 %v607_v40  ;;  %v2073_v51 = vunpack.c.h.s8.bf16 %v609_v41  ;;  %v2070_v54 = vunpack.c.h.s8.bf16 %v606_v46 }
 0x633   : > { %v2072_v55 = vunpack.c.h.s8.bf16 %v608_v47  ;;  %v2079_v56 = vunpack.c.l.s8.bf16 %v615_v52  ;;  %v2081_v57 = vunpack.c.l.s8.bf16 %v617_v53  ;;  %v2078_v60 = vunpack.c.l.s8.bf16 %v614_v58 }
 0x634   : > { %6018 = vmatpush1.bf16.msra.mxu0 %v2030_v22  ;;  %6835 = vmatpush1.bf16.msra.mxu1 %v2032_v23  ;;  %v2080_v61 = vunpack.c.l.s8.bf16 %v616_v59  ;;  %v2087_v62 = vunpack.c.h.s8.bf16 %v615_v52  ;;  %v2089_v63 = vunpack.c.h.s8.bf16 %v617_v53  ;;  %v2086_v2 = vunpack.c.h.s8.bf16 %v614_v58  ;;  %v630_v22 = vld [vmem:[%s9580_s25 + $0x860] sm:$0xff]  ;;  %v632_v23 = vld [vmem:[%s9580_s25 + $0x870] sm:$0xff] }
 0x635   : > { %6019 = vmatprep.subr.bf16.mxu0 %v2039_v26  ;;  %6836 = vmatprep.subr.bf16.mxu1 %v2041_v27  ;;  %v2088_v3 = vunpack.c.h.s8.bf16 %v616_v59  ;;  %v2095_v4 = vunpack.c.l.s8.bf16 %v623_v0  ;;  %v2097_v5 = vunpack.c.l.s8.bf16 %v625_v1  ;;  %v2094_v9 = vunpack.c.l.s8.bf16 %v622_v7  ;;  %v9149_v26 = vld [vmem:[%s11165_s0 + $0x24] ss:$152 sps:$4 sm:$0xff]  }
 0x636   : > { %v2096_v10 = vunpack.c.l.s8.bf16 %v624_v8  ;;  %v2103_v11 = vunpack.c.h.s8.bf16 %v623_v0  ;;  %v2105_v12 = vunpack.c.h.s8.bf16 %v625_v1  ;;  %v2102_v16 = vunpack.c.h.s8.bf16 %v622_v7 }
 0x637   : > { %v2104_v17 = vunpack.c.h.s8.bf16 %v624_v8  ;;  %v2111_v18 = vunpack.c.l.s8.bf16 %v631_v13  ;;  %v2113_v19 = vunpack.c.l.s8.bf16 %v633_v14  ;;  %v2110_v27 = vunpack.c.l.s8.bf16 %v630_v22 }
 0x638   : > { %6020 = vmatpush1.bf16.msra.mxu0 %v2038_v30  ;;  %6837 = vmatpush1.bf16.msra.mxu1 %v2040_v31  ;;  %v2112_v28 = vunpack.c.l.s8.bf16 %v632_v23  ;;  %v2119_v29 = vunpack.c.h.s8.bf16 %v631_v13  ;;  %v2121_v30 = vunpack.c.h.s8.bf16 %v633_v14  ;;  %v639_v31 = vld [vmem:[%s9580_s25 + $0x8a8] sm:$0xff]  ;;  %v2120_v34 = vunpack.c.h.s8.bf16 %v632_v23 }
 0x639   : > { %6021 = vmatprep.subr.bf16.mxu0 %v2047_v32  ;;  %6838 = vmatprep.subr.bf16.mxu1 %v2049_v33  ;;  %v641_v32 = vld [vmem:[%s9580_s25 + $0x8b8] sm:$0xff]  ;;  %v2118_v33 = vunpack.c.h.s8.bf16 %v630_v22  ;;  %v2127_v35 = vunpack.c.l.s8.bf16 %v639_v31  ;;  %v2135_v41 = vunpack.c.h.s8.bf16 %v639_v31 }
 0x63c   : > { %6022 = vmatpush1.bf16.msra.mxu0 %v2046_v36  ;;  %6839 = vmatpush1.bf16.msra.mxu1 %v2048_v37  ;;  %v2129_v36 = vunpack.c.l.s8.bf16 %v641_v32  ;;  %v638_v37 = vld [vmem:[%s9580_s25 + $0x8a0] sm:$0xff] }
 0x63d   : > { %6023 = vmatprep.subr.bf16.mxu0 %v2055_v38  ;;  %6840 = vmatprep.subr.bf16.mxu1 %v2057_v39  ;;  %v640_v38 = vld [vmem:[%s9580_s25 + $0x8b0] sm:$0xff]  ;;  %v2126_v39 = vunpack.c.l.s8.bf16 %v638_v37 }
 0x63e   : > { %v2128_v40 = vunpack.c.l.s8.bf16 %v640_v38  ;;  %v2136_v46 = vunpack.c.h.s8.bf16 %v640_v38  ;;  %v678_v38 = vld [vmem:[%s9580_s25 + $0x9e0] sm:$0xff] }
 0x640   : > { %6024 = vmatpush1.bf16.msra.mxu0 %v2054_v42  ;;  %6841 = vmatpush1.bf16.msra.mxu1 %v2056_v43  ;;  %v2137_v42 = vunpack.c.h.s8.bf16 %v641_v32  ;;  %v647_v43 = vld [vmem:[%s9580_s25 + $0x8e8] sm:$0xff] }
 0x641   : > { %6025 = vmatprep.subr.bf16.mxu0 %v2063_v44  ;;  %6842 = vmatprep.subr.bf16.mxu1 %v2065_v45  ;;  %v649_v44 = vld [vmem:[%s9580_s25 + $0x8f8] sm:$0xff]  ;;  %v2134_v45 = vunpack.c.h.s8.bf16 %v638_v37  ;;  %v2143_v47 = vunpack.c.l.s8.bf16 %v647_v43  ;;  %v2151_v53 = vunpack.c.h.s8.bf16 %v647_v43  ;;  %v679_v32 = vld [vmem:[%s9580_s25 + $0x9e8] sm:$0xff] }
 0x644   : > { %6026 = vmatpush1.bf16.msra.mxu0 %v2062_v48  ;;  %6843 = vmatpush1.bf16.msra.mxu1 %v2064_v49  ;;  %v2145_v48 = vunpack.c.l.s8.bf16 %v649_v44  ;;  %v646_v49 = vld [vmem:[%s9580_s25 + $0x8e0] sm:$0xff] }
 0x645   : > { %6027 = vmatprep.subr.bf16.mxu0 %v2071_v50  ;;  %6844 = vmatprep.subr.bf16.mxu1 %v2073_v51  ;;  %v648_v50 = vld [vmem:[%s9580_s25 + $0x8f0] sm:$0xff]  ;;  %v2142_v51 = vunpack.c.l.s8.bf16 %v646_v49 }
 0x646   : > { %v2144_v52 = vunpack.c.l.s8.bf16 %v648_v50  ;;  %v2152_v58 = vunpack.c.h.s8.bf16 %v648_v50  ;;  %v686_v50 = vld [vmem:[%s9580_s25 + $0xa20] sm:$0xff] }
 0x648   : > { %6028 = vmatpush1.bf16.msra.mxu0 %v2070_v54  ;;  %6845 = vmatpush1.bf16.msra.mxu1 %v2072_v55  ;;  %v2153_v54 = vunpack.c.h.s8.bf16 %v649_v44  ;;  %v655_v55 = vld [vmem:[%s9580_s25 + $0x928] sm:$0xff] }
 0x649   : > { %6029 = vmatprep.subr.bf16.mxu0 %v2079_v56  ;;  %6846 = vmatprep.subr.bf16.mxu1 %v2081_v57  ;;  %v657_v56 = vld [vmem:[%s9580_s25 + $0x938] sm:$0xff]  ;;  %v2150_v57 = vunpack.c.h.s8.bf16 %v646_v49  ;;  %v2159_v59 = vunpack.c.l.s8.bf16 %v655_v55  ;;  %v2167_v1 = vunpack.c.h.s8.bf16 %v655_v55  ;;  %v687_v44 = vld [vmem:[%s9580_s25 + $0xa28] sm:$0xff] }
 0x64c   : > { %6030 = vmatpush1.bf16.msra.mxu0 %v2078_v60  ;;  %6847 = vmatpush1.bf16.msra.mxu1 %v2080_v61  ;;  %v2161_v60 = vunpack.c.l.s8.bf16 %v657_v56  ;;  %v654_v61 = vld [vmem:[%s9580_s25 + $0x920] sm:$0xff] }
 0x64d   : > { %6031 = vmatprep.subr.bf16.mxu0 %v2087_v62  ;;  %6848 = vmatprep.subr.bf16.mxu1 %v2089_v63  ;;  %v656_v62 = vld [vmem:[%s9580_s25 + $0x930] sm:$0xff]  ;;  %v2158_v63 = vunpack.c.l.s8.bf16 %v654_v61 }
 0x64e   : > { %v2160_v0 = vunpack.c.l.s8.bf16 %v656_v62  ;;  %v2168_v7 = vunpack.c.h.s8.bf16 %v656_v62 }
 0x650   : > { %6032 = vmatpush1.bf16.msra.mxu0 %v2086_v2  ;;  %6849 = vmatpush1.bf16.msra.mxu1 %v2088_v3  ;;  %v2169_v2 = vunpack.c.h.s8.bf16 %v657_v56  ;;  %v663_v3 = vld [vmem:[%s9580_s25 + $0x968] sm:$0xff] }
 0x651   : > { %6044 = vmatprep.subr.bf16.mxu0 %v2095_v4  ;;  %6861 = vmatprep.subr.bf16.mxu1 %v2097_v5  ;;  %v665_v4 = vld [vmem:[%s9580_s25 + $0x978] sm:$0xff]  ;;  %v2166_v5 = vunpack.c.h.s8.bf16 %v654_v61  ;;  %v2175_v8 = vunpack.c.l.s8.bf16 %v663_v3  ;;  %v2183_v14 = vunpack.c.h.s8.bf16 %v663_v3  ;;  %v695_v56 = vld [vmem:[%s9580_s25 + $0xa68] sm:$0xff] }
 0x652   : > { %v2239_v61 = vunpack.c.l.s8.bf16 %v695_v56 }
 0x653   : > { %6034 = vmatmul.mubr.bf16.vlgmr.msra.gmra.mrb[4].mxu0 %v9148_v15  ;;  %6851 = vmatmul.mubr.bf16.vlgmr.msra.gmra.mrb[4].mxu1 %v9148_v15  ;;  %v2185_v15 = vunpack.c.h.s8.bf16 %v665_v4 }
 0x654   : > { %6045 = vmatpush1.bf16.msra.mxu0 %v2094_v9  ;;  %6862 = vmatpush1.bf16.msra.mxu1 %v2096_v10  ;;  %v2177_v9 = vunpack.c.l.s8.bf16 %v665_v4  ;;  %v662_v10 = vld [vmem:[%s9580_s25 + $0x960] sm:$0xff]  ;;  %v2247_v4 = vunpack.c.h.s8.bf16 %v695_v56 }
 0x655   : > { %6046 = vmatprep.subr.bf16.mxu0 %v2103_v11  ;;  %6863 = vmatprep.subr.bf16.mxu1 %v2105_v12  ;;  %v664_v11 = vld [vmem:[%s9580_s25 + $0x970] sm:$0xff]  ;;  %v2174_v12 = vunpack.c.l.s8.bf16 %v662_v10 }
 0x656   : > { %6076 = vmatprep.mubr.bf16.mxu0 %v9149_v26  ;;  %6893 = vmatprep.mubr.bf16.mxu1 %v9149_v26  ;;  %v2176_v13 = vunpack.c.l.s8.bf16 %v664_v11  ;;  %v670_v26 = vld [vmem:[%s9580_s25 + $0x9a0] sm:$0xff] }
 0x658   : > { %6047 = vmatpush1.bf16.msra.mxu0 %v2102_v16  ;;  %6864 = vmatpush1.bf16.msra.mxu1 %v2104_v17  ;;  %v671_v16 = vld [vmem:[%s9580_s25 + $0x9a8] sm:$0xff]  ;;  %v673_v17 = vld [vmem:[%s9580_s25 + $0x9b8] sm:$0xff] }
 0x659   : > { %6048 = vmatprep.subr.bf16.mxu0 %v2111_v18  ;;  %6865 = vmatprep.subr.bf16.mxu1 %v2113_v19  ;;  %v2182_v18 = vunpack.c.h.s8.bf16 %v662_v10  ;;  %v2184_v19 = vunpack.c.h.s8.bf16 %v664_v11  ;;  %v2191_v22 = vunpack.c.l.s8.bf16 %v671_v16  ;;  %v2193_v23 = vunpack.c.l.s8.bf16 %v673_v17 }
 0x65a   : > { %v2201_v31 = vunpack.c.h.s8.bf16 %v673_v17 }
 0x65c   : > { %6049 = vmatpush1.bf16.msra.mxu0 %v2110_v27  ;;  %6866 = vmatpush1.bf16.msra.mxu1 %v2112_v28  ;;  %v672_v27 = vld [vmem:[%s9580_s25 + $0x9b0] sm:$0xff]  ;;  %v2190_v28 = vunpack.c.l.s8.bf16 %v670_v26 }
 0x65d   : > { %6050 = vmatprep.subr.bf16.mxu0 %v2119_v29  ;;  %6867 = vmatprep.subr.bf16.mxu1 %v2121_v30  ;;  %v2192_v29 = vunpack.c.l.s8.bf16 %v672_v27  ;;  %v2199_v30 = vunpack.c.h.s8.bf16 %v671_v16 }
 0x660   : > { %6051 = vmatpush1.bf16.msra.mxu0 %v2118_v33  ;;  %6868 = vmatpush1.bf16.msra.mxu1 %v2120_v34  ;;  %v681_v33 = vld [vmem:[%s9580_s25 + $0x9f8] sm:$0xff]  ;;  %v2198_v34 = vunpack.c.h.s8.bf16 %v670_v26 }
 0x661   : > { %6052 = vmatprep.subr.bf16.mxu0 %v2127_v35  ;;  %6869 = vmatprep.subr.bf16.mxu1 %v2129_v36  ;;  %v2200_v35 = vunpack.c.h.s8.bf16 %v672_v27  ;;  %v2207_v36 = vunpack.c.l.s8.bf16 %v679_v32  ;;  %v2209_v37 = vunpack.c.l.s8.bf16 %v681_v33  ;;  %v2217_v43 = vunpack.c.h.s8.bf16 %v681_v33 }
 0x664   : > { %6053 = vmatpush1.bf16.msra.mxu0 %v2126_v39  ;;  %6870 = vmatpush1.bf16.msra.mxu1 %v2128_v40  ;;  %v680_v39 = vld [vmem:[%s9580_s25 + $0x9f0] sm:$0xff]  ;;  %v2206_v40 = vunpack.c.l.s8.bf16 %v678_v38 }
 0x665   : > { %6054 = vmatprep.subr.bf16.mxu0 %v2135_v41  ;;  %6871 = vmatprep.subr.bf16.mxu1 %v2137_v42  ;;  %v2208_v41 = vunpack.c.l.s8.bf16 %v680_v39  ;;  %v2215_v42 = vunpack.c.h.s8.bf16 %v679_v32 }
 0x668   : > { %6055 = vmatpush1.bf16.msra.mxu0 %v2134_v45  ;;  %6872 = vmatpush1.bf16.msra.mxu1 %v2136_v46  ;;  %v689_v45 = vld [vmem:[%s9580_s25 + $0xa38] sm:$0xff]  ;;  %v2214_v46 = vunpack.c.h.s8.bf16 %v678_v38 }
 0x669   : > { %6056 = vmatprep.subr.bf16.mxu0 %v2143_v47  ;;  %6873 = vmatprep.subr.bf16.mxu1 %v2145_v48  ;;  %v2216_v47 = vunpack.c.h.s8.bf16 %v680_v39  ;;  %v2223_v48 = vunpack.c.l.s8.bf16 %v687_v44  ;;  %v2225_v49 = vunpack.c.l.s8.bf16 %v689_v45  ;;  %v2233_v55 = vunpack.c.h.s8.bf16 %v689_v45 }
 0x66c   : > { %6057 = vmatpush1.bf16.msra.mxu0 %v2142_v51  ;;  %6874 = vmatpush1.bf16.msra.mxu1 %v2144_v52  ;;  %v688_v51 = vld [vmem:[%s9580_s25 + $0xa30] sm:$0xff]  ;;  %v2222_v52 = vunpack.c.l.s8.bf16 %v686_v50 }
 0x66d   : > { %6058 = vmatprep.subr.bf16.mxu0 %v2151_v53  ;;  %6875 = vmatprep.subr.bf16.mxu1 %v2153_v54  ;;  %v2224_v53 = vunpack.c.l.s8.bf16 %v688_v51  ;;  %v2231_v54 = vunpack.c.h.s8.bf16 %v687_v44 }
 0x670   : > { %6059 = vmatpush1.bf16.msra.mxu0 %v2150_v57  ;;  %6876 = vmatpush1.bf16.msra.mxu1 %v2152_v58  ;;  %v697_v57 = vld [vmem:[%s9580_s25 + $0xa78] sm:$0xff] }
 0x671   : > { %6060 = vmatprep.subr.bf16.mxu0 %v2159_v59  ;;  %6877 = vmatprep.subr.bf16.mxu1 %v2161_v60  ;;  %v9150_v58 = vld [vmem:[%s11165_s0 + $0x20] ss:$152 sps:$4 sm:$0xff]   ;;  %v2230_v59 = vunpack.c.h.s8.bf16 %v686_v50  ;;  %v2232_v60 = vunpack.c.h.s8.bf16 %v688_v51  ;;  %v2241_v62 = vunpack.c.l.s8.bf16 %v697_v57 }
 0x674   : > { %6061 = vmatpush1.bf16.msra.mxu0 %v2158_v63  ;;  %6878 = vmatpush1.bf16.msra.mxu1 %v2160_v0  ;;  %v694_v63 = vld [vmem:[%s9580_s25 + $0xa60] sm:$0xff]  ;;  %v696_v0 = vld [vmem:[%s9580_s25 + $0xa70] sm:$0xff] }
 0x675   : > { %6062 = vmatprep.subr.bf16.mxu0 %v2167_v1  ;;  %6879 = vmatprep.subr.bf16.mxu1 %v2169_v2  ;;  %v9151_v1 = vld [vmem:[%s11165_s0 + $0x2c] ss:$152 sps:$4 sm:$0xff]   ;;  %v2238_v2 = vunpack.c.l.s8.bf16 %v694_v63  ;;  %v2240_v3 = vunpack.c.l.s8.bf16 %v696_v0  ;;  %v2248_v10 = vunpack.c.h.s8.bf16 %v696_v0 }
 0x678   : > { %6063 = vmatpush1.bf16.msra.mxu0 %v2166_v5  ;;  %6880 = vmatpush1.bf16.msra.mxu1 %v2168_v7  ;;  %v2249_v5 = vunpack.c.h.s8.bf16 %v697_v57  ;;  %v703_v7 = vld [vmem:[%s9580_s25 + $0xaa8] sm:$0xff] }
 0x679   : > { %6064 = vmatprep.subr.bf16.mxu0 %v2175_v8  ;;  %6881 = vmatprep.subr.bf16.mxu1 %v2177_v9  ;;  %v705_v8 = vld [vmem:[%s9580_s25 + $0xab8] sm:$0xff]  ;;  %v2246_v9 = vunpack.c.h.s8.bf16 %v694_v63  ;;  %v2255_v11 = vunpack.c.l.s8.bf16 %v703_v7  ;;  %v2263_v17 = vunpack.c.h.s8.bf16 %v703_v7 }
 0x67c   : > { %6065 = vmatpush1.bf16.msra.mxu0 %v2174_v12  ;;  %6882 = vmatpush1.bf16.msra.mxu1 %v2176_v13  ;;  %v2257_v12 = vunpack.c.l.s8.bf16 %v705_v8  ;;  %v702_v13 = vld [vmem:[%s9580_s25 + $0xaa0] sm:$0xff] }
 0x67d   : > { %6066 = vmatprep.subr.bf16.mxu0 %v2183_v14  ;;  %6883 = vmatprep.subr.bf16.mxu1 %v2185_v15  ;;  %v704_v14 = vld [vmem:[%s9580_s25 + $0xab0] sm:$0xff]  ;;  %v2254_v15 = vunpack.c.l.s8.bf16 %v702_v13 }
 0x67e   : > { %v2256_v16 = vunpack.c.l.s8.bf16 %v704_v14  ;;  %v2264_v26 = vunpack.c.h.s8.bf16 %v704_v14  ;;  %v742_v14 = vld [vmem:[%s9580_s25 + $0xbe0] sm:$0xff] }
 0x680   : > { %6067 = vmatpush1.bf16.msra.mxu0 %v2182_v18  ;;  %6884 = vmatpush1.bf16.msra.mxu1 %v2184_v19  ;;  %v2265_v18 = vunpack.c.h.s8.bf16 %v705_v8  ;;  %v711_v19 = vld [vmem:[%s9580_s25 + $0xae8] sm:$0xff] }
 0x681   : > { %6068 = vmatprep.subr.bf16.mxu0 %v2191_v22  ;;  %6885 = vmatprep.subr.bf16.mxu1 %v2193_v23  ;;  %v713_v22 = vld [vmem:[%s9580_s25 + $0xaf8] sm:$0xff]  ;;  %v2262_v23 = vunpack.c.h.s8.bf16 %v702_v13  ;;  %v2271_v27 = vunpack.c.l.s8.bf16 %v711_v19  ;;  %v2279_v33 = vunpack.c.h.s8.bf16 %v711_v19  ;;  %v743_v8 = vld [vmem:[%s9580_s25 + $0xbe8] sm:$0xff] }
 0x684   : > { %6069 = vmatpush1.bf16.msra.mxu0 %v2190_v28  ;;  %6886 = vmatpush1.bf16.msra.mxu1 %v2192_v29  ;;  %v2273_v28 = vunpack.c.l.s8.bf16 %v713_v22  ;;  %v710_v29 = vld [vmem:[%s9580_s25 + $0xae0] sm:$0xff] }
 0x685   : > { %6070 = vmatprep.subr.bf16.mxu0 %v2199_v30  ;;  %6887 = vmatprep.subr.bf16.mxu1 %v2201_v31  ;;  %v712_v30 = vld [vmem:[%s9580_s25 + $0xaf0] sm:$0xff]  ;;  %v2270_v31 = vunpack.c.l.s8.bf16 %v710_v29 }
 0x686   : > { %v2272_v32 = vunpack.c.l.s8.bf16 %v712_v30  ;;  %v2280_v38 = vunpack.c.h.s8.bf16 %v712_v30  ;;  %v750_v30 = vld [vmem:[%s9580_s25 + $0xc20] sm:$0xff] }
 0x688   : > { %6071 = vmatpush1.bf16.msra.mxu0 %v2198_v34  ;;  %6888 = vmatpush1.bf16.msra.mxu1 %v2200_v35  ;;  %v2281_v34 = vunpack.c.h.s8.bf16 %v713_v22  ;;  %v719_v35 = vld [vmem:[%s9580_s25 + $0xb28] sm:$0xff] }
 0x689   : > { %6072 = vmatprep.subr.bf16.mxu0 %v2207_v36  ;;  %6889 = vmatprep.subr.bf16.mxu1 %v2209_v37  ;;  %v721_v36 = vld [vmem:[%s9580_s25 + $0xb38] sm:$0xff]  ;;  %v2278_v37 = vunpack.c.h.s8.bf16 %v710_v29  ;;  %v2287_v39 = vunpack.c.l.s8.bf16 %v719_v35  ;;  %v2295_v45 = vunpack.c.h.s8.bf16 %v719_v35  ;;  %v751_v22 = vld [vmem:[%s9580_s25 + $0xc28] sm:$0xff] }
 0x68c   : > { %6073 = vmatpush1.bf16.msra.mxu0 %v2206_v40  ;;  %6890 = vmatpush1.bf16.msra.mxu1 %v2208_v41  ;;  %v2289_v40 = vunpack.c.l.s8.bf16 %v721_v36  ;;  %v718_v41 = vld [vmem:[%s9580_s25 + $0xb20] sm:$0xff] }
 0x68d   : > { %6074 = vmatprep.subr.bf16.mxu0 %v2215_v42  ;;  %6891 = vmatprep.subr.bf16.mxu1 %v2217_v43  ;;  %v720_v42 = vld [vmem:[%s9580_s25 + $0xb30] sm:$0xff]  ;;  %v2286_v43 = vunpack.c.l.s8.bf16 %v718_v41 }
 0x68e   : > { %v2288_v44 = vunpack.c.l.s8.bf16 %v720_v42  ;;  %v2296_v50 = vunpack.c.h.s8.bf16 %v720_v42 }
 0x690   : > { %6075 = vmatpush1.bf16.msra.mxu0 %v2214_v46  ;;  %6892 = vmatpush1.bf16.msra.mxu1 %v2216_v47  ;;  %v2297_v46 = vunpack.c.h.s8.bf16 %v721_v36  ;;  %v727_v47 = vld [vmem:[%s9580_s25 + $0xb68] sm:$0xff] }
 0x691   : > { %6087 = vmatprep.subr.bf16.mxu0 %v2223_v48  ;;  %6904 = vmatprep.subr.bf16.mxu1 %v2225_v49  ;;  %v729_v48 = vld [vmem:[%s9580_s25 + $0xb78] sm:$0xff]  ;;  %v2294_v49 = vunpack.c.h.s8.bf16 %v718_v41  ;;  %v2303_v51 = vunpack.c.l.s8.bf16 %v727_v47  ;;  %v2311_v57 = vunpack.c.h.s8.bf16 %v727_v47  ;;  %v759_v36 = vld [vmem:[%s9580_s25 + $0xc68] sm:$0xff] }
 0x692   : > { %v2367_v41 = vunpack.c.l.s8.bf16 %v759_v36 }
 0x693   : > { %6077 = vmatmul.mubr.bf16.vlgmr.msra.gmra.mrb[4].mxu0 %v9150_v58  ;;  %6894 = vmatmul.mubr.bf16.vlgmr.msra.gmra.mrb[4].mxu1 %v9150_v58  ;;  %v2313_v58 = vunpack.c.h.s8.bf16 %v729_v48 }
 0x694   : > { %6088 = vmatpush1.bf16.msra.mxu0 %v2222_v52  ;;  %6905 = vmatpush1.bf16.msra.mxu1 %v2224_v53  ;;  %v2305_v52 = vunpack.c.l.s8.bf16 %v729_v48  ;;  %v726_v53 = vld [vmem:[%s9580_s25 + $0xb60] sm:$0xff]  ;;  %v2375_v48 = vunpack.c.h.s8.bf16 %v759_v36 }
 0x695   : > { %6089 = vmatprep.subr.bf16.mxu0 %v2231_v54  ;;  %6906 = vmatprep.subr.bf16.mxu1 %v2233_v55  ;;  %v728_v54 = vld [vmem:[%s9580_s25 + $0xb70] sm:$0xff]  ;;  %v2302_v55 = vunpack.c.l.s8.bf16 %v726_v53 }
 0x696   : > { %6119 = vmatprep.mubr.bf16.mxu0 %v9151_v1  ;;  %6936 = vmatprep.mubr.bf16.mxu1 %v9151_v1  ;;  %v2304_v56 = vunpack.c.l.s8.bf16 %v728_v54  ;;  %v734_v1 = vld [vmem:[%s9580_s25 + $0xba0] sm:$0xff] }
 0x698   : > { %6090 = vmatpush1.bf16.msra.mxu0 %v2230_v59  ;;  %6907 = vmatpush1.bf16.msra.mxu1 %v2232_v60  ;;  %v735_v59 = vld [vmem:[%s9580_s25 + $0xba8] sm:$0xff]  ;;  %v737_v60 = vld [vmem:[%s9580_s25 + $0xbb8] sm:$0xff] }
 0x699   : > { %6091 = vmatprep.subr.bf16.mxu0 %v2239_v61  ;;  %6908 = vmatprep.subr.bf16.mxu1 %v2241_v62  ;;  %v2310_v61 = vunpack.c.h.s8.bf16 %v726_v53  ;;  %v2312_v62 = vunpack.c.h.s8.bf16 %v728_v54  ;;  %v2319_v63 = vunpack.c.l.s8.bf16 %v735_v59  ;;  %v2321_v0 = vunpack.c.l.s8.bf16 %v737_v60 }
 0x69a   : > { %v2329_v7 = vunpack.c.h.s8.bf16 %v737_v60 }
 0x69c   : > { %6092 = vmatpush1.bf16.msra.mxu0 %v2238_v2  ;;  %6909 = vmatpush1.bf16.msra.mxu1 %v2240_v3  ;;  %v736_v2 = vld [vmem:[%s9580_s25 + $0xbb0] sm:$0xff]  ;;  %v2318_v3 = vunpack.c.l.s8.bf16 %v734_v1 }
 0x69d   : > { %6093 = vmatprep.subr.bf16.mxu0 %v2247_v4  ;;  %6910 = vmatprep.subr.bf16.mxu1 %v2249_v5  ;;  %v2320_v4 = vunpack.c.l.s8.bf16 %v736_v2  ;;  %v2327_v5 = vunpack.c.h.s8.bf16 %v735_v59 }
 0x6a0   : > { %6094 = vmatpush1.bf16.msra.mxu0 %v2246_v9  ;;  %6911 = vmatpush1.bf16.msra.mxu1 %v2248_v10  ;;  %v745_v9 = vld [vmem:[%s9580_s25 + $0xbf8] sm:$0xff]  ;;  %v2326_v10 = vunpack.c.h.s8.bf16 %v734_v1 }
 0x6a1   : > { %6095 = vmatprep.subr.bf16.mxu0 %v2255_v11  ;;  %6912 = vmatprep.subr.bf16.mxu1 %v2257_v12  ;;  %v2328_v11 = vunpack.c.h.s8.bf16 %v736_v2  ;;  %v2335_v12 = vunpack.c.l.s8.bf16 %v743_v8  ;;  %v2337_v13 = vunpack.c.l.s8.bf16 %v745_v9  ;;  %v2345_v19 = vunpack.c.h.s8.bf16 %v745_v9 }
 0x6a4   : > { %6096 = vmatpush1.bf16.msra.mxu0 %v2254_v15  ;;  %6913 = vmatpush1.bf16.msra.mxu1 %v2256_v16  ;;  %v744_v15 = vld [vmem:[%s9580_s25 + $0xbf0] sm:$0xff]  ;;  %v2334_v16 = vunpack.c.l.s8.bf16 %v742_v14 }
 0x6a5   : > { %6097 = vmatprep.subr.bf16.mxu0 %v2263_v17  ;;  %6914 = vmatprep.subr.bf16.mxu1 %v2265_v18  ;;  %v2336_v17 = vunpack.c.l.s8.bf16 %v744_v15  ;;  %v2343_v18 = vunpack.c.h.s8.bf16 %v743_v8 }
 0x6a8   : > { %6098 = vmatpush1.bf16.msra.mxu0 %v2262_v23  ;;  %6915 = vmatpush1.bf16.msra.mxu1 %v2264_v26  ;;  %v753_v23 = vld [vmem:[%s9580_s25 + $0xc38] sm:$0xff]  ;;  %v2342_v26 = vunpack.c.h.s8.bf16 %v742_v14 }
 0x6a9   : > { %6099 = vmatprep.subr.bf16.mxu0 %v2271_v27  ;;  %6916 = vmatprep.subr.bf16.mxu1 %v2273_v28  ;;  %v2344_v27 = vunpack.c.h.s8.bf16 %v744_v15  ;;  %v2351_v28 = vunpack.c.l.s8.bf16 %v751_v22  ;;  %v2353_v29 = vunpack.c.l.s8.bf16 %v753_v23  ;;  %v2361_v35 = vunpack.c.h.s8.bf16 %v753_v23 }
 0x6ac   : > { %6100 = vmatpush1.bf16.msra.mxu0 %v2270_v31  ;;  %6917 = vmatpush1.bf16.msra.mxu1 %v2272_v32  ;;  %v752_v31 = vld [vmem:[%s9580_s25 + $0xc30] sm:$0xff]  ;;  %v2350_v32 = vunpack.c.l.s8.bf16 %v750_v30 }
 0x6ad   : > { %6101 = vmatprep.subr.bf16.mxu0 %v2279_v33  ;;  %6918 = vmatprep.subr.bf16.mxu1 %v2281_v34  ;;  %v2352_v33 = vunpack.c.l.s8.bf16 %v752_v31  ;;  %v2359_v34 = vunpack.c.h.s8.bf16 %v751_v22 }
 0x6b0   : > { %6102 = vmatpush1.bf16.msra.mxu0 %v2278_v37  ;;  %6919 = vmatpush1.bf16.msra.mxu1 %v2280_v38  ;;  %v761_v37 = vld [vmem:[%s9580_s25 + $0xc78] sm:$0xff]  ;;  %v9152_v38 = vld [vmem:[%s11165_s0 + $0x28] ss:$152 sps:$4 sm:$0xff]  }
 0x6b1   : > { %6103 = vmatprep.subr.bf16.mxu0 %v2287_v39  ;;  %6920 = vmatprep.subr.bf16.mxu1 %v2289_v40  ;;  %v2358_v39 = vunpack.c.h.s8.bf16 %v750_v30  ;;  %v2360_v40 = vunpack.c.h.s8.bf16 %v752_v31  ;;  %v2369_v42 = vunpack.c.l.s8.bf16 %v761_v37 }
 0x6b4   : > { %6104 = vmatpush1.bf16.msra.mxu0 %v2286_v43  ;;  %6921 = vmatpush1.bf16.msra.mxu1 %v2288_v44  ;;  %v758_v43 = vld [vmem:[%s9580_s25 + $0xc60] sm:$0xff]  ;;  %v760_v44 = vld [vmem:[%s9580_s25 + $0xc70] sm:$0xff] }
 0x6b5   : > { %6105 = vmatprep.subr.bf16.mxu0 %v2295_v45  ;;  %6922 = vmatprep.subr.bf16.mxu1 %v2297_v46  ;;  %v9153_v45 = vld [vmem:[%s11165_s0 + $0x34] ss:$152 sps:$4 sm:$0xff]   ;;  %v2366_v46 = vunpack.c.l.s8.bf16 %v758_v43  ;;  %v2368_v47 = vunpack.c.l.s8.bf16 %v760_v44  ;;  %v2376_v53 = vunpack.c.h.s8.bf16 %v760_v44 }
 0x6b8   : > { %6106 = vmatpush1.bf16.msra.mxu0 %v2294_v49  ;;  %6923 = vmatpush1.bf16.msra.mxu1 %v2296_v50  ;;  %v2377_v49 = vunpack.c.h.s8.bf16 %v761_v37  ;;  %v767_v50 = vld [vmem:[%s9580_s25 + $0xca8] sm:$0xff] }
 0x6b9   : > { %6107 = vmatprep.subr.bf16.mxu0 %v2303_v51  ;;  %6924 = vmatprep.subr.bf16.mxu1 %v2305_v52  ;;  %v769_v51 = vld [vmem:[%s9580_s25 + $0xcb8] sm:$0xff]  ;;  %v2374_v52 = vunpack.c.h.s8.bf16 %v758_v43  ;;  %v2383_v54 = vunpack.c.l.s8.bf16 %v767_v50  ;;  %v2391_v60 = vunpack.c.h.s8.bf16 %v767_v50 }
 0x6bc   : > { %6108 = vmatpush1.bf16.msra.mxu0 %v2302_v55  ;;  %6925 = vmatpush1.bf16.msra.mxu1 %v2304_v56  ;;  %v2385_v55 = vunpack.c.l.s8.bf16 %v769_v51  ;;  %v766_v56 = vld [vmem:[%s9580_s25 + $0xca0] sm:$0xff] }
 0x6bd   : > { %6109 = vmatprep.subr.bf16.mxu0 %v2311_v57  ;;  %6926 = vmatprep.subr.bf16.mxu1 %v2313_v58  ;;  %v768_v57 = vld [vmem:[%s9580_s25 + $0xcb0] sm:$0xff]  ;;  %v2382_v58 = vunpack.c.l.s8.bf16 %v766_v56 }
 0x6be   : > { %v2384_v59 = vunpack.c.l.s8.bf16 %v768_v57  ;;  %v2392_v1 = vunpack.c.h.s8.bf16 %v768_v57  ;;  %v806_v57 = vld [vmem:[%s9580_s25 + $0xde0] sm:$0xff] }
 0x6c0   : > { %6110 = vmatpush1.bf16.msra.mxu0 %v2310_v61  ;;  %6927 = vmatpush1.bf16.msra.mxu1 %v2312_v62  ;;  %v2393_v61 = vunpack.c.h.s8.bf16 %v769_v51  ;;  %v775_v62 = vld [vmem:[%s9580_s25 + $0xce8] sm:$0xff] }
 0x6c1   : > { %6111 = vmatprep.subr.bf16.mxu0 %v2319_v63  ;;  %6928 = vmatprep.subr.bf16.mxu1 %v2321_v0  ;;  %v777_v63 = vld [vmem:[%s9580_s25 + $0xcf8] sm:$0xff]  ;;  %v2390_v0 = vunpack.c.h.s8.bf16 %v766_v56  ;;  %v2399_v2 = vunpack.c.l.s8.bf16 %v775_v62  ;;  %v2407_v9 = vunpack.c.h.s8.bf16 %v775_v62  ;;  %v807_v51 = vld [vmem:[%s9580_s25 + $0xde8] sm:$0xff] }
 0x6c4   : > { %6112 = vmatpush1.bf16.msra.mxu0 %v2318_v3  ;;  %6929 = vmatpush1.bf16.msra.mxu1 %v2320_v4  ;;  %v2401_v3 = vunpack.c.l.s8.bf16 %v777_v63  ;;  %v774_v4 = vld [vmem:[%s9580_s25 + $0xce0] sm:$0xff] }
 0x6c5   : > { %6113 = vmatprep.subr.bf16.mxu0 %v2327_v5  ;;  %6930 = vmatprep.subr.bf16.mxu1 %v2329_v7  ;;  %v776_v5 = vld [vmem:[%s9580_s25 + $0xcf0] sm:$0xff]  ;;  %v2398_v7 = vunpack.c.l.s8.bf16 %v774_v4 }
 0x6c6   : > { %v2400_v8 = vunpack.c.l.s8.bf16 %v776_v5  ;;  %v2408_v14 = vunpack.c.h.s8.bf16 %v776_v5  ;;  %v814_v5 = vld [vmem:[%s9580_s25 + $0xe20] sm:$0xff] }
 0x6c8   : > { %6114 = vmatpush1.bf16.msra.mxu0 %v2326_v10  ;;  %6931 = vmatpush1.bf16.msra.mxu1 %v2328_v11  ;;  %v2409_v10 = vunpack.c.h.s8.bf16 %v777_v63  ;;  %v783_v11 = vld [vmem:[%s9580_s25 + $0xd28] sm:$0xff] }
 0x6c9   : > { %6115 = vmatprep.subr.bf16.mxu0 %v2335_v12  ;;  %6932 = vmatprep.subr.bf16.mxu1 %v2337_v13  ;;  %v785_v12 = vld [vmem:[%s9580_s25 + $0xd38] sm:$0xff]  ;;  %v2406_v13 = vunpack.c.h.s8.bf16 %v774_v4  ;;  %v2415_v15 = vunpack.c.l.s8.bf16 %v783_v11  ;;  %v2423_v23 = vunpack.c.h.s8.bf16 %v783_v11  ;;  %v815_v63 = vld [vmem:[%s9580_s25 + $0xe28] sm:$0xff] }
 0x6cc   : > { %6116 = vmatpush1.bf16.msra.mxu0 %v2334_v16  ;;  %6933 = vmatpush1.bf16.msra.mxu1 %v2336_v17  ;;  %v2417_v16 = vunpack.c.l.s8.bf16 %v785_v12  ;;  %v782_v17 = vld [vmem:[%s9580_s25 + $0xd20] sm:$0xff] }
 0x6cd   : > { %6117 = vmatprep.subr.bf16.mxu0 %v2343_v18  ;;  %6934 = vmatprep.subr.bf16.mxu1 %v2345_v19  ;;  %v784_v18 = vld [vmem:[%s9580_s25 + $0xd30] sm:$0xff]  ;;  %v2414_v19 = vunpack.c.l.s8.bf16 %v782_v17 }
 0x6ce   : > { %v2416_v22 = vunpack.c.l.s8.bf16 %v784_v18  ;;  %v2424_v30 = vunpack.c.h.s8.bf16 %v784_v18 }
 0x6d0   : > { %6118 = vmatpush1.bf16.msra.mxu0 %v2342_v26  ;;  %6935 = vmatpush1.bf16.msra.mxu1 %v2344_v27  ;;  %v2425_v26 = vunpack.c.h.s8.bf16 %v785_v12  ;;  %v791_v27 = vld [vmem:[%s9580_s25 + $0xd68] sm:$0xff] }
 0x6d1   : > { %6130 = vmatprep.subr.bf16.mxu0 %v2351_v28  ;;  %6947 = vmatprep.subr.bf16.mxu1 %v2353_v29  ;;  %v793_v28 = vld [vmem:[%s9580_s25 + $0xd78] sm:$0xff]  ;;  %v2422_v29 = vunpack.c.h.s8.bf16 %v782_v17  ;;  %v2431_v31 = vunpack.c.l.s8.bf16 %v791_v27  ;;  %v2439_v37 = vunpack.c.h.s8.bf16 %v791_v27  ;;  %v823_v12 = vld [vmem:[%s9580_s25 + $0xe68] sm:$0xff] }
 0x6d2   : > { %v2495_v17 = vunpack.c.l.s8.bf16 %v823_v12 }
 0x6d3   : > { %6120 = vmatmul.mubr.bf16.vlgmr.msra.gmra.mrb[4].mxu0 %v9152_v38  ;;  %6937 = vmatmul.mubr.bf16.vlgmr.msra.gmra.mrb[4].mxu1 %v9152_v38  ;;  %v2441_v38 = vunpack.c.h.s8.bf16 %v793_v28 }
 0x6d4   : > { %6131 = vmatpush1.bf16.msra.mxu0 %v2350_v32  ;;  %6948 = vmatpush1.bf16.msra.mxu1 %v2352_v33  ;;  %v2433_v32 = vunpack.c.l.s8.bf16 %v793_v28  ;;  %v790_v33 = vld [vmem:[%s9580_s25 + $0xd60] sm:$0xff]  ;;  %v2503_v28 = vunpack.c.h.s8.bf16 %v823_v12 }
 0x6d5   : > { %6132 = vmatprep.subr.bf16.mxu0 %v2359_v34  ;;  %6949 = vmatprep.subr.bf16.mxu1 %v2361_v35  ;;  %v792_v34 = vld [vmem:[%s9580_s25 + $0xd70] sm:$0xff]  ;;  %v2430_v35 = vunpack.c.l.s8.bf16 %v790_v33 }
 0x6d6   : > { %6162 = vmatprep.mubr.bf16.mxu0 %v9153_v45  ;;  %6979 = vmatprep.mubr.bf16.mxu1 %v9153_v45  ;;  %v2432_v36 = vunpack.c.l.s8.bf16 %v792_v34  ;;  %v798_v45 = vld [vmem:[%s9580_s25 + $0xda0] sm:$0xff] }
 0x6d8   : > { %6133 = vmatpush1.bf16.msra.mxu0 %v2358_v39  ;;  %6950 = vmatpush1.bf16.msra.mxu1 %v2360_v40  ;;  %v799_v39 = vld [vmem:[%s9580_s25 + $0xda8] sm:$0xff]  ;;  %v801_v40 = vld [vmem:[%s9580_s25 + $0xdb8] sm:$0xff] }
 0x6d9   : > { %6134 = vmatprep.subr.bf16.mxu0 %v2367_v41  ;;  %6951 = vmatprep.subr.bf16.mxu1 %v2369_v42  ;;  %v2438_v41 = vunpack.c.h.s8.bf16 %v790_v33  ;;  %v2440_v42 = vunpack.c.h.s8.bf16 %v792_v34  ;;  %v2447_v43 = vunpack.c.l.s8.bf16 %v799_v39  ;;  %v2449_v44 = vunpack.c.l.s8.bf16 %v801_v40 }
 0x6da   : > { %v2457_v50 = vunpack.c.h.s8.bf16 %v801_v40 }
 0x6dc   : > { %6135 = vmatpush1.bf16.msra.mxu0 %v2366_v46  ;;  %6952 = vmatpush1.bf16.msra.mxu1 %v2368_v47  ;;  %v800_v46 = vld [vmem:[%s9580_s25 + $0xdb0] sm:$0xff]  ;;  %v2446_v47 = vunpack.c.l.s8.bf16 %v798_v45 }
 0x6dd   : > { %6136 = vmatprep.subr.bf16.mxu0 %v2375_v48  ;;  %6953 = vmatprep.subr.bf16.mxu1 %v2377_v49  ;;  %v2448_v48 = vunpack.c.l.s8.bf16 %v800_v46  ;;  %v2455_v49 = vunpack.c.h.s8.bf16 %v799_v39 }
 0x6e0   : > { %6137 = vmatpush1.bf16.msra.mxu0 %v2374_v52  ;;  %6954 = vmatpush1.bf16.msra.mxu1 %v2376_v53  ;;  %v809_v52 = vld [vmem:[%s9580_s25 + $0xdf8] sm:$0xff]  ;;  %v2454_v53 = vunpack.c.h.s8.bf16 %v798_v45 }
 0x6e1   : > { %6138 = vmatprep.subr.bf16.mxu0 %v2383_v54  ;;  %6955 = vmatprep.subr.bf16.mxu1 %v2385_v55  ;;  %v2456_v54 = vunpack.c.h.s8.bf16 %v800_v46  ;;  %v2463_v55 = vunpack.c.l.s8.bf16 %v807_v51  ;;  %v2465_v56 = vunpack.c.l.s8.bf16 %v809_v52  ;;  %v2473_v62 = vunpack.c.h.s8.bf16 %v809_v52 }
 0x6e4   : > { %6139 = vmatpush1.bf16.msra.mxu0 %v2382_v58  ;;  %6956 = vmatpush1.bf16.msra.mxu1 %v2384_v59  ;;  %v808_v58 = vld [vmem:[%s9580_s25 + $0xdf0] sm:$0xff]  ;;  %v2462_v59 = vunpack.c.l.s8.bf16 %v806_v57 }
 0x6e5   : > { %6140 = vmatprep.subr.bf16.mxu0 %v2391_v60  ;;  %6957 = vmatprep.subr.bf16.mxu1 %v2393_v61  ;;  %v2464_v60 = vunpack.c.l.s8.bf16 %v808_v58  ;;  %v2471_v61 = vunpack.c.h.s8.bf16 %v807_v51 }
 0x6e8   : > { %6141 = vmatpush1.bf16.msra.mxu0 %v2390_v0  ;;  %6958 = vmatpush1.bf16.msra.mxu1 %v2392_v1  ;;  %v817_v0 = vld [vmem:[%s9580_s25 + $0xe38] sm:$0xff]  ;;  %v2470_v1 = vunpack.c.h.s8.bf16 %v806_v57 }
 0x6e9   : > { %6142 = vmatprep.subr.bf16.mxu0 %v2399_v2  ;;  %6959 = vmatprep.subr.bf16.mxu1 %v2401_v3  ;;  %v2472_v2 = vunpack.c.h.s8.bf16 %v808_v58  ;;  %v2479_v3 = vunpack.c.l.s8.bf16 %v815_v63  ;;  %v2481_v4 = vunpack.c.l.s8.bf16 %v817_v0  ;;  %v2489_v11 = vunpack.c.h.s8.bf16 %v817_v0 }
 0x6ec   : > { %6143 = vmatpush1.bf16.msra.mxu0 %v2398_v7  ;;  %6960 = vmatpush1.bf16.msra.mxu1 %v2400_v8  ;;  %v816_v7 = vld [vmem:[%s9580_s25 + $0xe30] sm:$0xff]  ;;  %v2478_v8 = vunpack.c.l.s8.bf16 %v814_v5 }
 0x6ed   : > { %6144 = vmatprep.subr.bf16.mxu0 %v2407_v9  ;;  %6961 = vmatprep.subr.bf16.mxu1 %v2409_v10  ;;  %v2480_v9 = vunpack.c.l.s8.bf16 %v816_v7  ;;  %v2487_v10 = vunpack.c.h.s8.bf16 %v815_v63 }
 0x6f0   : > { %6145 = vmatpush1.bf16.msra.mxu0 %v2406_v13  ;;  %6962 = vmatpush1.bf16.msra.mxu1 %v2408_v14  ;;  %v825_v13 = vld [vmem:[%s9580_s25 + $0xe78] sm:$0xff]  ;;  %v9154_v14 = vld [vmem:[%s11165_s0 + $0x30] ss:$152 sps:$4 sm:$0xff]  }
 0x6f1   : > { %6146 = vmatprep.subr.bf16.mxu0 %v2415_v15  ;;  %6963 = vmatprep.subr.bf16.mxu1 %v2417_v16  ;;  %v2486_v15 = vunpack.c.h.s8.bf16 %v814_v5  ;;  %v2488_v16 = vunpack.c.h.s8.bf16 %v816_v7  ;;  %v2497_v18 = vunpack.c.l.s8.bf16 %v825_v13 }
 0x6f4   : > { %6147 = vmatpush1.bf16.msra.mxu0 %v2414_v19  ;;  %6964 = vmatpush1.bf16.msra.mxu1 %v2416_v22  ;;  %v822_v19 = vld [vmem:[%s9580_s25 + $0xe60] sm:$0xff]  ;;  %v824_v22 = vld [vmem:[%s9580_s25 + $0xe70] sm:$0xff] }
 0x6f5   : > { %6148 = vmatprep.subr.bf16.mxu0 %v2423_v23  ;;  %6965 = vmatprep.subr.bf16.mxu1 %v2425_v26  ;;  %v9155_v23 = vld [vmem:[%s11165_s0 + $0x3c] ss:$152 sps:$4 sm:$0xff]   ;;  %v2494_v26 = vunpack.c.l.s8.bf16 %v822_v19  ;;  %v2496_v27 = vunpack.c.l.s8.bf16 %v824_v22  ;;  %v2504_v33 = vunpack.c.h.s8.bf16 %v824_v22 }
 0x6f8   : > { %6149 = vmatpush1.bf16.msra.mxu0 %v2422_v29  ;;  %6966 = vmatpush1.bf16.msra.mxu1 %v2424_v30  ;;  %v2505_v29 = vunpack.c.h.s8.bf16 %v825_v13  ;;  %v831_v30 = vld [vmem:[%s9580_s25 + $0xea8] sm:$0xff] }
 0x6f9   : > { %6150 = vmatprep.subr.bf16.mxu0 %v2431_v31  ;;  %6967 = vmatprep.subr.bf16.mxu1 %v2433_v32  ;;  %v833_v31 = vld [vmem:[%s9580_s25 + $0xeb8] sm:$0xff]  ;;  %v2502_v32 = vunpack.c.h.s8.bf16 %v822_v19  ;;  %v2511_v34 = vunpack.c.l.s8.bf16 %v831_v30  ;;  %v2519_v40 = vunpack.c.h.s8.bf16 %v831_v30 }
 0x6fc   : > { %6151 = vmatpush1.bf16.msra.mxu0 %v2430_v35  ;;  %6968 = vmatpush1.bf16.msra.mxu1 %v2432_v36  ;;  %v2513_v35 = vunpack.c.l.s8.bf16 %v833_v31  ;;  %v830_v36 = vld [vmem:[%s9580_s25 + $0xea0] sm:$0xff] }
 0x6fd   : > { %6152 = vmatprep.subr.bf16.mxu0 %v2439_v37  ;;  %6969 = vmatprep.subr.bf16.mxu1 %v2441_v38  ;;  %v832_v37 = vld [vmem:[%s9580_s25 + $0xeb0] sm:$0xff]  ;;  %v2510_v38 = vunpack.c.l.s8.bf16 %v830_v36 }
 0x6fe   : > { %v2512_v39 = vunpack.c.l.s8.bf16 %v832_v37  ;;  %v2520_v45 = vunpack.c.h.s8.bf16 %v832_v37  ;;  %v870_v37 = vld [vmem:[%s9580_s25 + $0xfe0] sm:$0xff] }
 0x700   : > { %6153 = vmatpush1.bf16.msra.mxu0 %v2438_v41  ;;  %6970 = vmatpush1.bf16.msra.mxu1 %v2440_v42  ;;  %v2521_v41 = vunpack.c.h.s8.bf16 %v833_v31  ;;  %v839_v42 = vld [vmem:[%s9580_s25 + $0xee8] sm:$0xff] }
 0x701   : > { %6154 = vmatprep.subr.bf16.mxu0 %v2447_v43  ;;  %6971 = vmatprep.subr.bf16.mxu1 %v2449_v44  ;;  %v841_v43 = vld [vmem:[%s9580_s25 + $0xef8] sm:$0xff]  ;;  %v2518_v44 = vunpack.c.h.s8.bf16 %v830_v36  ;;  %v2527_v46 = vunpack.c.l.s8.bf16 %v839_v42  ;;  %v2535_v52 = vunpack.c.h.s8.bf16 %v839_v42  ;;  %v871_v31 = vld [vmem:[%s9580_s25 + $0xfe8] sm:$0xff] }
 0x704   : > { %6155 = vmatpush1.bf16.msra.mxu0 %v2446_v47  ;;  %6972 = vmatpush1.bf16.msra.mxu1 %v2448_v48  ;;  %v2529_v47 = vunpack.c.l.s8.bf16 %v841_v43  ;;  %v838_v48 = vld [vmem:[%s9580_s25 + $0xee0] sm:$0xff] }
 0x705   : > { %6156 = vmatprep.subr.bf16.mxu0 %v2455_v49  ;;  %6973 = vmatprep.subr.bf16.mxu1 %v2457_v50  ;;  %v840_v49 = vld [vmem:[%s9580_s25 + $0xef0] sm:$0xff]  ;;  %v2526_v50 = vunpack.c.l.s8.bf16 %v838_v48 }
 0x706   : > { %v2528_v51 = vunpack.c.l.s8.bf16 %v840_v49  ;;  %v2536_v57 = vunpack.c.h.s8.bf16 %v840_v49  ;;  %v878_v49 = vld [vmem:[%s9580_s25 + $0x1020] sm:$0xff] }
 0x708   : > { %6157 = vmatpush1.bf16.msra.mxu0 %v2454_v53  ;;  %6974 = vmatpush1.bf16.msra.mxu1 %v2456_v54  ;;  %v2537_v53 = vunpack.c.h.s8.bf16 %v841_v43  ;;  %v847_v54 = vld [vmem:[%s9580_s25 + $0xf28] sm:$0xff] }
 0x709   : > { %6158 = vmatprep.subr.bf16.mxu0 %v2463_v55  ;;  %6975 = vmatprep.subr.bf16.mxu1 %v2465_v56  ;;  %v849_v55 = vld [vmem:[%s9580_s25 + $0xf38] sm:$0xff]  ;;  %v2534_v56 = vunpack.c.h.s8.bf16 %v838_v48  ;;  %v2543_v58 = vunpack.c.l.s8.bf16 %v847_v54  ;;  %v2551_v0 = vunpack.c.h.s8.bf16 %v847_v54  ;;  %v879_v43 = vld [vmem:[%s9580_s25 + $0x1028] sm:$0xff] }
 0x70c   : > { %6159 = vmatpush1.bf16.msra.mxu0 %v2462_v59  ;;  %6976 = vmatpush1.bf16.msra.mxu1 %v2464_v60  ;;  %v2545_v59 = vunpack.c.l.s8.bf16 %v849_v55  ;;  %v846_v60 = vld [vmem:[%s9580_s25 + $0xf20] sm:$0xff] }
 0x70d   : > { %6160 = vmatprep.subr.bf16.mxu0 %v2471_v61  ;;  %6977 = vmatprep.subr.bf16.mxu1 %v2473_v62  ;;  %v848_v61 = vld [vmem:[%s9580_s25 + $0xf30] sm:$0xff]  ;;  %v2542_v62 = vunpack.c.l.s8.bf16 %v846_v60 }
 0x70e   : > { %v2544_v63 = vunpack.c.l.s8.bf16 %v848_v61  ;;  %v2552_v5 = vunpack.c.h.s8.bf16 %v848_v61 }
 0x710   : > { %6161 = vmatpush1.bf16.msra.mxu0 %v2470_v1  ;;  %6978 = vmatpush1.bf16.msra.mxu1 %v2472_v2  ;;  %v2553_v1 = vunpack.c.h.s8.bf16 %v849_v55  ;;  %v855_v2 = vld [vmem:[%s9580_s25 + $0xf68] sm:$0xff] }
 0x711   : > { %6173 = vmatprep.subr.bf16.mxu0 %v2479_v3  ;;  %6990 = vmatprep.subr.bf16.mxu1 %v2481_v4  ;;  %v857_v3 = vld [vmem:[%s9580_s25 + $0xf78] sm:$0xff]  ;;  %v2550_v4 = vunpack.c.h.s8.bf16 %v846_v60  ;;  %v2559_v7 = vunpack.c.l.s8.bf16 %v855_v2  ;;  %v2567_v13 = vunpack.c.h.s8.bf16 %v855_v2  ;;  %v887_v55 = vld [vmem:[%s9580_s25 + $0x1068] sm:$0xff] }
 0x712   : > { %v2623_v60 = vunpack.c.l.s8.bf16 %v887_v55 }
 0x713   : > { %6163 = vmatmul.mubr.bf16.vlgmr.msra.gmra.mrb[4].mxu0 %v9154_v14  ;;  %6980 = vmatmul.mubr.bf16.vlgmr.msra.gmra.mrb[4].mxu1 %v9154_v14  ;;  %v2569_v14 = vunpack.c.h.s8.bf16 %v857_v3 }
 0x714   : > { %6174 = vmatpush1.bf16.msra.mxu0 %v2478_v8  ;;  %6991 = vmatpush1.bf16.msra.mxu1 %v2480_v9  ;;  %v2561_v8 = vunpack.c.l.s8.bf16 %v857_v3  ;;  %v854_v9 = vld [vmem:[%s9580_s25 + $0xf60] sm:$0xff]  ;;  %v2631_v3 = vunpack.c.h.s8.bf16 %v887_v55 }
 0x715   : > { %6175 = vmatprep.subr.bf16.mxu0 %v2487_v10  ;;  %6992 = vmatprep.subr.bf16.mxu1 %v2489_v11  ;;  %v856_v10 = vld [vmem:[%s9580_s25 + $0xf70] sm:$0xff]  ;;  %v2558_v11 = vunpack.c.l.s8.bf16 %v854_v9 }
 0x716   : > { %6205 = vmatprep.mubr.bf16.mxu0 %v9155_v23  ;;  %7022 = vmatprep.mubr.bf16.mxu1 %v9155_v23  ;;  %v2560_v12 = vunpack.c.l.s8.bf16 %v856_v10  ;;  %v862_v23 = vld [vmem:[%s9580_s25 + $0xfa0] sm:$0xff] }
 0x718   : > { %6176 = vmatpush1.bf16.msra.mxu0 %v2486_v15  ;;  %6993 = vmatpush1.bf16.msra.mxu1 %v2488_v16  ;;  %v863_v15 = vld [vmem:[%s9580_s25 + $0xfa8] sm:$0xff]  ;;  %v865_v16 = vld [vmem:[%s9580_s25 + $0xfb8] sm:$0xff] }
 0x719   : > { %6177 = vmatprep.subr.bf16.mxu0 %v2495_v17  ;;  %6994 = vmatprep.subr.bf16.mxu1 %v2497_v18  ;;  %v2566_v17 = vunpack.c.h.s8.bf16 %v854_v9  ;;  %v2568_v18 = vunpack.c.h.s8.bf16 %v856_v10  ;;  %v2575_v19 = vunpack.c.l.s8.bf16 %v863_v15  ;;  %v2577_v22 = vunpack.c.l.s8.bf16 %v865_v16 }
 0x71a   : > { %v2585_v30 = vunpack.c.h.s8.bf16 %v865_v16 }
 0x71c   : > { %6178 = vmatpush1.bf16.msra.mxu0 %v2494_v26  ;;  %6995 = vmatpush1.bf16.msra.mxu1 %v2496_v27  ;;  %v864_v26 = vld [vmem:[%s9580_s25 + $0xfb0] sm:$0xff]  ;;  %v2574_v27 = vunpack.c.l.s8.bf16 %v862_v23 }
 0x71d   : > { %6179 = vmatprep.subr.bf16.mxu0 %v2503_v28  ;;  %6996 = vmatprep.subr.bf16.mxu1 %v2505_v29  ;;  %v2576_v28 = vunpack.c.l.s8.bf16 %v864_v26  ;;  %v2583_v29 = vunpack.c.h.s8.bf16 %v863_v15 }
 0x720   : > { %6180 = vmatpush1.bf16.msra.mxu0 %v2502_v32  ;;  %6997 = vmatpush1.bf16.msra.mxu1 %v2504_v33  ;;  %v873_v32 = vld [vmem:[%s9580_s25 + $0xff8] sm:$0xff]  ;;  %v2582_v33 = vunpack.c.h.s8.bf16 %v862_v23 }
 0x721   : > { %6181 = vmatprep.subr.bf16.mxu0 %v2511_v34  ;;  %6998 = vmatprep.subr.bf16.mxu1 %v2513_v35  ;;  %v2584_v34 = vunpack.c.h.s8.bf16 %v864_v26  ;;  %v2591_v35 = vunpack.c.l.s8.bf16 %v871_v31  ;;  %v2593_v36 = vunpack.c.l.s8.bf16 %v873_v32  ;;  %v2601_v42 = vunpack.c.h.s8.bf16 %v873_v32 }
 0x724   : > { %6182 = vmatpush1.bf16.msra.mxu0 %v2510_v38  ;;  %6999 = vmatpush1.bf16.msra.mxu1 %v2512_v39  ;;  %v872_v38 = vld [vmem:[%s9580_s25 + $0xff0] sm:$0xff]  ;;  %v2590_v39 = vunpack.c.l.s8.bf16 %v870_v37 }
 0x725   : > { %6183 = vmatprep.subr.bf16.mxu0 %v2519_v40  ;;  %7000 = vmatprep.subr.bf16.mxu1 %v2521_v41  ;;  %v2592_v40 = vunpack.c.l.s8.bf16 %v872_v38  ;;  %v2599_v41 = vunpack.c.h.s8.bf16 %v871_v31 }
 0x728   : > { %6184 = vmatpush1.bf16.msra.mxu0 %v2518_v44  ;;  %7001 = vmatpush1.bf16.msra.mxu1 %v2520_v45  ;;  %v881_v44 = vld [vmem:[%s9580_s25 + $0x1038] sm:$0xff]  ;;  %v2598_v45 = vunpack.c.h.s8.bf16 %v870_v37 }
 0x729   : > { %6185 = vmatprep.subr.bf16.mxu0 %v2527_v46  ;;  %7002 = vmatprep.subr.bf16.mxu1 %v2529_v47  ;;  %v2600_v46 = vunpack.c.h.s8.bf16 %v872_v38  ;;  %v2607_v47 = vunpack.c.l.s8.bf16 %v879_v43  ;;  %v2609_v48 = vunpack.c.l.s8.bf16 %v881_v44  ;;  %v2617_v54 = vunpack.c.h.s8.bf16 %v881_v44 }
 0x72c   : > { %6186 = vmatpush1.bf16.msra.mxu0 %v2526_v50  ;;  %7003 = vmatpush1.bf16.msra.mxu1 %v2528_v51  ;;  %v880_v50 = vld [vmem:[%s9580_s25 + $0x1030] sm:$0xff]  ;;  %v2606_v51 = vunpack.c.l.s8.bf16 %v878_v49 }
 0x72d   : > { %6187 = vmatprep.subr.bf16.mxu0 %v2535_v52  ;;  %7004 = vmatprep.subr.bf16.mxu1 %v2537_v53  ;;  %v2608_v52 = vunpack.c.l.s8.bf16 %v880_v50  ;;  %v2615_v53 = vunpack.c.h.s8.bf16 %v879_v43 }
 0x730   : > { %6188 = vmatpush1.bf16.msra.mxu0 %v2534_v56  ;;  %7005 = vmatpush1.bf16.msra.mxu1 %v2536_v57  ;;  %v889_v56 = vld [vmem:[%s9580_s25 + $0x1078] sm:$0xff] }
 0x731   : > { %6189 = vmatprep.subr.bf16.mxu0 %v2543_v58  ;;  %7006 = vmatprep.subr.bf16.mxu1 %v2545_v59  ;;  %v9156_v57 = vld [vmem:[%s11165_s0 + $0x38] ss:$152 sps:$4 sm:$0xff]   ;;  %v2614_v58 = vunpack.c.h.s8.bf16 %v878_v49  ;;  %v2616_v59 = vunpack.c.h.s8.bf16 %v880_v50  ;;  %v2625_v61 = vunpack.c.l.s8.bf16 %v889_v56 }
 0x734   : > { %6190 = vmatpush1.bf16.msra.mxu0 %v2542_v62  ;;  %7007 = vmatpush1.bf16.msra.mxu1 %v2544_v63  ;;  %v886_v62 = vld [vmem:[%s9580_s25 + $0x1060] sm:$0xff]  ;;  %v888_v63 = vld [vmem:[%s9580_s25 + $0x1070] sm:$0xff] }
 0x735   : > { %6191 = vmatprep.subr.bf16.mxu0 %v2551_v0  ;;  %7008 = vmatprep.subr.bf16.mxu1 %v2553_v1  ;;  %v9157_v0 = vld [vmem:[%s11165_s0 + $0x44] ss:$152 sps:$4 sm:$0xff]   ;;  %v2622_v1 = vunpack.c.l.s8.bf16 %v886_v62  ;;  %v2624_v2 = vunpack.c.l.s8.bf16 %v888_v63  ;;  %v2632_v9 = vunpack.c.h.s8.bf16 %v888_v63 }
 0x738   : > { %6192 = vmatpush1.bf16.msra.mxu0 %v2550_v4  ;;  %7009 = vmatpush1.bf16.msra.mxu1 %v2552_v5  ;;  %v2633_v4 = vunpack.c.h.s8.bf16 %v889_v56  ;;  %v895_v5 = vld [vmem:[%s9580_s25 + $0x10a8] sm:$0xff] }
 0x739   : > { %6193 = vmatprep.subr.bf16.mxu0 %v2559_v7  ;;  %7010 = vmatprep.subr.bf16.mxu1 %v2561_v8  ;;  %v897_v7 = vld [vmem:[%s9580_s25 + $0x10b8] sm:$0xff]  ;;  %v2630_v8 = vunpack.c.h.s8.bf16 %v886_v62  ;;  %v2639_v10 = vunpack.c.l.s8.bf16 %v895_v5  ;;  %v2647_v16 = vunpack.c.h.s8.bf16 %v895_v5 }
 0x73c   : > { %6194 = vmatpush1.bf16.msra.mxu0 %v2558_v11  ;;  %7011 = vmatpush1.bf16.msra.mxu1 %v2560_v12  ;;  %v2641_v11 = vunpack.c.l.s8.bf16 %v897_v7  ;;  %v894_v12 = vld [vmem:[%s9580_s25 + $0x10a0] sm:$0xff] }
 0x73d   : > { %6195 = vmatprep.subr.bf16.mxu0 %v2567_v13  ;;  %7012 = vmatprep.subr.bf16.mxu1 %v2569_v14  ;;  %v896_v13 = vld [vmem:[%s9580_s25 + $0x10b0] sm:$0xff]  ;;  %v2638_v14 = vunpack.c.l.s8.bf16 %v894_v12 }
 0x73e   : > { %v2640_v15 = vunpack.c.l.s8.bf16 %v896_v13  ;;  %v2648_v23 = vunpack.c.h.s8.bf16 %v896_v13  ;;  %v934_v13 = vld [vmem:[%s9580_s25 + $0x11e0] sm:$0xff] }
 0x740   : > { %6196 = vmatpush1.bf16.msra.mxu0 %v2566_v17  ;;  %7013 = vmatpush1.bf16.msra.mxu1 %v2568_v18  ;;  %v2649_v17 = vunpack.c.h.s8.bf16 %v897_v7  ;;  %v903_v18 = vld [vmem:[%s9580_s25 + $0x10e8] sm:$0xff] }
 0x741   : > { %6197 = vmatprep.subr.bf16.mxu0 %v2575_v19  ;;  %7014 = vmatprep.subr.bf16.mxu1 %v2577_v22  ;;  %v905_v19 = vld [vmem:[%s9580_s25 + $0x10f8] sm:$0xff]  ;;  %v2646_v22 = vunpack.c.h.s8.bf16 %v894_v12  ;;  %v2655_v26 = vunpack.c.l.s8.bf16 %v903_v18  ;;  %v2663_v32 = vunpack.c.h.s8.bf16 %v903_v18  ;;  %v935_v7 = vld [vmem:[%s9580_s25 + $0x11e8] sm:$0xff] }
 0x744   : > { %6198 = vmatpush1.bf16.msra.mxu0 %v2574_v27  ;;  %7015 = vmatpush1.bf16.msra.mxu1 %v2576_v28  ;;  %v2657_v27 = vunpack.c.l.s8.bf16 %v905_v19  ;;  %v902_v28 = vld [vmem:[%s9580_s25 + $0x10e0] sm:$0xff] }
 0x745   : > { %6199 = vmatprep.subr.bf16.mxu0 %v2583_v29  ;;  %7016 = vmatprep.subr.bf16.mxu1 %v2585_v30  ;;  %v904_v29 = vld [vmem:[%s9580_s25 + $0x10f0] sm:$0xff]  ;;  %v2654_v30 = vunpack.c.l.s8.bf16 %v902_v28 }
 0x746   : > { %v2656_v31 = vunpack.c.l.s8.bf16 %v904_v29  ;;  %v2664_v37 = vunpack.c.h.s8.bf16 %v904_v29  ;;  %v942_v29 = vld [vmem:[%s9580_s25 + $0x1220] sm:$0xff] }
 0x748   : > { %6200 = vmatpush1.bf16.msra.mxu0 %v2582_v33  ;;  %7017 = vmatpush1.bf16.msra.mxu1 %v2584_v34  ;;  %v2665_v33 = vunpack.c.h.s8.bf16 %v905_v19  ;;  %v911_v34 = vld [vmem:[%s9580_s25 + $0x1128] sm:$0xff] }
 0x749   : > { %6201 = vmatprep.subr.bf16.mxu0 %v2591_v35  ;;  %7018 = vmatprep.subr.bf16.mxu1 %v2593_v36  ;;  %v913_v35 = vld [vmem:[%s9580_s25 + $0x1138] sm:$0xff]  ;;  %v2662_v36 = vunpack.c.h.s8.bf16 %v902_v28  ;;  %v2671_v38 = vunpack.c.l.s8.bf16 %v911_v34  ;;  %v2679_v44 = vunpack.c.h.s8.bf16 %v911_v34  ;;  %v943_v19 = vld [vmem:[%s9580_s25 + $0x1228] sm:$0xff] }
 0x74c   : > { %6202 = vmatpush1.bf16.msra.mxu0 %v2590_v39  ;;  %7019 = vmatpush1.bf16.msra.mxu1 %v2592_v40  ;;  %v2673_v39 = vunpack.c.l.s8.bf16 %v913_v35  ;;  %v910_v40 = vld [vmem:[%s9580_s25 + $0x1120] sm:$0xff] }
 0x74d   : > { %6203 = vmatprep.subr.bf16.mxu0 %v2599_v41  ;;  %7020 = vmatprep.subr.bf16.mxu1 %v2601_v42  ;;  %v912_v41 = vld [vmem:[%s9580_s25 + $0x1130] sm:$0xff]  ;;  %v2670_v42 = vunpack.c.l.s8.bf16 %v910_v40 }
 0x74e   : > { %v2672_v43 = vunpack.c.l.s8.bf16 %v912_v41  ;;  %v2680_v49 = vunpack.c.h.s8.bf16 %v912_v41 }
 0x750   : > { %6204 = vmatpush1.bf16.msra.mxu0 %v2598_v45  ;;  %7021 = vmatpush1.bf16.msra.mxu1 %v2600_v46  ;;  %v2681_v45 = vunpack.c.h.s8.bf16 %v913_v35  ;;  %v919_v46 = vld [vmem:[%s9580_s25 + $0x1168] sm:$0xff] }
 0x751   : > { %6216 = vmatprep.subr.bf16.mxu0 %v2607_v47  ;;  %7033 = vmatprep.subr.bf16.mxu1 %v2609_v48  ;;  %v921_v47 = vld [vmem:[%s9580_s25 + $0x1178] sm:$0xff]  ;;  %v2678_v48 = vunpack.c.h.s8.bf16 %v910_v40  ;;  %v2687_v50 = vunpack.c.l.s8.bf16 %v919_v46  ;;  %v2695_v56 = vunpack.c.h.s8.bf16 %v919_v46  ;;  %v951_v35 = vld [vmem:[%s9580_s25 + $0x1268] sm:$0xff] }
 0x752   : > { %v2751_v40 = vunpack.c.l.s8.bf16 %v951_v35 }
 0x753   : > { %6206 = vmatmul.mubr.bf16.vlgmr.msra.gmra.mrb[4].mxu0 %v9156_v57  ;;  %7023 = vmatmul.mubr.bf16.vlgmr.msra.gmra.mrb[4].mxu1 %v9156_v57  ;;  %v2697_v57 = vunpack.c.h.s8.bf16 %v921_v47 }
 0x754   : > { %6217 = vmatpush1.bf16.msra.mxu0 %v2606_v51  ;;  %7034 = vmatpush1.bf16.msra.mxu1 %v2608_v52  ;;  %v2689_v51 = vunpack.c.l.s8.bf16 %v921_v47  ;;  %v918_v52 = vld [vmem:[%s9580_s25 + $0x1160] sm:$0xff]  ;;  %v2759_v47 = vunpack.c.h.s8.bf16 %v951_v35 }
 0x755   : > { %6218 = vmatprep.subr.bf16.mxu0 %v2615_v53  ;;  %7035 = vmatprep.subr.bf16.mxu1 %v2617_v54  ;;  %v920_v53 = vld [vmem:[%s9580_s25 + $0x1170] sm:$0xff]  ;;  %v2686_v54 = vunpack.c.l.s8.bf16 %v918_v52 }
 0x756   : > { %6248 = vmatprep.mubr.bf16.mxu0 %v9157_v0  ;;  %7065 = vmatprep.mubr.bf16.mxu1 %v9157_v0  ;;  %v2688_v55 = vunpack.c.l.s8.bf16 %v920_v53  ;;  %v926_v0 = vld [vmem:[%s9580_s25 + $0x11a0] sm:$0xff] }
 0x758   : > { %6219 = vmatpush1.bf16.msra.mxu0 %v2614_v58  ;;  %7036 = vmatpush1.bf16.msra.mxu1 %v2616_v59  ;;  %v927_v58 = vld [vmem:[%s9580_s25 + $0x11a8] sm:$0xff]  ;;  %v929_v59 = vld [vmem:[%s9580_s25 + $0x11b8] sm:$0xff] }
 0x759   : > { %6220 = vmatprep.subr.bf16.mxu0 %v2623_v60  ;;  %7037 = vmatprep.subr.bf16.mxu1 %v2625_v61  ;;  %v2694_v60 = vunpack.c.h.s8.bf16 %v918_v52  ;;  %v2696_v61 = vunpack.c.h.s8.bf16 %v920_v53  ;;  %v2703_v62 = vunpack.c.l.s8.bf16 %v927_v58  ;;  %v2705_v63 = vunpack.c.l.s8.bf16 %v929_v59 }
 0x75a   : > { %v2713_v5 = vunpack.c.h.s8.bf16 %v929_v59 }
 0x75c   : > { %6221 = vmatpush1.bf16.msra.mxu0 %v2622_v1  ;;  %7038 = vmatpush1.bf16.msra.mxu1 %v2624_v2  ;;  %v928_v1 = vld [vmem:[%s9580_s25 + $0x11b0] sm:$0xff]  ;;  %v2702_v2 = vunpack.c.l.s8.bf16 %v926_v0 }
 0x75d   : > { %6222 = vmatprep.subr.bf16.mxu0 %v2631_v3  ;;  %7039 = vmatprep.subr.bf16.mxu1 %v2633_v4  ;;  %v2704_v3 = vunpack.c.l.s8.bf16 %v928_v1  ;;  %v2711_v4 = vunpack.c.h.s8.bf16 %v927_v58 }
 0x760   : > { %6223 = vmatpush1.bf16.msra.mxu0 %v2630_v8  ;;  %7040 = vmatpush1.bf16.msra.mxu1 %v2632_v9  ;;  %v937_v8 = vld [vmem:[%s9580_s25 + $0x11f8] sm:$0xff]  ;;  %v2710_v9 = vunpack.c.h.s8.bf16 %v926_v0 }
 0x761   : > { %6224 = vmatprep.subr.bf16.mxu0 %v2639_v10  ;;  %7041 = vmatprep.subr.bf16.mxu1 %v2641_v11  ;;  %v2712_v10 = vunpack.c.h.s8.bf16 %v928_v1  ;;  %v2719_v11 = vunpack.c.l.s8.bf16 %v935_v7  ;;  %v2721_v12 = vunpack.c.l.s8.bf16 %v937_v8  ;;  %v2729_v18 = vunpack.c.h.s8.bf16 %v937_v8 }
 0x764   : > { %6225 = vmatpush1.bf16.msra.mxu0 %v2638_v14  ;;  %7042 = vmatpush1.bf16.msra.mxu1 %v2640_v15  ;;  %v936_v14 = vld [vmem:[%s9580_s25 + $0x11f0] sm:$0xff]  ;;  %v2718_v15 = vunpack.c.l.s8.bf16 %v934_v13 }
 0x765   : > { %6226 = vmatprep.subr.bf16.mxu0 %v2647_v16  ;;  %7043 = vmatprep.subr.bf16.mxu1 %v2649_v17  ;;  %v2720_v16 = vunpack.c.l.s8.bf16 %v936_v14  ;;  %v2727_v17 = vunpack.c.h.s8.bf16 %v935_v7 }
 0x768   : > { %6227 = vmatpush1.bf16.msra.mxu0 %v2646_v22  ;;  %7044 = vmatpush1.bf16.msra.mxu1 %v2648_v23  ;;  %v945_v22 = vld [vmem:[%s9580_s25 + $0x1238] sm:$0xff]  ;;  %v2726_v23 = vunpack.c.h.s8.bf16 %v934_v13 }
 0x769   : > { %6228 = vmatprep.subr.bf16.mxu0 %v2655_v26  ;;  %7045 = vmatprep.subr.bf16.mxu1 %v2657_v27  ;;  %v2728_v26 = vunpack.c.h.s8.bf16 %v936_v14  ;;  %v2735_v27 = vunpack.c.l.s8.bf16 %v943_v19  ;;  %v2737_v28 = vunpack.c.l.s8.bf16 %v945_v22  ;;  %v2745_v34 = vunpack.c.h.s8.bf16 %v945_v22 }
 0x76c   : > { %6229 = vmatpush1.bf16.msra.mxu0 %v2654_v30  ;;  %7046 = vmatpush1.bf16.msra.mxu1 %v2656_v31  ;;  %v944_v30 = vld [vmem:[%s9580_s25 + $0x1230] sm:$0xff]  ;;  %v2734_v31 = vunpack.c.l.s8.bf16 %v942_v29 }
 0x76d   : > { %6230 = vmatprep.subr.bf16.mxu0 %v2663_v32  ;;  %7047 = vmatprep.subr.bf16.mxu1 %v2665_v33  ;;  %v2736_v32 = vunpack.c.l.s8.bf16 %v944_v30  ;;  %v2743_v33 = vunpack.c.h.s8.bf16 %v943_v19 }
 0x770   : > { %6231 = vmatpush1.bf16.msra.mxu0 %v2662_v36  ;;  %7048 = vmatpush1.bf16.msra.mxu1 %v2664_v37  ;;  %v953_v36 = vld [vmem:[%s9580_s25 + $0x1278] sm:$0xff] }
 0x771   : > { %6232 = vmatprep.subr.bf16.mxu0 %v2671_v38  ;;  %7049 = vmatprep.subr.bf16.mxu1 %v2673_v39  ;;  %v9158_v37 = vld [vmem:[%s11165_s0 + $0x40] ss:$152 sps:$4 sm:$0xff]   ;;  %v2742_v38 = vunpack.c.h.s8.bf16 %v942_v29  ;;  %v2744_v39 = vunpack.c.h.s8.bf16 %v944_v30  ;;  %v2753_v41 = vunpack.c.l.s8.bf16 %v953_v36 }
 0x774   : > { %6233 = vmatpush1.bf16.msra.mxu0 %v2670_v42  ;;  %7050 = vmatpush1.bf16.msra.mxu1 %v2672_v43  ;;  %v950_v42 = vld [vmem:[%s9580_s25 + $0x1260] sm:$0xff]  ;;  %v952_v43 = vld [vmem:[%s9580_s25 + $0x1270] sm:$0xff] }
 0x775   : > { %6234 = vmatprep.subr.bf16.mxu0 %v2679_v44  ;;  %7051 = vmatprep.subr.bf16.mxu1 %v2681_v45  ;;  %v9159_v44 = vld [vmem:[%s11165_s0 + $0x4c] ss:$152 sps:$4 sm:$0xff]   ;;  %v2750_v45 = vunpack.c.l.s8.bf16 %v950_v42  ;;  %v2752_v46 = vunpack.c.l.s8.bf16 %v952_v43  ;;  %v2760_v52 = vunpack.c.h.s8.bf16 %v952_v43 }
 0x778   : > { %6235 = vmatpush1.bf16.msra.mxu0 %v2678_v48  ;;  %7052 = vmatpush1.bf16.msra.mxu1 %v2680_v49  ;;  %v2761_v48 = vunpack.c.h.s8.bf16 %v953_v36  ;;  %v959_v49 = vld [vmem:[%s9580_s25 + $0x12a8] sm:$0xff] }
 0x779   : > { %6236 = vmatprep.subr.bf16.mxu0 %v2687_v50  ;;  %7053 = vmatprep.subr.bf16.mxu1 %v2689_v51  ;;  %v961_v50 = vld [vmem:[%s9580_s25 + $0x12b8] sm:$0xff]  ;;  %v2758_v51 = vunpack.c.h.s8.bf16 %v950_v42  ;;  %v2767_v53 = vunpack.c.l.s8.bf16 %v959_v49  ;;  %v2775_v59 = vunpack.c.h.s8.bf16 %v959_v49 }
 0x77c   : > { %6237 = vmatpush1.bf16.msra.mxu0 %v2686_v54  ;;  %7054 = vmatpush1.bf16.msra.mxu1 %v2688_v55  ;;  %v2769_v54 = vunpack.c.l.s8.bf16 %v961_v50  ;;  %v958_v55 = vld [vmem:[%s9580_s25 + $0x12a0] sm:$0xff] }
 0x77d   : > { %6238 = vmatprep.subr.bf16.mxu0 %v2695_v56  ;;  %7055 = vmatprep.subr.bf16.mxu1 %v2697_v57  ;;  %v960_v56 = vld [vmem:[%s9580_s25 + $0x12b0] sm:$0xff]  ;;  %v2766_v57 = vunpack.c.l.s8.bf16 %v958_v55 }
 0x77e   : > { %v2768_v58 = vunpack.c.l.s8.bf16 %v960_v56  ;;  %v2776_v0 = vunpack.c.h.s8.bf16 %v960_v56  ;;  %v998_v56 = vld [vmem:[%s9580_s25 + $0x13e0] sm:$0xff] }
 0x780   : > { %6239 = vmatpush1.bf16.msra.mxu0 %v2694_v60  ;;  %7056 = vmatpush1.bf16.msra.mxu1 %v2696_v61  ;;  %v2777_v60 = vunpack.c.h.s8.bf16 %v961_v50  ;;  %v967_v61 = vld [vmem:[%s9580_s25 + $0x12e8] sm:$0xff] }
 0x781   : > { %6240 = vmatprep.subr.bf16.mxu0 %v2703_v62  ;;  %7057 = vmatprep.subr.bf16.mxu1 %v2705_v63  ;;  %v969_v62 = vld [vmem:[%s9580_s25 + $0x12f8] sm:$0xff]  ;;  %v2774_v63 = vunpack.c.h.s8.bf16 %v958_v55  ;;  %v2783_v1 = vunpack.c.l.s8.bf16 %v967_v61  ;;  %v2791_v8 = vunpack.c.h.s8.bf16 %v967_v61  ;;  %v999_v50 = vld [vmem:[%s9580_s25 + $0x13e8] sm:$0xff] }
 0x784   : > { %6241 = vmatpush1.bf16.msra.mxu0 %v2702_v2  ;;  %7058 = vmatpush1.bf16.msra.mxu1 %v2704_v3  ;;  %v2785_v2 = vunpack.c.l.s8.bf16 %v969_v62  ;;  %v966_v3 = vld [vmem:[%s9580_s25 + $0x12e0] sm:$0xff] }
 0x785   : > { %6242 = vmatprep.subr.bf16.mxu0 %v2711_v4  ;;  %7059 = vmatprep.subr.bf16.mxu1 %v2713_v5  ;;  %v968_v4 = vld [vmem:[%s9580_s25 + $0x12f0] sm:$0xff]  ;;  %v2782_v5 = vunpack.c.l.s8.bf16 %v966_v3 }
 0x786   : > { %v2784_v7 = vunpack.c.l.s8.bf16 %v968_v4  ;;  %v2792_v13 = vunpack.c.h.s8.bf16 %v968_v4  ;;  %v1006_v4 = vld [vmem:[%s9580_s25 + $0x1420] sm:$0xff] }
 0x788   : > { %6243 = vmatpush1.bf16.msra.mxu0 %v2710_v9  ;;  %7060 = vmatpush1.bf16.msra.mxu1 %v2712_v10  ;;  %v2793_v9 = vunpack.c.h.s8.bf16 %v969_v62  ;;  %v975_v10 = vld [vmem:[%s9580_s25 + $0x1328] sm:$0xff] }
 0x789   : > { %6244 = vmatprep.subr.bf16.mxu0 %v2719_v11  ;;  %7061 = vmatprep.subr.bf16.mxu1 %v2721_v12  ;;  %v977_v11 = vld [vmem:[%s9580_s25 + $0x1338] sm:$0xff]  ;;  %v2790_v12 = vunpack.c.h.s8.bf16 %v966_v3  ;;  %v2799_v14 = vunpack.c.l.s8.bf16 %v975_v10  ;;  %v2807_v22 = vunpack.c.h.s8.bf16 %v975_v10  ;;  %v1007_v62 = vld [vmem:[%s9580_s25 + $0x1428] sm:$0xff] }
 0x78c   : > { %6245 = vmatpush1.bf16.msra.mxu0 %v2718_v15  ;;  %7062 = vmatpush1.bf16.msra.mxu1 %v2720_v16  ;;  %v2801_v15 = vunpack.c.l.s8.bf16 %v977_v11  ;;  %v974_v16 = vld [vmem:[%s9580_s25 + $0x1320] sm:$0xff] }
 0x78d   : > { %6246 = vmatprep.subr.bf16.mxu0 %v2727_v17  ;;  %7063 = vmatprep.subr.bf16.mxu1 %v2729_v18  ;;  %v976_v17 = vld [vmem:[%s9580_s25 + $0x1330] sm:$0xff]  ;;  %v2798_v18 = vunpack.c.l.s8.bf16 %v974_v16 }
 0x78e   : > { %v2800_v19 = vunpack.c.l.s8.bf16 %v976_v17  ;;  %v2808_v29 = vunpack.c.h.s8.bf16 %v976_v17 }
 0x790   : > { %6247 = vmatpush1.bf16.msra.mxu0 %v2726_v23  ;;  %7064 = vmatpush1.bf16.msra.mxu1 %v2728_v26  ;;  %v2809_v23 = vunpack.c.h.s8.bf16 %v977_v11  ;;  %v983_v26 = vld [vmem:[%s9580_s25 + $0x1368] sm:$0xff] }
 0x791   : > { %6259 = vmatprep.subr.bf16.mxu0 %v2735_v27  ;;  %7076 = vmatprep.subr.bf16.mxu1 %v2737_v28  ;;  %v985_v27 = vld [vmem:[%s9580_s25 + $0x1378] sm:$0xff]  ;;  %v2806_v28 = vunpack.c.h.s8.bf16 %v974_v16  ;;  %v2815_v30 = vunpack.c.l.s8.bf16 %v983_v26  ;;  %v2823_v36 = vunpack.c.h.s8.bf16 %v983_v26  ;;  %v1015_v11 = vld [vmem:[%s9580_s25 + $0x1468] sm:$0xff] }
 0x792   : > { %v2879_v16 = vunpack.c.l.s8.bf16 %v1015_v11 }
 0x793   : > { %6249 = vmatmul.mubr.bf16.vlgmr.msra.gmra.mrb[4].mxu0 %v9158_v37  ;;  %7066 = vmatmul.mubr.bf16.vlgmr.msra.gmra.mrb[4].mxu1 %v9158_v37  ;;  %v2825_v37 = vunpack.c.h.s8.bf16 %v985_v27 }
 0x794   : > { %6260 = vmatpush1.bf16.msra.mxu0 %v2734_v31  ;;  %7077 = vmatpush1.bf16.msra.mxu1 %v2736_v32  ;;  %v2817_v31 = vunpack.c.l.s8.bf16 %v985_v27  ;;  %v982_v32 = vld [vmem:[%s9580_s25 + $0x1360] sm:$0xff]  ;;  %v2887_v27 = vunpack.c.h.s8.bf16 %v1015_v11 }
 0x795   : > { %6261 = vmatprep.subr.bf16.mxu0 %v2743_v33  ;;  %7078 = vmatprep.subr.bf16.mxu1 %v2745_v34  ;;  %v984_v33 = vld [vmem:[%s9580_s25 + $0x1370] sm:$0xff]  ;;  %v2814_v34 = vunpack.c.l.s8.bf16 %v982_v32 }
 0x796   : > { %6291 = vmatprep.mubr.bf16.mxu0 %v9159_v44  ;;  %7108 = vmatprep.mubr.bf16.mxu1 %v9159_v44  ;;  %v2816_v35 = vunpack.c.l.s8.bf16 %v984_v33  ;;  %v990_v44 = vld [vmem:[%s9580_s25 + $0x13a0] sm:$0xff] }
 0x798   : > { %6262 = vmatpush1.bf16.msra.mxu0 %v2742_v38  ;;  %7079 = vmatpush1.bf16.msra.mxu1 %v2744_v39  ;;  %v991_v38 = vld [vmem:[%s9580_s25 + $0x13a8] sm:$0xff]  ;;  %v993_v39 = vld [vmem:[%s9580_s25 + $0x13b8] sm:$0xff] }
 0x799   : > { %6263 = vmatprep.subr.bf16.mxu0 %v2751_v40  ;;  %7080 = vmatprep.subr.bf16.mxu1 %v2753_v41  ;;  %v2822_v40 = vunpack.c.h.s8.bf16 %v982_v32  ;;  %v2824_v41 = vunpack.c.h.s8.bf16 %v984_v33  ;;  %v2831_v42 = vunpack.c.l.s8.bf16 %v991_v38  ;;  %v2833_v43 = vunpack.c.l.s8.bf16 %v993_v39 }
 0x79a   : > { %v2841_v49 = vunpack.c.h.s8.bf16 %v993_v39 }
 0x79c   : > { %6264 = vmatpush1.bf16.msra.mxu0 %v2750_v45  ;;  %7081 = vmatpush1.bf16.msra.mxu1 %v2752_v46  ;;  %v992_v45 = vld [vmem:[%s9580_s25 + $0x13b0] sm:$0xff]  ;;  %v2830_v46 = vunpack.c.l.s8.bf16 %v990_v44 }
 0x79d   : > { %6265 = vmatprep.subr.bf16.mxu0 %v2759_v47  ;;  %7082 = vmatprep.subr.bf16.mxu1 %v2761_v48  ;;  %v2832_v47 = vunpack.c.l.s8.bf16 %v992_v45  ;;  %v2839_v48 = vunpack.c.h.s8.bf16 %v991_v38 }
 0x7a0   : > { %6266 = vmatpush1.bf16.msra.mxu0 %v2758_v51  ;;  %7083 = vmatpush1.bf16.msra.mxu1 %v2760_v52  ;;  %v1001_v51 = vld [vmem:[%s9580_s25 + $0x13f8] sm:$0xff]  ;;  %v2838_v52 = vunpack.c.h.s8.bf16 %v990_v44 }
 0x7a1   : > { %6267 = vmatprep.subr.bf16.mxu0 %v2767_v53  ;;  %7084 = vmatprep.subr.bf16.mxu1 %v2769_v54  ;;  %v2840_v53 = vunpack.c.h.s8.bf16 %v992_v45  ;;  %v2847_v54 = vunpack.c.l.s8.bf16 %v999_v50  ;;  %v2849_v55 = vunpack.c.l.s8.bf16 %v1001_v51  ;;  %v2857_v61 = vunpack.c.h.s8.bf16 %v1001_v51 }
 0x7a4   : > { %6268 = vmatpush1.bf16.msra.mxu0 %v2766_v57  ;;  %7085 = vmatpush1.bf16.msra.mxu1 %v2768_v58  ;;  %v1000_v57 = vld [vmem:[%s9580_s25 + $0x13f0] sm:$0xff]  ;;  %v2846_v58 = vunpack.c.l.s8.bf16 %v998_v56 }
 0x7a5   : > { %6269 = vmatprep.subr.bf16.mxu0 %v2775_v59  ;;  %7086 = vmatprep.subr.bf16.mxu1 %v2777_v60  ;;  %v2848_v59 = vunpack.c.l.s8.bf16 %v1000_v57  ;;  %v2855_v60 = vunpack.c.h.s8.bf16 %v999_v50 }
 0x7a8   : > { %6270 = vmatpush1.bf16.msra.mxu0 %v2774_v63  ;;  %7087 = vmatpush1.bf16.msra.mxu1 %v2776_v0  ;;  %v1009_v63 = vld [vmem:[%s9580_s25 + $0x1438] sm:$0xff]  ;;  %v2854_v0 = vunpack.c.h.s8.bf16 %v998_v56 }
 0x7a9   : > { %6271 = vmatprep.subr.bf16.mxu0 %v2783_v1  ;;  %7088 = vmatprep.subr.bf16.mxu1 %v2785_v2  ;;  %v2856_v1 = vunpack.c.h.s8.bf16 %v1000_v57  ;;  %v2863_v2 = vunpack.c.l.s8.bf16 %v1007_v62  ;;  %v2865_v3 = vunpack.c.l.s8.bf16 %v1009_v63  ;;  %v2873_v10 = vunpack.c.h.s8.bf16 %v1009_v63 }
 0x7ac   : > { %6272 = vmatpush1.bf16.msra.mxu0 %v2782_v5  ;;  %7089 = vmatpush1.bf16.msra.mxu1 %v2784_v7  ;;  %v1008_v5 = vld [vmem:[%s9580_s25 + $0x1430] sm:$0xff]  ;;  %v2862_v7 = vunpack.c.l.s8.bf16 %v1006_v4 }
 0x7ad   : > { %6273 = vmatprep.subr.bf16.mxu0 %v2791_v8  ;;  %7090 = vmatprep.subr.bf16.mxu1 %v2793_v9  ;;  %v2864_v8 = vunpack.c.l.s8.bf16 %v1008_v5  ;;  %v2871_v9 = vunpack.c.h.s8.bf16 %v1007_v62 }
 0x7b0   : > { %6274 = vmatpush1.bf16.msra.mxu0 %v2790_v12  ;;  %7091 = vmatpush1.bf16.msra.mxu1 %v2792_v13  ;;  %v1017_v12 = vld [vmem:[%s9580_s25 + $0x1478] sm:$0xff]  ;;  %v9160_v13 = vld [vmem:[%s11165_s0 + $0x48] ss:$152 sps:$4 sm:$0xff]  }
 0x7b1   : > { %6275 = vmatprep.subr.bf16.mxu0 %v2799_v14  ;;  %7092 = vmatprep.subr.bf16.mxu1 %v2801_v15  ;;  %v2870_v14 = vunpack.c.h.s8.bf16 %v1006_v4  ;;  %v2872_v15 = vunpack.c.h.s8.bf16 %v1008_v5  ;;  %v2881_v17 = vunpack.c.l.s8.bf16 %v1017_v12 }
 0x7b4   : > { %6276 = vmatpush1.bf16.msra.mxu0 %v2798_v18  ;;  %7093 = vmatpush1.bf16.msra.mxu1 %v2800_v19  ;;  %v1014_v18 = vld [vmem:[%s9580_s25 + $0x1460] sm:$0xff]  ;;  %v1016_v19 = vld [vmem:[%s9580_s25 + $0x1470] sm:$0xff] }
 0x7b5   : > { %6277 = vmatprep.subr.bf16.mxu0 %v2807_v22  ;;  %7094 = vmatprep.subr.bf16.mxu1 %v2809_v23  ;;  %v9161_v22 = vld [vmem:[%s11165_s0 + $0x54] ss:$152 sps:$4 sm:$0xff]   ;;  %v2878_v23 = vunpack.c.l.s8.bf16 %v1014_v18  ;;  %v2880_v26 = vunpack.c.l.s8.bf16 %v1016_v19  ;;  %v2888_v32 = vunpack.c.h.s8.bf16 %v1016_v19 }
 0x7b8   : > { %6278 = vmatpush1.bf16.msra.mxu0 %v2806_v28  ;;  %7095 = vmatpush1.bf16.msra.mxu1 %v2808_v29  ;;  %v2889_v28 = vunpack.c.h.s8.bf16 %v1017_v12  ;;  %v1023_v29 = vld [vmem:[%s9580_s25 + $0x14a8] sm:$0xff] }
 0x7b9   : > { %6279 = vmatprep.subr.bf16.mxu0 %v2815_v30  ;;  %7096 = vmatprep.subr.bf16.mxu1 %v2817_v31  ;;  %v1025_v30 = vld [vmem:[%s9580_s25 + $0x14b8] sm:$0xff]  ;;  %v2886_v31 = vunpack.c.h.s8.bf16 %v1014_v18  ;;  %v2895_v33 = vunpack.c.l.s8.bf16 %v1023_v29  ;;  %v2903_v39 = vunpack.c.h.s8.bf16 %v1023_v29 }
 0x7bc   : > { %6280 = vmatpush1.bf16.msra.mxu0 %v2814_v34  ;;  %7097 = vmatpush1.bf16.msra.mxu1 %v2816_v35  ;;  %v2897_v34 = vunpack.c.l.s8.bf16 %v1025_v30  ;;  %v1022_v35 = vld [vmem:[%s9580_s25 + $0x14a0] sm:$0xff] }
 0x7bd   : > { %6281 = vmatprep.subr.bf16.mxu0 %v2823_v36  ;;  %7098 = vmatprep.subr.bf16.mxu1 %v2825_v37  ;;  %v1024_v36 = vld [vmem:[%s9580_s25 + $0x14b0] sm:$0xff]  ;;  %v2894_v37 = vunpack.c.l.s8.bf16 %v1022_v35 }
 0x7be   : > { %v2896_v38 = vunpack.c.l.s8.bf16 %v1024_v36  ;;  %v2904_v44 = vunpack.c.h.s8.bf16 %v1024_v36  ;;  %v1062_v36 = vld [vmem:[%s9580_s25 + $0x15e0] sm:$0xff] }
 0x7c0   : > { %6282 = vmatpush1.bf16.msra.mxu0 %v2822_v40  ;;  %7099 = vmatpush1.bf16.msra.mxu1 %v2824_v41  ;;  %v2905_v40 = vunpack.c.h.s8.bf16 %v1025_v30  ;;  %v1031_v41 = vld [vmem:[%s9580_s25 + $0x14e8] sm:$0xff] }
 0x7c1   : > { %6283 = vmatprep.subr.bf16.mxu0 %v2831_v42  ;;  %7100 = vmatprep.subr.bf16.mxu1 %v2833_v43  ;;  %v1033_v42 = vld [vmem:[%s9580_s25 + $0x14f8] sm:$0xff]  ;;  %v2902_v43 = vunpack.c.h.s8.bf16 %v1022_v35  ;;  %v2911_v45 = vunpack.c.l.s8.bf16 %v1031_v41  ;;  %v2919_v51 = vunpack.c.h.s8.bf16 %v1031_v41  ;;  %v1063_v30 = vld [vmem:[%s9580_s25 + $0x15e8] sm:$0xff] }
 0x7c4   : > { %6284 = vmatpush1.bf16.msra.mxu0 %v2830_v46  ;;  %7101 = vmatpush1.bf16.msra.mxu1 %v2832_v47  ;;  %v2913_v46 = vunpack.c.l.s8.bf16 %v1033_v42  ;;  %v1030_v47 = vld [vmem:[%s9580_s25 + $0x14e0] sm:$0xff] }
 0x7c5   : > { %6285 = vmatprep.subr.bf16.mxu0 %v2839_v48  ;;  %7102 = vmatprep.subr.bf16.mxu1 %v2841_v49  ;;  %v1032_v48 = vld [vmem:[%s9580_s25 + $0x14f0] sm:$0xff]  ;;  %v2910_v49 = vunpack.c.l.s8.bf16 %v1030_v47 }
 0x7c6   : > { %v2912_v50 = vunpack.c.l.s8.bf16 %v1032_v48  ;;  %v2920_v56 = vunpack.c.h.s8.bf16 %v1032_v48  ;;  %v1070_v48 = vld [vmem:[%s9580_s25 + $0x1620] sm:$0xff] }
 0x7c8   : > { %6286 = vmatpush1.bf16.msra.mxu0 %v2838_v52  ;;  %7103 = vmatpush1.bf16.msra.mxu1 %v2840_v53  ;;  %v2921_v52 = vunpack.c.h.s8.bf16 %v1033_v42  ;;  %v1039_v53 = vld [vmem:[%s9580_s25 + $0x1528] sm:$0xff] }
 0x7c9   : > { %6287 = vmatprep.subr.bf16.mxu0 %v2847_v54  ;;  %7104 = vmatprep.subr.bf16.mxu1 %v2849_v55  ;;  %v1041_v54 = vld [vmem:[%s9580_s25 + $0x1538] sm:$0xff]  ;;  %v2918_v55 = vunpack.c.h.s8.bf16 %v1030_v47  ;;  %v2927_v57 = vunpack.c.l.s8.bf16 %v1039_v53  ;;  %v2935_v63 = vunpack.c.h.s8.bf16 %v1039_v53  ;;  %v1071_v42 = vld [vmem:[%s9580_s25 + $0x1628] sm:$0xff] }
 0x7cc   : > { %6288 = vmatpush1.bf16.msra.mxu0 %v2846_v58  ;;  %7105 = vmatpush1.bf16.msra.mxu1 %v2848_v59  ;;  %v2929_v58 = vunpack.c.l.s8.bf16 %v1041_v54  ;;  %v1038_v59 = vld [vmem:[%s9580_s25 + $0x1520] sm:$0xff] }
 0x7cd   : > { %6289 = vmatprep.subr.bf16.mxu0 %v2855_v60  ;;  %7106 = vmatprep.subr.bf16.mxu1 %v2857_v61  ;;  %v1040_v60 = vld [vmem:[%s9580_s25 + $0x1530] sm:$0xff]  ;;  %v2926_v61 = vunpack.c.l.s8.bf16 %v1038_v59 }
 0x7ce   : > { %v2928_v62 = vunpack.c.l.s8.bf16 %v1040_v60  ;;  %v2936_v4 = vunpack.c.h.s8.bf16 %v1040_v60 }
 0x7d0   : > { %6290 = vmatpush1.bf16.msra.mxu0 %v2854_v0  ;;  %7107 = vmatpush1.bf16.msra.mxu1 %v2856_v1  ;;  %v2937_v0 = vunpack.c.h.s8.bf16 %v1041_v54  ;;  %v1047_v1 = vld [vmem:[%s9580_s25 + $0x1568] sm:$0xff] }
 0x7d1   : > { %6302 = vmatprep.subr.bf16.mxu0 %v2863_v2  ;;  %7119 = vmatprep.subr.bf16.mxu1 %v2865_v3  ;;  %v1049_v2 = vld [vmem:[%s9580_s25 + $0x1578] sm:$0xff]  ;;  %v2934_v3 = vunpack.c.h.s8.bf16 %v1038_v59  ;;  %v2943_v5 = vunpack.c.l.s8.bf16 %v1047_v1  ;;  %v2951_v12 = vunpack.c.h.s8.bf16 %v1047_v1  ;;  %v1079_v54 = vld [vmem:[%s9580_s25 + $0x1668] sm:$0xff] }
 0x7d2   : > { %v3007_v59 = vunpack.c.l.s8.bf16 %v1079_v54 }
 0x7d3   : > { %6292 = vmatmul.mubr.bf16.vlgmr.msra.gmra.mrb[4].mxu0 %v9160_v13  ;;  %7109 = vmatmul.mubr.bf16.vlgmr.msra.gmra.mrb[4].mxu1 %v9160_v13  ;;  %v2953_v13 = vunpack.c.h.s8.bf16 %v1049_v2 }
 0x7d4   : > { %6303 = vmatpush1.bf16.msra.mxu0 %v2862_v7  ;;  %7120 = vmatpush1.bf16.msra.mxu1 %v2864_v8  ;;  %v2945_v7 = vunpack.c.l.s8.bf16 %v1049_v2  ;;  %v1046_v8 = vld [vmem:[%s9580_s25 + $0x1560] sm:$0xff]  ;;  %v3015_v2 = vunpack.c.h.s8.bf16 %v1079_v54 }
 0x7d5   : > { %6304 = vmatprep.subr.bf16.mxu0 %v2871_v9  ;;  %7121 = vmatprep.subr.bf16.mxu1 %v2873_v10  ;;  %v1048_v9 = vld [vmem:[%s9580_s25 + $0x1570] sm:$0xff]  ;;  %v2942_v10 = vunpack.c.l.s8.bf16 %v1046_v8 }
 0x7d6   : > { %6334 = vmatprep.mubr.bf16.mxu0 %v9161_v22  ;;  %7151 = vmatprep.mubr.bf16.mxu1 %v9161_v22  ;;  %v2944_v11 = vunpack.c.l.s8.bf16 %v1048_v9  ;;  %v1054_v22 = vld [vmem:[%s9580_s25 + $0x15a0] sm:$0xff] }
 0x7d8   : > { %6305 = vmatpush1.bf16.msra.mxu0 %v2870_v14  ;;  %7122 = vmatpush1.bf16.msra.mxu1 %v2872_v15  ;;  %v1055_v14 = vld [vmem:[%s9580_s25 + $0x15a8] sm:$0xff]  ;;  %v1057_v15 = vld [vmem:[%s9580_s25 + $0x15b8] sm:$0xff] }
 0x7d9   : > { %6306 = vmatprep.subr.bf16.mxu0 %v2879_v16  ;;  %7123 = vmatprep.subr.bf16.mxu1 %v2881_v17  ;;  %v2950_v16 = vunpack.c.h.s8.bf16 %v1046_v8  ;;  %v2952_v17 = vunpack.c.h.s8.bf16 %v1048_v9  ;;  %v2959_v18 = vunpack.c.l.s8.bf16 %v1055_v14  ;;  %v2961_v19 = vunpack.c.l.s8.bf16 %v1057_v15 }
 0x7da   : > { %v2969_v29 = vunpack.c.h.s8.bf16 %v1057_v15 }
 0x7dc   : > { %6307 = vmatpush1.bf16.msra.mxu0 %v2878_v23  ;;  %7124 = vmatpush1.bf16.msra.mxu1 %v2880_v26  ;;  %v1056_v23 = vld [vmem:[%s9580_s25 + $0x15b0] sm:$0xff]  ;;  %v2958_v26 = vunpack.c.l.s8.bf16 %v1054_v22 }
 0x7dd   : > { %6308 = vmatprep.subr.bf16.mxu0 %v2887_v27  ;;  %7125 = vmatprep.subr.bf16.mxu1 %v2889_v28  ;;  %v2960_v27 = vunpack.c.l.s8.bf16 %v1056_v23  ;;  %v2967_v28 = vunpack.c.h.s8.bf16 %v1055_v14 }
 0x7e0   : > { %6309 = vmatpush1.bf16.msra.mxu0 %v2886_v31  ;;  %7126 = vmatpush1.bf16.msra.mxu1 %v2888_v32  ;;  %v1065_v31 = vld [vmem:[%s9580_s25 + $0x15f8] sm:$0xff]  ;;  %v2966_v32 = vunpack.c.h.s8.bf16 %v1054_v22 }
 0x7e1   : > { %6310 = vmatprep.subr.bf16.mxu0 %v2895_v33  ;;  %7127 = vmatprep.subr.bf16.mxu1 %v2897_v34  ;;  %v2968_v33 = vunpack.c.h.s8.bf16 %v1056_v23  ;;  %v2975_v34 = vunpack.c.l.s8.bf16 %v1063_v30  ;;  %v2977_v35 = vunpack.c.l.s8.bf16 %v1065_v31  ;;  %v2985_v41 = vunpack.c.h.s8.bf16 %v1065_v31 }
 0x7e4   : > { %6311 = vmatpush1.bf16.msra.mxu0 %v2894_v37  ;;  %7128 = vmatpush1.bf16.msra.mxu1 %v2896_v38  ;;  %v1064_v37 = vld [vmem:[%s9580_s25 + $0x15f0] sm:$0xff]  ;;  %v2974_v38 = vunpack.c.l.s8.bf16 %v1062_v36 }
 0x7e5   : > { %6312 = vmatprep.subr.bf16.mxu0 %v2903_v39  ;;  %7129 = vmatprep.subr.bf16.mxu1 %v2905_v40  ;;  %v2976_v39 = vunpack.c.l.s8.bf16 %v1064_v37  ;;  %v2983_v40 = vunpack.c.h.s8.bf16 %v1063_v30 }
 0x7e8   : > { %6313 = vmatpush1.bf16.msra.mxu0 %v2902_v43  ;;  %7130 = vmatpush1.bf16.msra.mxu1 %v2904_v44  ;;  %v1073_v43 = vld [vmem:[%s9580_s25 + $0x1638] sm:$0xff]  ;;  %v2982_v44 = vunpack.c.h.s8.bf16 %v1062_v36 }
 0x7e9   : > { %6314 = vmatprep.subr.bf16.mxu0 %v2911_v45  ;;  %7131 = vmatprep.subr.bf16.mxu1 %v2913_v46  ;;  %v2984_v45 = vunpack.c.h.s8.bf16 %v1064_v37  ;;  %v2991_v46 = vunpack.c.l.s8.bf16 %v1071_v42  ;;  %v2993_v47 = vunpack.c.l.s8.bf16 %v1073_v43  ;;  %v3001_v53 = vunpack.c.h.s8.bf16 %v1073_v43 }
 0x7ec   : > { %6315 = vmatpush1.bf16.msra.mxu0 %v2910_v49  ;;  %7132 = vmatpush1.bf16.msra.mxu1 %v2912_v50  ;;  %v1072_v49 = vld [vmem:[%s9580_s25 + $0x1630] sm:$0xff]  ;;  %v2990_v50 = vunpack.c.l.s8.bf16 %v1070_v48 }
 0x7ed   : > { %6316 = vmatprep.subr.bf16.mxu0 %v2919_v51  ;;  %7133 = vmatprep.subr.bf16.mxu1 %v2921_v52  ;;  %v2992_v51 = vunpack.c.l.s8.bf16 %v1072_v49  ;;  %v2999_v52 = vunpack.c.h.s8.bf16 %v1071_v42 }
 0x7f0   : > { %6317 = vmatpush1.bf16.msra.mxu0 %v2918_v55  ;;  %7134 = vmatpush1.bf16.msra.mxu1 %v2920_v56  ;;  %v1081_v55 = vld [vmem:[%s9580_s25 + $0x1678] sm:$0xff]  ;;  %v9162_v56 = vld [vmem:[%s11165_s0 + $0x50] ss:$152 sps:$4 sm:$0xff]  }
 0x7f1   : > { %6318 = vmatprep.subr.bf16.mxu0 %v2927_v57  ;;  %7135 = vmatprep.subr.bf16.mxu1 %v2929_v58  ;;  %v2998_v57 = vunpack.c.h.s8.bf16 %v1070_v48  ;;  %v3000_v58 = vunpack.c.h.s8.bf16 %v1072_v49  ;;  %v3009_v60 = vunpack.c.l.s8.bf16 %v1081_v55 }
 0x7f4   : > { %6319 = vmatpush1.bf16.msra.mxu0 %v2926_v61  ;;  %7136 = vmatpush1.bf16.msra.mxu1 %v2928_v62  ;;  %v1078_v61 = vld [vmem:[%s9580_s25 + $0x1660] sm:$0xff]  ;;  %v1080_v62 = vld [vmem:[%s9580_s25 + $0x1670] sm:$0xff] }
 0x7f5   : > { %6320 = vmatprep.subr.bf16.mxu0 %v2935_v63  ;;  %7137 = vmatprep.subr.bf16.mxu1 %v2937_v0  ;;  %v9163_v63 = vld [vmem:[%s11165_s0 + $0x5c] ss:$152 sps:$4 sm:$0xff]   ;;  %v3006_v0 = vunpack.c.l.s8.bf16 %v1078_v61  ;;  %v3008_v1 = vunpack.c.l.s8.bf16 %v1080_v62  ;;  %v3016_v8 = vunpack.c.h.s8.bf16 %v1080_v62 }
 0x7f8   : > { %6321 = vmatpush1.bf16.msra.mxu0 %v2934_v3  ;;  %7138 = vmatpush1.bf16.msra.mxu1 %v2936_v4  ;;  %v3017_v3 = vunpack.c.h.s8.bf16 %v1081_v55  ;;  %v1087_v4 = vld [vmem:[%s9580_s25 + $0x16a8] sm:$0xff] }
 0x7f9   : > { %6322 = vmatprep.subr.bf16.mxu0 %v2943_v5  ;;  %7139 = vmatprep.subr.bf16.mxu1 %v2945_v7  ;;  %v1089_v5 = vld [vmem:[%s9580_s25 + $0x16b8] sm:$0xff]  ;;  %v3014_v7 = vunpack.c.h.s8.bf16 %v1078_v61  ;;  %v3023_v9 = vunpack.c.l.s8.bf16 %v1087_v4  ;;  %v3031_v15 = vunpack.c.h.s8.bf16 %v1087_v4 }
 0x7fc   : > { %6323 = vmatpush1.bf16.msra.mxu0 %v2942_v10  ;;  %7140 = vmatpush1.bf16.msra.mxu1 %v2944_v11  ;;  %v3025_v10 = vunpack.c.l.s8.bf16 %v1089_v5  ;;  %v1086_v11 = vld [vmem:[%s9580_s25 + $0x16a0] sm:$0xff] }
 0x7fd   : > { %6324 = vmatprep.subr.bf16.mxu0 %v2951_v12  ;;  %7141 = vmatprep.subr.bf16.mxu1 %v2953_v13  ;;  %v1088_v12 = vld [vmem:[%s9580_s25 + $0x16b0] sm:$0xff]  ;;  %v3022_v13 = vunpack.c.l.s8.bf16 %v1086_v11 }
 0x7fe   : > { %v3024_v14 = vunpack.c.l.s8.bf16 %v1088_v12  ;;  %v3032_v22 = vunpack.c.h.s8.bf16 %v1088_v12  ;;  %v1126_v12 = vld [vmem:[%s9580_s25 + $0x17e0] sm:$0xff] }
 0x800   : > { %6325 = vmatpush1.bf16.msra.mxu0 %v2950_v16  ;;  %7142 = vmatpush1.bf16.msra.mxu1 %v2952_v17  ;;  %v3033_v16 = vunpack.c.h.s8.bf16 %v1089_v5  ;;  %v1095_v17 = vld [vmem:[%s9580_s25 + $0x16e8] sm:$0xff] }
 0x801   : > { %6326 = vmatprep.subr.bf16.mxu0 %v2959_v18  ;;  %7143 = vmatprep.subr.bf16.mxu1 %v2961_v19  ;;  %v1097_v18 = vld [vmem:[%s9580_s25 + $0x16f8] sm:$0xff]  ;;  %v3030_v19 = vunpack.c.h.s8.bf16 %v1086_v11  ;;  %v3039_v23 = vunpack.c.l.s8.bf16 %v1095_v17  ;;  %v3047_v31 = vunpack.c.h.s8.bf16 %v1095_v17  ;;  %v1127_v5 = vld [vmem:[%s9580_s25 + $0x17e8] sm:$0xff] }
 0x804   : > { %6327 = vmatpush1.bf16.msra.mxu0 %v2958_v26  ;;  %7144 = vmatpush1.bf16.msra.mxu1 %v2960_v27  ;;  %v3041_v26 = vunpack.c.l.s8.bf16 %v1097_v18  ;;  %v1094_v27 = vld [vmem:[%s9580_s25 + $0x16e0] sm:$0xff] }
 0x805   : > { %6328 = vmatprep.subr.bf16.mxu0 %v2967_v28  ;;  %7145 = vmatprep.subr.bf16.mxu1 %v2969_v29  ;;  %v1096_v28 = vld [vmem:[%s9580_s25 + $0x16f0] sm:$0xff]  ;;  %v3038_v29 = vunpack.c.l.s8.bf16 %v1094_v27 }
 0x806   : > { %v3040_v30 = vunpack.c.l.s8.bf16 %v1096_v28  ;;  %v3048_v36 = vunpack.c.h.s8.bf16 %v1096_v28  ;;  %v1134_v28 = vld [vmem:[%s9580_s25 + $0x1820] sm:$0xff] }
 0x808   : > { %6329 = vmatpush1.bf16.msra.mxu0 %v2966_v32  ;;  %7146 = vmatpush1.bf16.msra.mxu1 %v2968_v33  ;;  %v3049_v32 = vunpack.c.h.s8.bf16 %v1097_v18  ;;  %v1103_v33 = vld [vmem:[%s9580_s25 + $0x1728] sm:$0xff] }
 0x809   : > { %6330 = vmatprep.subr.bf16.mxu0 %v2975_v34  ;;  %7147 = vmatprep.subr.bf16.mxu1 %v2977_v35  ;;  %v1105_v34 = vld [vmem:[%s9580_s25 + $0x1738] sm:$0xff]  ;;  %v3046_v35 = vunpack.c.h.s8.bf16 %v1094_v27  ;;  %v3055_v37 = vunpack.c.l.s8.bf16 %v1103_v33  ;;  %v3063_v43 = vunpack.c.h.s8.bf16 %v1103_v33  ;;  %v1135_v18 = vld [vmem:[%s9580_s25 + $0x1828] sm:$0xff] }
 0x80c   : > { %6331 = vmatpush1.bf16.msra.mxu0 %v2974_v38  ;;  %7148 = vmatpush1.bf16.msra.mxu1 %v2976_v39  ;;  %v3057_v38 = vunpack.c.l.s8.bf16 %v1105_v34  ;;  %v1102_v39 = vld [vmem:[%s9580_s25 + $0x1720] sm:$0xff] }
 0x80d   : > { %6332 = vmatprep.subr.bf16.mxu0 %v2983_v40  ;;  %7149 = vmatprep.subr.bf16.mxu1 %v2985_v41  ;;  %v1104_v40 = vld [vmem:[%s9580_s25 + $0x1730] sm:$0xff]  ;;  %v3054_v41 = vunpack.c.l.s8.bf16 %v1102_v39 }
 0x80e   : > { %v3056_v42 = vunpack.c.l.s8.bf16 %v1104_v40  ;;  %v3064_v48 = vunpack.c.h.s8.bf16 %v1104_v40 }
 0x810   : > { %6333 = vmatpush1.bf16.msra.mxu0 %v2982_v44  ;;  %7150 = vmatpush1.bf16.msra.mxu1 %v2984_v45  ;;  %v3065_v44 = vunpack.c.h.s8.bf16 %v1105_v34  ;;  %v1111_v45 = vld [vmem:[%s9580_s25 + $0x1768] sm:$0xff] }
 0x811   : > { %6345 = vmatprep.subr.bf16.mxu0 %v2991_v46  ;;  %7162 = vmatprep.subr.bf16.mxu1 %v2993_v47  ;;  %v1113_v46 = vld [vmem:[%s9580_s25 + $0x1778] sm:$0xff]  ;;  %v3062_v47 = vunpack.c.h.s8.bf16 %v1102_v39  ;;  %v3071_v49 = vunpack.c.l.s8.bf16 %v1111_v45  ;;  %v3079_v55 = vunpack.c.h.s8.bf16 %v1111_v45  ;;  %v1143_v34 = vld [vmem:[%s9580_s25 + $0x1868] sm:$0xff] }
 0x812   : > { %v3135_v39 = vunpack.c.l.s8.bf16 %v1143_v34 }
 0x813   : > { %6335 = vmatmul.mubr.bf16.vlgmr.msra.gmra.mrb[4].mxu0 %v9162_v56  ;;  %7152 = vmatmul.mubr.bf16.vlgmr.msra.gmra.mrb[4].mxu1 %v9162_v56  ;;  %v3081_v56 = vunpack.c.h.s8.bf16 %v1113_v46 }
 0x814   : > { %6346 = vmatpush1.bf16.msra.mxu0 %v2990_v50  ;;  %7163 = vmatpush1.bf16.msra.mxu1 %v2992_v51  ;;  %v3073_v50 = vunpack.c.l.s8.bf16 %v1113_v46  ;;  %v1110_v51 = vld [vmem:[%s9580_s25 + $0x1760] sm:$0xff]  ;;  %v3143_v46 = vunpack.c.h.s8.bf16 %v1143_v34 }
 0x815   : > { %6347 = vmatprep.subr.bf16.mxu0 %v2999_v52  ;;  %7164 = vmatprep.subr.bf16.mxu1 %v3001_v53  ;;  %v1112_v52 = vld [vmem:[%s9580_s25 + $0x1770] sm:$0xff]  ;;  %v3070_v53 = vunpack.c.l.s8.bf16 %v1110_v51 }
 0x816   : > { %6377 = vmatprep.mubr.bf16.mxu0 %v9163_v63  ;;  %7194 = vmatprep.mubr.bf16.mxu1 %v9163_v63  ;;  %v3072_v54 = vunpack.c.l.s8.bf16 %v1112_v52  ;;  %v1118_v63 = vld [vmem:[%s9580_s25 + $0x17a0] sm:$0xff] }
 0x818   : > { %6348 = vmatpush1.bf16.msra.mxu0 %v2998_v57  ;;  %7165 = vmatpush1.bf16.msra.mxu1 %v3000_v58  ;;  %v1119_v57 = vld [vmem:[%s9580_s25 + $0x17a8] sm:$0xff]  ;;  %v1121_v58 = vld [vmem:[%s9580_s25 + $0x17b8] sm:$0xff] }
 0x819   : > { %6349 = vmatprep.subr.bf16.mxu0 %v3007_v59  ;;  %7166 = vmatprep.subr.bf16.mxu1 %v3009_v60  ;;  %v3078_v59 = vunpack.c.h.s8.bf16 %v1110_v51  ;;  %v3080_v60 = vunpack.c.h.s8.bf16 %v1112_v52  ;;  %v3087_v61 = vunpack.c.l.s8.bf16 %v1119_v57  ;;  %v3089_v62 = vunpack.c.l.s8.bf16 %v1121_v58 }
 0x81a   : > { %v3097_v4 = vunpack.c.h.s8.bf16 %v1121_v58 }
 0x81c   : > { %6350 = vmatpush1.bf16.msra.mxu0 %v3006_v0  ;;  %7167 = vmatpush1.bf16.msra.mxu1 %v3008_v1  ;;  %v1120_v0 = vld [vmem:[%s9580_s25 + $0x17b0] sm:$0xff]  ;;  %v3086_v1 = vunpack.c.l.s8.bf16 %v1118_v63 }
 0x81d   : > { %6351 = vmatprep.subr.bf16.mxu0 %v3015_v2  ;;  %7168 = vmatprep.subr.bf16.mxu1 %v3017_v3  ;;  %v3088_v2 = vunpack.c.l.s8.bf16 %v1120_v0  ;;  %v3095_v3 = vunpack.c.h.s8.bf16 %v1119_v57 }
 0x820   : > { %6352 = vmatpush1.bf16.msra.mxu0 %v3014_v7  ;;  %7169 = vmatpush1.bf16.msra.mxu1 %v3016_v8  ;;  %v1129_v7 = vld [vmem:[%s9580_s25 + $0x17f8] sm:$0xff]  ;;  %v3094_v8 = vunpack.c.h.s8.bf16 %v1118_v63 }
 0x821   : > { %6353 = vmatprep.subr.bf16.mxu0 %v3023_v9  ;;  %7170 = vmatprep.subr.bf16.mxu1 %v3025_v10  ;;  %v3096_v9 = vunpack.c.h.s8.bf16 %v1120_v0  ;;  %v3103_v10 = vunpack.c.l.s8.bf16 %v1127_v5  ;;  %v3105_v11 = vunpack.c.l.s8.bf16 %v1129_v7  ;;  %v3113_v17 = vunpack.c.h.s8.bf16 %v1129_v7 }
 0x824   : > { %6354 = vmatpush1.bf16.msra.mxu0 %v3022_v13  ;;  %7171 = vmatpush1.bf16.msra.mxu1 %v3024_v14  ;;  %v1128_v13 = vld [vmem:[%s9580_s25 + $0x17f0] sm:$0xff]  ;;  %v3102_v14 = vunpack.c.l.s8.bf16 %v1126_v12 }
 0x825   : > { %6355 = vmatprep.subr.bf16.mxu0 %v3031_v15  ;;  %7172 = vmatprep.subr.bf16.mxu1 %v3033_v16  ;;  %v3104_v15 = vunpack.c.l.s8.bf16 %v1128_v13  ;;  %v3111_v16 = vunpack.c.h.s8.bf16 %v1127_v5 }
 0x828   : > { %6356 = vmatpush1.bf16.msra.mxu0 %v3030_v19  ;;  %7173 = vmatpush1.bf16.msra.mxu1 %v3032_v22  ;;  %v1137_v19 = vld [vmem:[%s9580_s25 + $0x1838] sm:$0xff]  ;;  %v3110_v22 = vunpack.c.h.s8.bf16 %v1126_v12 }
 0x829   : > { %6357 = vmatprep.subr.bf16.mxu0 %v3039_v23  ;;  %7174 = vmatprep.subr.bf16.mxu1 %v3041_v26  ;;  %v3112_v23 = vunpack.c.h.s8.bf16 %v1128_v13  ;;  %v3119_v26 = vunpack.c.l.s8.bf16 %v1135_v18  ;;  %v3121_v27 = vunpack.c.l.s8.bf16 %v1137_v19  ;;  %v3129_v33 = vunpack.c.h.s8.bf16 %v1137_v19 }
 0x82c   : > { %6358 = vmatpush1.bf16.msra.mxu0 %v3038_v29  ;;  %7175 = vmatpush1.bf16.msra.mxu1 %v3040_v30  ;;  %v1136_v29 = vld [vmem:[%s9580_s25 + $0x1830] sm:$0xff]  ;;  %v3118_v30 = vunpack.c.l.s8.bf16 %v1134_v28 }
 0x82d   : > { %6359 = vmatprep.subr.bf16.mxu0 %v3047_v31  ;;  %7176 = vmatprep.subr.bf16.mxu1 %v3049_v32  ;;  %v3120_v31 = vunpack.c.l.s8.bf16 %v1136_v29  ;;  %v3127_v32 = vunpack.c.h.s8.bf16 %v1135_v18 }
 0x830   : > { %6360 = vmatpush1.bf16.msra.mxu0 %v3046_v35  ;;  %7177 = vmatpush1.bf16.msra.mxu1 %v3048_v36  ;;  %v1145_v35 = vld [vmem:[%s9580_s25 + $0x1878] sm:$0xff] }
 0x831   : > { %6361 = vmatprep.subr.bf16.mxu0 %v3055_v37  ;;  %7178 = vmatprep.subr.bf16.mxu1 %v3057_v38  ;;  %v9164_v36 = vld [vmem:[%s11165_s0 + $0x58] ss:$152 sps:$4 sm:$0xff]   ;;  %v3126_v37 = vunpack.c.h.s8.bf16 %v1134_v28  ;;  %v3128_v38 = vunpack.c.h.s8.bf16 %v1136_v29  ;;  %v3137_v40 = vunpack.c.l.s8.bf16 %v1145_v35 }
 0x834   : > { %6362 = vmatpush1.bf16.msra.mxu0 %v3054_v41  ;;  %7179 = vmatpush1.bf16.msra.mxu1 %v3056_v42  ;;  %v1142_v41 = vld [vmem:[%s9580_s25 + $0x1860] sm:$0xff]  ;;  %v1144_v42 = vld [vmem:[%s9580_s25 + $0x1870] sm:$0xff] }
 0x835   : > { %6363 = vmatprep.subr.bf16.mxu0 %v3063_v43  ;;  %7180 = vmatprep.subr.bf16.mxu1 %v3065_v44  ;;  %v9165_v43 = vld [vmem:[%s11165_s0 + $0x64] ss:$152 sps:$4 sm:$0xff]   ;;  %v3134_v44 = vunpack.c.l.s8.bf16 %v1142_v41  ;;  %v3136_v45 = vunpack.c.l.s8.bf16 %v1144_v42  ;;  %v3144_v51 = vunpack.c.h.s8.bf16 %v1144_v42 }
 0x838   : > { %6364 = vmatpush1.bf16.msra.mxu0 %v3062_v47  ;;  %7181 = vmatpush1.bf16.msra.mxu1 %v3064_v48  ;;  %v3145_v47 = vunpack.c.h.s8.bf16 %v1145_v35  ;;  %v1151_v48 = vld [vmem:[%s9580_s25 + $0x18a8] sm:$0xff] }
 0x839   : > { %6365 = vmatprep.subr.bf16.mxu0 %v3071_v49  ;;  %7182 = vmatprep.subr.bf16.mxu1 %v3073_v50  ;;  %v1153_v49 = vld [vmem:[%s9580_s25 + $0x18b8] sm:$0xff]  ;;  %v3142_v50 = vunpack.c.h.s8.bf16 %v1142_v41  ;;  %v3151_v52 = vunpack.c.l.s8.bf16 %v1151_v48  ;;  %v3159_v58 = vunpack.c.h.s8.bf16 %v1151_v48 }
 0x83c   : > { %6366 = vmatpush1.bf16.msra.mxu0 %v3070_v53  ;;  %7183 = vmatpush1.bf16.msra.mxu1 %v3072_v54  ;;  %v3153_v53 = vunpack.c.l.s8.bf16 %v1153_v49  ;;  %v1150_v54 = vld [vmem:[%s9580_s25 + $0x18a0] sm:$0xff] }
 0x83d   : > { %6367 = vmatprep.subr.bf16.mxu0 %v3079_v55  ;;  %7184 = vmatprep.subr.bf16.mxu1 %v3081_v56  ;;  %v1152_v55 = vld [vmem:[%s9580_s25 + $0x18b0] sm:$0xff]  ;;  %v3150_v56 = vunpack.c.l.s8.bf16 %v1150_v54 }
 0x83e   : > { %v3152_v57 = vunpack.c.l.s8.bf16 %v1152_v55  ;;  %v3160_v63 = vunpack.c.h.s8.bf16 %v1152_v55  ;;  %v1190_v55 = vld [vmem:[%s9580_s25 + $0x19e0] sm:$0xff] }
 0x840   : > { %6368 = vmatpush1.bf16.msra.mxu0 %v3078_v59  ;;  %7185 = vmatpush1.bf16.msra.mxu1 %v3080_v60  ;;  %v3161_v59 = vunpack.c.h.s8.bf16 %v1153_v49  ;;  %v1159_v60 = vld [vmem:[%s9580_s25 + $0x18e8] sm:$0xff] }
 0x841   : > { %6369 = vmatprep.subr.bf16.mxu0 %v3087_v61  ;;  %7186 = vmatprep.subr.bf16.mxu1 %v3089_v62  ;;  %v1161_v61 = vld [vmem:[%s9580_s25 + $0x18f8] sm:$0xff]  ;;  %v3158_v62 = vunpack.c.h.s8.bf16 %v1150_v54  ;;  %v3167_v0 = vunpack.c.l.s8.bf16 %v1159_v60  ;;  %v3175_v7 = vunpack.c.h.s8.bf16 %v1159_v60  ;;  %v1191_v49 = vld [vmem:[%s9580_s25 + $0x19e8] sm:$0xff] }
 0x844   : > { %6370 = vmatpush1.bf16.msra.mxu0 %v3086_v1  ;;  %7187 = vmatpush1.bf16.msra.mxu1 %v3088_v2  ;;  %v3169_v1 = vunpack.c.l.s8.bf16 %v1161_v61  ;;  %v1158_v2 = vld [vmem:[%s9580_s25 + $0x18e0] sm:$0xff] }
 0x845   : > { %6371 = vmatprep.subr.bf16.mxu0 %v3095_v3  ;;  %7188 = vmatprep.subr.bf16.mxu1 %v3097_v4  ;;  %v1160_v3 = vld [vmem:[%s9580_s25 + $0x18f0] sm:$0xff]  ;;  %v3166_v4 = vunpack.c.l.s8.bf16 %v1158_v2 }
 0x846   : > { %v3168_v5 = vunpack.c.l.s8.bf16 %v1160_v3  ;;  %v3176_v12 = vunpack.c.h.s8.bf16 %v1160_v3  ;;  %v1198_v3 = vld [vmem:[%s9580_s25 + $0x1a20] sm:$0xff] }
 0x848   : > { %6372 = vmatpush1.bf16.msra.mxu0 %v3094_v8  ;;  %7189 = vmatpush1.bf16.msra.mxu1 %v3096_v9  ;;  %v3177_v8 = vunpack.c.h.s8.bf16 %v1161_v61  ;;  %v1167_v9 = vld [vmem:[%s9580_s25 + $0x1928] sm:$0xff] }
 0x849   : > { %6373 = vmatprep.subr.bf16.mxu0 %v3103_v10  ;;  %7190 = vmatprep.subr.bf16.mxu1 %v3105_v11  ;;  %v1169_v10 = vld [vmem:[%s9580_s25 + $0x1938] sm:$0xff]  ;;  %v3174_v11 = vunpack.c.h.s8.bf16 %v1158_v2  ;;  %v3183_v13 = vunpack.c.l.s8.bf16 %v1167_v9  ;;  %v3191_v19 = vunpack.c.h.s8.bf16 %v1167_v9  ;;  %v1199_v61 = vld [vmem:[%s9580_s25 + $0x1a28] sm:$0xff] }
 0x84c   : > { %6374 = vmatpush1.bf16.msra.mxu0 %v3102_v14  ;;  %7191 = vmatpush1.bf16.msra.mxu1 %v3104_v15  ;;  %v3185_v14 = vunpack.c.l.s8.bf16 %v1169_v10  ;;  %v1166_v15 = vld [vmem:[%s9580_s25 + $0x1920] sm:$0xff] }
 0x84d   : > { %6375 = vmatprep.subr.bf16.mxu0 %v3111_v16  ;;  %7192 = vmatprep.subr.bf16.mxu1 %v3113_v17  ;;  %v1168_v16 = vld [vmem:[%s9580_s25 + $0x1930] sm:$0xff]  ;;  %v3182_v17 = vunpack.c.l.s8.bf16 %v1166_v15 }
 0x84e   : > { %v3184_v18 = vunpack.c.l.s8.bf16 %v1168_v16  ;;  %v3192_v28 = vunpack.c.h.s8.bf16 %v1168_v16 }
 0x850   : > { %6376 = vmatpush1.bf16.msra.mxu0 %v3110_v22  ;;  %7193 = vmatpush1.bf16.msra.mxu1 %v3112_v23  ;;  %v3193_v22 = vunpack.c.h.s8.bf16 %v1169_v10  ;;  %v1175_v23 = vld [vmem:[%s9580_s25 + $0x1968] sm:$0xff] }
 0x851   : > { %6388 = vmatprep.subr.bf16.mxu0 %v3119_v26  ;;  %7205 = vmatprep.subr.bf16.mxu1 %v3121_v27  ;;  %v1177_v26 = vld [vmem:[%s9580_s25 + $0x1978] sm:$0xff]  ;;  %v3190_v27 = vunpack.c.h.s8.bf16 %v1166_v15  ;;  %v3199_v29 = vunpack.c.l.s8.bf16 %v1175_v23  ;;  %v3207_v35 = vunpack.c.h.s8.bf16 %v1175_v23  ;;  %v1207_v10 = vld [vmem:[%s9580_s25 + $0x1a68] sm:$0xff] }
 0x852   : > { %v3263_v15 = vunpack.c.l.s8.bf16 %v1207_v10 }
 0x853   : > { %6378 = vmatmul.mubr.bf16.vlgmr.msra.gmra.mrb[4].mxu0 %v9164_v36  ;;  %7195 = vmatmul.mubr.bf16.vlgmr.msra.gmra.mrb[4].mxu1 %v9164_v36  ;;  %v3209_v36 = vunpack.c.h.s8.bf16 %v1177_v26 }
 0x854   : > { %6389 = vmatpush1.bf16.msra.mxu0 %v3118_v30  ;;  %7206 = vmatpush1.bf16.msra.mxu1 %v3120_v31  ;;  %v3201_v30 = vunpack.c.l.s8.bf16 %v1177_v26  ;;  %v1174_v31 = vld [vmem:[%s9580_s25 + $0x1960] sm:$0xff]  ;;  %v3271_v26 = vunpack.c.h.s8.bf16 %v1207_v10 }
 0x855   : > { %6390 = vmatprep.subr.bf16.mxu0 %v3127_v32  ;;  %7207 = vmatprep.subr.bf16.mxu1 %v3129_v33  ;;  %v1176_v32 = vld [vmem:[%s9580_s25 + $0x1970] sm:$0xff]  ;;  %v3198_v33 = vunpack.c.l.s8.bf16 %v1174_v31 }
 0x856   : > { %6420 = vmatprep.mubr.bf16.mxu0 %v9165_v43  ;;  %7237 = vmatprep.mubr.bf16.mxu1 %v9165_v43  ;;  %v3200_v34 = vunpack.c.l.s8.bf16 %v1176_v32  ;;  %v1182_v43 = vld [vmem:[%s9580_s25 + $0x19a0] sm:$0xff] }
 0x858   : > { %6391 = vmatpush1.bf16.msra.mxu0 %v3126_v37  ;;  %7208 = vmatpush1.bf16.msra.mxu1 %v3128_v38  ;;  %v1183_v37 = vld [vmem:[%s9580_s25 + $0x19a8] sm:$0xff]  ;;  %v1185_v38 = vld [vmem:[%s9580_s25 + $0x19b8] sm:$0xff] }
 0x859   : > { %6392 = vmatprep.subr.bf16.mxu0 %v3135_v39  ;;  %7209 = vmatprep.subr.bf16.mxu1 %v3137_v40  ;;  %v3206_v39 = vunpack.c.h.s8.bf16 %v1174_v31  ;;  %v3208_v40 = vunpack.c.h.s8.bf16 %v1176_v32  ;;  %v3215_v41 = vunpack.c.l.s8.bf16 %v1183_v37  ;;  %v3217_v42 = vunpack.c.l.s8.bf16 %v1185_v38 }
 0x85a   : > { %v3225_v48 = vunpack.c.h.s8.bf16 %v1185_v38 }
 0x85c   : > { %6393 = vmatpush1.bf16.msra.mxu0 %v3134_v44  ;;  %7210 = vmatpush1.bf16.msra.mxu1 %v3136_v45  ;;  %v1184_v44 = vld [vmem:[%s9580_s25 + $0x19b0] sm:$0xff]  ;;  %v3214_v45 = vunpack.c.l.s8.bf16 %v1182_v43 }
 0x85d   : > { %6394 = vmatprep.subr.bf16.mxu0 %v3143_v46  ;;  %7211 = vmatprep.subr.bf16.mxu1 %v3145_v47  ;;  %v3216_v46 = vunpack.c.l.s8.bf16 %v1184_v44  ;;  %v3223_v47 = vunpack.c.h.s8.bf16 %v1183_v37 }
 0x860   : > { %6395 = vmatpush1.bf16.msra.mxu0 %v3142_v50  ;;  %7212 = vmatpush1.bf16.msra.mxu1 %v3144_v51  ;;  %v1193_v50 = vld [vmem:[%s9580_s25 + $0x19f8] sm:$0xff]  ;;  %v3222_v51 = vunpack.c.h.s8.bf16 %v1182_v43 }
 0x861   : > { %6396 = vmatprep.subr.bf16.mxu0 %v3151_v52  ;;  %7213 = vmatprep.subr.bf16.mxu1 %v3153_v53  ;;  %v3224_v52 = vunpack.c.h.s8.bf16 %v1184_v44  ;;  %v3231_v53 = vunpack.c.l.s8.bf16 %v1191_v49  ;;  %v3233_v54 = vunpack.c.l.s8.bf16 %v1193_v50  ;;  %v3241_v60 = vunpack.c.h.s8.bf16 %v1193_v50 }
 0x864   : > { %6397 = vmatpush1.bf16.msra.mxu0 %v3150_v56  ;;  %7214 = vmatpush1.bf16.msra.mxu1 %v3152_v57  ;;  %v1192_v56 = vld [vmem:[%s9580_s25 + $0x19f0] sm:$0xff]  ;;  %v3230_v57 = vunpack.c.l.s8.bf16 %v1190_v55 }
 0x865   : > { %6398 = vmatprep.subr.bf16.mxu0 %v3159_v58  ;;  %7215 = vmatprep.subr.bf16.mxu1 %v3161_v59  ;;  %v3232_v58 = vunpack.c.l.s8.bf16 %v1192_v56  ;;  %v3239_v59 = vunpack.c.h.s8.bf16 %v1191_v49 }
 0x868   : > { %6399 = vmatpush1.bf16.msra.mxu0 %v3158_v62  ;;  %7216 = vmatpush1.bf16.msra.mxu1 %v3160_v63  ;;  %v1201_v62 = vld [vmem:[%s9580_s25 + $0x1a38] sm:$0xff]  ;;  %v3238_v63 = vunpack.c.h.s8.bf16 %v1190_v55 }
 0x869   : > { %6400 = vmatprep.subr.bf16.mxu0 %v3167_v0  ;;  %7217 = vmatprep.subr.bf16.mxu1 %v3169_v1  ;;  %v3240_v0 = vunpack.c.h.s8.bf16 %v1192_v56  ;;  %v3247_v1 = vunpack.c.l.s8.bf16 %v1199_v61  ;;  %v3249_v2 = vunpack.c.l.s8.bf16 %v1201_v62  ;;  %v3257_v9 = vunpack.c.h.s8.bf16 %v1201_v62 }
 0x86c   : > { %6401 = vmatpush1.bf16.msra.mxu0 %v3166_v4  ;;  %7218 = vmatpush1.bf16.msra.mxu1 %v3168_v5  ;;  %v1200_v4 = vld [vmem:[%s9580_s25 + $0x1a30] sm:$0xff]  ;;  %v3246_v5 = vunpack.c.l.s8.bf16 %v1198_v3 }
 0x86d   : > { %6402 = vmatprep.subr.bf16.mxu0 %v3175_v7  ;;  %7219 = vmatprep.subr.bf16.mxu1 %v3177_v8  ;;  %v3248_v7 = vunpack.c.l.s8.bf16 %v1200_v4  ;;  %v3255_v8 = vunpack.c.h.s8.bf16 %v1199_v61 }
 0x870   : > { %6403 = vmatpush1.bf16.msra.mxu0 %v3174_v11  ;;  %7220 = vmatpush1.bf16.msra.mxu1 %v3176_v12  ;;  %v1209_v11 = vld [vmem:[%s9580_s25 + $0x1a78] sm:$0xff] }
 0x871   : > { %6404 = vmatprep.subr.bf16.mxu0 %v3183_v13  ;;  %7221 = vmatprep.subr.bf16.mxu1 %v3185_v14  ;;  %v9166_v12 = vld [vmem:[%s11165_s0 + $0x60] ss:$152 sps:$4 sm:$0xff]   ;;  %v3254_v13 = vunpack.c.h.s8.bf16 %v1198_v3  ;;  %v3256_v14 = vunpack.c.h.s8.bf16 %v1200_v4  ;;  %v3265_v16 = vunpack.c.l.s8.bf16 %v1209_v11 }
 0x874   : > { %6405 = vmatpush1.bf16.msra.mxu0 %v3182_v17  ;;  %7222 = vmatpush1.bf16.msra.mxu1 %v3184_v18  ;;  %v1206_v17 = vld [vmem:[%s9580_s25 + $0x1a60] sm:$0xff]  ;;  %v1208_v18 = vld [vmem:[%s9580_s25 + $0x1a70] sm:$0xff] }
 0x875   : > { %6406 = vmatprep.subr.bf16.mxu0 %v3191_v19  ;;  %7223 = vmatprep.subr.bf16.mxu1 %v3193_v22  ;;  %v9167_v19 = vld [vmem:[%s11165_s0 + $0x6c] ss:$152 sps:$4 sm:$0xff]   ;;  %v3262_v22 = vunpack.c.l.s8.bf16 %v1206_v17  ;;  %v3264_v23 = vunpack.c.l.s8.bf16 %v1208_v18  ;;  %v3272_v31 = vunpack.c.h.s8.bf16 %v1208_v18 }
 0x878   : > { %6407 = vmatpush1.bf16.msra.mxu0 %v3190_v27  ;;  %7224 = vmatpush1.bf16.msra.mxu1 %v3192_v28  ;;  %v3273_v27 = vunpack.c.h.s8.bf16 %v1209_v11  ;;  %v1215_v28 = vld [vmem:[%s9580_s25 + $0x1aa8] sm:$0xff] }
 0x879   : > { %6408 = vmatprep.subr.bf16.mxu0 %v3199_v29  ;;  %7225 = vmatprep.subr.bf16.mxu1 %v3201_v30  ;;  %v1217_v29 = vld [vmem:[%s9580_s25 + $0x1ab8] sm:$0xff]  ;;  %v3270_v30 = vunpack.c.h.s8.bf16 %v1206_v17  ;;  %v3279_v32 = vunpack.c.l.s8.bf16 %v1215_v28  ;;  %v3287_v38 = vunpack.c.h.s8.bf16 %v1215_v28 }
 0x87c   : > { %6409 = vmatpush1.bf16.msra.mxu0 %v3198_v33  ;;  %7226 = vmatpush1.bf16.msra.mxu1 %v3200_v34  ;;  %v3281_v33 = vunpack.c.l.s8.bf16 %v1217_v29  ;;  %v1214_v34 = vld [vmem:[%s9580_s25 + $0x1aa0] sm:$0xff] }
 0x87d   : > { %6410 = vmatprep.subr.bf16.mxu0 %v3207_v35  ;;  %7227 = vmatprep.subr.bf16.mxu1 %v3209_v36  ;;  %v1216_v35 = vld [vmem:[%s9580_s25 + $0x1ab0] sm:$0xff]  ;;  %v3278_v36 = vunpack.c.l.s8.bf16 %v1214_v34 }
 0x87e   : > { %v3280_v37 = vunpack.c.l.s8.bf16 %v1216_v35  ;;  %v3288_v43 = vunpack.c.h.s8.bf16 %v1216_v35  ;;  %v1254_v35 = vld [vmem:[%s9580_s25 + $0x1be0] sm:$0xff] }
 0x880   : > { %6411 = vmatpush1.bf16.msra.mxu0 %v3206_v39  ;;  %7228 = vmatpush1.bf16.msra.mxu1 %v3208_v40  ;;  %v3289_v39 = vunpack.c.h.s8.bf16 %v1217_v29  ;;  %v1223_v40 = vld [vmem:[%s9580_s25 + $0x1ae8] sm:$0xff] }
 0x881   : > { %6412 = vmatprep.subr.bf16.mxu0 %v3215_v41  ;;  %7229 = vmatprep.subr.bf16.mxu1 %v3217_v42  ;;  %v1225_v41 = vld [vmem:[%s9580_s25 + $0x1af8] sm:$0xff]  ;;  %v3286_v42 = vunpack.c.h.s8.bf16 %v1214_v34  ;;  %v3295_v44 = vunpack.c.l.s8.bf16 %v1223_v40  ;;  %v3303_v50 = vunpack.c.h.s8.bf16 %v1223_v40  ;;  %v1255_v29 = vld [vmem:[%s9580_s25 + $0x1be8] sm:$0xff] }
 0x884   : > { %6413 = vmatpush1.bf16.msra.mxu0 %v3214_v45  ;;  %7230 = vmatpush1.bf16.msra.mxu1 %v3216_v46  ;;  %v3297_v45 = vunpack.c.l.s8.bf16 %v1225_v41  ;;  %v1222_v46 = vld [vmem:[%s9580_s25 + $0x1ae0] sm:$0xff] }
 0x885   : > { %6414 = vmatprep.subr.bf16.mxu0 %v3223_v47  ;;  %7231 = vmatprep.subr.bf16.mxu1 %v3225_v48  ;;  %v1224_v47 = vld [vmem:[%s9580_s25 + $0x1af0] sm:$0xff]  ;;  %v3294_v48 = vunpack.c.l.s8.bf16 %v1222_v46 }
 0x886   : > { %v3296_v49 = vunpack.c.l.s8.bf16 %v1224_v47  ;;  %v3304_v55 = vunpack.c.h.s8.bf16 %v1224_v47  ;;  %v1262_v47 = vld [vmem:[%s9580_s25 + $0x1c20] sm:$0xff] }
 0x888   : > { %6415 = vmatpush1.bf16.msra.mxu0 %v3222_v51  ;;  %7232 = vmatpush1.bf16.msra.mxu1 %v3224_v52  ;;  %v3305_v51 = vunpack.c.h.s8.bf16 %v1225_v41  ;;  %v1231_v52 = vld [vmem:[%s9580_s25 + $0x1b28] sm:$0xff] }
 0x889   : > { %6416 = vmatprep.subr.bf16.mxu0 %v3231_v53  ;;  %7233 = vmatprep.subr.bf16.mxu1 %v3233_v54  ;;  %v1233_v53 = vld [vmem:[%s9580_s25 + $0x1b38] sm:$0xff]  ;;  %v3302_v54 = vunpack.c.h.s8.bf16 %v1222_v46  ;;  %v3311_v56 = vunpack.c.l.s8.bf16 %v1231_v52  ;;  %v3319_v62 = vunpack.c.h.s8.bf16 %v1231_v52  ;;  %v1263_v41 = vld [vmem:[%s9580_s25 + $0x1c28] sm:$0xff] }
 0x88c   : > { %6417 = vmatpush1.bf16.msra.mxu0 %v3230_v57  ;;  %7234 = vmatpush1.bf16.msra.mxu1 %v3232_v58  ;;  %v3313_v57 = vunpack.c.l.s8.bf16 %v1233_v53  ;;  %v1230_v58 = vld [vmem:[%s9580_s25 + $0x1b20] sm:$0xff] }
 0x88d   : > { %6418 = vmatprep.subr.bf16.mxu0 %v3239_v59  ;;  %7235 = vmatprep.subr.bf16.mxu1 %v3241_v60  ;;  %v1232_v59 = vld [vmem:[%s9580_s25 + $0x1b30] sm:$0xff]  ;;  %v3310_v60 = vunpack.c.l.s8.bf16 %v1230_v58 }
 0x88e   : > { %v3312_v61 = vunpack.c.l.s8.bf16 %v1232_v59  ;;  %v3320_v3 = vunpack.c.h.s8.bf16 %v1232_v59 }
 0x890   : > { %6419 = vmatpush1.bf16.msra.mxu0 %v3238_v63  ;;  %7236 = vmatpush1.bf16.msra.mxu1 %v3240_v0  ;;  %v3321_v63 = vunpack.c.h.s8.bf16 %v1233_v53  ;;  %v1239_v0 = vld [vmem:[%s9580_s25 + $0x1b68] sm:$0xff] }
 0x891   : > { %6431 = vmatprep.subr.bf16.mxu0 %v3247_v1  ;;  %7248 = vmatprep.subr.bf16.mxu1 %v3249_v2  ;;  %v1241_v1 = vld [vmem:[%s9580_s25 + $0x1b78] sm:$0xff]  ;;  %v3318_v2 = vunpack.c.h.s8.bf16 %v1230_v58  ;;  %v3327_v4 = vunpack.c.l.s8.bf16 %v1239_v0  ;;  %v3335_v11 = vunpack.c.h.s8.bf16 %v1239_v0  ;;  %v1271_v53 = vld [vmem:[%s9580_s25 + $0x1c68] sm:$0xff] }
 0x892   : > { %v3391_v58 = vunpack.c.l.s8.bf16 %v1271_v53 }
 0x893   : > { %6421 = vmatmul.mubr.bf16.vlgmr.msra.gmra.mrb[4].mxu0 %v9166_v12  ;;  %7238 = vmatmul.mubr.bf16.vlgmr.msra.gmra.mrb[4].mxu1 %v9166_v12  ;;  %v3337_v12 = vunpack.c.h.s8.bf16 %v1241_v1 }
 0x894   : > { %6432 = vmatpush1.bf16.msra.mxu0 %v3246_v5  ;;  %7249 = vmatpush1.bf16.msra.mxu1 %v3248_v7  ;;  %v3329_v5 = vunpack.c.l.s8.bf16 %v1241_v1  ;;  %v1238_v7 = vld [vmem:[%s9580_s25 + $0x1b60] sm:$0xff]  ;;  %v3399_v1 = vunpack.c.h.s8.bf16 %v1271_v53 }
 0x895   : > { %6433 = vmatprep.subr.bf16.mxu0 %v3255_v8  ;;  %7250 = vmatprep.subr.bf16.mxu1 %v3257_v9  ;;  %v1240_v8 = vld [vmem:[%s9580_s25 + $0x1b70] sm:$0xff]  ;;  %v3326_v9 = vunpack.c.l.s8.bf16 %v1238_v7 }
 0x896   : > { %6463 = vmatprep.mubr.bf16.mxu0 %v9167_v19  ;;  %7280 = vmatprep.mubr.bf16.mxu1 %v9167_v19  ;;  %v3328_v10 = vunpack.c.l.s8.bf16 %v1240_v8  ;;  %v1246_v19 = vld [vmem:[%s9580_s25 + $0x1ba0] sm:$0xff] }
 0x898   : > { %6434 = vmatpush1.bf16.msra.mxu0 %v3254_v13  ;;  %7251 = vmatpush1.bf16.msra.mxu1 %v3256_v14  ;;  %v1247_v13 = vld [vmem:[%s9580_s25 + $0x1ba8] sm:$0xff]  ;;  %v1249_v14 = vld [vmem:[%s9580_s25 + $0x1bb8] sm:$0xff] }
 0x899   : > { %6435 = vmatprep.subr.bf16.mxu0 %v3263_v15  ;;  %7252 = vmatprep.subr.bf16.mxu1 %v3265_v16  ;;  %v3334_v15 = vunpack.c.h.s8.bf16 %v1238_v7  ;;  %v3336_v16 = vunpack.c.h.s8.bf16 %v1240_v8  ;;  %v3343_v17 = vunpack.c.l.s8.bf16 %v1247_v13  ;;  %v3345_v18 = vunpack.c.l.s8.bf16 %v1249_v14 }
 0x89a   : > { %v3353_v28 = vunpack.c.h.s8.bf16 %v1249_v14 }
 0x89c   : > { %6436 = vmatpush1.bf16.msra.mxu0 %v3262_v22  ;;  %7253 = vmatpush1.bf16.msra.mxu1 %v3264_v23  ;;  %v1248_v22 = vld [vmem:[%s9580_s25 + $0x1bb0] sm:$0xff]  ;;  %v3342_v23 = vunpack.c.l.s8.bf16 %v1246_v19 }
 0x89d   : > { %6437 = vmatprep.subr.bf16.mxu0 %v3271_v26  ;;  %7254 = vmatprep.subr.bf16.mxu1 %v3273_v27  ;;  %v3344_v26 = vunpack.c.l.s8.bf16 %v1248_v22  ;;  %v3351_v27 = vunpack.c.h.s8.bf16 %v1247_v13 }
 0x8a0   : > { %6438 = vmatpush1.bf16.msra.mxu0 %v3270_v30  ;;  %7255 = vmatpush1.bf16.msra.mxu1 %v3272_v31  ;;  %v1257_v30 = vld [vmem:[%s9580_s25 + $0x1bf8] sm:$0xff]  ;;  %v3350_v31 = vunpack.c.h.s8.bf16 %v1246_v19 }
 0x8a1   : > { %6439 = vmatprep.subr.bf16.mxu0 %v3279_v32  ;;  %7256 = vmatprep.subr.bf16.mxu1 %v3281_v33  ;;  %v3352_v32 = vunpack.c.h.s8.bf16 %v1248_v22  ;;  %v3359_v33 = vunpack.c.l.s8.bf16 %v1255_v29  ;;  %v3361_v34 = vunpack.c.l.s8.bf16 %v1257_v30  ;;  %v3369_v40 = vunpack.c.h.s8.bf16 %v1257_v30 }
 0x8a4   : > { %6440 = vmatpush1.bf16.msra.mxu0 %v3278_v36  ;;  %7257 = vmatpush1.bf16.msra.mxu1 %v3280_v37  ;;  %v1256_v36 = vld [vmem:[%s9580_s25 + $0x1bf0] sm:$0xff]  ;;  %v3358_v37 = vunpack.c.l.s8.bf16 %v1254_v35 }
 0x8a5   : > { %6441 = vmatprep.subr.bf16.mxu0 %v3287_v38  ;;  %7258 = vmatprep.subr.bf16.mxu1 %v3289_v39  ;;  %v3360_v38 = vunpack.c.l.s8.bf16 %v1256_v36  ;;  %v3367_v39 = vunpack.c.h.s8.bf16 %v1255_v29 }
 0x8a8   : > { %6442 = vmatpush1.bf16.msra.mxu0 %v3286_v42  ;;  %7259 = vmatpush1.bf16.msra.mxu1 %v3288_v43  ;;  %v1265_v42 = vld [vmem:[%s9580_s25 + $0x1c38] sm:$0xff]  ;;  %v3366_v43 = vunpack.c.h.s8.bf16 %v1254_v35 }
 0x8a9   : > { %6443 = vmatprep.subr.bf16.mxu0 %v3295_v44  ;;  %7260 = vmatprep.subr.bf16.mxu1 %v3297_v45  ;;  %v3368_v44 = vunpack.c.h.s8.bf16 %v1256_v36  ;;  %v3375_v45 = vunpack.c.l.s8.bf16 %v1263_v41  ;;  %v3377_v46 = vunpack.c.l.s8.bf16 %v1265_v42  ;;  %v3385_v52 = vunpack.c.h.s8.bf16 %v1265_v42 }
 0x8ac   : > { %6444 = vmatpush1.bf16.msra.mxu0 %v3294_v48  ;;  %7261 = vmatpush1.bf16.msra.mxu1 %v3296_v49  ;;  %v1264_v48 = vld [vmem:[%s9580_s25 + $0x1c30] sm:$0xff]  ;;  %v3374_v49 = vunpack.c.l.s8.bf16 %v1262_v47 }
 0x8ad   : > { %6445 = vmatprep.subr.bf16.mxu0 %v3303_v50  ;;  %7262 = vmatprep.subr.bf16.mxu1 %v3305_v51  ;;  %v3376_v50 = vunpack.c.l.s8.bf16 %v1264_v48  ;;  %v3383_v51 = vunpack.c.h.s8.bf16 %v1263_v41 }
 0x8b0   : > { %6446 = vmatpush1.bf16.msra.mxu0 %v3302_v54  ;;  %7263 = vmatpush1.bf16.msra.mxu1 %v3304_v55  ;;  %v1273_v54 = vld [vmem:[%s9580_s25 + $0x1c78] sm:$0xff]  ;;  %v9168_v55 = vld [vmem:[%s11165_s0 + $0x68] ss:$152 sps:$4 sm:$0xff]  }
 0x8b1   : > { %6447 = vmatprep.subr.bf16.mxu0 %v3311_v56  ;;  %7264 = vmatprep.subr.bf16.mxu1 %v3313_v57  ;;  %v3382_v56 = vunpack.c.h.s8.bf16 %v1262_v47  ;;  %v3384_v57 = vunpack.c.h.s8.bf16 %v1264_v48  ;;  %v3393_v59 = vunpack.c.l.s8.bf16 %v1273_v54 }
 0x8b4   : > { %6448 = vmatpush1.bf16.msra.mxu0 %v3310_v60  ;;  %7265 = vmatpush1.bf16.msra.mxu1 %v3312_v61  ;;  %v1270_v60 = vld [vmem:[%s9580_s25 + $0x1c60] sm:$0xff]  ;;  %v1272_v61 = vld [vmem:[%s9580_s25 + $0x1c70] sm:$0xff] }
 0x8b5   : > { %6449 = vmatprep.subr.bf16.mxu0 %v3319_v62  ;;  %7266 = vmatprep.subr.bf16.mxu1 %v3321_v63  ;;  %v9169_v62 = vld [vmem:[%s11165_s0 + $0x74] ss:$152 sps:$4 sm:$0xff]   ;;  %v3390_v63 = vunpack.c.l.s8.bf16 %v1270_v60  ;;  %v3392_v0 = vunpack.c.l.s8.bf16 %v1272_v61  ;;  %v3400_v7 = vunpack.c.h.s8.bf16 %v1272_v61 }
 0x8b8   : > { %6450 = vmatpush1.bf16.msra.mxu0 %v3318_v2  ;;  %7267 = vmatpush1.bf16.msra.mxu1 %v3320_v3  ;;  %v3401_v2 = vunpack.c.h.s8.bf16 %v1273_v54  ;;  %v1279_v3 = vld [vmem:[%s9580_s25 + $0x1ca8] sm:$0xff] }
 0x8b9   : > { %6451 = vmatprep.subr.bf16.mxu0 %v3327_v4  ;;  %7268 = vmatprep.subr.bf16.mxu1 %v3329_v5  ;;  %v1281_v4 = vld [vmem:[%s9580_s25 + $0x1cb8] sm:$0xff]  ;;  %v3398_v5 = vunpack.c.h.s8.bf16 %v1270_v60  ;;  %v3407_v8 = vunpack.c.l.s8.bf16 %v1279_v3  ;;  %v3415_v14 = vunpack.c.h.s8.bf16 %v1279_v3 }
 0x8bc   : > { %6452 = vmatpush1.bf16.msra.mxu0 %v3326_v9  ;;  %7269 = vmatpush1.bf16.msra.mxu1 %v3328_v10  ;;  %v3409_v9 = vunpack.c.l.s8.bf16 %v1281_v4  ;;  %v1278_v10 = vld [vmem:[%s9580_s25 + $0x1ca0] sm:$0xff] }
 0x8bd   : > { %6453 = vmatprep.subr.bf16.mxu0 %v3335_v11  ;;  %7270 = vmatprep.subr.bf16.mxu1 %v3337_v12  ;;  %v1280_v11 = vld [vmem:[%s9580_s25 + $0x1cb0] sm:$0xff]  ;;  %v3406_v12 = vunpack.c.l.s8.bf16 %v1278_v10 }
 0x8be   : > { %v3408_v13 = vunpack.c.l.s8.bf16 %v1280_v11  ;;  %v3416_v19 = vunpack.c.h.s8.bf16 %v1280_v11  ;;  %v1318_v11 = vld [vmem:[%s9580_s25 + $0x1de0] sm:$0xff] }
 0x8c0   : > { %6454 = vmatpush1.bf16.msra.mxu0 %v3334_v15  ;;  %7271 = vmatpush1.bf16.msra.mxu1 %v3336_v16  ;;  %v3417_v15 = vunpack.c.h.s8.bf16 %v1281_v4  ;;  %v1287_v16 = vld [vmem:[%s9580_s25 + $0x1ce8] sm:$0xff] }
 0x8c1   : > { %6455 = vmatprep.subr.bf16.mxu0 %v3343_v17  ;;  %7272 = vmatprep.subr.bf16.mxu1 %v3345_v18  ;;  %v1289_v17 = vld [vmem:[%s9580_s25 + $0x1cf8] sm:$0xff]  ;;  %v3414_v18 = vunpack.c.h.s8.bf16 %v1278_v10  ;;  %v3423_v22 = vunpack.c.l.s8.bf16 %v1287_v16  ;;  %v3431_v30 = vunpack.c.h.s8.bf16 %v1287_v16  ;;  %v1319_v4 = vld [vmem:[%s9580_s25 + $0x1de8] sm:$0xff] }
 0x8c4   : > { %6456 = vmatpush1.bf16.msra.mxu0 %v3342_v23  ;;  %7273 = vmatpush1.bf16.msra.mxu1 %v3344_v26  ;;  %v3425_v23 = vunpack.c.l.s8.bf16 %v1289_v17  ;;  %v1286_v26 = vld [vmem:[%s9580_s25 + $0x1ce0] sm:$0xff] }
 0x8c5   : > { %6457 = vmatprep.subr.bf16.mxu0 %v3351_v27  ;;  %7274 = vmatprep.subr.bf16.mxu1 %v3353_v28  ;;  %v1288_v27 = vld [vmem:[%s9580_s25 + $0x1cf0] sm:$0xff]  ;;  %v3422_v28 = vunpack.c.l.s8.bf16 %v1286_v26 }
 0x8c6   : > { %v3424_v29 = vunpack.c.l.s8.bf16 %v1288_v27  ;;  %v3432_v35 = vunpack.c.h.s8.bf16 %v1288_v27  ;;  %v1326_v27 = vld [vmem:[%s9580_s25 + $0x1e20] sm:$0xff] }
 0x8c8   : > { %6458 = vmatpush1.bf16.msra.mxu0 %v3350_v31  ;;  %7275 = vmatpush1.bf16.msra.mxu1 %v3352_v32  ;;  %v3433_v31 = vunpack.c.h.s8.bf16 %v1289_v17  ;;  %v1295_v32 = vld [vmem:[%s9580_s25 + $0x1d28] sm:$0xff] }
 0x8c9   : > { %6459 = vmatprep.subr.bf16.mxu0 %v3359_v33  ;;  %7276 = vmatprep.subr.bf16.mxu1 %v3361_v34  ;;  %v1297_v33 = vld [vmem:[%s9580_s25 + $0x1d38] sm:$0xff]  ;;  %v3430_v34 = vunpack.c.h.s8.bf16 %v1286_v26  ;;  %v3439_v36 = vunpack.c.l.s8.bf16 %v1295_v32  ;;  %v3447_v42 = vunpack.c.h.s8.bf16 %v1295_v32  ;;  %v1327_v17 = vld [vmem:[%s9580_s25 + $0x1e28] sm:$0xff] }
 0x8cc   : > { %6460 = vmatpush1.bf16.msra.mxu0 %v3358_v37  ;;  %7277 = vmatpush1.bf16.msra.mxu1 %v3360_v38  ;;  %v3441_v37 = vunpack.c.l.s8.bf16 %v1297_v33  ;;  %v1294_v38 = vld [vmem:[%s9580_s25 + $0x1d20] sm:$0xff] }
 0x8cd   : > { %6461 = vmatprep.subr.bf16.mxu0 %v3367_v39  ;;  %7278 = vmatprep.subr.bf16.mxu1 %v3369_v40  ;;  %v1296_v39 = vld [vmem:[%s9580_s25 + $0x1d30] sm:$0xff]  ;;  %v3438_v40 = vunpack.c.l.s8.bf16 %v1294_v38 }
 0x8ce   : > { %v3440_v41 = vunpack.c.l.s8.bf16 %v1296_v39  ;;  %v3448_v47 = vunpack.c.h.s8.bf16 %v1296_v39 }
 0x8d0   : > { %6462 = vmatpush1.bf16.msra.mxu0 %v3366_v43  ;;  %7279 = vmatpush1.bf16.msra.mxu1 %v3368_v44  ;;  %v3449_v43 = vunpack.c.h.s8.bf16 %v1297_v33  ;;  %v1303_v44 = vld [vmem:[%s9580_s25 + $0x1d68] sm:$0xff] }
 0x8d1   : > { %6474 = vmatprep.subr.bf16.mxu0 %v3375_v45  ;;  %7291 = vmatprep.subr.bf16.mxu1 %v3377_v46  ;;  %v1305_v45 = vld [vmem:[%s9580_s25 + $0x1d78] sm:$0xff]  ;;  %v3446_v46 = vunpack.c.h.s8.bf16 %v1294_v38  ;;  %v3455_v48 = vunpack.c.l.s8.bf16 %v1303_v44  ;;  %v3463_v54 = vunpack.c.h.s8.bf16 %v1303_v44  ;;  %v1335_v33 = vld [vmem:[%s9580_s25 + $0x1e68] sm:$0xff] }
 0x8d2   : > { %v3519_v38 = vunpack.c.l.s8.bf16 %v1335_v33 }
 0x8d3   : > { %6464 = vmatmul.mubr.bf16.vlgmr.msra.gmra.mrb[4].mxu0 %v9168_v55  ;;  %7281 = vmatmul.mubr.bf16.vlgmr.msra.gmra.mrb[4].mxu1 %v9168_v55  ;;  %v3465_v55 = vunpack.c.h.s8.bf16 %v1305_v45 }
 0x8d4   : > { %6475 = vmatpush1.bf16.msra.mxu0 %v3374_v49  ;;  %7292 = vmatpush1.bf16.msra.mxu1 %v3376_v50  ;;  %v3457_v49 = vunpack.c.l.s8.bf16 %v1305_v45  ;;  %v1302_v50 = vld [vmem:[%s9580_s25 + $0x1d60] sm:$0xff]  ;;  %v3527_v45 = vunpack.c.h.s8.bf16 %v1335_v33 }
 0x8d5   : > { %6476 = vmatprep.subr.bf16.mxu0 %v3383_v51  ;;  %7293 = vmatprep.subr.bf16.mxu1 %v3385_v52  ;;  %v1304_v51 = vld [vmem:[%s9580_s25 + $0x1d70] sm:$0xff]  ;;  %v3454_v52 = vunpack.c.l.s8.bf16 %v1302_v50 }
 0x8d6   : > { %6506 = vmatprep.mubr.bf16.mxu0 %v9169_v62  ;;  %7323 = vmatprep.mubr.bf16.mxu1 %v9169_v62  ;;  %v3456_v53 = vunpack.c.l.s8.bf16 %v1304_v51  ;;  %v1310_v62 = vld [vmem:[%s9580_s25 + $0x1da0] sm:$0xff] }
 0x8d8   : > { %6477 = vmatpush1.bf16.msra.mxu0 %v3382_v56  ;;  %7294 = vmatpush1.bf16.msra.mxu1 %v3384_v57  ;;  %v1311_v56 = vld [vmem:[%s9580_s25 + $0x1da8] sm:$0xff]  ;;  %v1313_v57 = vld [vmem:[%s9580_s25 + $0x1db8] sm:$0xff] }
 0x8d9   : > { %6478 = vmatprep.subr.bf16.mxu0 %v3391_v58  ;;  %7295 = vmatprep.subr.bf16.mxu1 %v3393_v59  ;;  %v3462_v58 = vunpack.c.h.s8.bf16 %v1302_v50  ;;  %v3464_v59 = vunpack.c.h.s8.bf16 %v1304_v51  ;;  %v3471_v60 = vunpack.c.l.s8.bf16 %v1311_v56  ;;  %v3473_v61 = vunpack.c.l.s8.bf16 %v1313_v57 }
 0x8da   : > { %v3481_v3 = vunpack.c.h.s8.bf16 %v1313_v57 }
 0x8dc   : > { %6479 = vmatpush1.bf16.msra.mxu0 %v3390_v63  ;;  %7296 = vmatpush1.bf16.msra.mxu1 %v3392_v0  ;;  %v1312_v63 = vld [vmem:[%s9580_s25 + $0x1db0] sm:$0xff]  ;;  %v3470_v0 = vunpack.c.l.s8.bf16 %v1310_v62 }
 0x8dd   : > { %6480 = vmatprep.subr.bf16.mxu0 %v3399_v1  ;;  %7297 = vmatprep.subr.bf16.mxu1 %v3401_v2  ;;  %v3472_v1 = vunpack.c.l.s8.bf16 %v1312_v63  ;;  %v3479_v2 = vunpack.c.h.s8.bf16 %v1311_v56 }
 0x8e0   : > { %6481 = vmatpush1.bf16.msra.mxu0 %v3398_v5  ;;  %7298 = vmatpush1.bf16.msra.mxu1 %v3400_v7  ;;  %v1321_v5 = vld [vmem:[%s9580_s25 + $0x1df8] sm:$0xff]  ;;  %v3478_v7 = vunpack.c.h.s8.bf16 %v1310_v62 }
 0x8e1   : > { %6482 = vmatprep.subr.bf16.mxu0 %v3407_v8  ;;  %7299 = vmatprep.subr.bf16.mxu1 %v3409_v9  ;;  %v3480_v8 = vunpack.c.h.s8.bf16 %v1312_v63  ;;  %v3487_v9 = vunpack.c.l.s8.bf16 %v1319_v4  ;;  %v3489_v10 = vunpack.c.l.s8.bf16 %v1321_v5  ;;  %v3497_v16 = vunpack.c.h.s8.bf16 %v1321_v5 }
 0x8e4   : > { %6483 = vmatpush1.bf16.msra.mxu0 %v3406_v12  ;;  %7300 = vmatpush1.bf16.msra.mxu1 %v3408_v13  ;;  %v1320_v12 = vld [vmem:[%s9580_s25 + $0x1df0] sm:$0xff]  ;;  %v3486_v13 = vunpack.c.l.s8.bf16 %v1318_v11 }
 0x8e5   : > { %6484 = vmatprep.subr.bf16.mxu0 %v3415_v14  ;;  %7301 = vmatprep.subr.bf16.mxu1 %v3417_v15  ;;  %v3488_v14 = vunpack.c.l.s8.bf16 %v1320_v12  ;;  %v3495_v15 = vunpack.c.h.s8.bf16 %v1319_v4 }
 0x8e8   : > { %6485 = vmatpush1.bf16.msra.mxu0 %v3414_v18  ;;  %7302 = vmatpush1.bf16.msra.mxu1 %v3416_v19  ;;  %v1329_v18 = vld [vmem:[%s9580_s25 + $0x1e38] sm:$0xff]  ;;  %v3494_v19 = vunpack.c.h.s8.bf16 %v1318_v11 }
 0x8e9   : > { %6486 = vmatprep.subr.bf16.mxu0 %v3423_v22  ;;  %7303 = vmatprep.subr.bf16.mxu1 %v3425_v23  ;;  %v3496_v22 = vunpack.c.h.s8.bf16 %v1320_v12  ;;  %v3503_v23 = vunpack.c.l.s8.bf16 %v1327_v17  ;;  %v3505_v26 = vunpack.c.l.s8.bf16 %v1329_v18  ;;  %v3513_v32 = vunpack.c.h.s8.bf16 %v1329_v18 }
 0x8ec   : > { %6487 = vmatpush1.bf16.msra.mxu0 %v3422_v28  ;;  %7304 = vmatpush1.bf16.msra.mxu1 %v3424_v29  ;;  %v1328_v28 = vld [vmem:[%s9580_s25 + $0x1e30] sm:$0xff]  ;;  %v3502_v29 = vunpack.c.l.s8.bf16 %v1326_v27 }
 0x8ed   : > { %6488 = vmatprep.subr.bf16.mxu0 %v3431_v30  ;;  %7305 = vmatprep.subr.bf16.mxu1 %v3433_v31  ;;  %v3504_v30 = vunpack.c.l.s8.bf16 %v1328_v28  ;;  %v3511_v31 = vunpack.c.h.s8.bf16 %v1327_v17 }
 0x8f0   : > { %6489 = vmatpush1.bf16.msra.mxu0 %v3430_v34  ;;  %7306 = vmatpush1.bf16.msra.mxu1 %v3432_v35  ;;  %v1337_v34 = vld [vmem:[%s9580_s25 + $0x1e78] sm:$0xff]  ;;  %v9170_v35 = vld [vmem:[%s11165_s0 + $0x70] ss:$152 sps:$4 sm:$0xff]  }
 0x8f1   : > { %6490 = vmatprep.subr.bf16.mxu0 %v3439_v36  ;;  %7307 = vmatprep.subr.bf16.mxu1 %v3441_v37  ;;  %v3510_v36 = vunpack.c.h.s8.bf16 %v1326_v27  ;;  %v3512_v37 = vunpack.c.h.s8.bf16 %v1328_v28  ;;  %v3521_v39 = vunpack.c.l.s8.bf16 %v1337_v34 }
 0x8f4   : > { %6491 = vmatpush1.bf16.msra.mxu0 %v3438_v40  ;;  %7308 = vmatpush1.bf16.msra.mxu1 %v3440_v41  ;;  %v1334_v40 = vld [vmem:[%s9580_s25 + $0x1e60] sm:$0xff]  ;;  %v1336_v41 = vld [vmem:[%s9580_s25 + $0x1e70] sm:$0xff] }
 0x8f5   : > { %6492 = vmatprep.subr.bf16.mxu0 %v3447_v42  ;;  %7309 = vmatprep.subr.bf16.mxu1 %v3449_v43  ;;  %v9171_v42 = vld [vmem:[%s11165_s0 + $0x7c] ss:$152 sps:$4 sm:$0xff]   ;;  %v3518_v43 = vunpack.c.l.s8.bf16 %v1334_v40  ;;  %v3520_v44 = vunpack.c.l.s8.bf16 %v1336_v41  ;;  %v3528_v50 = vunpack.c.h.s8.bf16 %v1336_v41 }
 0x8f8   : > { %6493 = vmatpush1.bf16.msra.mxu0 %v3446_v46  ;;  %7310 = vmatpush1.bf16.msra.mxu1 %v3448_v47  ;;  %v3529_v46 = vunpack.c.h.s8.bf16 %v1337_v34  ;;  %v1343_v47 = vld [vmem:[%s9580_s25 + $0x1ea8] sm:$0xff] }
 0x8f9   : > { %6494 = vmatprep.subr.bf16.mxu0 %v3455_v48  ;;  %7311 = vmatprep.subr.bf16.mxu1 %v3457_v49  ;;  %v1345_v48 = vld [vmem:[%s9580_s25 + $0x1eb8] sm:$0xff]  ;;  %v3526_v49 = vunpack.c.h.s8.bf16 %v1334_v40  ;;  %v3535_v51 = vunpack.c.l.s8.bf16 %v1343_v47  ;;  %v3543_v57 = vunpack.c.h.s8.bf16 %v1343_v47 }
 0x8fc   : > { %6495 = vmatpush1.bf16.msra.mxu0 %v3454_v52  ;;  %7312 = vmatpush1.bf16.msra.mxu1 %v3456_v53  ;;  %v3537_v52 = vunpack.c.l.s8.bf16 %v1345_v48  ;;  %v1342_v53 = vld [vmem:[%s9580_s25 + $0x1ea0] sm:$0xff] }
 0x8fd   : > { %6496 = vmatprep.subr.bf16.mxu0 %v3463_v54  ;;  %7313 = vmatprep.subr.bf16.mxu1 %v3465_v55  ;;  %v1344_v54 = vld [vmem:[%s9580_s25 + $0x1eb0] sm:$0xff]  ;;  %v3534_v55 = vunpack.c.l.s8.bf16 %v1342_v53 }
 0x8fe   : > { %v3536_v56 = vunpack.c.l.s8.bf16 %v1344_v54  ;;  %v3544_v62 = vunpack.c.h.s8.bf16 %v1344_v54  ;;  %v1382_v54 = vld [vmem:[%s9580_s25 + $0x1fe0] sm:$0xff] }
 0x900   : > { %6497 = vmatpush1.bf16.msra.mxu0 %v3462_v58  ;;  %7314 = vmatpush1.bf16.msra.mxu1 %v3464_v59  ;;  %v3545_v58 = vunpack.c.h.s8.bf16 %v1345_v48  ;;  %v1351_v59 = vld [vmem:[%s9580_s25 + $0x1ee8] sm:$0xff] }
 0x901   : > { %6498 = vmatprep.subr.bf16.mxu0 %v3471_v60  ;;  %7315 = vmatprep.subr.bf16.mxu1 %v3473_v61  ;;  %v1353_v60 = vld [vmem:[%s9580_s25 + $0x1ef8] sm:$0xff]  ;;  %v3542_v61 = vunpack.c.h.s8.bf16 %v1342_v53  ;;  %v3551_v63 = vunpack.c.l.s8.bf16 %v1351_v59  ;;  %v3559_v5 = vunpack.c.h.s8.bf16 %v1351_v59  ;;  %v1383_v48 = vld [vmem:[%s9580_s25 + $0x1fe8] sm:$0xff] }
 0x904   : > { %6499 = vmatpush1.bf16.msra.mxu0 %v3470_v0  ;;  %7316 = vmatpush1.bf16.msra.mxu1 %v3472_v1  ;;  %v3553_v0 = vunpack.c.l.s8.bf16 %v1353_v60  ;;  %v1350_v1 = vld [vmem:[%s9580_s25 + $0x1ee0] sm:$0xff] }
 0x905   : > { %6500 = vmatprep.subr.bf16.mxu0 %v3479_v2  ;;  %7317 = vmatprep.subr.bf16.mxu1 %v3481_v3  ;;  %v1352_v2 = vld [vmem:[%s9580_s25 + $0x1ef0] sm:$0xff]  ;;  %v3550_v3 = vunpack.c.l.s8.bf16 %v1350_v1 }
 0x906   : > { %v3552_v4 = vunpack.c.l.s8.bf16 %v1352_v2  ;;  %v3560_v11 = vunpack.c.h.s8.bf16 %v1352_v2  ;;  %v1390_v2 = vld [vmem:[%s9580_s25 + $0x2020] sm:$0xff] }
 0x908   : > { %6501 = vmatpush1.bf16.msra.mxu0 %v3478_v7  ;;  %7318 = vmatpush1.bf16.msra.mxu1 %v3480_v8  ;;  %v3561_v7 = vunpack.c.h.s8.bf16 %v1353_v60  ;;  %v1359_v8 = vld [vmem:[%s9580_s25 + $0x1f28] sm:$0xff] }
 0x909   : > { %6502 = vmatprep.subr.bf16.mxu0 %v3487_v9  ;;  %7319 = vmatprep.subr.bf16.mxu1 %v3489_v10  ;;  %v1361_v9 = vld [vmem:[%s9580_s25 + $0x1f38] sm:$0xff]  ;;  %v3558_v10 = vunpack.c.h.s8.bf16 %v1350_v1  ;;  %v3567_v12 = vunpack.c.l.s8.bf16 %v1359_v8  ;;  %v3575_v18 = vunpack.c.h.s8.bf16 %v1359_v8  ;;  %v1391_v60 = vld [vmem:[%s9580_s25 + $0x2028] sm:$0xff] }
 0x90c   : > { %6503 = vmatpush1.bf16.msra.mxu0 %v3486_v13  ;;  %7320 = vmatpush1.bf16.msra.mxu1 %v3488_v14  ;;  %v3569_v13 = vunpack.c.l.s8.bf16 %v1361_v9  ;;  %v1358_v14 = vld [vmem:[%s9580_s25 + $0x1f20] sm:$0xff] }
 0x90d   : > { %6504 = vmatprep.subr.bf16.mxu0 %v3495_v15  ;;  %7321 = vmatprep.subr.bf16.mxu1 %v3497_v16  ;;  %v1360_v15 = vld [vmem:[%s9580_s25 + $0x1f30] sm:$0xff]  ;;  %v3566_v16 = vunpack.c.l.s8.bf16 %v1358_v14 }
 0x90e   : > { %v3568_v17 = vunpack.c.l.s8.bf16 %v1360_v15  ;;  %v3576_v27 = vunpack.c.h.s8.bf16 %v1360_v15 }
 0x910   : > { %6505 = vmatpush1.bf16.msra.mxu0 %v3494_v19  ;;  %7322 = vmatpush1.bf16.msra.mxu1 %v3496_v22  ;;  %v3577_v19 = vunpack.c.h.s8.bf16 %v1361_v9  ;;  %v1367_v22 = vld [vmem:[%s9580_s25 + $0x1f68] sm:$0xff] }
 0x911   : > { %6517 = vmatprep.subr.bf16.mxu0 %v3503_v23  ;;  %7334 = vmatprep.subr.bf16.mxu1 %v3505_v26  ;;  %v1369_v23 = vld [vmem:[%s9580_s25 + $0x1f78] sm:$0xff]  ;;  %v3574_v26 = vunpack.c.h.s8.bf16 %v1358_v14  ;;  %v3583_v28 = vunpack.c.l.s8.bf16 %v1367_v22  ;;  %v3591_v34 = vunpack.c.h.s8.bf16 %v1367_v22  ;;  %v1399_v9 = vld [vmem:[%s9580_s25 + $0x2068] sm:$0xff] }
 0x912   : > { %v3647_v14 = vunpack.c.l.s8.bf16 %v1399_v9 }
 0x913   : > { %6507 = vmatmul.mubr.bf16.vlgmr.msra.gmra.mrb[4].mxu0 %v9170_v35  ;;  %7324 = vmatmul.mubr.bf16.vlgmr.msra.gmra.mrb[4].mxu1 %v9170_v35  ;;  %v3593_v35 = vunpack.c.h.s8.bf16 %v1369_v23 }
 0x914   : > { %6518 = vmatpush1.bf16.msra.mxu0 %v3502_v29  ;;  %7335 = vmatpush1.bf16.msra.mxu1 %v3504_v30  ;;  %v3585_v29 = vunpack.c.l.s8.bf16 %v1369_v23  ;;  %v1366_v30 = vld [vmem:[%s9580_s25 + $0x1f60] sm:$0xff]  ;;  %v3655_v23 = vunpack.c.h.s8.bf16 %v1399_v9 }
 0x915   : > { %6519 = vmatprep.subr.bf16.mxu0 %v3511_v31  ;;  %7336 = vmatprep.subr.bf16.mxu1 %v3513_v32  ;;  %v1368_v31 = vld [vmem:[%s9580_s25 + $0x1f70] sm:$0xff]  ;;  %v3582_v32 = vunpack.c.l.s8.bf16 %v1366_v30 }
 0x916   : > { %6549 = vmatprep.mubr.bf16.mxu0 %v9171_v42  ;;  %7366 = vmatprep.mubr.bf16.mxu1 %v9171_v42  ;;  %v3584_v33 = vunpack.c.l.s8.bf16 %v1368_v31  ;;  %v1374_v42 = vld [vmem:[%s9580_s25 + $0x1fa0] sm:$0xff] }
 0x918   : > { %6520 = vmatpush1.bf16.msra.mxu0 %v3510_v36  ;;  %7337 = vmatpush1.bf16.msra.mxu1 %v3512_v37  ;;  %v1375_v36 = vld [vmem:[%s9580_s25 + $0x1fa8] sm:$0xff]  ;;  %v1377_v37 = vld [vmem:[%s9580_s25 + $0x1fb8] sm:$0xff] }
 0x919   : > { %6521 = vmatprep.subr.bf16.mxu0 %v3519_v38  ;;  %7338 = vmatprep.subr.bf16.mxu1 %v3521_v39  ;;  %v3590_v38 = vunpack.c.h.s8.bf16 %v1366_v30  ;;  %v3592_v39 = vunpack.c.h.s8.bf16 %v1368_v31  ;;  %v3599_v40 = vunpack.c.l.s8.bf16 %v1375_v36  ;;  %v3601_v41 = vunpack.c.l.s8.bf16 %v1377_v37 }
 0x91a   : > { %v3609_v47 = vunpack.c.h.s8.bf16 %v1377_v37 }
 0x91c   : > { %6522 = vmatpush1.bf16.msra.mxu0 %v3518_v43  ;;  %7339 = vmatpush1.bf16.msra.mxu1 %v3520_v44  ;;  %v1376_v43 = vld [vmem:[%s9580_s25 + $0x1fb0] sm:$0xff]  ;;  %v3598_v44 = vunpack.c.l.s8.bf16 %v1374_v42 }
 0x91d   : > { %6523 = vmatprep.subr.bf16.mxu0 %v3527_v45  ;;  %7340 = vmatprep.subr.bf16.mxu1 %v3529_v46  ;;  %v3600_v45 = vunpack.c.l.s8.bf16 %v1376_v43  ;;  %v3607_v46 = vunpack.c.h.s8.bf16 %v1375_v36 }
 0x920   : > { %6524 = vmatpush1.bf16.msra.mxu0 %v3526_v49  ;;  %7341 = vmatpush1.bf16.msra.mxu1 %v3528_v50  ;;  %v1385_v49 = vld [vmem:[%s9580_s25 + $0x1ff8] sm:$0xff]  ;;  %v3606_v50 = vunpack.c.h.s8.bf16 %v1374_v42 }
 0x921   : > { %6525 = vmatprep.subr.bf16.mxu0 %v3535_v51  ;;  %7342 = vmatprep.subr.bf16.mxu1 %v3537_v52  ;;  %v3608_v51 = vunpack.c.h.s8.bf16 %v1376_v43  ;;  %v3615_v52 = vunpack.c.l.s8.bf16 %v1383_v48  ;;  %v3617_v53 = vunpack.c.l.s8.bf16 %v1385_v49  ;;  %v3625_v59 = vunpack.c.h.s8.bf16 %v1385_v49 }
 0x924   : > { %6526 = vmatpush1.bf16.msra.mxu0 %v3534_v55  ;;  %7343 = vmatpush1.bf16.msra.mxu1 %v3536_v56  ;;  %v1384_v55 = vld [vmem:[%s9580_s25 + $0x1ff0] sm:$0xff]  ;;  %v3614_v56 = vunpack.c.l.s8.bf16 %v1382_v54 }
 0x925   : > { %6527 = vmatprep.subr.bf16.mxu0 %v3543_v57  ;;  %7344 = vmatprep.subr.bf16.mxu1 %v3545_v58  ;;  %v3616_v57 = vunpack.c.l.s8.bf16 %v1384_v55  ;;  %v3623_v58 = vunpack.c.h.s8.bf16 %v1383_v48 }
 0x928   : > { %6528 = vmatpush1.bf16.msra.mxu0 %v3542_v61  ;;  %7345 = vmatpush1.bf16.msra.mxu1 %v3544_v62  ;;  %v1393_v61 = vld [vmem:[%s9580_s25 + $0x2038] sm:$0xff]  ;;  %v3622_v62 = vunpack.c.h.s8.bf16 %v1382_v54 }
 0x929   : > { %6529 = vmatprep.subr.bf16.mxu0 %v3551_v63  ;;  %7346 = vmatprep.subr.bf16.mxu1 %v3553_v0  ;;  %v3624_v63 = vunpack.c.h.s8.bf16 %v1384_v55  ;;  %v3631_v0 = vunpack.c.l.s8.bf16 %v1391_v60  ;;  %v3633_v1 = vunpack.c.l.s8.bf16 %v1393_v61  ;;  %v3641_v8 = vunpack.c.h.s8.bf16 %v1393_v61 }
 0x92c   : > { %6530 = vmatpush1.bf16.msra.mxu0 %v3550_v3  ;;  %7347 = vmatpush1.bf16.msra.mxu1 %v3552_v4  ;;  %v1392_v3 = vld [vmem:[%s9580_s25 + $0x2030] sm:$0xff]  ;;  %v3630_v4 = vunpack.c.l.s8.bf16 %v1390_v2 }
 0x92d   : > { %6531 = vmatprep.subr.bf16.mxu0 %v3559_v5  ;;  %7348 = vmatprep.subr.bf16.mxu1 %v3561_v7  ;;  %v3632_v5 = vunpack.c.l.s8.bf16 %v1392_v3  ;;  %v3639_v7 = vunpack.c.h.s8.bf16 %v1391_v60 }
 0x930   : > { %6532 = vmatpush1.bf16.msra.mxu0 %v3558_v10  ;;  %7349 = vmatpush1.bf16.msra.mxu1 %v3560_v11  ;;  %v1401_v10 = vld [vmem:[%s9580_s25 + $0x2078] sm:$0xff] }
 0x931   : > { %6533 = vmatprep.subr.bf16.mxu0 %v3567_v12  ;;  %7350 = vmatprep.subr.bf16.mxu1 %v3569_v13  ;;  %v9172_v11 = vld [vmem:[%s11165_s0 + $0x78] ss:$152 sps:$4 sm:$0xff]   ;;  %v3638_v12 = vunpack.c.h.s8.bf16 %v1390_v2  ;;  %v3640_v13 = vunpack.c.h.s8.bf16 %v1392_v3  ;;  %v3649_v15 = vunpack.c.l.s8.bf16 %v1401_v10 }
 0x934   : > { %6534 = vmatpush1.bf16.msra.mxu0 %v3566_v16  ;;  %7351 = vmatpush1.bf16.msra.mxu1 %v3568_v17  ;;  %v1398_v16 = vld [vmem:[%s9580_s25 + $0x2060] sm:$0xff]  ;;  %v1400_v17 = vld [vmem:[%s9580_s25 + $0x2070] sm:$0xff] }
 0x935   : > { %6535 = vmatprep.subr.bf16.mxu0 %v3575_v18  ;;  %7352 = vmatprep.subr.bf16.mxu1 %v3577_v19  ;;  %v9173_v18 = vld [vmem:[%s11165_s0 + $0x84] ss:$152 sps:$4 sm:$0xff]   ;;  %v3646_v19 = vunpack.c.l.s8.bf16 %v1398_v16  ;;  %v3648_v22 = vunpack.c.l.s8.bf16 %v1400_v17  ;;  %v3656_v30 = vunpack.c.h.s8.bf16 %v1400_v17 }
 0x938   : > { %6536 = vmatpush1.bf16.msra.mxu0 %v3574_v26  ;;  %7353 = vmatpush1.bf16.msra.mxu1 %v3576_v27  ;;  %v3657_v26 = vunpack.c.h.s8.bf16 %v1401_v10  ;;  %v1407_v27 = vld [vmem:[%s9580_s25 + $0x20a8] sm:$0xff] }
 0x939   : > { %6537 = vmatprep.subr.bf16.mxu0 %v3583_v28  ;;  %7354 = vmatprep.subr.bf16.mxu1 %v3585_v29  ;;  %v1409_v28 = vld [vmem:[%s9580_s25 + $0x20b8] sm:$0xff]  ;;  %v3654_v29 = vunpack.c.h.s8.bf16 %v1398_v16  ;;  %v3663_v31 = vunpack.c.l.s8.bf16 %v1407_v27  ;;  %v3671_v37 = vunpack.c.h.s8.bf16 %v1407_v27 }
 0x93c   : > { %6538 = vmatpush1.bf16.msra.mxu0 %v3582_v32  ;;  %7355 = vmatpush1.bf16.msra.mxu1 %v3584_v33  ;;  %v3665_v32 = vunpack.c.l.s8.bf16 %v1409_v28  ;;  %v1406_v33 = vld [vmem:[%s9580_s25 + $0x20a0] sm:$0xff] }
 0x93d   : > { %6539 = vmatprep.subr.bf16.mxu0 %v3591_v34  ;;  %7356 = vmatprep.subr.bf16.mxu1 %v3593_v35  ;;  %v1408_v34 = vld [vmem:[%s9580_s25 + $0x20b0] sm:$0xff]  ;;  %v3662_v35 = vunpack.c.l.s8.bf16 %v1406_v33 }
 0x93e   : > { %v3664_v36 = vunpack.c.l.s8.bf16 %v1408_v34  ;;  %v3672_v42 = vunpack.c.h.s8.bf16 %v1408_v34  ;;  %v1446_v34 = vld [vmem:[%s9580_s25 + $0x21e0] sm:$0xff] }
 0x940   : > { %6540 = vmatpush1.bf16.msra.mxu0 %v3590_v38  ;;  %7357 = vmatpush1.bf16.msra.mxu1 %v3592_v39  ;;  %v3673_v38 = vunpack.c.h.s8.bf16 %v1409_v28  ;;  %v1415_v39 = vld [vmem:[%s9580_s25 + $0x20e8] sm:$0xff] }
 0x941   : > { %6541 = vmatprep.subr.bf16.mxu0 %v3599_v40  ;;  %7358 = vmatprep.subr.bf16.mxu1 %v3601_v41  ;;  %v1417_v40 = vld [vmem:[%s9580_s25 + $0x20f8] sm:$0xff]  ;;  %v3670_v41 = vunpack.c.h.s8.bf16 %v1406_v33  ;;  %v3679_v43 = vunpack.c.l.s8.bf16 %v1415_v39  ;;  %v3687_v49 = vunpack.c.h.s8.bf16 %v1415_v39  ;;  %v1447_v28 = vld [vmem:[%s9580_s25 + $0x21e8] sm:$0xff] }
 0x944   : > { %6542 = vmatpush1.bf16.msra.mxu0 %v3598_v44  ;;  %7359 = vmatpush1.bf16.msra.mxu1 %v3600_v45  ;;  %v3681_v44 = vunpack.c.l.s8.bf16 %v1417_v40  ;;  %v1414_v45 = vld [vmem:[%s9580_s25 + $0x20e0] sm:$0xff] }
 0x945   : > { %6543 = vmatprep.subr.bf16.mxu0 %v3607_v46  ;;  %7360 = vmatprep.subr.bf16.mxu1 %v3609_v47  ;;  %v1416_v46 = vld [vmem:[%s9580_s25 + $0x20f0] sm:$0xff]  ;;  %v3678_v47 = vunpack.c.l.s8.bf16 %v1414_v45 }
 0x946   : > { %v3680_v48 = vunpack.c.l.s8.bf16 %v1416_v46  ;;  %v3688_v54 = vunpack.c.h.s8.bf16 %v1416_v46  ;;  %v1454_v46 = vld [vmem:[%s9580_s25 + $0x2220] sm:$0xff] }
 0x948   : > { %6544 = vmatpush1.bf16.msra.mxu0 %v3606_v50  ;;  %7361 = vmatpush1.bf16.msra.mxu1 %v3608_v51  ;;  %v3689_v50 = vunpack.c.h.s8.bf16 %v1417_v40  ;;  %v1423_v51 = vld [vmem:[%s9580_s25 + $0x2128] sm:$0xff] }
 0x949   : > { %6545 = vmatprep.subr.bf16.mxu0 %v3615_v52  ;;  %7362 = vmatprep.subr.bf16.mxu1 %v3617_v53  ;;  %v1425_v52 = vld [vmem:[%s9580_s25 + $0x2138] sm:$0xff]  ;;  %v3686_v53 = vunpack.c.h.s8.bf16 %v1414_v45  ;;  %v3695_v55 = vunpack.c.l.s8.bf16 %v1423_v51  ;;  %v3703_v61 = vunpack.c.h.s8.bf16 %v1423_v51  ;;  %v1455_v40 = vld [vmem:[%s9580_s25 + $0x2228] sm:$0xff] }
 0x94c   : > { %6546 = vmatpush1.bf16.msra.mxu0 %v3614_v56  ;;  %7363 = vmatpush1.bf16.msra.mxu1 %v3616_v57  ;;  %v3697_v56 = vunpack.c.l.s8.bf16 %v1425_v52  ;;  %v1422_v57 = vld [vmem:[%s9580_s25 + $0x2120] sm:$0xff] }
 0x94d   : > { %6547 = vmatprep.subr.bf16.mxu0 %v3623_v58  ;;  %7364 = vmatprep.subr.bf16.mxu1 %v3625_v59  ;;  %v1424_v58 = vld [vmem:[%s9580_s25 + $0x2130] sm:$0xff]  ;;  %v3694_v59 = vunpack.c.l.s8.bf16 %v1422_v57 }
 0x94e   : > { %v3696_v60 = vunpack.c.l.s8.bf16 %v1424_v58  ;;  %v3704_v2 = vunpack.c.h.s8.bf16 %v1424_v58 }
 0x950   : > { %6548 = vmatpush1.bf16.msra.mxu0 %v3622_v62  ;;  %7365 = vmatpush1.bf16.msra.mxu1 %v3624_v63  ;;  %v3705_v62 = vunpack.c.h.s8.bf16 %v1425_v52  ;;  %v1431_v63 = vld [vmem:[%s9580_s25 + $0x2168] sm:$0xff] }
 0x951   : > { %6560 = vmatprep.subr.bf16.mxu0 %v3631_v0  ;;  %7377 = vmatprep.subr.bf16.mxu1 %v3633_v1  ;;  %v1433_v0 = vld [vmem:[%s9580_s25 + $0x2178] sm:$0xff]  ;;  %v3702_v1 = vunpack.c.h.s8.bf16 %v1422_v57  ;;  %v3711_v3 = vunpack.c.l.s8.bf16 %v1431_v63  ;;  %v3719_v10 = vunpack.c.h.s8.bf16 %v1431_v63  ;;  %v1463_v52 = vld [vmem:[%s9580_s25 + $0x2268] sm:$0xff] }
 0x952   : > { %v3775_v57 = vunpack.c.l.s8.bf16 %v1463_v52 }
 0x953   : > { %6550 = vmatmul.mubr.bf16.vlgmr.msra.gmra.mrb[4].mxu0 %v9172_v11  ;;  %7367 = vmatmul.mubr.bf16.vlgmr.msra.gmra.mrb[4].mxu1 %v9172_v11  ;;  %v3721_v11 = vunpack.c.h.s8.bf16 %v1433_v0 }
 0x954   : > { %6561 = vmatpush1.bf16.msra.mxu0 %v3630_v4  ;;  %7378 = vmatpush1.bf16.msra.mxu1 %v3632_v5  ;;  %v3713_v4 = vunpack.c.l.s8.bf16 %v1433_v0  ;;  %v1430_v5 = vld [vmem:[%s9580_s25 + $0x2160] sm:$0xff]  ;;  %v3783_v0 = vunpack.c.h.s8.bf16 %v1463_v52 }
 0x955   : > { %6562 = vmatprep.subr.bf16.mxu0 %v3639_v7  ;;  %7379 = vmatprep.subr.bf16.mxu1 %v3641_v8  ;;  %v1432_v7 = vld [vmem:[%s9580_s25 + $0x2170] sm:$0xff]  ;;  %v3710_v8 = vunpack.c.l.s8.bf16 %v1430_v5 }
 0x956   : > { %6592 = vmatprep.mubr.bf16.mxu0 %v9173_v18  ;;  %7409 = vmatprep.mubr.bf16.mxu1 %v9173_v18  ;;  %v3712_v9 = vunpack.c.l.s8.bf16 %v1432_v7  ;;  %v1438_v18 = vld [vmem:[%s9580_s25 + $0x21a0] sm:$0xff] }
 0x958   : > { %6563 = vmatpush1.bf16.msra.mxu0 %v3638_v12  ;;  %7380 = vmatpush1.bf16.msra.mxu1 %v3640_v13  ;;  %v1439_v12 = vld [vmem:[%s9580_s25 + $0x21a8] sm:$0xff]  ;;  %v1441_v13 = vld [vmem:[%s9580_s25 + $0x21b8] sm:$0xff] }
 0x959   : > { %6564 = vmatprep.subr.bf16.mxu0 %v3647_v14  ;;  %7381 = vmatprep.subr.bf16.mxu1 %v3649_v15  ;;  %v3718_v14 = vunpack.c.h.s8.bf16 %v1430_v5  ;;  %v3720_v15 = vunpack.c.h.s8.bf16 %v1432_v7  ;;  %v3727_v16 = vunpack.c.l.s8.bf16 %v1439_v12  ;;  %v3729_v17 = vunpack.c.l.s8.bf16 %v1441_v13 }
 0x95a   : > { %v3737_v27 = vunpack.c.h.s8.bf16 %v1441_v13 }
 0x95c   : > { %6565 = vmatpush1.bf16.msra.mxu0 %v3646_v19  ;;  %7382 = vmatpush1.bf16.msra.mxu1 %v3648_v22  ;;  %v1440_v19 = vld [vmem:[%s9580_s25 + $0x21b0] sm:$0xff]  ;;  %v3726_v22 = vunpack.c.l.s8.bf16 %v1438_v18 }
 0x95d   : > { %6566 = vmatprep.subr.bf16.mxu0 %v3655_v23  ;;  %7383 = vmatprep.subr.bf16.mxu1 %v3657_v26  ;;  %v3728_v23 = vunpack.c.l.s8.bf16 %v1440_v19  ;;  %v3735_v26 = vunpack.c.h.s8.bf16 %v1439_v12 }
 0x960   : > { %6567 = vmatpush1.bf16.msra.mxu0 %v3654_v29  ;;  %7384 = vmatpush1.bf16.msra.mxu1 %v3656_v30  ;;  %v1449_v29 = vld [vmem:[%s9580_s25 + $0x21f8] sm:$0xff]  ;;  %v3734_v30 = vunpack.c.h.s8.bf16 %v1438_v18 }
 0x961   : > { %6568 = vmatprep.subr.bf16.mxu0 %v3663_v31  ;;  %7385 = vmatprep.subr.bf16.mxu1 %v3665_v32  ;;  %v3736_v31 = vunpack.c.h.s8.bf16 %v1440_v19  ;;  %v3743_v32 = vunpack.c.l.s8.bf16 %v1447_v28  ;;  %v3745_v33 = vunpack.c.l.s8.bf16 %v1449_v29  ;;  %v3753_v39 = vunpack.c.h.s8.bf16 %v1449_v29 }
 0x964   : > { %6569 = vmatpush1.bf16.msra.mxu0 %v3662_v35  ;;  %7386 = vmatpush1.bf16.msra.mxu1 %v3664_v36  ;;  %v1448_v35 = vld [vmem:[%s9580_s25 + $0x21f0] sm:$0xff]  ;;  %v3742_v36 = vunpack.c.l.s8.bf16 %v1446_v34 }
 0x965   : > { %6570 = vmatprep.subr.bf16.mxu0 %v3671_v37  ;;  %7387 = vmatprep.subr.bf16.mxu1 %v3673_v38  ;;  %v3744_v37 = vunpack.c.l.s8.bf16 %v1448_v35  ;;  %v3751_v38 = vunpack.c.h.s8.bf16 %v1447_v28 }
 0x968   : > { %6571 = vmatpush1.bf16.msra.mxu0 %v3670_v41  ;;  %7388 = vmatpush1.bf16.msra.mxu1 %v3672_v42  ;;  %v1457_v41 = vld [vmem:[%s9580_s25 + $0x2238] sm:$0xff]  ;;  %v3750_v42 = vunpack.c.h.s8.bf16 %v1446_v34 }
 0x969   : > { %6572 = vmatprep.subr.bf16.mxu0 %v3679_v43  ;;  %7389 = vmatprep.subr.bf16.mxu1 %v3681_v44  ;;  %v3752_v43 = vunpack.c.h.s8.bf16 %v1448_v35  ;;  %v3759_v44 = vunpack.c.l.s8.bf16 %v1455_v40  ;;  %v3761_v45 = vunpack.c.l.s8.bf16 %v1457_v41  ;;  %v3769_v51 = vunpack.c.h.s8.bf16 %v1457_v41 }
 0x96c   : > { %6573 = vmatpush1.bf16.msra.mxu0 %v3678_v47  ;;  %7390 = vmatpush1.bf16.msra.mxu1 %v3680_v48  ;;  %v1456_v47 = vld [vmem:[%s9580_s25 + $0x2230] sm:$0xff]  ;;  %v3758_v48 = vunpack.c.l.s8.bf16 %v1454_v46 }
 0x96d   : > { %6574 = vmatprep.subr.bf16.mxu0 %v3687_v49  ;;  %7391 = vmatprep.subr.bf16.mxu1 %v3689_v50  ;;  %v3760_v49 = vunpack.c.l.s8.bf16 %v1456_v47  ;;  %v3767_v50 = vunpack.c.h.s8.bf16 %v1455_v40 }
 0x970   : > { %6575 = vmatpush1.bf16.msra.mxu0 %v3686_v53  ;;  %7392 = vmatpush1.bf16.msra.mxu1 %v3688_v54  ;;  %v1465_v53 = vld [vmem:[%s9580_s25 + $0x2278] sm:$0xff] }
 0x971   : > { %6576 = vmatprep.subr.bf16.mxu0 %v3695_v55  ;;  %7393 = vmatprep.subr.bf16.mxu1 %v3697_v56  ;;  %v9174_v54 = vld [vmem:[%s11165_s0 + $0x80] ss:$152 sps:$4 sm:$0xff]   ;;  %v3766_v55 = vunpack.c.h.s8.bf16 %v1454_v46  ;;  %v3768_v56 = vunpack.c.h.s8.bf16 %v1456_v47  ;;  %v3777_v58 = vunpack.c.l.s8.bf16 %v1465_v53 }
 0x974   : > { %6577 = vmatpush1.bf16.msra.mxu0 %v3694_v59  ;;  %7394 = vmatpush1.bf16.msra.mxu1 %v3696_v60  ;;  %v1462_v59 = vld [vmem:[%s9580_s25 + $0x2260] sm:$0xff]  ;;  %v1464_v60 = vld [vmem:[%s9580_s25 + $0x2270] sm:$0xff] }
 0x975   : > { %6578 = vmatprep.subr.bf16.mxu0 %v3703_v61  ;;  %7395 = vmatprep.subr.bf16.mxu1 %v3705_v62  ;;  %v9175_v61 = vld [vmem:[%s11165_s0 + $0x8c] ss:$152 sps:$4 sm:$0xff]   ;;  %v3774_v62 = vunpack.c.l.s8.bf16 %v1462_v59  ;;  %v3776_v63 = vunpack.c.l.s8.bf16 %v1464_v60  ;;  %v3784_v5 = vunpack.c.h.s8.bf16 %v1464_v60 }
 0x978   : > { %6579 = vmatpush1.bf16.msra.mxu0 %v3702_v1  ;;  %7396 = vmatpush1.bf16.msra.mxu1 %v3704_v2  ;;  %v3785_v1 = vunpack.c.h.s8.bf16 %v1465_v53  ;;  %v1471_v2 = vld [vmem:[%s9580_s25 + $0x22a8] sm:$0xff] }
 0x979   : > { %6580 = vmatprep.subr.bf16.mxu0 %v3711_v3  ;;  %7397 = vmatprep.subr.bf16.mxu1 %v3713_v4  ;;  %v1473_v3 = vld [vmem:[%s9580_s25 + $0x22b8] sm:$0xff]  ;;  %v3782_v4 = vunpack.c.h.s8.bf16 %v1462_v59  ;;  %v3791_v7 = vunpack.c.l.s8.bf16 %v1471_v2  ;;  %v3799_v13 = vunpack.c.h.s8.bf16 %v1471_v2 }
 0x97c   : > { %6581 = vmatpush1.bf16.msra.mxu0 %v3710_v8  ;;  %7398 = vmatpush1.bf16.msra.mxu1 %v3712_v9  ;;  %v3793_v8 = vunpack.c.l.s8.bf16 %v1473_v3  ;;  %v1470_v9 = vld [vmem:[%s9580_s25 + $0x22a0] sm:$0xff] }
 0x97d   : > { %6582 = vmatprep.subr.bf16.mxu0 %v3719_v10  ;;  %7399 = vmatprep.subr.bf16.mxu1 %v3721_v11  ;;  %v1472_v10 = vld [vmem:[%s9580_s25 + $0x22b0] sm:$0xff]  ;;  %v3790_v11 = vunpack.c.l.s8.bf16 %v1470_v9 }
 0x97e   : > { %v3792_v12 = vunpack.c.l.s8.bf16 %v1472_v10  ;;  %v3800_v18 = vunpack.c.h.s8.bf16 %v1472_v10  ;;  %v1510_v10 = vld [vmem:[%s9580_s25 + $0x23e0] sm:$0xff] }
 0x980   : > { %6583 = vmatpush1.bf16.msra.mxu0 %v3718_v14  ;;  %7400 = vmatpush1.bf16.msra.mxu1 %v3720_v15  ;;  %v3801_v14 = vunpack.c.h.s8.bf16 %v1473_v3  ;;  %v1479_v15 = vld [vmem:[%s9580_s25 + $0x22e8] sm:$0xff] }
 0x981   : > { %6584 = vmatprep.subr.bf16.mxu0 %v3727_v16  ;;  %7401 = vmatprep.subr.bf16.mxu1 %v3729_v17  ;;  %v1481_v16 = vld [vmem:[%s9580_s25 + $0x22f8] sm:$0xff]  ;;  %v3798_v17 = vunpack.c.h.s8.bf16 %v1470_v9  ;;  %v3807_v19 = vunpack.c.l.s8.bf16 %v1479_v15  ;;  %v3815_v29 = vunpack.c.h.s8.bf16 %v1479_v15  ;;  %v1511_v3 = vld [vmem:[%s9580_s25 + $0x23e8] sm:$0xff] }
 0x984   : > { %6585 = vmatpush1.bf16.msra.mxu0 %v3726_v22  ;;  %7402 = vmatpush1.bf16.msra.mxu1 %v3728_v23  ;;  %v3809_v22 = vunpack.c.l.s8.bf16 %v1481_v16  ;;  %v1478_v23 = vld [vmem:[%s9580_s25 + $0x22e0] sm:$0xff] }
 0x985   : > { %6586 = vmatprep.subr.bf16.mxu0 %v3735_v26  ;;  %7403 = vmatprep.subr.bf16.mxu1 %v3737_v27  ;;  %v1480_v26 = vld [vmem:[%s9580_s25 + $0x22f0] sm:$0xff]  ;;  %v3806_v27 = vunpack.c.l.s8.bf16 %v1478_v23 }
 0x986   : > { %v3808_v28 = vunpack.c.l.s8.bf16 %v1480_v26  ;;  %v3816_v34 = vunpack.c.h.s8.bf16 %v1480_v26  ;;  %v1518_v26 = vld [vmem:[%s9580_s25 + $0x2420] sm:$0xff] }
 0x988   : > { %6587 = vmatpush1.bf16.msra.mxu0 %v3734_v30  ;;  %7404 = vmatpush1.bf16.msra.mxu1 %v3736_v31  ;;  %v3817_v30 = vunpack.c.h.s8.bf16 %v1481_v16  ;;  %v1487_v31 = vld [vmem:[%s9580_s25 + $0x2328] sm:$0xff] }
 0x989   : > { %6588 = vmatprep.subr.bf16.mxu0 %v3743_v32  ;;  %7405 = vmatprep.subr.bf16.mxu1 %v3745_v33  ;;  %v1489_v32 = vld [vmem:[%s9580_s25 + $0x2338] sm:$0xff]  ;;  %v3814_v33 = vunpack.c.h.s8.bf16 %v1478_v23  ;;  %v3823_v35 = vunpack.c.l.s8.bf16 %v1487_v31  ;;  %v3831_v41 = vunpack.c.h.s8.bf16 %v1487_v31  ;;  %v1519_v16 = vld [vmem:[%s9580_s25 + $0x2428] sm:$0xff] }
 0x98c   : > { %6589 = vmatpush1.bf16.msra.mxu0 %v3742_v36  ;;  %7406 = vmatpush1.bf16.msra.mxu1 %v3744_v37  ;;  %v3825_v36 = vunpack.c.l.s8.bf16 %v1489_v32  ;;  %v1486_v37 = vld [vmem:[%s9580_s25 + $0x2320] sm:$0xff] }
 0x98d   : > { %6590 = vmatprep.subr.bf16.mxu0 %v3751_v38  ;;  %7407 = vmatprep.subr.bf16.mxu1 %v3753_v39  ;;  %v1488_v38 = vld [vmem:[%s9580_s25 + $0x2330] sm:$0xff]  ;;  %v3822_v39 = vunpack.c.l.s8.bf16 %v1486_v37 }
 0x98e   : > { %v3824_v40 = vunpack.c.l.s8.bf16 %v1488_v38  ;;  %v3832_v46 = vunpack.c.h.s8.bf16 %v1488_v38 }
 0x990   : > { %6591 = vmatpush1.bf16.msra.mxu0 %v3750_v42  ;;  %7408 = vmatpush1.bf16.msra.mxu1 %v3752_v43  ;;  %v3833_v42 = vunpack.c.h.s8.bf16 %v1489_v32  ;;  %v1495_v43 = vld [vmem:[%s9580_s25 + $0x2368] sm:$0xff] }
 0x991   : > { %6603 = vmatprep.subr.bf16.mxu0 %v3759_v44  ;;  %7420 = vmatprep.subr.bf16.mxu1 %v3761_v45  ;;  %v1497_v44 = vld [vmem:[%s9580_s25 + $0x2378] sm:$0xff]  ;;  %v3830_v45 = vunpack.c.h.s8.bf16 %v1486_v37  ;;  %v3839_v47 = vunpack.c.l.s8.bf16 %v1495_v43  ;;  %v3847_v53 = vunpack.c.h.s8.bf16 %v1495_v43  ;;  %v1527_v32 = vld [vmem:[%s9580_s25 + $0x2468] sm:$0xff] }
 0x992   : > { %v3903_v37 = vunpack.c.l.s8.bf16 %v1527_v32 }
 0x993   : > { %6593 = vmatmul.mubr.bf16.vlgmr.msra.gmra.mrb[4].mxu0 %v9174_v54  ;;  %7410 = vmatmul.mubr.bf16.vlgmr.msra.gmra.mrb[4].mxu1 %v9174_v54  ;;  %v3849_v54 = vunpack.c.h.s8.bf16 %v1497_v44 }
 0x994   : > { %6604 = vmatpush1.bf16.msra.mxu0 %v3758_v48  ;;  %7421 = vmatpush1.bf16.msra.mxu1 %v3760_v49  ;;  %v3841_v48 = vunpack.c.l.s8.bf16 %v1497_v44  ;;  %v1494_v49 = vld [vmem:[%s9580_s25 + $0x2360] sm:$0xff]  ;;  %v3911_v44 = vunpack.c.h.s8.bf16 %v1527_v32 }
 0x995   : > { %6605 = vmatprep.subr.bf16.mxu0 %v3767_v50  ;;  %7422 = vmatprep.subr.bf16.mxu1 %v3769_v51  ;;  %v1496_v50 = vld [vmem:[%s9580_s25 + $0x2370] sm:$0xff]  ;;  %v3838_v51 = vunpack.c.l.s8.bf16 %v1494_v49 }
 0x996   : > { %6635 = vmatprep.mubr.bf16.mxu0 %v9175_v61  ;;  %7452 = vmatprep.mubr.bf16.mxu1 %v9175_v61  ;;  %v3840_v52 = vunpack.c.l.s8.bf16 %v1496_v50  ;;  %v1502_v61 = vld [vmem:[%s9580_s25 + $0x23a0] sm:$0xff] }
 0x998   : > { %6606 = vmatpush1.bf16.msra.mxu0 %v3766_v55  ;;  %7423 = vmatpush1.bf16.msra.mxu1 %v3768_v56  ;;  %v1503_v55 = vld [vmem:[%s9580_s25 + $0x23a8] sm:$0xff]  ;;  %v1505_v56 = vld [vmem:[%s9580_s25 + $0x23b8] sm:$0xff] }
 0x999   : > { %6607 = vmatprep.subr.bf16.mxu0 %v3775_v57  ;;  %7424 = vmatprep.subr.bf16.mxu1 %v3777_v58  ;;  %v3846_v57 = vunpack.c.h.s8.bf16 %v1494_v49  ;;  %v3848_v58 = vunpack.c.h.s8.bf16 %v1496_v50  ;;  %v3855_v59 = vunpack.c.l.s8.bf16 %v1503_v55  ;;  %v3857_v60 = vunpack.c.l.s8.bf16 %v1505_v56 }
 0x99a   : > { %v3865_v2 = vunpack.c.h.s8.bf16 %v1505_v56 }
 0x99c   : > { %6608 = vmatpush1.bf16.msra.mxu0 %v3774_v62  ;;  %7425 = vmatpush1.bf16.msra.mxu1 %v3776_v63  ;;  %v1504_v62 = vld [vmem:[%s9580_s25 + $0x23b0] sm:$0xff]  ;;  %v3854_v63 = vunpack.c.l.s8.bf16 %v1502_v61 }
 0x99d   : > { %6609 = vmatprep.subr.bf16.mxu0 %v3783_v0  ;;  %7426 = vmatprep.subr.bf16.mxu1 %v3785_v1  ;;  %v3856_v0 = vunpack.c.l.s8.bf16 %v1504_v62  ;;  %v3863_v1 = vunpack.c.h.s8.bf16 %v1503_v55 }
 0x9a0   : > { %6610 = vmatpush1.bf16.msra.mxu0 %v3782_v4  ;;  %7427 = vmatpush1.bf16.msra.mxu1 %v3784_v5  ;;  %v1513_v4 = vld [vmem:[%s9580_s25 + $0x23f8] sm:$0xff]  ;;  %v3862_v5 = vunpack.c.h.s8.bf16 %v1502_v61 }
 0x9a1   : > { %6611 = vmatprep.subr.bf16.mxu0 %v3791_v7  ;;  %7428 = vmatprep.subr.bf16.mxu1 %v3793_v8  ;;  %v3864_v7 = vunpack.c.h.s8.bf16 %v1504_v62  ;;  %v3871_v8 = vunpack.c.l.s8.bf16 %v1511_v3  ;;  %v3873_v9 = vunpack.c.l.s8.bf16 %v1513_v4  ;;  %v3881_v15 = vunpack.c.h.s8.bf16 %v1513_v4 }
 0x9a4   : > { %6612 = vmatpush1.bf16.msra.mxu0 %v3790_v11  ;;  %7429 = vmatpush1.bf16.msra.mxu1 %v3792_v12  ;;  %v1512_v11 = vld [vmem:[%s9580_s25 + $0x23f0] sm:$0xff]  ;;  %v3870_v12 = vunpack.c.l.s8.bf16 %v1510_v10 }
 0x9a5   : > { %6613 = vmatprep.subr.bf16.mxu0 %v3799_v13  ;;  %7430 = vmatprep.subr.bf16.mxu1 %v3801_v14  ;;  %v3872_v13 = vunpack.c.l.s8.bf16 %v1512_v11  ;;  %v3879_v14 = vunpack.c.h.s8.bf16 %v1511_v3 }
 0x9a8   : > { %6614 = vmatpush1.bf16.msra.mxu0 %v3798_v17  ;;  %7431 = vmatpush1.bf16.msra.mxu1 %v3800_v18  ;;  %v1521_v17 = vld [vmem:[%s9580_s25 + $0x2438] sm:$0xff]  ;;  %v3878_v18 = vunpack.c.h.s8.bf16 %v1510_v10 }
 0x9a9   : > { %6615 = vmatprep.subr.bf16.mxu0 %v3807_v19  ;;  %7432 = vmatprep.subr.bf16.mxu1 %v3809_v22  ;;  %v3880_v19 = vunpack.c.h.s8.bf16 %v1512_v11  ;;  %v3887_v22 = vunpack.c.l.s8.bf16 %v1519_v16  ;;  %v3889_v23 = vunpack.c.l.s8.bf16 %v1521_v17  ;;  %v3897_v31 = vunpack.c.h.s8.bf16 %v1521_v17 }
 0x9ac   : > { %6616 = vmatpush1.bf16.msra.mxu0 %v3806_v27  ;;  %7433 = vmatpush1.bf16.msra.mxu1 %v3808_v28  ;;  %v1520_v27 = vld [vmem:[%s9580_s25 + $0x2430] sm:$0xff]  ;;  %v3886_v28 = vunpack.c.l.s8.bf16 %v1518_v26 }
 0x9ad   : > { %6617 = vmatprep.subr.bf16.mxu0 %v3815_v29  ;;  %7434 = vmatprep.subr.bf16.mxu1 %v3817_v30  ;;  %v3888_v29 = vunpack.c.l.s8.bf16 %v1520_v27  ;;  %v3895_v30 = vunpack.c.h.s8.bf16 %v1519_v16 }
 0x9b0   : > { %6618 = vmatpush1.bf16.msra.mxu0 %v3814_v33  ;;  %7435 = vmatpush1.bf16.msra.mxu1 %v3816_v34  ;;  %v1529_v33 = vld [vmem:[%s9580_s25 + $0x2478] sm:$0xff]  ;;  %v9176_v34 = vld [vmem:[%s11165_s0 + $0x88] ss:$152 sps:$4 sm:$0xff]  }
 0x9b1   : > { %6619 = vmatprep.subr.bf16.mxu0 %v3823_v35  ;;  %7436 = vmatprep.subr.bf16.mxu1 %v3825_v36  ;;  %v3894_v35 = vunpack.c.h.s8.bf16 %v1518_v26  ;;  %v3896_v36 = vunpack.c.h.s8.bf16 %v1520_v27  ;;  %v3905_v38 = vunpack.c.l.s8.bf16 %v1529_v33 }
 0x9b4   : > { %6620 = vmatpush1.bf16.msra.mxu0 %v3822_v39  ;;  %7437 = vmatpush1.bf16.msra.mxu1 %v3824_v40  ;;  %v1526_v39 = vld [vmem:[%s9580_s25 + $0x2460] sm:$0xff]  ;;  %v1528_v40 = vld [vmem:[%s9580_s25 + $0x2470] sm:$0xff] }
 0x9b5   : > { %6621 = vmatprep.subr.bf16.mxu0 %v3831_v41  ;;  %7438 = vmatprep.subr.bf16.mxu1 %v3833_v42  ;;  %v9177_v41 = vld [vmem:[%s11165_s0 + $0x94] ss:$152 sps:$4 sm:$0xff]   ;;  %v3902_v42 = vunpack.c.l.s8.bf16 %v1526_v39  ;;  %v3904_v43 = vunpack.c.l.s8.bf16 %v1528_v40  ;;  %v3912_v49 = vunpack.c.h.s8.bf16 %v1528_v40 }
 0x9b8   : > { %6622 = vmatpush1.bf16.msra.mxu0 %v3830_v45  ;;  %7439 = vmatpush1.bf16.msra.mxu1 %v3832_v46  ;;  %v3913_v45 = vunpack.c.h.s8.bf16 %v1529_v33  ;;  %v1535_v46 = vld [vmem:[%s9580_s25 + $0x24a8] sm:$0xff] }
 0x9b9   : > { %6623 = vmatprep.subr.bf16.mxu0 %v3839_v47  ;;  %7440 = vmatprep.subr.bf16.mxu1 %v3841_v48  ;;  %v1537_v47 = vld [vmem:[%s9580_s25 + $0x24b8] sm:$0xff]  ;;  %v3910_v48 = vunpack.c.h.s8.bf16 %v1526_v39  ;;  %v3919_v50 = vunpack.c.l.s8.bf16 %v1535_v46  ;;  %v3927_v56 = vunpack.c.h.s8.bf16 %v1535_v46 }
 0x9bc   : > { %6624 = vmatpush1.bf16.msra.mxu0 %v3838_v51  ;;  %7441 = vmatpush1.bf16.msra.mxu1 %v3840_v52  ;;  %v3921_v51 = vunpack.c.l.s8.bf16 %v1537_v47  ;;  %v1534_v52 = vld [vmem:[%s9580_s25 + $0x24a0] sm:$0xff] }
 0x9bd   : > { %6625 = vmatprep.subr.bf16.mxu0 %v3847_v53  ;;  %7442 = vmatprep.subr.bf16.mxu1 %v3849_v54  ;;  %v1536_v53 = vld [vmem:[%s9580_s25 + $0x24b0] sm:$0xff]  ;;  %v3918_v54 = vunpack.c.l.s8.bf16 %v1534_v52 }
 0x9be   : > { %v3920_v55 = vunpack.c.l.s8.bf16 %v1536_v53  ;;  %v3928_v61 = vunpack.c.h.s8.bf16 %v1536_v53  ;;  %v1574_v53 = vld [vmem:[%s9580_s25 + $0x25e0] sm:$0xff] }
 0x9c0   : > { %6626 = vmatpush1.bf16.msra.mxu0 %v3846_v57  ;;  %7443 = vmatpush1.bf16.msra.mxu1 %v3848_v58  ;;  %v3929_v57 = vunpack.c.h.s8.bf16 %v1537_v47  ;;  %v1543_v58 = vld [vmem:[%s9580_s25 + $0x24e8] sm:$0xff] }
 0x9c1   : > { %6627 = vmatprep.subr.bf16.mxu0 %v3855_v59  ;;  %7444 = vmatprep.subr.bf16.mxu1 %v3857_v60  ;;  %v1545_v59 = vld [vmem:[%s9580_s25 + $0x24f8] sm:$0xff]  ;;  %v3926_v60 = vunpack.c.h.s8.bf16 %v1534_v52  ;;  %v3935_v62 = vunpack.c.l.s8.bf16 %v1543_v58  ;;  %v3943_v4 = vunpack.c.h.s8.bf16 %v1543_v58  ;;  %v1575_v47 = vld [vmem:[%s9580_s25 + $0x25e8] sm:$0xff] }
 0x9c4   : > { %6628 = vmatpush1.bf16.msra.mxu0 %v3854_v63  ;;  %7445 = vmatpush1.bf16.msra.mxu1 %v3856_v0  ;;  %v3937_v63 = vunpack.c.l.s8.bf16 %v1545_v59  ;;  %v1542_v0 = vld [vmem:[%s9580_s25 + $0x24e0] sm:$0xff] }
 0x9c5   : > { %6629 = vmatprep.subr.bf16.mxu0 %v3863_v1  ;;  %7446 = vmatprep.subr.bf16.mxu1 %v3865_v2  ;;  %v1544_v1 = vld [vmem:[%s9580_s25 + $0x24f0] sm:$0xff]  ;;  %v3934_v2 = vunpack.c.l.s8.bf16 %v1542_v0 }
 0x9c6   : > { %v3936_v3 = vunpack.c.l.s8.bf16 %v1544_v1  ;;  %v3944_v10 = vunpack.c.h.s8.bf16 %v1544_v1  ;;  %v9081_v1 = vld [vmem:[%s9595_s16 + $0x48] sm:$0xff]  }
 0x9c8   : > { %6630 = vmatpush1.bf16.msra.mxu0 %v3862_v5  ;;  %7447 = vmatpush1.bf16.msra.mxu1 %v3864_v7  ;;  %v3945_v5 = vunpack.c.h.s8.bf16 %v1545_v59  ;;  %v1551_v7 = vld [vmem:[%s9580_s25 + $0x2528] sm:$0xff]  ;;  %v4006_v59 = vunpack.c.h.s8.bf16 %v1574_v53 }
 0x9c9   : > { %6631 = vmatprep.subr.bf16.mxu0 %v3871_v8  ;;  %7448 = vmatprep.subr.bf16.mxu1 %v3873_v9  ;;  %v1553_v8 = vld [vmem:[%s9580_s25 + $0x2538] sm:$0xff]  ;;  %v3942_v9 = vunpack.c.h.s8.bf16 %v1542_v0  ;;  %v3951_v11 = vunpack.c.l.s8.bf16 %v1551_v7  ;;  %v3959_v17 = vunpack.c.h.s8.bf16 %v1551_v7  ;;  %v9080_v0 = vld [vmem:[%s9595_s16 + $0x80] sm:$0xff]   ;;  %v9085_v7 = vld [vmem:[%s9595_s16 + $0x50] sm:$0xff]  }
 0x9cc   : > { %6632 = vmatpush1.bf16.msra.mxu0 %v3870_v12  ;;  %7449 = vmatpush1.bf16.msra.mxu1 %v3872_v13  ;;  %v3953_v12 = vunpack.c.l.s8.bf16 %v1553_v8  ;;  %v1550_v13 = vld [vmem:[%s9580_s25 + $0x2520] sm:$0xff] }
 0x9cd   : > { %6633 = vmatprep.subr.bf16.mxu0 %v3879_v14  ;;  %7450 = vmatprep.subr.bf16.mxu1 %v3881_v15  ;;  %v1552_v14 = vld [vmem:[%s9580_s25 + $0x2530] sm:$0xff]  ;;  %v3950_v15 = vunpack.c.l.s8.bf16 %v1550_v13 }
 0x9ce   : > { %v3952_v16 = vunpack.c.l.s8.bf16 %v1552_v14  ;;  %v3960_v26 = vunpack.c.h.s8.bf16 %v1552_v14  ;;  %v9094_v14 = vld [vmem:[%s9595_s16 + $0xe0] sm:$0xff]  }
 0x9d0   : > { %6634 = vmatpush1.bf16.msra.mxu0 %v3878_v18  ;;  %7451 = vmatpush1.bf16.msra.mxu1 %v3880_v19  ;;  %v3961_v18 = vunpack.c.h.s8.bf16 %v1553_v8  ;;  %v1559_v19 = vld [vmem:[%s9580_s25 + $0x2568] sm:$0xff]  ;;  %v9086_v8 = vld [vmem:[%s9595_s16 + $0xd0] sm:$0xff]  }
 0x9d1   : > { %6646 = vmatprep.subr.bf16.mxu0 %v3887_v22  ;;  %7463 = vmatprep.subr.bf16.mxu1 %v3889_v23  ;;  %v1561_v22 = vld [vmem:[%s9580_s25 + $0x2578] sm:$0xff]  ;;  %v3958_v23 = vunpack.c.h.s8.bf16 %v1550_v13  ;;  %v3967_v27 = vunpack.c.l.s8.bf16 %v1559_v19  ;;  %v3975_v33 = vunpack.c.h.s8.bf16 %v1559_v19  ;;  %v9093_v13 = vld [vmem:[%s9595_s16 + $0x60] sm:$0xff]   ;;  %v9099_v19 = vld [vmem:[%s9595_s16 + $0x28] sm:$0xff]  }
 0x9d3   : > { %6636 = vmatmul.mubr.bf16.vlgmr.msra.gmra.mrb[4].mxu0 %v9176_v34  ;;  %7453 = vmatmul.mubr.bf16.vlgmr.msra.gmra.mrb[4].mxu1 %v9176_v34  ;;  %v3977_v34 = vunpack.c.h.s8.bf16 %v1561_v22 }
 0x9d4   : > { %6647 = vmatpush1.bf16.msra.mxu0 %v3886_v28  ;;  %7464 = vmatpush1.bf16.msra.mxu1 %v3888_v29  ;;  %v3969_v28 = vunpack.c.l.s8.bf16 %v1561_v22  ;;  %v1558_v29 = vld [vmem:[%s9580_s25 + $0x2560] sm:$0xff]  ;;  %v9100_v22 = vld [vmem:[%s9595_s16 + $0xa8] sm:$0xff]  }
 0x9d5   : > { %6648 = vmatprep.subr.bf16.mxu0 %v3895_v30  ;;  %7465 = vmatprep.subr.bf16.mxu1 %v3897_v31  ;;  %v1560_v30 = vld [vmem:[%s9580_s25 + $0x2570] sm:$0xff]  ;;  %v3966_v31 = vunpack.c.l.s8.bf16 %v1558_v29 }
 0x9d6   : > { %6678 = vmatprep.mubr.bf16.mxu0 %v9177_v41  ;;  %7495 = vmatprep.mubr.bf16.mxu1 %v9177_v41  ;;  %v3968_v32 = vunpack.c.l.s8.bf16 %v1560_v30  ;;  %v1566_v41 = vld [vmem:[%s9580_s25 + $0x25a0] sm:$0xff] }
 0x9d8   : > { %6649 = vmatpush1.bf16.msra.mxu0 %v3894_v35  ;;  %7466 = vmatpush1.bf16.msra.mxu1 %v3896_v36  ;;  %v1567_v35 = vld [vmem:[%s9580_s25 + $0x25a8] sm:$0xff]  ;;  %v1569_v36 = vld [vmem:[%s9580_s25 + $0x25b8] sm:$0xff] }
 0x9d9   : > { %6650 = vmatprep.subr.bf16.mxu0 %v3903_v37  ;;  %7467 = vmatprep.subr.bf16.mxu1 %v3905_v38  ;;  %v3974_v37 = vunpack.c.h.s8.bf16 %v1558_v29  ;;  %v3976_v38 = vunpack.c.h.s8.bf16 %v1560_v30  ;;  %v3983_v39 = vunpack.c.l.s8.bf16 %v1567_v35  ;;  %v3985_v40 = vunpack.c.l.s8.bf16 %v1569_v36  ;;  %v9105_v29 = vld [vmem:[%s9595_s16 + $0x78] sm:$0xff]  }
 0x9da   : > { %v3993_v46 = vunpack.c.h.s8.bf16 %v1569_v36  ;;  %v9106_v30 = vld [vmem:[%s9595_s16 + $0xf8] sm:$0xff]   ;;  %v9112_v36 = vld [vmem:[%s9595_s16 + $0x180] sm:$0xff]  }
 0x9dc   : > { %6651 = vmatpush1.bf16.msra.mxu0 %v3902_v42  ;;  %7468 = vmatpush1.bf16.msra.mxu1 %v3904_v43  ;;  %v1568_v42 = vld [vmem:[%s9580_s25 + $0x25b0] sm:$0xff]  ;;  %v3982_v43 = vunpack.c.l.s8.bf16 %v1566_v41 }
 0x9dd   : > { %6652 = vmatprep.subr.bf16.mxu0 %v3911_v44  ;;  %7469 = vmatprep.subr.bf16.mxu1 %v3913_v45  ;;  %v3984_v44 = vunpack.c.l.s8.bf16 %v1568_v42  ;;  %v3991_v45 = vunpack.c.h.s8.bf16 %v1567_v35  ;;  %v9111_v35 = vld [vmem:[%s9595_s16 + $0x100] sm:$0xff]  }
 0x9e0   : > { %6653 = vmatpush1.bf16.msra.mxu0 %v3910_v48  ;;  %7470 = vmatpush1.bf16.msra.mxu1 %v3912_v49  ;;  %v1577_v48 = vld [vmem:[%s9580_s25 + $0x25f8] sm:$0xff]  ;;  %v3990_v49 = vunpack.c.h.s8.bf16 %v1566_v41  ;;  %v9117_v41 = vld [vmem:[%s9595_s16 + $0x150] sm:$0xff]  }
 0x9e1   : > { %6654 = vmatprep.subr.bf16.mxu0 %v3919_v50  ;;  %7471 = vmatprep.subr.bf16.mxu1 %v3921_v51  ;;  %v3992_v50 = vunpack.c.h.s8.bf16 %v1568_v42  ;;  %v3999_v51 = vunpack.c.l.s8.bf16 %v1575_v47  ;;  %v4001_v52 = vunpack.c.l.s8.bf16 %v1577_v48  ;;  %v4009_v58 = vunpack.c.h.s8.bf16 %v1577_v48  ;;  %v9118_v42 = vld [vmem:[%s9595_s16 + $0x1d0] sm:$0xff]   ;;  %v9126_v48 = vld [vmem:[%s9595_s16 + $0x1e0] sm:$0xff]  }
 0x9e4   : > { %6655 = vmatpush1.bf16.msra.mxu0 %v3918_v54  ;;  %7472 = vmatpush1.bf16.msra.mxu1 %v3920_v55  ;;  %v1576_v54 = vld [vmem:[%s9580_s25 + $0x25f0] sm:$0xff]  ;;  %v3998_v55 = vunpack.c.l.s8.bf16 %v1574_v53  ;;  %v9131_v53 = vld [vmem:[%s9595_s16 + $0x128] sm:$0xff]  }
 0x9e5   : > { %6656 = vmatprep.subr.bf16.mxu0 %v3927_v56  ;;  %7473 = vmatprep.subr.bf16.mxu1 %v3929_v57  ;;  %v4000_v56 = vunpack.c.l.s8.bf16 %v1576_v54  ;;  %v4007_v57 = vunpack.c.h.s8.bf16 %v1575_v47  ;;  %v9125_v47 = vld [vmem:[%s9595_s16 + $0x160] sm:$0xff]  }
 0x9e8   : > { %6657 = vmatpush1.bf16.msra.mxu0 %v3926_v60  ;;  %7474 = vmatpush1.bf16.msra.mxu1 %v3928_v61  ;;  %v4008_v60 = vunpack.c.h.s8.bf16 %v1576_v54  ;;  %v9077_v61 = vld [vmem:[%s9595_s16 + $0x40] sm:$0xff]   ;;  %v9132_v54 = vld [vmem:[%s9595_s16 + $0x1a8] sm:$0xff]  }
 0x9e9   : > { %6658 = vmatprep.subr.bf16.mxu0 %v3935_v62  ;;  %7475 = vmatprep.subr.bf16.mxu1 %v3937_v63  ;;  %v9078_v62 = vld [vmem:[%s9595_s16 + $0xc0] sm:$0xff]  }
 0x9ea   : > { %v9079_v63 = vld [vmem:[%s9595_s16] sm:$0xff]  }
 0x9ec   : > { %6659 = vmatpush1.bf16.msra.mxu0 %v3934_v2  ;;  %7476 = vmatpush1.bf16.msra.mxu1 %v3936_v3  ;;  %v9082_v2 = vld [vmem:[%s9595_s16 + $0xc8] sm:$0xff]  }
 0x9ed   : > { %6660 = vmatprep.subr.bf16.mxu0 %v3943_v4  ;;  %7477 = vmatprep.subr.bf16.mxu1 %v3945_v5  ;;  %v9178_v3 = vld [vmem:[%s11165_s0 + $0x90] ss:$152 sps:$4 sm:$0xff]  }
 0x9ee   : > { %v9083_v4 = vld [vmem:[%s9595_s16 + $0x8] sm:$0xff]  }
 0x9ef   : > { %v9084_v5 = vld [vmem:[%s9595_s16 + $0x88] sm:$0xff]  }
 0x9f0   : > { %6661 = vmatpush1.bf16.msra.mxu0 %v3942_v9  ;;  %7478 = vmatpush1.bf16.msra.mxu1 %v3944_v10  ;;  %v9087_v9 = vld [vmem:[%s9595_s16 + $0x10] sm:$0xff]   ;;  %v9089_v10 = vld [vmem:[%s9595_s16 + $0x58] sm:$0xff]  }
 0x9f1   : > { %6662 = vmatprep.subr.bf16.mxu0 %v3951_v11  ;;  %7479 = vmatprep.subr.bf16.mxu1 %v3953_v12  ;;  %v9090_v11 = vld [vmem:[%s9595_s16 + $0xd8] sm:$0xff]  }
 0x9f2   : > { %v9092_v12 = vld [vmem:[%s9595_s16 + $0x98] sm:$0xff]  }
 0x9f4   : > { %6663 = vmatpush1.bf16.msra.mxu0 %v3950_v15  ;;  %7480 = vmatpush1.bf16.msra.mxu1 %v3952_v16  ;;  %v9095_v15 = vld [vmem:[%s9595_s16 + $0x20] sm:$0xff]  }
 0x9f5   : > { %6664 = vmatprep.subr.bf16.mxu0 %v3959_v17  ;;  %7481 = vmatprep.subr.bf16.mxu1 %v3961_v18  ;;  %v9096_v16 = vld [vmem:[%s9595_s16 + $0xa0] sm:$0xff]   ;;  %v9097_v17 = vld [vmem:[%s9595_s16 + $0x68] sm:$0xff]  }
 0x9f6   : > { %v9098_v18 = vld [vmem:[%s9595_s16 + $0xe8] sm:$0xff]  }
 0x9f8   : > { %6665 = vmatpush1.bf16.msra.mxu0 %v3958_v23  ;;  %7482 = vmatpush1.bf16.msra.mxu1 %v3960_v26  ;;  %v9101_v23 = vld [vmem:[%s9595_s16 + $0x70] sm:$0xff]  }
 0x9f9   : > { %6666 = vmatprep.subr.bf16.mxu0 %v3967_v27  ;;  %7483 = vmatprep.subr.bf16.mxu1 %v3969_v28  ;;  %v9102_v26 = vld [vmem:[%s9595_s16 + $0xf0] sm:$0xff]  }
 0x9fa   : > { %v9103_v27 = vld [vmem:[%s9595_s16 + $0x30] sm:$0xff]  }
 0x9fb   : > { %v9104_v28 = vld [vmem:[%s9595_s16 + $0xb0] sm:$0xff]  }
 0x9fc   : > { %6667 = vmatpush1.bf16.msra.mxu0 %v3966_v31  ;;  %7484 = vmatpush1.bf16.msra.mxu1 %v3968_v32  ;;  %v9107_v31 = vld [vmem:[%s9595_s16 + $0x38] sm:$0xff]  }
 0x9fd   : > { %6668 = vmatprep.subr.bf16.mxu0 %v3975_v33  ;;  %7485 = vmatprep.subr.bf16.mxu1 %v3977_v34  ;;  %v9108_v32 = vld [vmem:[%s9595_s16 + $0xb8] sm:$0xff]   ;;  %v9109_v33 = vld [vmem:[%s9595_s16 + $0x140] sm:$0xff]  }
 0x9fe   : > { %v9110_v34 = vld [vmem:[%s9595_s16 + $0x1c0] sm:$0xff]  }
 0xa00   : > { %6669 = vmatpush1.bf16.msra.mxu0 %v3974_v37  ;;  %7486 = vmatpush1.bf16.msra.mxu1 %v3976_v38  ;;  %v9113_v37 = vld [vmem:[%s9595_s16 + $0x148] sm:$0xff]  }
 0xa01   : > { %6670 = vmatprep.subr.bf16.mxu0 %v3983_v39  ;;  %7487 = vmatprep.subr.bf16.mxu1 %v3985_v40  ;;  %v9114_v38 = vld [vmem:[%s9595_s16 + $0x1c8] sm:$0xff]  }
 0xa02   : > { %v9115_v39 = vld [vmem:[%s9595_s16 + $0x108] sm:$0xff]  }
 0xa03   : > { %v9116_v40 = vld [vmem:[%s9595_s16 + $0x188] sm:$0xff]  }
 0xa04   : > { %6671 = vmatpush1.bf16.msra.mxu0 %v3982_v43  ;;  %7488 = vmatpush1.bf16.msra.mxu1 %v3984_v44  ;;  %v9119_v43 = vld [vmem:[%s9595_s16 + $0x110] sm:$0xff]   ;;  %v9122_v44 = vld [vmem:[%s9595_s16 + $0x1d8] sm:$0xff]  }
 0xa05   : > { %6672 = vmatprep.subr.bf16.mxu0 %v3991_v45  ;;  %7489 = vmatprep.subr.bf16.mxu1 %v3993_v46  ;;  %v9123_v45 = vld [vmem:[%s9595_s16 + $0x118] sm:$0xff]  }
 0xa06   : > { %v9124_v46 = vld [vmem:[%s9595_s16 + $0x198] sm:$0xff]  }
 0xa08   : > { %6673 = vmatpush1.bf16.msra.mxu0 %v3990_v49  ;;  %7490 = vmatpush1.bf16.msra.mxu1 %v3992_v50  ;;  %v9127_v49 = vld [vmem:[%s9595_s16 + $0x120] sm:$0xff]  }
 0xa09   : > { %6674 = vmatprep.subr.bf16.mxu0 %v3999_v51  ;;  %7491 = vmatprep.subr.bf16.mxu1 %v4001_v52  ;;  %v9128_v50 = vld [vmem:[%s9595_s16 + $0x1a0] sm:$0xff]   ;;  %v9129_v51 = vld [vmem:[%s9595_s16 + $0x168] sm:$0xff]  }
 0xa0a   : > { %v9130_v52 = vld [vmem:[%s9595_s16 + $0x1e8] sm:$0xff]  }
 0xa0c   : > { %6675 = vmatpush1.bf16.msra.mxu0 %v3998_v55  ;;  %7492 = vmatpush1.bf16.msra.mxu1 %v4000_v56  ;;  %v9133_v55 = vld [vmem:[%s9595_s16 + $0x170] sm:$0xff]  }
 0xa0d   : > { %6676 = vmatprep.subr.bf16.mxu0 %v4007_v57  ;;  %7493 = vmatprep.subr.bf16.mxu1 %v4009_v58  ;;  %v9134_v56 = vld [vmem:[%s9595_s16 + $0x1f0] sm:$0xff]  }
 0xa0e   : > { %v9135_v57 = vld [vmem:[%s9595_s16 + $0x130] sm:$0xff]  }
 0xa0f   : > { %v9136_v58 = vld [vmem:[%s9595_s16 + $0x1b0] sm:$0xff]  }
 0xa10   : > { %6677 = vmatpush1.bf16.msra.mxu0 %v4006_v59  ;;  %7494 = vmatpush1.bf16.msra.mxu1 %v4008_v60  ;;  %v9137_v59 = vld [vmem:[%s9595_s16 + $0x178] sm:$0xff]  }
 0xa11   : > { %8584 = vmatprep.subr.bf16.mxu0 %v9077_v61  ;;  %8606 = vmatprep.subr.bf16.mxu1 %v9078_v62  ;;  %v9138_v60 = vld [vmem:[%s9595_s16 + $0x1f8] sm:$0xff]  }
 0xa12   : > { %v9139_v61 = vld [vmem:[%s9595_s16 + $0x138] sm:$0xff]  }
 0xa13   : > { %6679 = vmatmul.mubr.bf16.vlgmr.msra.gmra.mrb[4].mxu0 %v9178_v3  ;;  %7496 = vmatmul.mubr.bf16.vlgmr.msra.gmra.mrb[4].mxu1 %v9178_v3  ;;  %v9140_v62 = vld [vmem:[%s9595_s16 + $0x1b8] sm:$0xff]   ;;  %v9179_v3 = vld [vmem:[%s9587_s11] sm:$0xff]  ;;  %s8583_s11 = sshll.u32 %s11192_s22, 4 }
 0xa14   : > { %8585 = vmatpush3.bf16.msra.mxu0 %v9079_v63  ;;  %8190 = vmatprep.mubr.bf16.mxu0 %v10484_v24  ;;  %v9088_v24 = vld [vmem:[%s9595_s16 + $0x90] sm:$0xff]   ;;  %v7526_v63 = vsub.s32 4, %v10450_v6  ;;  %s360_s14 = scalar_lea.vmem %s11170_s5, %s8583_s11 }
 0xa15   : > { %8607 = vmatpush3.bf16.msra.mxu1 %v9080_v0  ;;  %8231 = vmatprep.mubr.bf16.mxu1 %v10486_v25  ;;  %v9091_v25 = vld [vmem:[%s9595_s16 + $0x18] sm:$0xff]   ;;  %v7534_v0 = vsub.s32 6, %v10450_v6 }
 0xa16   : > { %8586 = vmatprep.subr.bf16.mxu0 %v9081_v1  ;;  %8608 = vmatprep.subr.bf16.mxu1 %v9082_v2  ;;  %v7530_v1 = vsub.s32 5, %v10450_v6  ;;  %v7538_v2 = vsub.s32 7, %v10450_v6 }
 0xa18   : > { %8587 = vmatpush3.bf16.msra.mxu0 %v9083_v4  ;;  %v7527_v4 = vrot.slane %v9179_v3, %v7526_v63 }
 0xa19   : > { %8609 = vmatpush3.bf16.msra.mxu1 %v9084_v5  ;;  %8588 = vmatprep.subr.bf16.mxu0 %v9085_v7  ;;  %v7535_v5 = vrot.slane %v9179_v3, %v7534_v0  ;;  %v7531_v7 = vrot.slane %v9179_v3, %v7530_v1 }
 0xa1a   : > { %8610 = vmatprep.subr.bf16.mxu1 %v9086_v8  ;;  %v7539_v8 = vrot.slane %v9179_v3, %v7538_v2 }
 0xa1c   : > { %8589 = vmatpush3.bf16.msra.mxu0 %v9087_v9  ;;  %v9180_v9 = vld [vmem:[%s9593_s9] sm:$0xff] }
 0xa1d   : > { %8611 = vmatpush3.bf16.msra.mxu1 %v9088_v24  ;;  %8590 = vmatprep.subr.bf16.mxu0 %v9089_v10  ;;  %v7585_v24 = vrot.slane %v9180_v9, %v7526_v63  ;;  %v7593_v10 = vrot.slane %v9180_v9, %v7534_v0 }
 0xa1e   : > { %8612 = vmatprep.subr.bf16.mxu1 %v9090_v11 }
 0xa20   : > { %8591 = vmatpush3.bf16.msra.mxu0 %v9091_v25 }
 0xa21   : > { %8613 = vmatpush3.bf16.msra.mxu1 %v9092_v12  ;;  %8592 = vmatprep.subr.bf16.mxu0 %v9093_v13  ;;  %v7589_v12 = vrot.slane %v9180_v9, %v7530_v1  ;;  %v7597_v13 = vrot.slane %v9180_v9, %v7538_v2 }
 0xa22   : > { %8614 = vmatprep.subr.bf16.mxu1 %v9094_v14 }
 0xa24   : > { %8593 = vmatpush3.bf16.msra.mxu0 %v9095_v15 }
 0xa25   : > { %8615 = vmatpush3.bf16.msra.mxu1 %v9096_v16  ;;  %8594 = vmatprep.subr.bf16.mxu0 %v9097_v17 }
 0xa26   : > { %8616 = vmatprep.subr.bf16.mxu1 %v9098_v18 }
 0xa28   : > { %8595 = vmatpush3.bf16.msra.mxu0 %v9099_v19 }
 0xa29   : > { %8617 = vmatpush3.bf16.msra.mxu1 %v9100_v22  ;;  %8596 = vmatprep.subr.bf16.mxu0 %v9101_v23 }
 0xa2a   : > { %8618 = vmatprep.subr.bf16.mxu1 %v9102_v26 }
 0xa2c   : > { %8597 = vmatpush3.bf16.msra.mxu0 %v9103_v27 }
 0xa2d   : > { %8619 = vmatpush3.bf16.msra.mxu1 %v9104_v28  ;;  %8598 = vmatprep.subr.bf16.mxu0 %v9105_v29 }
 0xa2e   : > { %8620 = vmatprep.subr.bf16.mxu1 %v9106_v30 }
 0xa30   : > { %8599 = vmatpush3.bf16.msra.mxu0 %v9107_v31 }
 0xa31   : > { %8621 = vmatpush3.bf16.msra.mxu1 %v9108_v32  ;;  %8628 = vmatprep.subr.bf16.mxu0 %v9109_v33 }
 0xa32   : > { %8650 = vmatprep.subr.bf16.mxu1 %v9110_v34 }
 0xa33   : > { %8191 = vmatmul.mubr.bf16.vlgmr.msra.gmra.mrb[8].mxu0 %v10480_v20  ;;  %v9120_v20 = vld [vmem:[%s9595_s16 + $0x190] sm:$0xff]  }
 0xa34   : > { %8232 = vmatmul.mubr.bf16.vlgmr.msra.gmra.mrb[8].mxu1 %v10482_v21  ;;  %8629 = vmatpush3.bf16.msra.mxu0 %v9111_v35  ;;  %v9121_v21 = vld [vmem:[%s9595_s16 + $0x158] sm:$0xff]  }
 0xa35   : > { %8651 = vmatpush3.bf16.msra.mxu1 %v9112_v36  ;;  %8630 = vmatprep.subr.bf16.mxu0 %v9113_v37 }
 0xa36   : > { %8652 = vmatprep.subr.bf16.mxu1 %v9114_v38 }
 0xa38   : > { %8631 = vmatpush3.bf16.msra.mxu0 %v9115_v39 }
 0xa39   : > { %8653 = vmatpush3.bf16.msra.mxu1 %v9116_v40  ;;  %8632 = vmatprep.subr.bf16.mxu0 %v9117_v41 }
 0xa3a   : > { %8654 = vmatprep.subr.bf16.mxu1 %v9118_v42 }
 0xa3c   : > { %8633 = vmatpush3.bf16.msra.mxu0 %v9119_v43 }
 0xa3d   : > { %8655 = vmatpush3.bf16.msra.mxu1 %v9120_v20  ;;  %8634 = vmatprep.subr.bf16.mxu0 %v9121_v21 }
 0xa3e   : > { %8656 = vmatprep.subr.bf16.mxu1 %v9122_v44 }
 0xa40   : > { %8635 = vmatpush3.bf16.msra.mxu0 %v9123_v45 }
 0xa41   : > { %8657 = vmatpush3.bf16.msra.mxu1 %v9124_v46  ;;  %8636 = vmatprep.subr.bf16.mxu0 %v9125_v47 }
 0xa42   : > { %8658 = vmatprep.subr.bf16.mxu1 %v9126_v48 }
 0xa44   : > { %8637 = vmatpush3.bf16.msra.mxu0 %v9127_v49 }
 0xa45   : > { %8659 = vmatpush3.bf16.msra.mxu1 %v9128_v50  ;;  %8638 = vmatprep.subr.bf16.mxu0 %v9129_v51 }
 0xa46   : > { %8660 = vmatprep.subr.bf16.mxu1 %v9130_v52 }
 0xa48   : > { %8639 = vmatpush3.bf16.msra.mxu0 %v9131_v53 }
 0xa49   : > { %8661 = vmatpush3.bf16.msra.mxu1 %v9132_v54  ;;  %8640 = vmatprep.subr.bf16.mxu0 %v9133_v55 }
 0xa4a   : > { %8662 = vmatprep.subr.bf16.mxu1 %v9134_v56 }
 0xa4c   : > { %8641 = vmatpush3.bf16.msra.mxu0 %v9135_v57 }
 0xa4d   : > { %8663 = vmatpush3.bf16.msra.mxu1 %v9136_v58  ;;  %8642 = vmatprep.subr.bf16.mxu0 %v9137_v59 }
 0xa4e   : > { %8664 = vmatprep.subr.bf16.mxu1 %v9138_v60 }
 0xa50   : > { %8643 = vmatpush3.bf16.msra.mxu0 %v9139_v61 }
 0xa51   : > { %8665 = vmatpush3.bf16.msra.mxu1 %v9140_v62 }
 0xae6   : > { %v6680_v11 = vpop.f32.mrb[4].mxu0  ;;  %v7497_v25 = vpop.f32.mrb[4].mxu1 }
 0xae7   : > { %v7552_v14 = vmul.f32 %v7527_v4, %v6680_v11  ;;  %v7554_v15 = vmul.f32 %v7535_v5, %v7497_v25  ;;  %v6682_v16 = vpop.f32.mrb[5].mxu0  ;;  %v7499_v17 = vpop.f32.mrb[5].mxu1 }
 0xae8   : > { %v7553_v18 = vmul.f32 %v7531_v7, %v6682_v16  ;;  %v7555_v19 = vmul.f32 %v7539_v8, %v7499_v17  ;;  %v6684_v22 = vpop.f32.mrb[6].mxu0  ;;  %v7501_v6 = vpop.f32.mrb[6].mxu1 }
 0xae9   : > { %v7610_v23 = vadd.f32 %v7585_v24, %v7552_v14  ;;  %v7612_v26 = vadd.f32 %v7593_v10, %v7554_v15  ;;  %v7560_v27 = vmul.f32 %v7527_v4, %v6684_v22  ;;  %v7562_v28 = vmul.f32 %v7535_v5, %v7501_v6  ;;  %v6686_v29 = vpop.f32.mrb[7].mxu0  ;;  %v7503_v30 = vpop.f32.mrb[7].mxu1 }
 0xaea   : > { %v7611_v31 = vadd.f32 %v7589_v12, %v7553_v18  ;;  %v7613_v32 = vadd.f32 %v7597_v13, %v7555_v19  ;;  %v7561_v33 = vmul.f32 %v7531_v7, %v6686_v29  ;;  %v7563_v34 = vmul.f32 %v7539_v8, %v7503_v30 }
 0xaeb   : > { %v7618_v35 = vadd.f32 %v7585_v24, %v7560_v27  ;;  %v7620_v36 = vadd.f32 %v7593_v10, %v7562_v28  ;;  %v7626_v39 = vmax.f32 %v7610_v23, 0.0  ;;  %v7628_v40 = vmax.f32 %v7612_v26, 0.0 }
 0xaec   : > { %v7619_v37 = vadd.f32 %v7589_v12, %v7561_v33  ;;  %v7621_v38 = vadd.f32 %v7597_v13, %v7563_v34  ;;  %v7627_v43 = vmax.f32 %v7611_v31, 0.0  ;;  %v7629_v20 = vmax.f32 %v7613_v32, 0.0 }
 0xaed   : > { %v7634_v41 = vmax.f32 %v7618_v35, 0.0  ;;  %v7636_v42 = vmax.f32 %v7620_v36, 0.0 }
 0xaee   : > { %v7635_v21 = vmax.f32 %v7619_v37, 0.0  ;;  %v7637_v44 = vmax.f32 %v7621_v38, 0.0 }
 0xaef   : > { %v7642_v45 = vpack.c.bf16 %v7634_v41, %v7626_v39  ;;  %v7644_v46 = vpack.c.bf16 %v7636_v42, %v7628_v40 }
 0xaf0   : > { %v7643_v47 = vpack.c.bf16 %v7635_v21, %v7627_v43  ;;  %v7645_v48 = vpack.c.bf16 %v7637_v44, %v7629_v20 }
 0xaf2   : > { %8272 = vmatprep.mubr.bf16.mxu0 %v7643_v47  ;;  %8313 = vmatprep.mubr.bf16.mxu1 %v7645_v48 }
 0xaf3   : > { %8273 = vmatmul.mubr.bf16.vlgmr.msra.gmra.mrb[12].mxu0 %v7642_v45  ;;  %8314 = vmatmul.mubr.bf16.vlgmr.msra.gmra.mrb[12].mxu1 %v7644_v46 }
 0xb06   : > { %v8600_v49 = vpop.f32.mrb[8].mxu0 }
 0xb07   : > { %v8622_v50 = vpop.f32.mrb[8].mxu1  ;;  %v8601_v51 = vpop.f32.mrb[9].mxu0 }
 0xb08   : > { %v8602_v52 = vadd.f32 %v8601_v51, %v8600_v49  ;;  %v8623_v53 = vpop.f32.mrb[9].mxu1  ;;  %v8603_v54 = vpop.f32.mrb[10].mxu0 }
 0xb09   : > { %v8624_v55 = vadd.f32 %v8623_v53, %v8622_v50  ;;  %v8625_v56 = vpop.f32.mrb[10].mxu1  ;;  %v8604_v57 = vpop.f32.mrb[11].mxu0 }
 0xb0a   : > { %v8605_v58 = vadd.f32 %v8604_v57, %v8603_v54  ;;  %v8626_v59 = vpop.f32.mrb[11].mxu1 }
 0xb0b   : > { %v8234_v60 = vadd.f32 %v8624_v55, %v8602_v52  ;;  %v8627_v61 = vadd.f32 %v8626_v59, %v8625_v56 }
 0xb0d   : > { %v8237_v62 = vadd.f32 %v8627_v61, %v8605_v58 }
 0xbc6   : > { %v8644_v63 = vpop.f32.mrb[12].mxu0  ;;  %v8666_v0 = vpop.f32.mrb[12].mxu1 }
 0xbc7   : > { %v8645_v1 = vpop.f32.mrb[13].mxu0  ;;  %v8667_v2 = vpop.f32.mrb[13].mxu1 }
 0xbc8   : > { %v8646_v3 = vadd.f32 %v8645_v1, %v8644_v63  ;;  %v8668_v4 = vadd.f32 %v8667_v2, %v8666_v0  ;;  %v8647_v5 = vpop.f32.mrb[14].mxu0  ;;  %v8669_v7 = vpop.f32.mrb[14].mxu1 }
 0xbc9   : > { %v8648_v8 = vpop.f32.mrb[15].mxu0  ;;  %v8670_v9 = vpop.f32.mrb[15].mxu1 }
 0xbca   : > { %v8275_v24 = vadd.f32 %v8646_v3, %v8234_v60  ;;  %v8649_v10 = vadd.f32 %v8648_v8, %v8647_v5  ;;  %v8671_v11 = vadd.f32 %v8670_v9, %v8669_v7 }
 0xbcc   : > { %v8316_v25 = vadd.f32 %v8668_v4, %v8275_v24  ;;  %v8278_v12 = vadd.f32 %v8649_v10, %v8237_v62 }
 0xbce   : > { %8322 = vst [vmem:[%s360_s14] sm:$0xff] %v8316_v25  ;;  %v8319_v13 = vadd.f32 %v8671_v11, %v8278_v12 }
 0xbd0   : > { %8323 = vst [vmem:[%s360_s14 + $0x8] sm:$0xff] %v8319_v13 }
 0xbd1 PF: > { %s11186_s22 = sld [smem:[#allocation12_spill]]  ;;  %p21_p2 = scmp.ge.s32.totalorder %s9404_s23, 6  }
 0xbd2   : > { %s11187_s18 = smov %s9335_s19  ;;  %s11188_s19 = smov %s9339_s20 }
 0xbd3   : > { %s11190_s21 = smov %s9404_s23  ;;  %23 = sbr.rel (!%p21_p2) target bundleno = 10 (0xa), region = 117 }
 0xbd7   : > { %s11189_s20 = smov %s11186_s22 }
 0xbda   :  { %8345 = vsyncpa [#allocation3], 1 }
 0xbdb   :  { %8347 = vsyncpa [#allocation3 + $0x1], 1 }
 0xbdc   :  { %8348 = vsyncpa [#allocation5], 1 }
 0xbdd   :  { %8350 = vsyncpa [#allocation5 + $0x1], 1 }
 0xbde   :  { %8351 = vsyncpa [#allocation8], 1 }
 0xbdf   :  { %8353 = vsyncpa [#allocation8 + $0x1], 1 }

</bundles_post_ra>
